<compile_context>
chip_gen: v6e
topology: v6e:2x2x1
jax: 0.10.0
libtpu: 0.0.40
codegen_flags: <defaults>
</compile_context>

<pallas_src>
import functools

import numpy as np
import jax
import jax.numpy as jnp
from jax import lax
from jax.experimental import pallas as pl
from jax.experimental.pallas import tpu as pltpu


# ----------------------------------------------------------------------------
# Fused OCR kernel: one batch element per grid step, everything in VMEM.
# ----------------------------------------------------------------------------
def _ocr_kernel(feats_pad_ref, probs_ref,
                w_in_ref, sb_in_ref,
                wq1_ref, sb_q1_ref, wq2_ref, sb_q2_ref,
                wk1_ref, sb_k1_ref, wk2_ref, sb_k2_ref,
                wv_ref, sb_v_ref,
                wout_ref, sb_out_ref,
                wf_ctx_ref, wf_pix_ref, sb_f_ref,
                out_ref, *, H, W, scale):
    # feats_pad_ref: (1, H+2, W+2, Cin)   zero-padded input image
    # probs_ref    : (1, K, H*W)          class logits (spatial flattened)
    # w_in_ref     : (9, Cin, Cmid)       conv_in taps (kh,kw row-major)
    # sb_*_ref     : (2, C)               row0 = folded BN scale, row1 = shift
    # w*_ref       : (Cin_layer, Cout_layer)  1x1 conv weights, (in, out)
    # out_ref      : (1, H*W, Cmid)
    Cin = feats_pad_ref.shape[-1]
    Cmid = w_in_ref.shape[-1]
    Ck = wq1_ref.shape[-1]
    HW = H * W

    def bn_relu(x, sb):
        return jnp.maximum(x * sb[0:1, :] + sb[1:2, :], 0.0)

    # ---- conv_in: 3x3 pad=1 conv as 9 shift-matmuls (f32 MXU accumulate) ----
    acc = jnp.zeros((HW, Cmid), jnp.float32)
    for kh in range(3):
        for kw in range(3):
            patch = feats_pad_ref[0, kh:kh + H, kw:kw + W, :]
            acc = acc + jnp.dot(patch.reshape(HW, Cin), w_in_ref[kh * 3 + kw],
                                preferred_element_type=jnp.float32)
    pixel_rep = bn_relu(acc, sb_in_ref[...])                       # (HW, Cmid)

    # ---- soft object regions: softmax over spatial; ctx0 = probs @ pix ----
    p = probs_ref[0].astype(jnp.float32) * scale                   # (K, HW)
    p = p - jnp.max(p, axis=-1, keepdims=True)
    e = jnp.exp(p)
    probs_sm = e * pl.reciprocal(jnp.sum(e, axis=-1, keepdims=True), approx=False)
    ctx0 = jnp.dot(probs_sm, pixel_rep, preferred_element_type=jnp.float32)  # (K, Cmid)

    # ---- conv_q (pixel path), conv_k / conv_v (region path): 1x1 + BN + ReLU ----
    q = bn_relu(jnp.dot(pixel_rep, wq1_ref[...], preferred_element_type=jnp.float32),
                sb_q1_ref[...])
    q = bn_relu(jnp.dot(q, wq2_ref[...], preferred_element_type=jnp.float32),
                sb_q2_ref[...])                                    # (HW, Ck)
    k = bn_relu(jnp.dot(ctx0, wk1_ref[...], preferred_element_type=jnp.float32),
                sb_k1_ref[...])
    k = bn_relu(jnp.dot(k, wk2_ref[...], preferred_element_type=jnp.float32),
                sb_k2_ref[...])                                    # (K, Ck)
    v = bn_relu(jnp.dot(ctx0, wv_ref[...], preferred_element_type=jnp.float32),
                sb_v_ref[...])                                     # (K, Ck)

    # ---- attention: sim = sigmoid(q @ k^T / sqrt(Ck)); ctx = sim @ v ----
    sim = jnp.dot(q, k.T, preferred_element_type=jnp.float32) * float(Ck) ** -0.5
    sim = pl.reciprocal(1.0 + jnp.exp(-sim), approx=False)         # sigmoid
    ctx = jnp.dot(sim, v, preferred_element_type=jnp.float32)      # (HW, Ck)

    # ---- conv_out ----
    ctx = bn_relu(jnp.dot(ctx, wout_ref[...], preferred_element_type=jnp.float32),
                  sb_out_ref[...])                                 # (HW, Cmid)

    # ---- conv_fuse on concat([ctx, pixel_rep]) via split weights (no concat) ----
    fused = (jnp.dot(ctx, wf_ctx_ref[...], preferred_element_type=jnp.float32)
             + jnp.dot(pixel_rep, wf_pix_ref[...], preferred_element_type=jnp.float32))
    fused = bn_relu(fused, sb_f_ref[...])
    # Dropout2d is identity in eval mode.
    out_ref[...] = fused.reshape(1, HW, Cmid).astype(out_ref.dtype)


def ocr_forward(feats, probs, params, *, scale=1.0):
    """feats: (N, H, W, Cin) NHWC;  probs: (N, K, H, W).  Returns (N, H, W, Cmid)."""
    N, H, W, Cin = feats.shape
    K = probs.shape[1]
    Cmid = params["w_in_taps"].shape[-1]
    Ck = params["wq1"].shape[-1]
    HW = H * W

    # 3x3 halo pad (tiny: ~80 KiB/image, negligible vs. ~1.7 MiB of weights).
    feats_pad = jnp.pad(feats, ((0, 0), (1, 1), (1, 1), (0, 0)))
    probs_flat = probs.reshape(N, K, HW)

    kernel = functools.partial(_ocr_kernel, H=H, W=W, scale=float(scale))
    const = lambda n: (0, 0)

    out = pl.pallas_call(
        kernel,
        out_shape=jax.ShapeDtypeStruct((N, HW, Cmid), feats.dtype),
        grid=(N,),
        in_specs=[
            pl.BlockSpec((1, H + 2, W + 2, Cin), lambda n: (n, 0, 0, 0)),
            pl.BlockSpec((1, K, HW), lambda n: (n, 0, 0)),
            pl.BlockSpec((9, Cin, Cmid), lambda n: (0, 0, 0)),
            pl.BlockSpec((2, Cmid), const),
            pl.BlockSpec((Cmid, Ck), const),
            pl.BlockSpec((2, Ck), const),
            pl.BlockSpec((Ck, Ck), const),
            pl.BlockSpec((2, Ck), const),
            pl.BlockSpec((Cmid, Ck), const),
            pl.BlockSpec((2, Ck), const),
            pl.BlockSpec((Ck, Ck), const),
            pl.BlockSpec((2, Ck), const),
            pl.BlockSpec((Cmid, Ck), const),
            pl.BlockSpec((2, Ck), const),
            pl.BlockSpec((Ck, Cmid), const),
            pl.BlockSpec((2, Cmid), const),
            pl.BlockSpec((Cmid, Cmid), const),
            pl.BlockSpec((Cmid, Cmid), const),
            pl.BlockSpec((2, Cmid), const),
        ],
        out_specs=pl.BlockSpec((1, HW, Cmid), lambda n: (n, 0, 0)),
        compiler_params=pltpu.CompilerParams(
            dimension_semantics=("parallel",),
            vmem_limit_bytes=32 * 1024 * 1024),
    )(feats_pad, probs_flat,
      params["w_in_taps"], params["sb_in"],
      params["wq1"], params["sb_q1"], params["wq2"], params["sb_q2"],
      params["wk1"], params["sb_k1"], params["wk2"], params["sb_k2"],
      params["wv"], params["sb_v"],
      params["wout"], params["sb_out"],
      params["wf_ctx"], params["wf_pix"], params["sb_f"])
    return out.reshape(N, H, W, Cmid)


# ----------------------------------------------------------------------------
# Deterministic parameter construction (mirrors the PyTorch module's layers;
# BatchNorm running stats / affine folded into per-channel scale & shift).
# ----------------------------------------------------------------------------
def make_params(key, in_channels=64, key_channels=128, mid_channels=256, eps=1e-5):
    ks = iter(jax.random.split(key, 64))

    def kaiming(shape, fan_in):
        return jax.random.normal(next(ks), shape, jnp.float32) * np.sqrt(2.0 / fan_in)

    def bn_fold(c, conv_bias=None):
        gamma = 1.0 + 0.1 * jax.random.normal(next(ks), (c,), jnp.float32)
        beta = 0.1 * jax.random.normal(next(ks), (c,), jnp.float32)
        mean = 0.1 * jax.random.normal(next(ks), (c,), jnp.float32)
        var = 0.5 + jax.random.uniform(next(ks), (c,), jnp.float32)
        s = gamma / jnp.sqrt(var + eps)
        b = jnp.zeros((c,), jnp.float32) if conv_bias is None else conv_bias
        return jnp.stack([s, (b - mean) * s + beta], axis=0)      # (2, c)

    p = {}
    # conv_in: Conv2d(in, mid, 3, pad=1) with bias, + BN
    p["w_in"] = kaiming((3, 3, in_channels, mid_channels), in_channels * 9)   # HWIO
    p["w_in_taps"] = p["w_in"].reshape(9, in_channels, mid_channels)
    b_in = 0.1 * jax.random.normal(next(ks), (mid_channels,), jnp.float32)
    p["sb_in"] = bn_fold(mid_channels, b_in)
    # conv_q / conv_k: two 1x1 (bias=False) + BN + ReLU each
    p["wq1"] = kaiming((mid_channels, key_channels), mid_channels); p["sb_q1"] = bn_fold(key_channels)
    p["wq2"] = kaiming((key_channels, key_channels), key_channels); p["sb_q2"] = bn_fold(key_channels)
    p["wk1"] = kaiming((mid_channels, key_channels), mid_channels); p["sb_k1"] = bn_fold(key_channels)
    p["wk2"] = kaiming((key_channels, key_channels), key_channels); p["sb_k2"] = bn_fold(key_channels)
    # conv_v, conv_out
    p["wv"] = kaiming((mid_channels, key_channels), mid_channels); p["sb_v"] = bn_fold(key_channels)
    p["wout"] = kaiming((key_channels, mid_channels), key_channels); p["sb_out"] = bn_fold(mid_channels)
    # conv_fuse: 1x1 on concat([context, pixel_rep]); split into two halves
    wf = kaiming((2 * mid_channels, mid_channels), 2 * mid_channels)
    p["wf_ctx"] = wf[:mid_channels]
    p["wf_pix"] = wf[mid_channels:]
    p["sb_f"] = bn_fold(mid_channels)
    return p


# ----------------------------------------------------------------------------
# Pure-JAX reference (for correctness verification)
# ----------------------------------------------------------------------------
def _ref_forward(feats, probs, p, *, scale=1.0):
    prec = lax.Precision.HIGHEST
    N, H, W, _ = feats.shape
    K = probs.shape[1]
    Ck = p["wq1"].shape[-1]

    def bn_relu(x, sb):
        return jax.nn.relu(x * sb[0] + sb[1])

    def mm(a, w):
        return jnp.einsum("nic,co->nio", a, w, precision=prec)

    pix = lax.conv_general_dilated(
        feats, p["w_in"], (1, 1), [(1, 1), (1, 1)],
        dimension_numbers=("NHWC", "HWIO", "NHWC"), precision=prec)
    pix = bn_relu(pix, p["sb_in"])                                  # (N,H,W,Cmid)
    pix_flat = pix.reshape(N, H * W, -1)                            # (N,HW,Cmid)

    pr = jax.nn.softmax(scale * probs.reshape(N, K, H * W), axis=2)
    ctx0 = jnp.einsum("nkm,nmc->nkc", pr, pix_flat, precision=prec)  # (N,K,Cmid)

    q = bn_relu(mm(pix_flat, p["wq1"]), p["sb_q1"])
    q = bn_relu(mm(q, p["wq2"]), p["sb_q2"])                        # (N,HW,Ck)
    k = bn_relu(mm(ctx0, p["wk1"]), p["sb_k1"])
    k = bn_relu(mm(k, p["wk2"]), p["sb_k2"])                        # (N,K,Ck)
    v = bn_relu(mm(ctx0, p["wv"]), p["sb_v"])                       # (N,K,Ck)

    sim = jnp.einsum("nqc,nkc->nqk", q, k, precision=prec) * float(Ck) ** -0.5
    sim = 1.0 / (1.0 + jnp.exp(-sim))
    ctx = jnp.einsum("nqk,nkc->nqc", sim, v, precision=prec)        # (N,HW,Ck)

    ctx = bn_relu(mm(ctx, p["wout"]), p["sb_out"])                  # (N,HW,Cmid)
    fused = bn_relu(mm(ctx, p["wf_ctx"]) + mm(pix_flat, p["wf_pix"]), p["sb_f"])
    return fused.reshape(N, H, W, -1)


if __name__ == "__main__":
    key = jax.random.PRNGKey(0)
    kf, kp, kpar = jax.random.split(key, 3)

    N, H, W = 2, 16, 16
    Cin, Ck, Cmid, K = 64, 128, 256, 8          # NCHW-equivalent: feats=[2,64,16,16], probs=[2,8,16,16]
    feats = jax.random.normal(kf, (N, H, W, Cin), jnp.float32)      # NHWC
    probs = jax.random.normal(kp, (N, K, H, W), jnp.float32)        # class logits
    params = make_params(kpar, in_channels=Cin, key_channels=Ck, mid_channels=Cmid)

    out = ocr_forward(feats, probs, params, scale=1.0)
    jax.block_until_ready(out)

    ref = _ref_forward(feats, probs, params, scale=1.0)
    np.testing.assert_allclose(np.asarray(out), np.asarray(ref), rtol=2e-3, atol=2e-3)

    assert out.shape == (N, H, W, Cmid)
    print("KERNEL_OK")
</pallas_src>

<mosaic_0001>
module attributes {stable_mosaic.version = 11 : i64} {
  func.func @_ocr_kernel(%arg0: i32, %arg1: memref<1x18x18x64xf32, #tpu.memory_space<vmem>>, %arg2: memref<1x8x256xf32, #tpu.memory_space<vmem>>, %arg3: memref<9x64x256xf32, #tpu.memory_space<vmem>>, %arg4: memref<2x256xf32, #tpu.memory_space<vmem>>, %arg5: memref<256x128xf32, #tpu.memory_space<vmem>>, %arg6: memref<2x128xf32, #tpu.memory_space<vmem>>, %arg7: memref<128x128xf32, #tpu.memory_space<vmem>>, %arg8: memref<2x128xf32, #tpu.memory_space<vmem>>, %arg9: memref<256x128xf32, #tpu.memory_space<vmem>>, %arg10: memref<2x128xf32, #tpu.memory_space<vmem>>, %arg11: memref<128x128xf32, #tpu.memory_space<vmem>>, %arg12: memref<2x128xf32, #tpu.memory_space<vmem>>, %arg13: memref<256x128xf32, #tpu.memory_space<vmem>>, %arg14: memref<2x128xf32, #tpu.memory_space<vmem>>, %arg15: memref<128x256xf32, #tpu.memory_space<vmem>>, %arg16: memref<2x256xf32, #tpu.memory_space<vmem>>, %arg17: memref<256x256xf32, #tpu.memory_space<vmem>>, %arg18: memref<256x256xf32, #tpu.memory_space<vmem>>, %arg19: memref<2x256xf32, #tpu.memory_space<vmem>>, %arg20: memref<1x256x256xf32, #tpu.memory_space<vmem>>) attributes {dimension_semantics = [#tpu.dimension_semantics<parallel>], iteration_bounds = array<i64: 2>, scalar_prefetch = 0 : i64, scratch_operands = 0 : i64, tpu.core_type = #tpu.core_type<tc>, window_params = [{transform_indices = @transform_0, window_bounds = array<i64: 1, 18, 18, 64>}, {transform_indices = @transform_1, window_bounds = array<i64: 1, 8, 256>}, {pipeline_mode = #tpu.pipeline_mode<synchronous>, transform_indices = @transform_2, window_bounds = array<i64: 9, 64, 256>}, {pipeline_mode = #tpu.pipeline_mode<synchronous>, transform_indices = @transform_3, window_bounds = array<i64: 2, 256>}, {pipeline_mode = #tpu.pipeline_mode<synchronous>, transform_indices = @transform_4, window_bounds = array<i64: 256, 128>}, {pipeline_mode = #tpu.pipeline_mode<synchronous>, transform_indices = @transform_5, window_bounds = array<i64: 2, 128>}, {pipeline_mode = #tpu.pipeline_mode<synchronous>, transform_indices = @transform_6, window_bounds = array<i64: 128, 128>}, {pipeline_mode = #tpu.pipeline_mode<synchronous>, transform_indices = @transform_7, window_bounds = array<i64: 2, 128>}, {pipeline_mode = #tpu.pipeline_mode<synchronous>, transform_indices = @transform_8, window_bounds = array<i64: 256, 128>}, {pipeline_mode = #tpu.pipeline_mode<synchronous>, transform_indices = @transform_9, window_bounds = array<i64: 2, 128>}, {pipeline_mode = #tpu.pipeline_mode<synchronous>, transform_indices = @transform_10, window_bounds = array<i64: 128, 128>}, {pipeline_mode = #tpu.pipeline_mode<synchronous>, transform_indices = @transform_11, window_bounds = array<i64: 2, 128>}, {pipeline_mode = #tpu.pipeline_mode<synchronous>, transform_indices = @transform_12, window_bounds = array<i64: 256, 128>}, {pipeline_mode = #tpu.pipeline_mode<synchronous>, transform_indices = @transform_13, window_bounds = array<i64: 2, 128>}, {pipeline_mode = #tpu.pipeline_mode<synchronous>, transform_indices = @transform_14, window_bounds = array<i64: 128, 256>}, {pipeline_mode = #tpu.pipeline_mode<synchronous>, transform_indices = @transform_15, window_bounds = array<i64: 2, 256>}, {pipeline_mode = #tpu.pipeline_mode<synchronous>, transform_indices = @transform_16, window_bounds = array<i64: 256, 256>}, {pipeline_mode = #tpu.pipeline_mode<synchronous>, transform_indices = @transform_17, window_bounds = array<i64: 256, 256>}, {pipeline_mode = #tpu.pipeline_mode<synchronous>, transform_indices = @transform_18, window_bounds = array<i64: 2, 256>}, {transform_indices = @transform_19, window_bounds = array<i64: 1, 256, 256>}]} {
    %cst = arith.constant 0.000000e+00 : f32
    %0 = vector.broadcast %cst : f32 to vector<256x256xf32>
    %c0 = arith.constant 0 : index
    %c0_0 = arith.constant 0 : index
    %c0_1 = arith.constant 0 : index
    %c0_2 = arith.constant 0 : index
    %1 = vector.load %arg1[%c0, %c0_0, %c0_1, %c0_2] : memref<1x18x18x64xf32, #tpu.memory_space<vmem>>, vector<1x16x16x64xf32>
    %2 = vector.shape_cast %1 : vector<1x16x16x64xf32> to vector<16x16x64xf32>
    %3 = vector.shape_cast %2 : vector<16x16x64xf32> to vector<256x64xf32>
    %c0_3 = arith.constant 0 : index
    %c0_4 = arith.constant 0 : index
    %c0_5 = arith.constant 0 : index
    %4 = vector.load %arg3[%c0_3, %c0_4, %c0_5] : memref<9x64x256xf32, #tpu.memory_space<vmem>>, vector<1x64x256xf32>
    %5 = vector.shape_cast %4 : vector<1x64x256xf32> to vector<64x256xf32>
    %cst_6 = arith.constant dense<0.000000e+00> : vector<256x256xf32>
    %6 = tpu.matmul %3, %5, %cst_6 {dimension_numbers = #tpu.dot_dimension_numbers<[1], [0], [0], [1], [0, 0, 1, 1], [], []>} : vector<256x64xf32>, vector<64x256xf32>, vector<256x256xf32> -> vector<256x256xf32>
    %7 = arith.addf %0, %6 : vector<256x256xf32>
    %c0_7 = arith.constant 0 : index
    %c0_8 = arith.constant 0 : index
    %c1 = arith.constant 1 : index
    %c0_9 = arith.constant 0 : index
    %8 = vector.load %arg1[%c0_7, %c0_8, %c1, %c0_9] : memref<1x18x18x64xf32, #tpu.memory_space<vmem>>, vector<1x16x16x64xf32>
    %9 = vector.shape_cast %8 : vector<1x16x16x64xf32> to vector<16x16x64xf32>
    %10 = vector.shape_cast %9 : vector<16x16x64xf32> to vector<256x64xf32>
    %c1_10 = arith.constant 1 : index
    %c0_11 = arith.constant 0 : index
    %c0_12 = arith.constant 0 : index
    %11 = vector.load %arg3[%c1_10, %c0_11, %c0_12] : memref<9x64x256xf32, #tpu.memory_space<vmem>>, vector<1x64x256xf32>
    %12 = vector.shape_cast %11 : vector<1x64x256xf32> to vector<64x256xf32>
    %cst_13 = arith.constant dense<0.000000e+00> : vector<256x256xf32>
    %13 = tpu.matmul %10, %12, %cst_13 {dimension_numbers = #tpu.dot_dimension_numbers<[1], [0], [0], [1], [0, 0, 1, 1], [], []>} : vector<256x64xf32>, vector<64x256xf32>, vector<256x256xf32> -> vector<256x256xf32>
    %14 = arith.addf %7, %13 : vector<256x256xf32>
    %c0_14 = arith.constant 0 : index
    %c0_15 = arith.constant 0 : index
    %c2 = arith.constant 2 : index
    %c0_16 = arith.constant 0 : index
    %15 = vector.load %arg1[%c0_14, %c0_15, %c2, %c0_16] : memref<1x18x18x64xf32, #tpu.memory_space<vmem>>, vector<1x16x16x64xf32>
    %16 = vector.shape_cast %15 : vector<1x16x16x64xf32> to vector<16x16x64xf32>
    %17 = vector.shape_cast %16 : vector<16x16x64xf32> to vector<256x64xf32>
    %c2_17 = arith.constant 2 : index
    %c0_18 = arith.constant 0 : index
    %c0_19 = arith.constant 0 : index
    %18 = vector.load %arg3[%c2_17, %c0_18, %c0_19] : memref<9x64x256xf32, #tpu.memory_space<vmem>>, vector<1x64x256xf32>
    %19 = vector.shape_cast %18 : vector<1x64x256xf32> to vector<64x256xf32>
    %cst_20 = arith.constant dense<0.000000e+00> : vector<256x256xf32>
    %20 = tpu.matmul %17, %19, %cst_20 {dimension_numbers = #tpu.dot_dimension_numbers<[1], [0], [0], [1], [0, 0, 1, 1], [], []>} : vector<256x64xf32>, vector<64x256xf32>, vector<256x256xf32> -> vector<256x256xf32>
    %21 = arith.addf %14, %20 : vector<256x256xf32>
    %c0_21 = arith.constant 0 : index
    %c1_22 = arith.constant 1 : index
    %c0_23 = arith.constant 0 : index
    %c0_24 = arith.constant 0 : index
    %22 = vector.load %arg1[%c0_21, %c1_22, %c0_23, %c0_24] : memref<1x18x18x64xf32, #tpu.memory_space<vmem>>, vector<1x16x16x64xf32>
    %23 = vector.shape_cast %22 : vector<1x16x16x64xf32> to vector<16x16x64xf32>
    %24 = vector.shape_cast %23 : vector<16x16x64xf32> to vector<256x64xf32>
    %c3 = arith.constant 3 : index
    %c0_25 = arith.constant 0 : index
    %c0_26 = arith.constant 0 : index
    %25 = vector.load %arg3[%c3, %c0_25, %c0_26] : memref<9x64x256xf32, #tpu.memory_space<vmem>>, vector<1x64x256xf32>
    %26 = vector.shape_cast %25 : vector<1x64x256xf32> to vector<64x256xf32>
    %cst_27 = arith.constant dense<0.000000e+00> : vector<256x256xf32>
    %27 = tpu.matmul %24, %26, %cst_27 {dimension_numbers = #tpu.dot_dimension_numbers<[1], [0], [0], [1], [0, 0, 1, 1], [], []>} : vector<256x64xf32>, vector<64x256xf32>, vector<256x256xf32> -> vector<256x256xf32>
    %28 = arith.addf %21, %27 : vector<256x256xf32>
    %c0_28 = arith.constant 0 : index
    %c1_29 = arith.constant 1 : index
    %c1_30 = arith.constant 1 : index
    %c0_31 = arith.constant 0 : index
    %29 = vector.load %arg1[%c0_28, %c1_29, %c1_30, %c0_31] : memref<1x18x18x64xf32, #tpu.memory_space<vmem>>, vector<1x16x16x64xf32>
    %30 = vector.shape_cast %29 : vector<1x16x16x64xf32> to vector<16x16x64xf32>
    %31 = vector.shape_cast %30 : vector<16x16x64xf32> to vector<256x64xf32>
    %c4 = arith.constant 4 : index
    %c0_32 = arith.constant 0 : index
    %c0_33 = arith.constant 0 : index
    %32 = vector.load %arg3[%c4, %c0_32, %c0_33] : memref<9x64x256xf32, #tpu.memory_space<vmem>>, vector<1x64x256xf32>
    %33 = vector.shape_cast %32 : vector<1x64x256xf32> to vector<64x256xf32>
    %cst_34 = arith.constant dense<0.000000e+00> : vector<256x256xf32>
    %34 = tpu.matmul %31, %33, %cst_34 {dimension_numbers = #tpu.dot_dimension_numbers<[1], [0], [0], [1], [0, 0, 1, 1], [], []>} : vector<256x64xf32>, vector<64x256xf32>, vector<256x256xf32> -> vector<256x256xf32>
    %35 = arith.addf %28, %34 : vector<256x256xf32>
    %c0_35 = arith.constant 0 : index
    %c1_36 = arith.constant 1 : index
    %c2_37 = arith.constant 2 : index
    %c0_38 = arith.constant 0 : index
    %36 = vector.load %arg1[%c0_35, %c1_36, %c2_37, %c0_38] : memref<1x18x18x64xf32, #tpu.memory_space<vmem>>, vector<1x16x16x64xf32>
    %37 = vector.shape_cast %36 : vector<1x16x16x64xf32> to vector<16x16x64xf32>
    %38 = vector.shape_cast %37 : vector<16x16x64xf32> to vector<256x64xf32>
    %c5 = arith.constant 5 : index
    %c0_39 = arith.constant 0 : index
    %c0_40 = arith.constant 0 : index
    %39 = vector.load %arg3[%c5, %c0_39, %c0_40] : memref<9x64x256xf32, #tpu.memory_space<vmem>>, vector<1x64x256xf32>
    %40 = vector.shape_cast %39 : vector<1x64x256xf32> to vector<64x256xf32>
    %cst_41 = arith.constant dense<0.000000e+00> : vector<256x256xf32>
    %41 = tpu.matmul %38, %40, %cst_41 {dimension_numbers = #tpu.dot_dimension_numbers<[1], [0], [0], [1], [0, 0, 1, 1], [], []>} : vector<256x64xf32>, vector<64x256xf32>, vector<256x256xf32> -> vector<256x256xf32>
    %42 = arith.addf %35, %41 : vector<256x256xf32>
    %c0_42 = arith.constant 0 : index
    %c2_43 = arith.constant 2 : index
    %c0_44 = arith.constant 0 : index
    %c0_45 = arith.constant 0 : index
    %43 = vector.load %arg1[%c0_42, %c2_43, %c0_44, %c0_45] : memref<1x18x18x64xf32, #tpu.memory_space<vmem>>, vector<1x16x16x64xf32>
    %44 = vector.shape_cast %43 : vector<1x16x16x64xf32> to vector<16x16x64xf32>
    %45 = vector.shape_cast %44 : vector<16x16x64xf32> to vector<256x64xf32>
    %c6 = arith.constant 6 : index
    %c0_46 = arith.constant 0 : index
    %c0_47 = arith.constant 0 : index
    %46 = vector.load %arg3[%c6, %c0_46, %c0_47] : memref<9x64x256xf32, #tpu.memory_space<vmem>>, vector<1x64x256xf32>
    %47 = vector.shape_cast %46 : vector<1x64x256xf32> to vector<64x256xf32>
    %cst_48 = arith.constant dense<0.000000e+00> : vector<256x256xf32>
    %48 = tpu.matmul %45, %47, %cst_48 {dimension_numbers = #tpu.dot_dimension_numbers<[1], [0], [0], [1], [0, 0, 1, 1], [], []>} : vector<256x64xf32>, vector<64x256xf32>, vector<256x256xf32> -> vector<256x256xf32>
    %49 = arith.addf %42, %48 : vector<256x256xf32>
    %c0_49 = arith.constant 0 : index
    %c2_50 = arith.constant 2 : index
    %c1_51 = arith.constant 1 : index
    %c0_52 = arith.constant 0 : index
    %50 = vector.load %arg1[%c0_49, %c2_50, %c1_51, %c0_52] : memref<1x18x18x64xf32, #tpu.memory_space<vmem>>, vector<1x16x16x64xf32>
    %51 = vector.shape_cast %50 : vector<1x16x16x64xf32> to vector<16x16x64xf32>
    %52 = vector.shape_cast %51 : vector<16x16x64xf32> to vector<256x64xf32>
    %c7 = arith.constant 7 : index
    %c0_53 = arith.constant 0 : index
    %c0_54 = arith.constant 0 : index
    %53 = vector.load %arg3[%c7, %c0_53, %c0_54] : memref<9x64x256xf32, #tpu.memory_space<vmem>>, vector<1x64x256xf32>
    %54 = vector.shape_cast %53 : vector<1x64x256xf32> to vector<64x256xf32>
    %cst_55 = arith.constant dense<0.000000e+00> : vector<256x256xf32>
    %55 = tpu.matmul %52, %54, %cst_55 {dimension_numbers = #tpu.dot_dimension_numbers<[1], [0], [0], [1], [0, 0, 1, 1], [], []>} : vector<256x64xf32>, vector<64x256xf32>, vector<256x256xf32> -> vector<256x256xf32>
    %56 = arith.addf %49, %55 : vector<256x256xf32>
    %c0_56 = arith.constant 0 : index
    %c2_57 = arith.constant 2 : index
    %c2_58 = arith.constant 2 : index
    %c0_59 = arith.constant 0 : index
    %57 = vector.load %arg1[%c0_56, %c2_57, %c2_58, %c0_59] : memref<1x18x18x64xf32, #tpu.memory_space<vmem>>, vector<1x16x16x64xf32>
    %58 = vector.shape_cast %57 : vector<1x16x16x64xf32> to vector<16x16x64xf32>
    %59 = vector.shape_cast %58 : vector<16x16x64xf32> to vector<256x64xf32>
    %c8 = arith.constant 8 : index
    %c0_60 = arith.constant 0 : index
    %c0_61 = arith.constant 0 : index
    %60 = vector.load %arg3[%c8, %c0_60, %c0_61] : memref<9x64x256xf32, #tpu.memory_space<vmem>>, vector<1x64x256xf32>
    %61 = vector.shape_cast %60 : vector<1x64x256xf32> to vector<64x256xf32>
    %cst_62 = arith.constant dense<0.000000e+00> : vector<256x256xf32>
    %62 = tpu.matmul %59, %61, %cst_62 {dimension_numbers = #tpu.dot_dimension_numbers<[1], [0], [0], [1], [0, 0, 1, 1], [], []>} : vector<256x64xf32>, vector<64x256xf32>, vector<256x256xf32> -> vector<256x256xf32>
    %63 = arith.addf %56, %62 : vector<256x256xf32>
    %c0_63 = arith.constant 0 : index
    %c0_64 = arith.constant 0 : index
    %64 = vector.load %arg4[%c0_63, %c0_64] : memref<2x256xf32, #tpu.memory_space<vmem>>, vector<2x256xf32>
    %65 = vector.extract_strided_slice %64 {offsets = [0, 0], sizes = [1, 256], strides = [1, 1]} : vector<2x256xf32> to vector<1x256xf32>
    %66 = vector.broadcast %65 : vector<1x256xf32> to vector<256x256xf32>
    %67 = arith.mulf %63, %66 : vector<256x256xf32>
    %68 = vector.extract_strided_slice %64 {offsets = [1, 0], sizes = [1, 256], strides = [1, 1]} : vector<2x256xf32> to vector<1x256xf32>
    %69 = vector.broadcast %68 : vector<1x256xf32> to vector<256x256xf32>
    %70 = arith.addf %67, %69 : vector<256x256xf32>
    %cst_65 = arith.constant 0.000000e+00 : f32
    %71 = vector.broadcast %cst_65 : f32 to vector<256x256xf32>
    %72 = arith.maximumf %70, %71 : vector<256x256xf32>
    %c0_66 = arith.constant 0 : index
    %c0_67 = arith.constant 0 : index
    %c0_68 = arith.constant 0 : index
    %73 = vector.load %arg2[%c0_66, %c0_67, %c0_68] : memref<1x8x256xf32, #tpu.memory_space<vmem>>, vector<1x8x256xf32>
    %74 = vector.shape_cast %73 : vector<1x8x256xf32> to vector<8x256xf32>
    %cst_69 = arith.constant 1.000000e+00 : f32
    %75 = vector.broadcast %cst_69 : f32 to vector<8x256xf32>
    %76 = arith.mulf %74, %75 : vector<8x256xf32>
    %cst_70 = arith.constant dense<0xFF800000> : vector<8xf32>
    %77 = vector.multi_reduction <maximumf>, %76, %cst_70 [1] : vector<8x256xf32> to vector<8xf32>
    %78 = vector.shape_cast %77 : vector<8xf32> to vector<8x1xf32>
    %79 = vector.broadcast %78 : vector<8x1xf32> to vector<8x256xf32>
    %80 = arith.subf %76, %79 : vector<8x256xf32>
    %81 = math.exp %80 : vector<8x256xf32>
    %cst_71 = arith.constant dense<0.000000e+00> : vector<8xf32>
    %82 = vector.multi_reduction <add>, %81, %cst_71 [1] : vector<8x256xf32> to vector<8xf32>
    %83 = vector.shape_cast %82 : vector<8xf32> to vector<8x1xf32>
    %84 = tpu.reciprocal %83 : vector<8x1xf32> -> vector<8x1xf32>
    %85 = vector.broadcast %84 : vector<8x1xf32> to vector<8x256xf32>
    %86 = arith.mulf %81, %85 : vector<8x256xf32>
    %cst_72 = arith.constant dense<0.000000e+00> : vector<8x256xf32>
    %87 = tpu.matmul %86, %72, %cst_72 {dimension_numbers = #tpu.dot_dimension_numbers<[1], [0], [0], [1], [0, 0, 1, 1], [], []>} : vector<8x256xf32>, vector<256x256xf32>, vector<8x256xf32> -> vector<8x256xf32>
    %c0_73 = arith.constant 0 : index
    %c0_74 = arith.constant 0 : index
    %88 = vector.load %arg5[%c0_73, %c0_74] : memref<256x128xf32, #tpu.memory_space<vmem>>, vector<256x128xf32>
    %cst_75 = arith.constant dense<0.000000e+00> : vector<256x128xf32>
    %89 = tpu.matmul %72, %88, %cst_75 {dimension_numbers = #tpu.dot_dimension_numbers<[1], [0], [0], [1], [0, 0, 1, 1], [], []>} : vector<256x256xf32>, vector<256x128xf32>, vector<256x128xf32> -> vector<256x128xf32>
    %c0_76 = arith.constant 0 : index
    %c0_77 = arith.constant 0 : index
    %90 = vector.load %arg6[%c0_76, %c0_77] : memref<2x128xf32, #tpu.memory_space<vmem>>, vector<2x128xf32>
    %91 = vector.extract_strided_slice %90 {offsets = [0, 0], sizes = [1, 128], strides = [1, 1]} : vector<2x128xf32> to vector<1x128xf32>
    %92 = vector.broadcast %91 : vector<1x128xf32> to vector<256x128xf32>
    %93 = arith.mulf %89, %92 : vector<256x128xf32>
    %94 = vector.extract_strided_slice %90 {offsets = [1, 0], sizes = [1, 128], strides = [1, 1]} : vector<2x128xf32> to vector<1x128xf32>
    %95 = vector.broadcast %94 : vector<1x128xf32> to vector<256x128xf32>
    %96 = arith.addf %93, %95 : vector<256x128xf32>
    %cst_78 = arith.constant 0.000000e+00 : f32
    %97 = vector.broadcast %cst_78 : f32 to vector<256x128xf32>
    %98 = arith.maximumf %96, %97 : vector<256x128xf32>
    %c0_79 = arith.constant 0 : index
    %c0_80 = arith.constant 0 : index
    %99 = vector.load %arg7[%c0_79, %c0_80] : memref<128x128xf32, #tpu.memory_space<vmem>>, vector<128x128xf32>
    %cst_81 = arith.constant dense<0.000000e+00> : vector<256x128xf32>
    %100 = tpu.matmul %98, %99, %cst_81 {dimension_numbers = #tpu.dot_dimension_numbers<[1], [0], [0], [1], [0, 0, 1, 1], [], []>} : vector<256x128xf32>, vector<128x128xf32>, vector<256x128xf32> -> vector<256x128xf32>
    %c0_82 = arith.constant 0 : index
    %c0_83 = arith.constant 0 : index
    %101 = vector.load %arg8[%c0_82, %c0_83] : memref<2x128xf32, #tpu.memory_space<vmem>>, vector<2x128xf32>
    %102 = vector.extract_strided_slice %101 {offsets = [0, 0], sizes = [1, 128], strides = [1, 1]} : vector<2x128xf32> to vector<1x128xf32>
    %103 = vector.broadcast %102 : vector<1x128xf32> to vector<256x128xf32>
    %104 = arith.mulf %100, %103 : vector<256x128xf32>
    %105 = vector.extract_strided_slice %101 {offsets = [1, 0], sizes = [1, 128], strides = [1, 1]} : vector<2x128xf32> to vector<1x128xf32>
    %106 = vector.broadcast %105 : vector<1x128xf32> to vector<256x128xf32>
    %107 = arith.addf %104, %106 : vector<256x128xf32>
    %cst_84 = arith.constant 0.000000e+00 : f32
    %108 = vector.broadcast %cst_84 : f32 to vector<256x128xf32>
    %109 = arith.maximumf %107, %108 : vector<256x128xf32>
    %c0_85 = arith.constant 0 : index
    %c0_86 = arith.constant 0 : index
    %110 = vector.load %arg9[%c0_85, %c0_86] : memref<256x128xf32, #tpu.memory_space<vmem>>, vector<256x128xf32>
    %cst_87 = arith.constant dense<0.000000e+00> : vector<8x128xf32>
    %111 = tpu.matmul %87, %110, %cst_87 {dimension_numbers = #tpu.dot_dimension_numbers<[1], [0], [0], [1], [0, 0, 1, 1], [], []>} : vector<8x256xf32>, vector<256x128xf32>, vector<8x128xf32> -> vector<8x128xf32>
    %c0_88 = arith.constant 0 : index
    %c0_89 = arith.constant 0 : index
    %112 = vector.load %arg10[%c0_88, %c0_89] : memref<2x128xf32, #tpu.memory_space<vmem>>, vector<2x128xf32>
    %113 = vector.extract_strided_slice %112 {offsets = [0, 0], sizes = [1, 128], strides = [1, 1]} : vector<2x128xf32> to vector<1x128xf32>
    %114 = vector.broadcast %113 : vector<1x128xf32> to vector<8x128xf32>
    %115 = arith.mulf %111, %114 : vector<8x128xf32>
    %116 = vector.extract_strided_slice %112 {offsets = [1, 0], sizes = [1, 128], strides = [1, 1]} : vector<2x128xf32> to vector<1x128xf32>
    %117 = vector.broadcast %116 : vector<1x128xf32> to vector<8x128xf32>
    %118 = arith.addf %115, %117 : vector<8x128xf32>
    %cst_90 = arith.constant 0.000000e+00 : f32
    %119 = vector.broadcast %cst_90 : f32 to vector<8x128xf32>
    %120 = arith.maximumf %118, %119 : vector<8x128xf32>
    %c0_91 = arith.constant 0 : index
    %c0_92 = arith.constant 0 : index
    %121 = vector.load %arg11[%c0_91, %c0_92] : memref<128x128xf32, #tpu.memory_space<vmem>>, vector<128x128xf32>
    %cst_93 = arith.constant dense<0.000000e+00> : vector<8x128xf32>
    %122 = tpu.matmul %120, %121, %cst_93 {dimension_numbers = #tpu.dot_dimension_numbers<[1], [0], [0], [1], [0, 0, 1, 1], [], []>} : vector<8x128xf32>, vector<128x128xf32>, vector<8x128xf32> -> vector<8x128xf32>
    %c0_94 = arith.constant 0 : index
    %c0_95 = arith.constant 0 : index
    %123 = vector.load %arg12[%c0_94, %c0_95] : memref<2x128xf32, #tpu.memory_space<vmem>>, vector<2x128xf32>
    %124 = vector.extract_strided_slice %123 {offsets = [0, 0], sizes = [1, 128], strides = [1, 1]} : vector<2x128xf32> to vector<1x128xf32>
    %125 = vector.broadcast %124 : vector<1x128xf32> to vector<8x128xf32>
    %126 = arith.mulf %122, %125 : vector<8x128xf32>
    %127 = vector.extract_strided_slice %123 {offsets = [1, 0], sizes = [1, 128], strides = [1, 1]} : vector<2x128xf32> to vector<1x128xf32>
    %128 = vector.broadcast %127 : vector<1x128xf32> to vector<8x128xf32>
    %129 = arith.addf %126, %128 : vector<8x128xf32>
    %cst_96 = arith.constant 0.000000e+00 : f32
    %130 = vector.broadcast %cst_96 : f32 to vector<8x128xf32>
    %131 = arith.maximumf %129, %130 : vector<8x128xf32>
    %c0_97 = arith.constant 0 : index
    %c0_98 = arith.constant 0 : index
    %132 = vector.load %arg13[%c0_97, %c0_98] : memref<256x128xf32, #tpu.memory_space<vmem>>, vector<256x128xf32>
    %cst_99 = arith.constant dense<0.000000e+00> : vector<8x128xf32>
    %133 = tpu.matmul %87, %132, %cst_99 {dimension_numbers = #tpu.dot_dimension_numbers<[1], [0], [0], [1], [0, 0, 1, 1], [], []>} : vector<8x256xf32>, vector<256x128xf32>, vector<8x128xf32> -> vector<8x128xf32>
    %c0_100 = arith.constant 0 : index
    %c0_101 = arith.constant 0 : index
    %134 = vector.load %arg14[%c0_100, %c0_101] : memref<2x128xf32, #tpu.memory_space<vmem>>, vector<2x128xf32>
    %135 = vector.extract_strided_slice %134 {offsets = [0, 0], sizes = [1, 128], strides = [1, 1]} : vector<2x128xf32> to vector<1x128xf32>
    %136 = vector.broadcast %135 : vector<1x128xf32> to vector<8x128xf32>
    %137 = arith.mulf %133, %136 : vector<8x128xf32>
    %138 = vector.extract_strided_slice %134 {offsets = [1, 0], sizes = [1, 128], strides = [1, 1]} : vector<2x128xf32> to vector<1x128xf32>
    %139 = vector.broadcast %138 : vector<1x128xf32> to vector<8x128xf32>
    %140 = arith.addf %137, %139 : vector<8x128xf32>
    %cst_102 = arith.constant 0.000000e+00 : f32
    %141 = vector.broadcast %cst_102 : f32 to vector<8x128xf32>
    %142 = arith.maximumf %140, %141 : vector<8x128xf32>
    %143 = tpu.transpose %131, [1, 0] : vector<8x128xf32> -> vector<128x8xf32>
    %cst_103 = arith.constant dense<0.000000e+00> : vector<256x8xf32>
    %144 = tpu.matmul %109, %143, %cst_103 {dimension_numbers = #tpu.dot_dimension_numbers<[1], [0], [0], [1], [0, 0, 1, 1], [], []>} : vector<256x128xf32>, vector<128x8xf32>, vector<256x8xf32> -> vector<256x8xf32>
    %cst_104 = arith.constant 0.0883883461 : f32
    %145 = vector.broadcast %cst_104 : f32 to vector<256x8xf32>
    %146 = arith.mulf %144, %145 : vector<256x8xf32>
    %cst_105 = arith.constant 0.000000e+00 : f32
    %147 = vector.broadcast %cst_105 : f32 to vector<256x8xf32>
    %148 = arith.subf %147, %146 : vector<256x8xf32>
    %149 = math.exp %148 : vector<256x8xf32>
    %cst_106 = arith.constant 1.000000e+00 : f32
    %150 = vector.broadcast %cst_106 : f32 to vector<256x8xf32>
    %151 = arith.addf %150, %149 : vector<256x8xf32>
    %152 = tpu.reciprocal %151 : vector<256x8xf32> -> vector<256x8xf32>
    %cst_107 = arith.constant dense<0.000000e+00> : vector<256x128xf32>
    %153 = tpu.matmul %152, %142, %cst_107 {dimension_numbers = #tpu.dot_dimension_numbers<[1], [0], [0], [1], [0, 0, 1, 1], [], []>} : vector<256x8xf32>, vector<8x128xf32>, vector<256x128xf32> -> vector<256x128xf32>
    %c0_108 = arith.constant 0 : index
    %c0_109 = arith.constant 0 : index
    %154 = vector.load %arg15[%c0_108, %c0_109] : memref<128x256xf32, #tpu.memory_space<vmem>>, vector<128x256xf32>
    %cst_110 = arith.constant dense<0.000000e+00> : vector<256x256xf32>
    %155 = tpu.matmul %153, %154, %cst_110 {dimension_numbers = #tpu.dot_dimension_numbers<[1], [0], [0], [1], [0, 0, 1, 1], [], []>} : vector<256x128xf32>, vector<128x256xf32>, vector<256x256xf32> -> vector<256x256xf32>
    %c0_111 = arith.constant 0 : index
    %c0_112 = arith.constant 0 : index
    %156 = vector.load %arg16[%c0_111, %c0_112] : memref<2x256xf32, #tpu.memory_space<vmem>>, vector<2x256xf32>
    %157 = vector.extract_strided_slice %156 {offsets = [0, 0], sizes = [1, 256], strides = [1, 1]} : vector<2x256xf32> to vector<1x256xf32>
    %158 = vector.broadcast %157 : vector<1x256xf32> to vector<256x256xf32>
    %159 = arith.mulf %155, %158 : vector<256x256xf32>
    %160 = vector.extract_strided_slice %156 {offsets = [1, 0], sizes = [1, 256], strides = [1, 1]} : vector<2x256xf32> to vector<1x256xf32>
    %161 = vector.broadcast %160 : vector<1x256xf32> to vector<256x256xf32>
    %162 = arith.addf %159, %161 : vector<256x256xf32>
    %cst_113 = arith.constant 0.000000e+00 : f32
    %163 = vector.broadcast %cst_113 : f32 to vector<256x256xf32>
    %164 = arith.maximumf %162, %163 : vector<256x256xf32>
    %c0_114 = arith.constant 0 : index
    %c0_115 = arith.constant 0 : index
    %165 = vector.load %arg17[%c0_114, %c0_115] : memref<256x256xf32, #tpu.memory_space<vmem>>, vector<256x256xf32>
    %cst_116 = arith.constant dense<0.000000e+00> : vector<256x256xf32>
    %166 = tpu.matmul %164, %165, %cst_116 {dimension_numbers = #tpu.dot_dimension_numbers<[1], [0], [0], [1], [0, 0, 1, 1], [], []>} : vector<256x256xf32>, vector<256x256xf32>, vector<256x256xf32> -> vector<256x256xf32>
    %c0_117 = arith.constant 0 : index
    %c0_118 = arith.constant 0 : index
    %167 = vector.load %arg18[%c0_117, %c0_118] : memref<256x256xf32, #tpu.memory_space<vmem>>, vector<256x256xf32>
    %cst_119 = arith.constant dense<0.000000e+00> : vector<256x256xf32>
    %168 = tpu.matmul %72, %167, %cst_119 {dimension_numbers = #tpu.dot_dimension_numbers<[1], [0], [0], [1], [0, 0, 1, 1], [], []>} : vector<256x256xf32>, vector<256x256xf32>, vector<256x256xf32> -> vector<256x256xf32>
    %169 = arith.addf %166, %168 : vector<256x256xf32>
    %c0_120 = arith.constant 0 : index
    %c0_121 = arith.constant 0 : index
    %170 = vector.load %arg19[%c0_120, %c0_121] : memref<2x256xf32, #tpu.memory_space<vmem>>, vector<2x256xf32>
    %171 = vector.extract_strided_slice %170 {offsets = [0, 0], sizes = [1, 256], strides = [1, 1]} : vector<2x256xf32> to vector<1x256xf32>
    %172 = vector.broadcast %171 : vector<1x256xf32> to vector<256x256xf32>
    %173 = arith.mulf %169, %172 : vector<256x256xf32>
    %174 = vector.extract_strided_slice %170 {offsets = [1, 0], sizes = [1, 256], strides = [1, 1]} : vector<2x256xf32> to vector<1x256xf32>
    %175 = vector.broadcast %174 : vector<1x256xf32> to vector<256x256xf32>
    %176 = arith.addf %173, %175 : vector<256x256xf32>
    %cst_122 = arith.constant 0.000000e+00 : f32
    %177 = vector.broadcast %cst_122 : f32 to vector<256x256xf32>
    %178 = arith.maximumf %176, %177 : vector<256x256xf32>
    %179 = vector.shape_cast %178 : vector<256x256xf32> to vector<1x256x256xf32>
    %c0_123 = arith.constant 0 : index
    %c0_124 = arith.constant 0 : index
    %c0_125 = arith.constant 0 : index
    %180 = vector.load %arg20[%c0_123, %c0_124, %c0_125] : memref<1x256x256xf32, #tpu.memory_space<vmem>>, vector<1x256x256xf32>
    tpu.vector_store %arg20[%c0_123, %c0_124, %c0_125], %179 {strides = array<i32>} : memref<1x256x256xf32, #tpu.memory_space<vmem>>, vector<1x256x256xf32>,
    return
  }
  func.func @transform_0(%arg0: i32) -> (i32, i32, i32, i32) {
    %c0_i32 = arith.constant 0 : i32
    %c0_i32_0 = arith.constant 0 : i32
    %c0_i32_1 = arith.constant 0 : i32
    %c0_i32_2 = arith.constant 0 : i32
    return %arg0, %c0_i32, %c0_i32_0, %c0_i32_1 : i32, i32, i32, i32
  }
  func.func @transform_1(%arg0: i32) -> (i32, i32, i32) {
    %c0_i32 = arith.constant 0 : i32
    %c0_i32_0 = arith.constant 0 : i32
    %c0_i32_1 = arith.constant 0 : i32
    return %arg0, %c0_i32, %c0_i32_0 : i32, i32, i32
  }
  func.func @transform_2(%arg0: i32) -> (i32, i32, i32) {
    %c0_i32 = arith.constant 0 : i32
    %c0_i32_0 = arith.constant 0 : i32
    %c0_i32_1 = arith.constant 0 : i32
    %c0_i32_2 = arith.constant 0 : i32
    return %c0_i32, %c0_i32_0, %c0_i32_1 : i32, i32, i32
  }
  func.func @transform_3(%arg0: i32) -> (i32, i32) {
    %c0_i32 = arith.constant 0 : i32
    %c0_i32_0 = arith.constant 0 : i32
    %c0_i32_1 = arith.constant 0 : i32
    return %c0_i32, %c0_i32_0 : i32, i32
  }
  func.func @transform_4(%arg0: i32) -> (i32, i32) {
    %c0_i32 = arith.constant 0 : i32
    %c0_i32_0 = arith.constant 0 : i32
    %c0_i32_1 = arith.constant 0 : i32
    return %c0_i32, %c0_i32_0 : i32, i32
  }
  func.func @transform_5(%arg0: i32) -> (i32, i32) {
    %c0_i32 = arith.constant 0 : i32
    %c0_i32_0 = arith.constant 0 : i32
    %c0_i32_1 = arith.constant 0 : i32
    return %c0_i32, %c0_i32_0 : i32, i32
  }
  func.func @transform_6(%arg0: i32) -> (i32, i32) {
    %c0_i32 = arith.constant 0 : i32
    %c0_i32_0 = arith.constant 0 : i32
    %c0_i32_1 = arith.constant 0 : i32
    return %c0_i32, %c0_i32_0 : i32, i32
  }
  func.func @transform_7(%arg0: i32) -> (i32, i32) {
    %c0_i32 = arith.constant 0 : i32
    %c0_i32_0 = arith.constant 0 : i32
    %c0_i32_1 = arith.constant 0 : i32
    return %c0_i32, %c0_i32_0 : i32, i32
  }
  func.func @transform_8(%arg0: i32) -> (i32, i32) {
    %c0_i32 = arith.constant 0 : i32
    %c0_i32_0 = arith.constant 0 : i32
    %c0_i32_1 = arith.constant 0 : i32
    return %c0_i32, %c0_i32_0 : i32, i32
  }
  func.func @transform_9(%arg0: i32) -> (i32, i32) {
    %c0_i32 = arith.constant 0 : i32
    %c0_i32_0 = arith.constant 0 : i32
    %c0_i32_1 = arith.constant 0 : i32
    return %c0_i32, %c0_i32_0 : i32, i32
  }
  func.func @transform_10(%arg0: i32) -> (i32, i32) {
    %c0_i32 = arith.constant 0 : i32
    %c0_i32_0 = arith.constant 0 : i32
    %c0_i32_1 = arith.constant 0 : i32
    return %c0_i32, %c0_i32_0 : i32, i32
  }
  func.func @transform_11(%arg0: i32) -> (i32, i32) {
    %c0_i32 = arith.constant 0 : i32
    %c0_i32_0 = arith.constant 0 : i32
    %c0_i32_1 = arith.constant 0 : i32
    return %c0_i32, %c0_i32_0 : i32, i32
  }
  func.func @transform_12(%arg0: i32) -> (i32, i32) {
    %c0_i32 = arith.constant 0 : i32
    %c0_i32_0 = arith.constant 0 : i32
    %c0_i32_1 = arith.constant 0 : i32
    return %c0_i32, %c0_i32_0 : i32, i32
  }
  func.func @transform_13(%arg0: i32) -> (i32, i32) {
    %c0_i32 = arith.constant 0 : i32
    %c0_i32_0 = arith.constant 0 : i32
    %c0_i32_1 = arith.constant 0 : i32
    return %c0_i32, %c0_i32_0 : i32, i32
  }
  func.func @transform_14(%arg0: i32) -> (i32, i32) {
    %c0_i32 = arith.constant 0 : i32
    %c0_i32_0 = arith.constant 0 : i32
    %c0_i32_1 = arith.constant 0 : i32
    return %c0_i32, %c0_i32_0 : i32, i32
  }
  func.func @transform_15(%arg0: i32) -> (i32, i32) {
    %c0_i32 = arith.constant 0 : i32
    %c0_i32_0 = arith.constant 0 : i32
    %c0_i32_1 = arith.constant 0 : i32
    return %c0_i32, %c0_i32_0 : i32, i32
  }
  func.func @transform_16(%arg0: i32) -> (i32, i32) {
    %c0_i32 = arith.constant 0 : i32
    %c0_i32_0 = arith.constant 0 : i32
    %c0_i32_1 = arith.constant 0 : i32
    return %c0_i32, %c0_i32_0 : i32, i32
  }
  func.func @transform_17(%arg0: i32) -> (i32, i32) {
    %c0_i32 = arith.constant 0 : i32
    %c0_i32_0 = arith.constant 0 : i32
    %c0_i32_1 = arith.constant 0 : i32
    return %c0_i32, %c0_i32_0 : i32, i32
  }
  func.func @transform_18(%arg0: i32) -> (i32, i32) {
    %c0_i32 = arith.constant 0 : i32
    %c0_i32_0 = arith.constant 0 : i32
    %c0_i32_1 = arith.constant 0 : i32
    return %c0_i32, %c0_i32_0 : i32, i32
  }
  func.func @transform_19(%arg0: i32) -> (i32, i32, i32) {
    %c0_i32 = arith.constant 0 : i32
    %c0_i32_0 = arith.constant 0 : i32
    %c0_i32_1 = arith.constant 0 : i32
    return %arg0, %c0_i32, %c0_i32_0 : i32, i32, i32
  }
}

</mosaic_0001>

<bundles_post_ra>
// kernel: tpu_custom_call.1
= control target key start
LH: loop header
LB: loop body
LE: loop exit
PB: predicated region body
PF: predicated region fallthrough
CT: control target
= control target key end

     0   :  { %s14500_s0 = inlined_call_operand.vmem [shape: f32[2,18,18,64], index: 0, kind: input, shape index: {}]   ;;  %s14501_s1 = inlined_call_operand.vmem [shape: f32[2,8,256], index: 1, kind: input, shape index: {}]   ;;  %s14502_s2 = inlined_call_operand.vmem [shape: f32[9,64,256], index: 2, kind: input, shape index: {}]   ;;  %s14503_s3 = inlined_call_operand.vmem [shape: f32[2,256], index: 3, kind: input, shape index: {}]   ;;  %s14504_s4 = inlined_call_operand.vmem [shape: f32[256,128], index: 4, kind: input, shape index: {}]   ;;  %s14505_s5 = inlined_call_operand.vmem [shape: f32[2,128], index: 5, kind: input, shape index: {}]   ;;  %s14506_s6 = inlined_call_operand.hbm [shape: f32[128,128], index: 6, kind: input, shape index: {}]   ;;  %s14507_s7 = inlined_call_operand.vmem [shape: f32[2,128], index: 7, kind: input, shape index: {}]   ;;  %s14508_s8 = inlined_call_operand.hbm [shape: f32[256,128], index: 8, kind: input, shape index: {}]   ;;  %s14509_s9 = inlined_call_operand.vmem [shape: f32[2,128], index: 9, kind: input, shape index: {}]   ;;  %s14510_s10 = inlined_call_operand.hbm [shape: f32[128,128], index: 10, kind: input, shape index: {}]   ;;  %s14511_s11 = inlined_call_operand.vmem [shape: f32[2,128], index: 11, kind: input, shape index: {}]   ;;  %s14512_s12 = inlined_call_operand.hbm [shape: f32[256,128], index: 12, kind: input, shape index: {}]   ;;  %s14513_s13 = inlined_call_operand.vmem [shape: f32[2,128], index: 13, kind: input, shape index: {}]   ;;  %s14514_s14 = inlined_call_operand.hbm [shape: f32[128,256], index: 14, kind: input, shape index: {}]   ;;  %s14515_s15 = inlined_call_operand.vmem [shape: f32[2,256], index: 15, kind: input, shape index: {}]   ;;  %s14516_s16 = inlined_call_operand.hbm [shape: f32[256,256], index: 16, kind: input, shape index: {}]   ;;  %s14517_s17 = inlined_call_operand.hbm [shape: f32[256,256], index: 17, kind: input, shape index: {}]   ;;  %s14518_s18 = inlined_call_operand.vmem [shape: f32[2,256], index: 18, kind: input, shape index: {}]   ;;  %s14519_s19 = inlined_call_operand.hbm [shape: f32[2,256,256], index: 19, kind: output, shape index: {}]  }
   0x1   :  { %14618 = sst [smem:[#allocation136_spill]] %s14500_s0 }
   0x2   :  { %14619 = sst [smem:[#allocation137_spill]] %s14501_s1 }
   0x3   :  { %14620 = sst [smem:[#allocation138_spill]] %s14502_s2 }
   0x4   :  { %14621 = sst [smem:[#allocation139_spill]] %s14503_s3 }
   0x5   :  { %14622 = sst [smem:[#allocation140_spill]] %s14506_s6 }
   0x6   :  { %14623 = sst [smem:[#allocation141_spill]] %s14508_s8 }
   0x7   :  { %14624 = sst [smem:[#allocation142_spill]] %s14519_s19 }
   0x8   :  { %24 = vsyncpa [#allocation3], 0 }
   0x9   :  { %25 = vsyncpa [#allocation6], 0 }
   0xa   :  { %26 = vsyncpa [#allocation9], 0 }
   0xb   :  { %27 = vsyncpa [#allocation12], 0 }
   0xc   :  { %28 = vsyncpa [#allocation4], 0 }
   0xd   :  { %30 = vsyncpa [#allocation4 + $0x1], 0  ;;  %s10208_s0 = smov 0   ;;  %s10210_s30 = smov 0  }
   0xe   :  { %s10212_s20 = smov 0   ;;  %s10214_s21 = smov 0  }
   0xf LB: > { %14625 = sst [smem:[#allocation20_spill]] %s10078_s0  ;;  %s10229_s1 = sadd.s32 4294967295, %s10090_s21   ;;  %s10090_s21 = sphi %s10214_s21, %s15124_s21   ;;  %s10086_s20 = sphi %s10212_s20, %s15126_s20   ;;  %s10082_s30 = sphi %s10210_s30, %s15128_s30   ;;  %s10078_s0 = sphi %s10208_s0, %s15127_s0  }
  0x10   : > { %14626 = sst [smem:[#allocation21_spill]] %s10086_s20  ;;  %s8494_s22 = sadd.s32 4294967294, %s10090_s21  }
  0x11   : > { %14627 = sst [smem:[#allocation22_spill]] %s10090_s21  ;;  %s10233_s2 = sadd.s32 1, %s10090_s21  }
  0x12   : > { %14628 = sst [smem:[#allocation23_spill]] %s10233_s2  ;;  %s452_s23 = sadd.s32 1, %s10086_s20 }
  0x13   : > { %s449_s24 = ssub.s32 %s10090_s21, %s10233_s2  ;;  %p462_p0 = scmp.ne.s32.totalorder %s10086_s20, %s10082_s30 }
  0x14   : > { %p450_p1 = scmp.eq.s32.totalorder %s449_s24, 0  ;;  %p463_p2 = scmp.eq.s32.totalorder %s10229_s1, 1 }
  0x15   : > { %p468_p3 = scmp.ne.s32.totalorder %s10082_s30, %s10078_s0  ;;  %p469_p4 = scmp.eq.s32.totalorder %s8494_s22, 1 }
  0x16   : > { %s10244_s25 = scalar_select %p450_p1, %s10086_s20, %s452_s23  }
  0x17   : > { %p10246_p5 = por %p463_p2, %p462_p0  ;;  %p10250_p6 = por %p469_p4, %p468_p3 }
  0x18   : > { %14629 = sst [smem:[#allocation24_spill]] %s10244_s25  ;;  %p8495_p7 = scmp.ge.s32.totalorder %s10090_s21, 1 }
  0x19   : > { %s14631_s26 = scalar_select %p10250_p6, 1, 0 }
  0x1a   : > { %p476_p8 = scmp.lt.s32.totalorder %s10090_s21, 3  ;;  %p14530_p9 = scmp.eq.s32.totalorder %s10229_s1, 0 }
  0x1b   : > { %14632 = sst [smem:[#allocation25_spill]] %s14631_s26  ;;  %s10092_s28 = smov [#allocation5]  }
  0x1c   : > { %p10257_p10 = pnand %p8495_p7, %p476_p8  ;;  %s516_s29 = sshll.u32 %s10092_s28, 4  ;;  %s517_s29 = int_to_ptr.vmem [resolvable:$true] %s516_s29 }
  0x1d   : > { %s10093_s23 = smov [#allocation8]   ;;  %s9843_s20 = scalar_lea.vmem %s517_s29, 4096 }
  0x1e   : > { %p9610_p11 = pneg %p10257_p10  ;;  %s548_s24 = sshll.u32 %s10093_s23, 4  ;;  %s549_s24 = int_to_ptr.vmem [resolvable:$true] %s548_s24 }
  0x1f   : > { %p9844_p0 = scmp.ne.s32.totalorder %s517_s29, %s9843_s20  ;;  %p9851_p3 = scmp.lt.s32.totalorder %s517_s29, %s517_s29 }
  0x20   : > { %p10265_p12 = pnand %p14530_p9, %p9610_p11  ;;  %p9852_p4 = scmp.lt.s32.totalorder %s9843_s20, %s9843_s20 }
  0x22   : > { %p10271_p13 = pneg %p10265_p12  ;;  %p9853_p7 = por %p9852_p4, %p9851_p3 }
  0x24   : > { %p9846_p1 = pnand %p9844_p0, %p10271_p13 }
  0x26   : > { %p9847_p2 = pneg %p9846_p1 }
  0x28   : > { %p9854_p8 = pnand %p9853_p7, %p9847_p2 }
  0x2a   : > { %9857 = shalt.err (!%p9854_p8)
}
  0x2b   : > { %s10094_s28 = smov 128   ;;  %s10095_s23 = smov 8  }
  0x2c   : > { %s14636_s8 = sld [smem:[#allocation141_spill]]  ;;  %s9869_s0 = scalar_lea.vmem %s549_s24, 4096 }
  0x2d   : > { %p9870_p11 = scmp.ne.s32.totalorder %s549_s24, %s9869_s0  ;;  %p9877_p3 = scmp.lt.s32.totalorder %s549_s24, %s549_s24 }
  0x2e   : > { %p9878_p2 = scmp.lt.s32.totalorder %s9869_s0, %s9869_s0 }
  0x2f   : > { %p9872_p0 = pnand %p9870_p11, %p10271_p13 }
  0x30   : > { %p9879_p4 = por %p9878_p2, %p9877_p3 }
  0x31   : > { %p9873_p1 = pneg %p9872_p0 }
  0x32   : > { %9616 = dma.hbm_to_vmem [thread:$0]  (!%p10265_p12), %s14636_s8, 4096, %s517_s29, [#allocation6], %s10094_s28, %s10094_s28, %s10095_s23  }
  0x33   : > { %p9880_p7 = pnand %p9879_p4, %p9873_p1 }
  0x35   : > { %9883 = shalt.err (!%p9880_p7)
}
  0x36   : > { %9622 = dma.hbm_to_vmem [thread:$0]  (!%p10265_p12), %s14512_s12, 4096, %s549_s24, [#allocation9], %s10094_s28, %s10094_s28, %s10095_s23  }
  0x37   : > { %s10096_s2 = smov [#allocation11]   ;;  %s10097_s29 = smov [#allocation2]  }
  0x38   : > { %s580_s26 = sshll.u32 %s10096_s2, 4  ;;  %s500_s8 = sshll.u32 %s10097_s29, 4  ;;  %s581_s26 = int_to_ptr.vmem [resolvable:$true] %s580_s26  ;;  %s501_s8 = int_to_ptr.vmem [resolvable:$true] %s500_s8 }
  0x39   : > { %s9895_s0 = scalar_lea.vmem %s581_s26, 8192  ;;  %p9903_p1 = scmp.lt.s32.totalorder %s581_s26, %s581_s26 }
  0x3a   : > { %p9896_p8 = scmp.ne.s32.totalorder %s581_s26, %s9895_s0  ;;  %p9904_p3 = scmp.lt.s32.totalorder %s9895_s0, %s9895_s0 }
  0x3c   : > { %p9898_p11 = pnand %p9896_p8, %p10271_p13  ;;  %p9905_p2 = por %p9904_p3, %p9903_p1 }
  0x3e   : > { %p9899_p0 = pneg %p9898_p11 }
  0x40   : > { %p9906_p4 = pnand %p9905_p2, %p9899_p0 }
  0x42   : > { %9909 = shalt.err (!%p9906_p4)
}
  0x43   : > { %s14528_s19 = smov 256   ;;  %s10099_s21 = smov 16  }
  0x44   : > { %9628 = dma.hbm_to_vmem [thread:$0]  (!%p10265_p12), %s14516_s16, 8192, %s581_s26, [#allocation12], %s14528_s19, %s14528_s19, %s10099_s21  }
  0x45   : > { %s9921_s2 = scalar_lea.vmem %s501_s8, 2048  ;;  %p9929_p1 = scmp.lt.s32.totalorder %s501_s8, %s501_s8 }
  0x46   : > { %p9922_p7 = scmp.ne.s32.totalorder %s501_s8, %s9921_s2  ;;  %p9930_p0 = scmp.lt.s32.totalorder %s9921_s2, %s9921_s2 }
  0x48   : > { %p9924_p8 = pnand %p9922_p7, %p10271_p13  ;;  %p9931_p3 = por %p9930_p0, %p9929_p1 }
  0x4a   : > { %p9925_p11 = pneg %p9924_p8 }
  0x4c   : > { %p9932_p2 = pnand %p9931_p3, %p9925_p11 }
  0x4e   : > { %9935 = shalt.err (!%p9932_p2)
}
  0x4f   : > { %s14637_s6 = sld [smem:[#allocation140_spill]]  ;;  %s10100_s26 = smov [#allocation7]  }
  0x50   : > { %s532_s24 = sshll.u32 %s10100_s26, 4  ;;  %s10101_s20 = smov [#allocation10]   ;;  %s533_s24 = int_to_ptr.vmem [resolvable:$true] %s532_s24 }
  0x51   : > { %s564_s19 = sshll.u32 %s10101_s20, 4  ;;  %s9947_s2 = scalar_lea.vmem %s533_s24, 2048  ;;  %s565_s19 = int_to_ptr.vmem [resolvable:$true] %s564_s19 }
  0x52   : > { %p9948_p4 = scmp.ne.s32.totalorder %s533_s24, %s9947_s2  ;;  %p9955_p11 = scmp.lt.s32.totalorder %s533_s24, %s533_s24 }
  0x53   : > { %p9956_p1 = scmp.lt.s32.totalorder %s9947_s2, %s9947_s2 }
  0x54   : > { %p9950_p7 = pnand %p9948_p4, %p10271_p13 }
  0x55   : > { %9613 = dma.hbm_to_vmem [thread:$0]  (!%p10265_p12), %s14637_s6, 2048, %s501_s8, [#allocation3], %s10094_s28, %s10094_s28, %s10095_s23  }
  0x56   : > { %p9951_p8 = pneg %p9950_p7  ;;  %p9957_p0 = por %p9956_p1, %p9955_p11 }
  0x58   : > { %p9958_p3 = pnand %p9957_p0, %p9951_p8 }
  0x5a   : > { %9961 = shalt.err (!%p9958_p3)
}
  0x5b   : > { %9619 = dma.hbm_to_vmem [thread:$0]  (!%p10265_p12), %s14510_s10, 2048, %s533_s24, [#allocation6], %s10094_s28, %s10094_s28, %s10095_s23  }
  0x5c   : > { %s9973_s0 = scalar_lea.vmem %s565_s19, 4096  ;;  %p9981_p9 = scmp.lt.s32.totalorder %s565_s19, %s565_s19 }
  0x5d   : > { %p9974_p2 = scmp.ne.s32.totalorder %s565_s19, %s9973_s0  ;;  %p9982_p6 = scmp.lt.s32.totalorder %s9973_s0, %s9973_s0 }
  0x5f   : > { %p9976_p4 = pnand %p9974_p2, %p10271_p13  ;;  %p9983_p11 = por %p9982_p6, %p9981_p9 }
  0x61   : > { %p9977_p7 = pneg %p9976_p4 }
  0x63   : > { %p9984_p8 = pnand %p9983_p11, %p9977_p7 }
  0x65   : > { %9987 = shalt.err (!%p9984_p8)
}
  0x66   : > { %s14638_s26 = smov 256   ;;  %s10102_s28 = smov [#allocation13]  }
  0x67   : > { %9625 = dma.hbm_to_vmem [thread:$0]  (!%p10265_p12), %s14514_s14, 4096, %s565_s19, [#allocation9], %s14638_s26, %s14638_s26, %s10099_s21  }
  0x68   : > { %s593_s23 = sshll.u32 %s10102_s28, 4  ;;  %s594_s23 = int_to_ptr.vmem [resolvable:$true] %s593_s23 }
  0x69   : > { %s9999_s24 = scalar_lea.vmem %s594_s23, 8192  ;;  %p10007_p9 = scmp.lt.s32.totalorder %s594_s23, %s594_s23 }
  0x6a   : > { %p10000_p1 = scmp.ne.s32.totalorder %s594_s23, %s9999_s24  ;;  %p10008_p3 = scmp.lt.s32.totalorder %s9999_s24, %s9999_s24 }
  0x6c   : > { %p10002_p0 = pnand %p10000_p1, %p10271_p13  ;;  %p10009_p2 = por %p10008_p3, %p10007_p9 }
  0x6e   : > { %p10003_p6 = pneg %p10002_p0 }
  0x70   : > { %p10010_p4 = pnand %p10009_p2, %p10003_p6 }
  0x72   : > { %10013 = shalt.err (!%p10010_p4)
}
  0x73   : > { %9631 = dma.hbm_to_vmem [thread:$0]  (!%p10265_p12), %s14517_s17, 8192, %s594_s23, [#allocation12], %s14638_s26, %s14638_s26, %s10099_s21  }
  0x74   : > { %628 = sbr.rel (%p10257_p10) target bundleno = 2600 (0xa28), region = 96 }
  0x79   : > { %p14639_p13 = scmp.eq.s32.totalorder %s10229_s1, 0 }
  0x7b   : > { %10057 = dma.done.wait (%p14639_p13), [#allocation3], 2048   ;;  %p14640_p7 = pmov %p14639_p13 }
  0x7d   : > { %10059 = vsyncadd (%p14640_p7), [#allocation3], 4294965248  ;;  %p14641_p11 = pmov %p14640_p7 }
  0x7e   : > { %p14642_p8 = pmov %p14640_p7 }
  0x7f   : > { %10061 = dma.done.wait (%p14641_p11), [#allocation6], 6144  }
  0x80   : > { %10063 = vsyncadd (%p14642_p8), [#allocation6], 4294961152  ;;  %p14643_p1 = pmov %p14640_p7 }
  0x82   : > { %10065 = dma.done.wait (%p14643_p1), [#allocation9], 8192   ;;  %p14644_p12 = pmov %p14643_p1 }
  0x83   : > { %p14645_p10 = pmov %p14643_p1 }
  0x84   : > { %10067 = vsyncadd (%p14644_p12), [#allocation9], 4294959104 }
  0x85   : > { %10069 = dma.done.wait (%p14645_p10), [#allocation12], 16384   ;;  %p14646_p0 = pmov %p14643_p1 }
  0x86   : > { %v14532_v0 = vmov 0.0   ;;  %p713_p6 = scmp.lt.s32.totalorder %s10229_s1, 1  ;;  %s14647_s22 = sld [smem:[#allocation138_spill]]  ;;  %vm820_vm0 = vcmask 523264   ;;  %vm10104_vm1 = vmmov 0   ;;  %vm6560_vm2 = vcmask 64512  }
  0x87   : > { %10071 = vsyncadd (%p14646_p0), [#allocation12], 4294950912  ;;  %981 = vmatprep.mubr.f32.mxu0 %v14532_v0  ;;  %1334 = vmatprep.mubr.f32.mxu1 %v14532_v0  ;;  %s14648_s19 = sld [smem:[#allocation136_spill]]  ;;  %s9162_s28 = sshll.u32 %s10229_s1, 13 }
  0x88   : > { %s10405_s8 = scalar_select %p713_p6, %s10229_s1, 1 }
  0x89   : > { %s14673_s24 = sld [smem:[#allocation137_spill]]  ;;  %s10105_s26 = smov [#allocation14]  }
  0x8a   : > { %s9579_s29 = smul.u32 432, %s10405_s8  ;;  %s9161_s25 = sshll.u32 %s10405_s8, 4 }
  0x8b   : > { %s14888_s20 = sld [smem:[#allocation139_spill]] }
  0x8c   : > { %v8531_v1 = vld [vmem:[%s14647_s22 + $0xf8] sm:$0xff]  ;;  %v8530_v3 = vld [vmem:[%s14647_s22 + $0xf0] sm:$0xff]  ;;  %v8529_v5 = vld [vmem:[%s14647_s22 + $0xe8] sm:$0xff]  ;;  %s15119_s27 = sld [smem:[#allocation142_spill]] }
  0x8d   : > { %v770_v2 = vld [vmem:[%s14647_s22 + $0x78] sm:$0xff]  ;;  %933 = vmatprep.subr.mxu0 %v8531_v1  ;;  %v769_v4 = vld [vmem:[%s14647_s22 + $0x70] sm:$0xff]  ;;  %v768_v6 = vld [vmem:[%s14647_s22 + $0x68] sm:$0xff]  ;;  %s10459_s6 = scalar_lea.vmem %s14648_s19, %s9579_s29 }
  0x8e   : > { %1286 = vmatprep.subr.mxu1 %v770_v2  ;;  %934 = vmatpush1.msra.mxu0 %v8530_v3  ;;  %v8528_v7 = vld [vmem:[%s14647_s22 + $0xe0] sm:$0xff]  ;;  %v8527_v9 = vld [vmem:[%s14647_s22 + $0xd8] sm:$0xff]  ;;  %v8526_v11 = vld [vmem:[%s14647_s22 + $0xd0] sm:$0xff] }
  0x8f   : > { %1287 = vmatpush1.msra.mxu1 %v769_v4  ;;  %v767_v8 = vld [vmem:[%s14647_s22 + $0x60] sm:$0xff]  ;;  %935 = vmatprep.subr.mxu0 %v8529_v5  ;;  %v766_v10 = vld [vmem:[%s14647_s22 + $0x58] sm:$0xff]  ;;  %v765_v12 = vld [vmem:[%s14647_s22 + $0x50] sm:$0xff]  ;;  %s722_s19 = scalar_lea.vmem %s14673_s24, %s9161_s25  ;;  %s710_s25 = sand.u32 1, %s10082_s30  }
  0x90   : > { %1288 = vmatprep.subr.mxu1 %v768_v6  ;;  %936 = vmatpush1.msra.mxu0 %v8528_v7  ;;  %v8525_v13 = vld [vmem:[%s14647_s22 + $0xc8] sm:$0xff]  ;;  %v8524_v15 = vld [vmem:[%s14647_s22 + $0xc0] sm:$0xff]  ;;  %v8523_v17 = vld [vmem:[%s14647_s22 + $0xb8] sm:$0xff]  ;;  %s8512_s29 = sshll.u32 %s710_s25, 9  ;;  %s14460_s1 = scalar_lea.sflag [#allocation4], %s710_s25 }
  0x91   : > { %1289 = vmatpush1.msra.mxu1 %v767_v8  ;;  %v764_v14 = vld [vmem:[%s14647_s22 + $0x48] sm:$0xff]  ;;  %937 = vmatprep.subr.mxu0 %v8527_v9  ;;  %v763_v16 = vld [vmem:[%s14647_s22 + $0x40] sm:$0xff]  ;;  %v762_v18 = vld [vmem:[%s14647_s22 + $0x38] sm:$0xff]  ;;  %s14167_s2 = scalar_lea.vmem [#allocation14], %s8512_s29 }
  0x92   : > { %1290 = vmatprep.subr.mxu1 %v766_v10  ;;  %938 = vmatpush1.msra.mxu0 %v8526_v11  ;;  %v8522_v19 = vld [vmem:[%s14647_s22 + $0xb0] sm:$0xff]  ;;  %v8521_v21 = vld [vmem:[%s14647_s22 + $0xa8] sm:$0xff]  ;;  %v8520_v23 = vld [vmem:[%s14647_s22 + $0xa0] sm:$0xff]  ;;  %s8351_s23 = sshll.u32 %s14167_s2, 4  ;;  %s14452_s21 = scalar_lea.hbm %s15119_s27, %s9162_s28  ;;  %s14454_s23 = int_to_ptr.vmem [resolvable:$true] %s8351_s23 }
  0x93   : > { %1291 = vmatpush1.msra.mxu1 %v765_v12  ;;  %939 = vmatprep.subr.mxu0 %v8525_v13  ;;  %v761_v20 = vld [vmem:[%s14647_s22 + $0x30] sm:$0xff]  ;;  %v760_v22 = vld [vmem:[%s14647_s22 + $0x28] sm:$0xff]  ;;  %v759_v24 = vld [vmem:[%s14647_s22 + $0x20] sm:$0xff]  ;;  %s10014_s0 = scalar_lea.vmem %s14454_s23, 8192 }
  0x94   : > { %1292 = vmatprep.subr.mxu1 %v764_v14  ;;  %940 = vmatpush1.msra.mxu0 %v8524_v15  ;;  %v8519_v25 = vld [vmem:[%s14647_s22 + $0x98] sm:$0xff]  ;;  %v8518_v27 = vld [vmem:[%s14647_s22 + $0x90] sm:$0xff]  ;;  %v8517_v29 = vld [vmem:[%s14647_s22 + $0x88] sm:$0xff]  ;;  %p10015_p9 = scmp.ne.s32.totalorder %s14454_s23, %s10014_s0 }
  0x95   : > { %1293 = vmatpush1.msra.mxu1 %v763_v16  ;;  %941 = vmatprep.subr.mxu0 %v8523_v17  ;;  %v758_v26 = vld [vmem:[%s14647_s22 + $0x18] sm:$0xff]  ;;  %v757_v28 = vld [vmem:[%s14647_s22 + $0x10] sm:$0xff]  ;;  %v756_v30 = vld [vmem:[%s14647_s22 + $0x8] sm:$0xff] }
  0x96   : > { %1294 = vmatprep.subr.mxu1 %v762_v18  ;;  %942 = vmatpush1.msra.mxu0 %v8522_v19  ;;  %v8516_v31 = vld [vmem:[%s14647_s22 + $0x80] sm:$0xff]  ;;  %v8611_v35 = vld [vmem:[%s14647_s22 + $0x178] sm:$0xff]  ;;  %v8610_v36 = vld [vmem:[%s14647_s22 + $0x170] sm:$0xff]  ;;  %p10016_p3 = pnand %p10015_p9, %p10246_p5 }
  0x97   : > { %1295 = vmatpush1.msra.mxu1 %v761_v20  ;;  %943 = vmatprep.subr.mxu0 %v8521_v21  ;;  %v755_v32 = vld [vmem:[%s14647_s22] sm:$0xff]  ;;  %v772_v37 = vld [vmem:[%s10459_s6 + $0x9] sm:$0xff]  ;;  %v10499_v42 = vld [vmem:[%s10459_s6 + $0x18] sm:$0xff] }
  0x98   : > { %1296 = vmatprep.subr.mxu1 %v760_v22  ;;  %944 = vmatpush1.msra.mxu0 %v8520_v23  ;;  %v771_v33 = vld [vmem:[%s10459_s6 + $0x1] sm:$0xff]  ;;  %v773_v41 = vld [vmem:[%s10459_s6 + $0x19] sm:$0xff]  ;;  %v8606_v44 = vld [vmem:[%s14647_s22 + $0x150] sm:$0xff]  ;;  %p10017_p2 = pneg %p10016_p3 }
  0x99   : > { %1297 = vmatpush1.msra.mxu1 %v759_v24  ;;  %945 = vmatprep.subr.mxu0 %v8519_v25  ;;  %v723_v34 = vld [vmem:[%s10459_s6] sm:$0xff]  ;;  %v724_v38 = vld [vmem:[%s10459_s6 + $0x8] sm:$0xff]  ;;  %v8607_v43 = vld [vmem:[%s14647_s22 + $0x158] sm:$0xff] }
  0x9a   : > { %1298 = vmatprep.subr.mxu1 %v758_v26  ;;  %946 = vmatpush1.msra.mxu0 %v8518_v27  ;;  %v8609_v39 = vld [vmem:[%s14647_s22 + $0x168] sm:$0xff]  ;;  %v8608_v40 = vld [vmem:[%s14647_s22 + $0x160] sm:$0xff]  ;;  %v775_v49 = vld [vmem:[%s10459_s6 + $0x31] sm:$0xff] }
  0x9b   : > { %1299 = vmatpush1.msra.mxu1 %v757_v28  ;;  %947 = vmatprep.subr.mxu0 %v8517_v29  ;;  %v774_v45 = vld [vmem:[%s10459_s6 + $0x21] sm:$0xff]  ;;  %v10529_v50 = vld [vmem:[%s10459_s6 + $0x30] sm:$0xff]  ;;  %v8603_v51 = vld [vmem:[%s14647_s22 + $0x138] sm:$0xff] }
  0x9c   : > { %1300 = vmatprep.subr.mxu1 %v756_v30  ;;  %948 = vmatpush1.msra.mxu0 %v8516_v31  ;;  %v10514_v46 = vld [vmem:[%s10459_s6 + $0x20] sm:$0xff]  ;;  %v8605_v47 = vld [vmem:[%s14647_s22 + $0x148] sm:$0xff]  ;;  %v8602_v53 = vld [vmem:[%s14647_s22 + $0x130] sm:$0xff] }
  0x9d   : > { %1301 = vmatpush1.msra.mxu1 %v755_v32  ;;  %8532 = vmatmul.mubr.msk.f32.vlgmr.msra.gmra.mxu0 %vm820_vm0, %v771_v33  ;;  %v8604_v48 = vld [vmem:[%s14647_s22 + $0x140] sm:$0xff]  ;;  %v10544_v54 = vld [vmem:[%s10459_s6 + $0x38] sm:$0xff]  ;;  %v8690_v56 = vld [vmem:[%s14647_s22 + $0x1f0] sm:$0xff] }
  0x9e   : > { %8564 = vmatmul.mubr.msk.f32.vlgmr.msra.gmra.mxu1 %vm820_vm0, %v723_v34  ;;  %987 = vmatprep.mubr.f32.mxu0 %v14532_v0  ;;  %v776_v52 = vld [vmem:[%s10459_s6 + $0x39] sm:$0xff]  ;;  %v8601_v57 = vld [vmem:[%s14647_s22 + $0x128] sm:$0xff]  ;;  %v8686_v2 = vld [vmem:[%s14647_s22 + $0x1d0] sm:$0xff] }
  0x9f   : > { %1340 = vmatprep.mubr.f32.mxu1 %v14532_v0  ;;  %1688 = vmatprep.subr.mxu0 %v8611_v35  ;;  %v8691_v55 = vld [vmem:[%s14647_s22 + $0x1f8] sm:$0xff]  ;;  %v8689_v58 = vld [vmem:[%s14647_s22 + $0x1e8] sm:$0xff]  ;;  %v8600_v59 = vld [vmem:[%s14647_s22 + $0x120] sm:$0xff] }
  0xa0   : > { %1689 = vmatpush1.msra.mxu0 %v8610_v36  ;;  %2155 = vmatprep.subr.mxu1 %v8691_v55  ;;  %v8688_v60 = vld [vmem:[%s14647_s22 + $0x1e0] sm:$0xff]  ;;  %v777_v61 = vld [vmem:[%s10459_s6 + $0x49] sm:$0xff]  ;;  %v8687_v63 = vld [vmem:[%s14647_s22 + $0x1d8] sm:$0xff] }
  0xa1   : > { %8533 = vmatmul.mubr.msk.f32.gmra.mxu0 %vm820_vm0, %v772_v37  ;;  %1690 = vmatprep.subr.mxu0 %v8609_v39  ;;  %v10571_v62 = vld [vmem:[%s10459_s6 + $0x48] sm:$0xff]  ;;  %v8599_v1 = vld [vmem:[%s14647_s22 + $0x118] sm:$0xff]  ;;  %v8598_v3 = vld [vmem:[%s14647_s22 + $0x110] sm:$0xff] }
  0xa2   : > { %8565 = vmatmul.mubr.msk.f32.gmra.mxu1 %vm820_vm0, %v724_v38  ;;  %993 = vmatprep.mubr.f32.mxu0 %v14532_v0  ;;  %v778_v4 = vld [vmem:[%s10459_s6 + $0x51] sm:$0xff]  ;;  %v8685_v6 = vld [vmem:[%s14647_s22 + $0x1c8] sm:$0xff]  ;;  %v8684_v8 = vld [vmem:[%s14647_s22 + $0x1c0] sm:$0xff] }
  0xa3   : > { %1346 = vmatprep.mubr.f32.mxu1 %v14532_v0  ;;  %1691 = vmatpush1.msra.mxu0 %v8608_v40  ;;  %v10592_v5 = vld [vmem:[%s10459_s6 + $0x50] sm:$0xff]  ;;  %v8597_v7 = vld [vmem:[%s14647_s22 + $0x108] sm:$0xff]  ;;  %v8596_v9 = vld [vmem:[%s14647_s22 + $0x100] sm:$0xff] }
  0xa4   : > { %1692 = vmatprep.subr.mxu0 %v8607_v43  ;;  %2156 = vmatpush1.msra.mxu1 %v8690_v56  ;;  %v779_v10 = vld [vmem:[%s10459_s6 + $0x61] sm:$0xff]  ;;  %v8683_v12 = vld [vmem:[%s14647_s22 + $0x1b8] sm:$0xff]  ;;  %v8682_v13 = vld [vmem:[%s14647_s22 + $0x1b0] sm:$0xff] }
  0xa5   : > { %8534 = vmatmul.mubr.msk.f32.gmra.mxu0 %vm820_vm0, %v773_v41  ;;  %2157 = vmatprep.subr.mxu1 %v8689_v58  ;;  %v10613_v11 = vld [vmem:[%s10459_s6 + $0x60] sm:$0xff]  ;;  %v8771_v14 = vld [vmem:[%s14647_s22 + $0x278] sm:$0xff]  ;;  %v780_v15 = vld [vmem:[%s10459_s6 + $0x69] sm:$0xff] }
  0xa6   : > { %8566 = vmatmul.mubr.msk.f32.gmra.mxu1 %vm820_vm0, %v10499_v42  ;;  %999 = vmatprep.mubr.f32.mxu0 %v14532_v0  ;;  %v10631_v16 = vld [vmem:[%s10459_s6 + $0x68] sm:$0xff]  ;;  %v8680_v18 = vld [vmem:[%s14647_s22 + $0x1a0] sm:$0xff]  ;;  %v10646_v20 = vld [vmem:[%s10459_s6 + $0x78] sm:$0xff] }
  0xa7   : > { %1352 = vmatprep.mubr.f32.mxu1 %v14532_v0  ;;  %1693 = vmatpush1.msra.mxu0 %v8606_v44  ;;  %v8681_v17 = vld [vmem:[%s14647_s22 + $0x1a8] sm:$0xff]  ;;  %v781_v19 = vld [vmem:[%s10459_s6 + $0x79] sm:$0xff]  ;;  %v8678_v22 = vld [vmem:[%s14647_s22 + $0x190] sm:$0xff] }
  0xa8   : > { %1694 = vmatprep.subr.mxu0 %v8605_v47  ;;  %2158 = vmatpush1.msra.mxu1 %v8688_v60  ;;  %v8679_v21 = vld [vmem:[%s14647_s22 + $0x198] sm:$0xff]  ;;  %v782_v23 = vld [vmem:[%s10459_s6 + $0x81] sm:$0xff]  ;;  %v10676_v28 = vld [vmem:[%s10459_s6 + $0x90] sm:$0xff] }
  0xa9   : > { %8535 = vmatmul.mubr.msk.f32.gmra.mxu0 %vm820_vm0, %v774_v45  ;;  %2159 = vmatprep.subr.mxu1 %v8687_v63  ;;  %v10661_v24 = vld [vmem:[%s10459_s6 + $0x80] sm:$0xff]  ;;  %v8677_v25 = vld [vmem:[%s14647_s22 + $0x188] sm:$0xff]  ;;  %v783_v27 = vld [vmem:[%s10459_s6 + $0x91] sm:$0xff] }
  0xaa   : > { %8567 = vmatmul.mubr.msk.f32.gmra.mxu1 %vm820_vm0, %v10514_v46  ;;  %1005 = vmatprep.mubr.f32.mxu0 %v14532_v0  ;;  %v8676_v26 = vld [vmem:[%s14647_s22 + $0x180] sm:$0xff]  ;;  %v10685_v30 = vld [vmem:[%s10459_s6 + $0x98] sm:$0xff]  ;;  %v785_v31 = vld [vmem:[%s10459_s6 + $0xa9] sm:$0xff] }
  0xab   : > { %1358 = vmatprep.mubr.f32.mxu1 %v14532_v0  ;;  %1695 = vmatpush1.msra.mxu0 %v8604_v48  ;;  %v784_v29 = vld [vmem:[%s10459_s6 + $0x99] sm:$0xff]  ;;  %v10694_v32 = vld [vmem:[%s10459_s6 + $0xa8] sm:$0xff]  ;;  %v786_v33 = vld [vmem:[%s10459_s6 + $0xb1] sm:$0xff] }
  0xac   : > { %1696 = vmatprep.subr.mxu0 %v8603_v51  ;;  %2160 = vmatpush1.msra.mxu1 %v8686_v2  ;;  %v10703_v34 = vld [vmem:[%s10459_s6 + $0xb0] sm:$0xff]  ;;  %v787_v35 = vld [vmem:[%s10459_s6 + $0xc1] sm:$0xff]  ;;  %v789_v39 = vld [vmem:[%s10459_s6 + $0xd9] sm:$0xff] }
  0xad   : > { %8536 = vmatmul.mubr.msk.f32.gmra.mxu0 %vm820_vm0, %v775_v49  ;;  %2161 = vmatprep.subr.mxu1 %v8685_v6  ;;  %v10712_v36 = vld [vmem:[%s10459_s6 + $0xc0] sm:$0xff]  ;;  %v788_v37 = vld [vmem:[%s10459_s6 + $0xc9] sm:$0xff]  ;;  %v10730_v40 = vld [vmem:[%s10459_s6 + $0xd8] sm:$0xff] }
  0xae   : > { %8568 = vmatmul.mubr.msk.f32.gmra.mxu1 %vm820_vm0, %v10529_v50  ;;  %1011 = vmatprep.mubr.f32.mxu0 %v14532_v0  ;;  %v10721_v38 = vld [vmem:[%s10459_s6 + $0xc8] sm:$0xff]  ;;  %v10739_v43 = vld [vmem:[%s10459_s6 + $0xe0] sm:$0xff]  ;;  %v791_v44 = vld [vmem:[%s10459_s6 + $0xf1] sm:$0xff] }
  0xaf   : > { %1364 = vmatprep.mubr.f32.mxu1 %v14532_v0  ;;  %1697 = vmatpush1.msra.mxu0 %v8602_v53  ;;  %v790_v41 = vld [vmem:[%s10459_s6 + $0xe1] sm:$0xff]  ;;  %v10748_v45 = vld [vmem:[%s10459_s6 + $0xf0] sm:$0xff]  ;;  %v792_v47 = vld [vmem:[%s10459_s6 + $0xf9] sm:$0xff] }
  0xb0   : > { %1698 = vmatprep.subr.mxu0 %v8601_v57  ;;  %2162 = vmatpush1.msra.mxu1 %v8684_v8  ;;  %v10757_v48 = vld [vmem:[%s10459_s6 + $0xf8] sm:$0xff]  ;;  %v793_v49 = vld [vmem:[%s10459_s6 + $0x109] sm:$0xff]  ;;  %v795_v55 = vld [vmem:[%s10459_s6 + $0x121] sm:$0xff] }
  0xb1   : > { %8537 = vmatmul.mubr.msk.f32.gmra.mxu0 %vm820_vm0, %v776_v52  ;;  %2163 = vmatprep.subr.mxu1 %v8683_v12  ;;  %v10766_v51 = vld [vmem:[%s10459_s6 + $0x108] sm:$0xff]  ;;  %v794_v52 = vld [vmem:[%s10459_s6 + $0x111] sm:$0xff]  ;;  %v10784_v56 = vld [vmem:[%s10459_s6 + $0x120] sm:$0xff] }
  0xb2   : > { %8569 = vmatmul.mubr.msk.f32.gmra.mxu1 %vm820_vm0, %v10544_v54  ;;  %1017 = vmatprep.mubr.f32.mxu0 %v14532_v0  ;;  %v10775_v53 = vld [vmem:[%s10459_s6 + $0x110] sm:$0xff]  ;;  %v10793_v58 = vld [vmem:[%s10459_s6 + $0x128] sm:$0xff]  ;;  %v10802_v60 = vld [vmem:[%s10459_s6 + $0x138] sm:$0xff] }
  0xb3   : > { %1370 = vmatprep.mubr.f32.mxu1 %v14532_v0  ;;  %1699 = vmatpush1.msra.mxu0 %v8600_v59  ;;  %v796_v57 = vld [vmem:[%s10459_s6 + $0x129] sm:$0xff]  ;;  %v797_v59 = vld [vmem:[%s10459_s6 + $0x139] sm:$0xff] }
  0xb4   : > { %1700 = vmatprep.subr.mxu0 %v8599_v1  ;;  %2164 = vmatpush1.msra.mxu1 %v8682_v13  ;;  %v10811_v63 = vld [vmem:[%s10459_s6 + $0x140] sm:$0xff]  ;;  %v799_v1 = vld [vmem:[%s10459_s6 + $0x151] sm:$0xff]  ;;  %v10841_v8 = vld [vmem:[%s10459_s6 + $0x168] sm:$0xff] }
  0xb5   : > { %8538 = vmatmul.mubr.msk.f32.gmra.mxu0 %vm820_vm0, %v777_v61  ;;  %2165 = vmatprep.subr.mxu1 %v8681_v17  ;;  %v798_v61 = vld [vmem:[%s10459_s6 + $0x141] sm:$0xff]  ;;  %v10820_v2 = vld [vmem:[%s10459_s6 + $0x150] sm:$0xff]  ;;  %v8851_v6 = vld [vmem:[%s14647_s22 + $0x2f8] sm:$0xff] }
  0xb6   : > { %8570 = vmatmul.mubr.msk.f32.gmra.mxu1 %vm820_vm0, %v10571_v62  ;;  %1023 = vmatprep.mubr.f32.mxu0 %v14532_v0  ;;  %v1527_v12 = vld [vmem:[%s10459_s6 + $0x2] sm:$0xff]  ;;  %v8770_v13 = vld [vmem:[%s14647_s22 + $0x270] sm:$0xff] }
  0xb7   : > { %1376 = vmatprep.mubr.f32.mxu1 %v14532_v0  ;;  %1701 = vmatpush1.msra.mxu0 %v8598_v3  ;;  %v800_v3 = vld [vmem:[%s10459_s6 + $0x159] sm:$0xff]  ;;  %v8849_v17 = vld [vmem:[%s14647_s22 + $0x2e8] sm:$0xff] }
  0xb8   : > { %1702 = vmatprep.subr.mxu0 %v8597_v7  ;;  %2166 = vmatpush1.msra.mxu1 %v8680_v18  ;;  %v801_v7 = vld [vmem:[%s10459_s6 + $0x169] sm:$0xff] }
  0xb9   : > { %8539 = vmatmul.mubr.msk.f32.gmra.mxu0 %vm820_vm0, %v778_v4  ;;  %2167 = vmatprep.subr.mxu1 %v8679_v21  ;;  %v10829_v4 = vld [vmem:[%s10459_s6 + $0x158] sm:$0xff]  ;;  %v1528_v18 = vld [vmem:[%s10459_s6 + $0xa] sm:$0xff] }
  0xba   : > { %8571 = vmatmul.mubr.msk.f32.gmra.mxu1 %vm820_vm0, %v10592_v5  ;;  %1029 = vmatprep.mubr.f32.mxu0 %v14532_v0  ;;  %v8767_v21 = vld [vmem:[%s14647_s22 + $0x258] sm:$0xff] }
  0xbb   : > { %1382 = vmatprep.mubr.f32.mxu1 %v14532_v0  ;;  %1703 = vmatpush1.msra.mxu0 %v8596_v9  ;;  %v802_v9 = vld [vmem:[%s10459_s6 + $0x171] sm:$0xff] }
  0xbc   : > { %2621 = vmatprep.subr.mxu0 %v8771_v14  ;;  %2168 = vmatpush1.msra.mxu1 %v8678_v22  ;;  %v8850_v14 = vld [vmem:[%s14647_s22 + $0x2f0] sm:$0xff]  ;;  %v8847_v22 = vld [vmem:[%s14647_s22 + $0x2d8] sm:$0xff] }
  0xbd   : > { %8540 = vmatmul.mubr.msk.f32.gmra.mxu0 %vm820_vm0, %v779_v10  ;;  %2169 = vmatprep.subr.mxu1 %v8677_v25  ;;  %v10850_v10 = vld [vmem:[%s10459_s6 + $0x170] sm:$0xff] }
  0xbe   : > { %8572 = vmatmul.mubr.msk.f32.gmra.mxu1 %vm820_vm0, %v10613_v11  ;;  %1035 = vmatprep.mubr.f32.mxu0 %v14532_v0  ;;  %v8846_v25 = vld [vmem:[%s14647_s22 + $0x2d0] sm:$0xff] }
  0xbf   : > { %1388 = vmatprep.mubr.f32.mxu1 %v14532_v0  ;;  %2170 = vmatpush1.msra.mxu1 %v8676_v26  ;;  %v8765_v26 = vld [vmem:[%s14647_s22 + $0x248] sm:$0xff] }
  0xc0   : > { %3087 = vmatprep.subr.mxu1 %v8851_v6  ;;  %v8836_v6 = vld [vmem:[%s14647_s22 + $0x280] sm:$0xff] }
  0xc1   : > { %8541 = vmatmul.mubr.msk.f32.gmra.mxu0 %vm820_vm0, %v780_v15  ;;  %v8769_v15 = vld [vmem:[%s14647_s22 + $0x268] sm:$0xff] }
  0xc2   : > { %8573 = vmatmul.mubr.msk.f32.gmra.mxu1 %vm820_vm0, %v10631_v16  ;;  %1041 = vmatprep.mubr.f32.mxu0 %v14532_v0 }
  0xc3   : > { %1394 = vmatprep.mubr.f32.mxu1 %v14532_v0 }
  0xc5   : > { %8542 = vmatmul.mubr.msk.f32.gmra.mxu0 %vm820_vm0, %v781_v19  ;;  %v8848_v19 = vld [vmem:[%s14647_s22 + $0x2e0] sm:$0xff] }
  0xc6   : > { %8574 = vmatmul.mubr.msk.f32.gmra.mxu1 %vm820_vm0, %v10646_v20  ;;  %1047 = vmatprep.mubr.f32.mxu0 %v14532_v0 }
  0xc7   : > { %1400 = vmatprep.mubr.f32.mxu1 %v14532_v0 }
  0xc9   : > { %8543 = vmatmul.mubr.msk.f32.gmra.mxu0 %vm820_vm0, %v782_v23  ;;  %v10893_v23 = vld [vmem:[%s10459_s6 + $0x1a] sm:$0xff] }
  0xca   : > { %8575 = vmatmul.mubr.msk.f32.gmra.mxu1 %vm820_vm0, %v10661_v24  ;;  %1053 = vmatprep.mubr.f32.mxu0 %v14532_v0 }
  0xcb   : > { %1406 = vmatprep.mubr.f32.mxu1 %v14532_v0 }
  0xcd   : > { %8544 = vmatmul.mubr.msk.f32.gmra.mxu0 %vm820_vm0, %v783_v27  ;;  %v8845_v27 = vld [vmem:[%s14647_s22 + $0x2c8] sm:$0xff] }
  0xce   : > { %8576 = vmatmul.mubr.msk.f32.gmra.mxu1 %vm820_vm0, %v10676_v28  ;;  %1059 = vmatprep.mubr.f32.mxu0 %v14532_v0 }
  0xcf   : > { %1412 = vmatprep.mubr.f32.mxu1 %v14532_v0 }
  0xd1   : > { %8545 = vmatmul.mubr.msk.f32.gmra.mxu0 %vm820_vm0, %v784_v29  ;;  %v10914_v29 = vld [vmem:[%s10459_s6 + $0x22] sm:$0xff] }
  0xd2   : > { %8577 = vmatmul.mubr.msk.f32.gmra.mxu1 %vm820_vm0, %v10685_v30  ;;  %1065 = vmatprep.mubr.f32.mxu0 %v14532_v0 }
  0xd3   : > { %1418 = vmatprep.mubr.f32.mxu1 %v14532_v0 }
  0xd5   : > { %8546 = vmatmul.mubr.msk.f32.gmra.mxu0 %vm820_vm0, %v785_v31  ;;  %v8844_v31 = vld [vmem:[%s14647_s22 + $0x2c0] sm:$0xff] }
  0xd6   : > { %8578 = vmatmul.mubr.msk.f32.gmra.mxu1 %vm820_vm0, %v10694_v32  ;;  %1071 = vmatprep.mubr.f32.mxu0 %v14532_v0 }
  0xd7   : > { %1424 = vmatprep.mubr.f32.mxu1 %v14532_v0 }
  0xd9   : > { %8547 = vmatmul.mubr.msk.f32.gmra.mxu0 %vm820_vm0, %v786_v33  ;;  %v8763_v33 = vld [vmem:[%s14647_s22 + $0x238] sm:$0xff] }
  0xda   : > { %8579 = vmatmul.mubr.msk.f32.gmra.mxu1 %vm820_vm0, %v10703_v34  ;;  %1077 = vmatprep.mubr.f32.mxu0 %v14532_v0 }
  0xdb   : > { %1430 = vmatprep.mubr.f32.mxu1 %v14532_v0 }
  0xdd   : > { %8548 = vmatmul.mubr.msk.f32.gmra.mxu0 %vm820_vm0, %v787_v35  ;;  %v8843_v35 = vld [vmem:[%s14647_s22 + $0x2b8] sm:$0xff] }
  0xde   : > { %8580 = vmatmul.mubr.msk.f32.gmra.mxu1 %vm820_vm0, %v10712_v36  ;;  %1083 = vmatprep.mubr.f32.mxu0 %v14532_v0 }
  0xdf   : > { %1436 = vmatprep.mubr.f32.mxu1 %v14532_v0 }
  0xe1   : > { %8549 = vmatmul.mubr.msk.f32.gmra.mxu0 %vm820_vm0, %v788_v37  ;;  %v10935_v37 = vld [vmem:[%s10459_s6 + $0x32] sm:$0xff] }
  0xe2   : > { %8581 = vmatmul.mubr.msk.f32.gmra.mxu1 %vm820_vm0, %v10721_v38  ;;  %1089 = vmatprep.mubr.f32.mxu0 %v14532_v0 }
  0xe3   : > { %1442 = vmatprep.mubr.f32.mxu1 %v14532_v0 }
  0xe5   : > { %8550 = vmatmul.mubr.msk.f32.gmra.mxu0 %vm820_vm0, %v789_v39  ;;  %v8842_v39 = vld [vmem:[%s14647_s22 + $0x2b0] sm:$0xff] }
  0xe6   : > { %8582 = vmatmul.mubr.msk.f32.gmra.mxu1 %vm820_vm0, %v10730_v40  ;;  %1095 = vmatprep.mubr.f32.mxu0 %v14532_v0 }
  0xe7   : > { %1448 = vmatprep.mubr.f32.mxu1 %v14532_v0 }
  0xe9   : > { %8551 = vmatmul.mubr.msk.f32.gmra.mxu0 %vm820_vm0, %v790_v41  ;;  %v8761_v41 = vld [vmem:[%s14647_s22 + $0x228] sm:$0xff] }
  0xea   : > { %8583 = vmatmul.mubr.msk.f32.gmra.mxu1 %vm820_vm0, %v10739_v43  ;;  %1101 = vmatprep.mubr.f32.mxu0 %v14532_v0 }
  0xeb   : > { %1454 = vmatprep.mubr.f32.mxu1 %v14532_v0 }
  0xed   : > { %8552 = vmatmul.mubr.msk.f32.gmra.mxu0 %vm820_vm0, %v791_v44  ;;  %v8841_v44 = vld [vmem:[%s14647_s22 + $0x2a8] sm:$0xff] }
  0xee   : > { %8584 = vmatmul.mubr.msk.f32.gmra.mxu1 %vm820_vm0, %v10748_v45  ;;  %1107 = vmatprep.mubr.f32.mxu0 %v14532_v0 }
  0xef   : > { %1460 = vmatprep.mubr.f32.mxu1 %v14532_v0 }
  0xf1   : > { %8553 = vmatmul.mubr.msk.f32.gmra.mxu0 %vm820_vm0, %v792_v47  ;;  %v10956_v47 = vld [vmem:[%s10459_s6 + $0x3a] sm:$0xff] }
  0xf2   : > { %8585 = vmatmul.mubr.msk.f32.gmra.mxu1 %vm820_vm0, %v10757_v48  ;;  %1113 = vmatprep.mubr.f32.mxu0 %v14532_v0 }
  0xf3   : > { %1466 = vmatprep.mubr.f32.mxu1 %v14532_v0 }
  0xf5   : > { %8554 = vmatmul.mubr.msk.f32.gmra.mxu0 %vm820_vm0, %v793_v49  ;;  %v8840_v49 = vld [vmem:[%s14647_s22 + $0x2a0] sm:$0xff] }
  0xf6   : > { %8586 = vmatmul.mubr.msk.f32.gmra.mxu1 %vm820_vm0, %v10766_v51  ;;  %1119 = vmatprep.mubr.f32.mxu0 %v14532_v0 }
  0xf7   : > { %1472 = vmatprep.mubr.f32.mxu1 %v14532_v0 }
  0xf9   : > { %8555 = vmatmul.mubr.msk.f32.gmra.mxu0 %vm820_vm0, %v794_v52  ;;  %v8759_v52 = vld [vmem:[%s14647_s22 + $0x218] sm:$0xff] }
  0xfa   : > { %8587 = vmatmul.mubr.msk.f32.gmra.mxu1 %vm820_vm0, %v10775_v53  ;;  %1125 = vmatprep.mubr.f32.mxu0 %v14532_v0 }
  0xfb   : > { %1478 = vmatprep.mubr.f32.mxu1 %v14532_v0 }
  0xfd   : > { %8556 = vmatmul.mubr.msk.f32.gmra.mxu0 %vm820_vm0, %v795_v55  ;;  %v8839_v55 = vld [vmem:[%s14647_s22 + $0x298] sm:$0xff] }
  0xfe   : > { %8588 = vmatmul.mubr.msk.f32.gmra.mxu1 %vm820_vm0, %v10784_v56  ;;  %1131 = vmatprep.mubr.f32.mxu0 %v14532_v0 }
  0xff   : > { %1484 = vmatprep.mubr.f32.mxu1 %v14532_v0 }
 0x101   : > { %8557 = vmatmul.mubr.msk.f32.gmra.mxu0 %vm820_vm0, %v796_v57  ;;  %v10977_v57 = vld [vmem:[%s10459_s6 + $0x4a] sm:$0xff] }
 0x102   : > { %8589 = vmatmul.mubr.msk.f32.gmra.mxu1 %vm820_vm0, %v10793_v58  ;;  %1137 = vmatprep.mubr.f32.mxu0 %v14532_v0 }
 0x103   : > { %1490 = vmatprep.mubr.f32.mxu1 %v14532_v0 }
 0x105   : > { %8558 = vmatmul.mubr.msk.f32.gmra.mxu0 %vm820_vm0, %v797_v59  ;;  %v8838_v59 = vld [vmem:[%s14647_s22 + $0x290] sm:$0xff] }
 0x106   : > { %8590 = vmatmul.mubr.msk.f32.gmra.mxu1 %vm820_vm0, %v10802_v60  ;;  %1143 = vmatprep.mubr.f32.mxu0 %v14532_v0 }
 0x107   : > { %1496 = vmatprep.mubr.f32.mxu1 %v14532_v0 }
 0x109   : > { %8559 = vmatmul.mubr.msk.f32.gmra.mxu0 %vm820_vm0, %v798_v61  ;;  %v8757_v61 = vld [vmem:[%s14647_s22 + $0x208] sm:$0xff] }
 0x10a   : > { %8591 = vmatmul.mubr.msk.f32.gmra.mxu1 %vm820_vm0, %v10811_v63  ;;  %1149 = vmatprep.mubr.f32.mxu0 %v14532_v0 }
 0x10b   : > { %1502 = vmatprep.mubr.f32.mxu1 %v14532_v0 }
 0x10d   : > { %8560 = vmatmul.mubr.msk.f32.gmra.mxu0 %vm820_vm0, %v799_v1  ;;  %v8837_v1 = vld [vmem:[%s14647_s22 + $0x288] sm:$0xff] }
 0x10e   : > { %8592 = vmatmul.mubr.msk.f32.gmra.mxu1 %vm820_vm0, %v10820_v2  ;;  %1155 = vmatprep.mubr.f32.mxu0 %v14532_v0 }
 0x10f   : > { %1508 = vmatprep.mubr.f32.mxu1 %v14532_v0 }
 0x111   : > { %8561 = vmatmul.mubr.msk.f32.gmra.mxu0 %vm820_vm0, %v800_v3  ;;  %v10998_v3 = vld [vmem:[%s10459_s6 + $0x52] sm:$0xff] }
 0x112   : > { %8593 = vmatmul.mubr.msk.f32.gmra.mxu1 %vm820_vm0, %v10829_v4  ;;  %1161 = vmatprep.mubr.f32.mxu0 %v14532_v0 }
 0x113   : > { %1514 = vmatprep.mubr.f32.mxu1 %v14532_v0 }
 0x115   : > { %8562 = vmatmul.mubr.msk.f32.gmra.mxu0 %vm820_vm0, %v801_v7  ;;  %v11013_v7 = vld [vmem:[%s10459_s6 + $0x62] sm:$0xff] }
 0x116   : > { %8594 = vmatmul.mubr.msk.f32.gmra.mxu1 %vm820_vm0, %v10841_v8  ;;  %1167 = vmatprep.mubr.f32.mxu0 %v14532_v0 }
 0x117   : > { %1520 = vmatprep.mubr.f32.mxu1 %v14532_v0 }
 0x119   : > { %8563 = vmatmul.mubr.msk.f32.gmra.mxu0 %vm820_vm0, %v802_v9  ;;  %v11022_v9 = vld [vmem:[%s10459_s6 + $0x6a] sm:$0xff] }
 0x11a   : > { %8595 = vmatmul.mubr.msk.f32.gmra.mxu1 %vm820_vm0, %v10850_v10  ;;  %1736 = vmatprep.mubr.f32.mxu0 %v14532_v0 }
 0x11b   : > { %2203 = vmatprep.mubr.f32.mxu1 %v14532_v0 }
 0x11d   : > { %8612 = vmatmul.mubr.msk.f32.vlgmr.msra.gmra.mxu0 %vm820_vm0, %v1527_v12  ;;  %v11043_v12 = vld [vmem:[%s10459_s6 + $0x82] sm:$0xff] }
 0x11e   : > { %8692 = vmatmul.mubr.msk.f32.vlgmr.msra.gmra.mxu1 %vm820_vm0, %v10499_v42  ;;  %1742 = vmatprep.mubr.f32.mxu0 %v14532_v0  ;;  %v8768_v42 = vld [vmem:[%s14647_s22 + $0x260] sm:$0xff] }
 0x11f   : > { %2209 = vmatprep.mubr.f32.mxu1 %v14532_v0  ;;  %2622 = vmatpush1.msra.mxu0 %v8770_v13 }
 0x120   : > { %3088 = vmatpush1.msra.mxu1 %v8850_v14  ;;  %2623 = vmatprep.subr.mxu0 %v8769_v15 }
 0x121   : > { %3089 = vmatprep.subr.mxu1 %v8849_v17  ;;  %8613 = vmatmul.mubr.msk.f32.gmra.mxu0 %vm820_vm0, %v1528_v18 }
 0x122   : > { %8693 = vmatmul.mubr.msk.f32.gmra.mxu1 %vm820_vm0, %v10514_v46  ;;  %1748 = vmatprep.mubr.f32.mxu0 %v14532_v0  ;;  %v8766_v46 = vld [vmem:[%s14647_s22 + $0x250] sm:$0xff] }
 0x123   : > { %2215 = vmatprep.mubr.f32.mxu1 %v14532_v0  ;;  %2624 = vmatpush1.msra.mxu0 %v8768_v42 }
 0x124   : > { %3090 = vmatpush1.msra.mxu1 %v8848_v19  ;;  %2625 = vmatprep.subr.mxu0 %v8767_v21  ;;  %v11112_v21 = vld [vmem:[%s10459_s6 + $0xda] sm:$0xff] }
 0x125   : > { %3091 = vmatprep.subr.mxu1 %v8847_v22  ;;  %8614 = vmatmul.mubr.msk.f32.gmra.mxu0 %vm820_vm0, %v10893_v23 }
 0x126   : > { %8694 = vmatmul.mubr.msk.f32.gmra.mxu1 %vm820_vm0, %v10529_v50  ;;  %1754 = vmatprep.mubr.f32.mxu0 %v14532_v0  ;;  %v8764_v50 = vld [vmem:[%s14647_s22 + $0x240] sm:$0xff] }
 0x127   : > { %2221 = vmatprep.mubr.f32.mxu1 %v14532_v0  ;;  %2626 = vmatpush1.msra.mxu0 %v8766_v46 }
 0x128   : > { %3092 = vmatpush1.msra.mxu1 %v8846_v25  ;;  %2627 = vmatprep.subr.mxu0 %v8765_v26 }
 0x129   : > { %3093 = vmatprep.subr.mxu1 %v8845_v27  ;;  %8615 = vmatmul.mubr.msk.f32.gmra.mxu0 %vm820_vm0, %v10914_v29 }
 0x12a   : > { %8695 = vmatmul.mubr.msk.f32.gmra.mxu1 %vm820_vm0, %v10544_v54  ;;  %1760 = vmatprep.mubr.f32.mxu0 %v14532_v0  ;;  %v8762_v54 = vld [vmem:[%s14647_s22 + $0x230] sm:$0xff] }
 0x12b   : > { %2227 = vmatprep.mubr.f32.mxu1 %v14532_v0  ;;  %2628 = vmatpush1.msra.mxu0 %v8764_v50  ;;  %v11125_v50 = vld [vmem:[%s10459_s6 + $0xe2] sm:$0xff] }
 0x12c   : > { %3094 = vmatpush1.msra.mxu1 %v8844_v31  ;;  %2629 = vmatprep.subr.mxu0 %v8763_v33 }
 0x12d   : > { %3095 = vmatprep.subr.mxu1 %v8843_v35  ;;  %8616 = vmatmul.mubr.msk.f32.gmra.mxu0 %vm820_vm0, %v10935_v37 }
 0x12e   : > { %8696 = vmatmul.mubr.msk.f32.gmra.mxu1 %vm820_vm0, %v10571_v62  ;;  %1766 = vmatprep.mubr.f32.mxu0 %v14532_v0  ;;  %v8760_v62 = vld [vmem:[%s14647_s22 + $0x220] sm:$0xff] }
 0x12f   : > { %2233 = vmatprep.mubr.f32.mxu1 %v14532_v0  ;;  %2630 = vmatpush1.msra.mxu0 %v8762_v54 }
 0x130   : > { %3096 = vmatpush1.msra.mxu1 %v8842_v39  ;;  %2631 = vmatprep.subr.mxu0 %v8761_v41  ;;  %v11138_v41 = vld [vmem:[%s10459_s6 + $0xf2] sm:$0xff] }
 0x131   : > { %3097 = vmatprep.subr.mxu1 %v8841_v44  ;;  %8617 = vmatmul.mubr.msk.f32.gmra.mxu0 %vm820_vm0, %v10956_v47 }
 0x132   : > { %8697 = vmatmul.mubr.msk.f32.gmra.mxu1 %vm820_vm0, %v10592_v5  ;;  %1772 = vmatprep.mubr.f32.mxu0 %v14532_v0  ;;  %v8758_v5 = vld [vmem:[%s14647_s22 + $0x210] sm:$0xff] }
 0x133   : > { %2239 = vmatprep.mubr.f32.mxu1 %v14532_v0  ;;  %2632 = vmatpush1.msra.mxu0 %v8760_v62 }
 0x134   : > { %3098 = vmatpush1.msra.mxu1 %v8840_v49  ;;  %2633 = vmatprep.subr.mxu0 %v8759_v52 }
 0x135   : > { %3099 = vmatprep.subr.mxu1 %v8839_v55  ;;  %8618 = vmatmul.mubr.msk.f32.gmra.mxu0 %vm820_vm0, %v10977_v57 }
 0x136   : > { %8698 = vmatmul.mubr.msk.f32.gmra.mxu1 %vm820_vm0, %v10613_v11  ;;  %1778 = vmatprep.mubr.f32.mxu0 %v14532_v0  ;;  %v8756_v11 = vld [vmem:[%s14647_s22 + $0x200] sm:$0xff] }
 0x137   : > { %2245 = vmatprep.mubr.f32.mxu1 %v14532_v0  ;;  %2634 = vmatpush1.msra.mxu0 %v8758_v5  ;;  %v11151_v5 = vld [vmem:[%s10459_s6 + $0xfa] sm:$0xff] }
 0x138   : > { %3100 = vmatpush1.msra.mxu1 %v8838_v59  ;;  %2635 = vmatprep.subr.mxu0 %v8757_v61 }
 0x139   : > { %3101 = vmatprep.subr.mxu1 %v8837_v1  ;;  %8619 = vmatmul.mubr.msk.f32.gmra.mxu0 %vm820_vm0, %v10998_v3 }
 0x13a   : > { %8699 = vmatmul.mubr.msk.f32.gmra.mxu1 %vm820_vm0, %v10631_v16  ;;  %1784 = vmatprep.mubr.f32.mxu0 %v14532_v0  ;;  %v8931_v16 = vld [vmem:[%s14647_s22 + $0x378] sm:$0xff] }
 0x13b   : > { %2251 = vmatprep.mubr.f32.mxu1 %v14532_v0  ;;  %2636 = vmatpush1.msra.mxu0 %v8756_v11 }
 0x13c   : > { %3102 = vmatpush1.msra.mxu1 %v8836_v6  ;;  %3554 = vmatprep.subr.mxu0 %v8931_v16  ;;  %v11164_v16 = vld [vmem:[%s10459_s6 + $0x10a] sm:$0xff] }
 0x13d   : > { %8620 = vmatmul.mubr.msk.f32.gmra.mxu0 %vm820_vm0, %v11013_v7 }
 0x13e   : > { %8700 = vmatmul.mubr.msk.f32.gmra.mxu1 %vm820_vm0, %v10646_v20  ;;  %1790 = vmatprep.mubr.f32.mxu0 %v14532_v0  ;;  %v11034_v20 = vld [vmem:[%s10459_s6 + $0x7a] sm:$0xff] }
 0x13f   : > { %2257 = vmatprep.mubr.f32.mxu1 %v14532_v0 }
 0x141   : > { %8621 = vmatmul.mubr.msk.f32.gmra.mxu0 %vm820_vm0, %v11022_v9 }
 0x142   : > { %8701 = vmatmul.mubr.msk.f32.gmra.mxu1 %vm820_vm0, %v10661_v24  ;;  %1796 = vmatprep.mubr.f32.mxu0 %v14532_v0  ;;  %v11052_v24 = vld [vmem:[%s10459_s6 + $0x92] sm:$0xff] }
 0x143   : > { %2263 = vmatprep.mubr.f32.mxu1 %v14532_v0 }
 0x145   : > { %8622 = vmatmul.mubr.msk.f32.gmra.mxu0 %vm820_vm0, %v11034_v20 }
 0x146   : > { %8702 = vmatmul.mubr.msk.f32.gmra.mxu1 %vm820_vm0, %v10676_v28  ;;  %1802 = vmatprep.mubr.f32.mxu0 %v14532_v0  ;;  %v11061_v28 = vld [vmem:[%s10459_s6 + $0x9a] sm:$0xff] }
 0x147   : > { %2269 = vmatprep.mubr.f32.mxu1 %v14532_v0 }
 0x149   : > { %8623 = vmatmul.mubr.msk.f32.gmra.mxu0 %vm820_vm0, %v11043_v12 }
 0x14a   : > { %8703 = vmatmul.mubr.msk.f32.gmra.mxu1 %vm820_vm0, %v10685_v30  ;;  %1808 = vmatprep.mubr.f32.mxu0 %v14532_v0  ;;  %v11070_v30 = vld [vmem:[%s10459_s6 + $0xaa] sm:$0xff] }
 0x14b   : > { %2275 = vmatprep.mubr.f32.mxu1 %v14532_v0 }
 0x14d   : > { %8624 = vmatmul.mubr.msk.f32.gmra.mxu0 %vm820_vm0, %v11052_v24 }
 0x14e   : > { %8704 = vmatmul.mubr.msk.f32.gmra.mxu1 %vm820_vm0, %v10694_v32  ;;  %1814 = vmatprep.mubr.f32.mxu0 %v14532_v0  ;;  %v11079_v32 = vld [vmem:[%s10459_s6 + $0xb2] sm:$0xff] }
 0x14f   : > { %2281 = vmatprep.mubr.f32.mxu1 %v14532_v0 }
 0x151   : > { %8625 = vmatmul.mubr.msk.f32.gmra.mxu0 %vm820_vm0, %v11061_v28 }
 0x152   : > { %8705 = vmatmul.mubr.msk.f32.gmra.mxu1 %vm820_vm0, %v10703_v34  ;;  %1820 = vmatprep.mubr.f32.mxu0 %v14532_v0  ;;  %v11088_v34 = vld [vmem:[%s10459_s6 + $0xc2] sm:$0xff] }
 0x153   : > { %2287 = vmatprep.mubr.f32.mxu1 %v14532_v0 }
 0x155   : > { %8626 = vmatmul.mubr.msk.f32.gmra.mxu0 %vm820_vm0, %v11070_v30 }
 0x156   : > { %8706 = vmatmul.mubr.msk.f32.gmra.mxu1 %vm820_vm0, %v10712_v36  ;;  %1826 = vmatprep.mubr.f32.mxu0 %v14532_v0 }
 0x157   : > { %2293 = vmatprep.mubr.f32.mxu1 %v14532_v0 }
 0x159   : > { %8627 = vmatmul.mubr.msk.f32.gmra.mxu0 %vm820_vm0, %v11079_v32 }
 0x15a   : > { %8707 = vmatmul.mubr.msk.f32.gmra.mxu1 %vm820_vm0, %v10721_v38  ;;  %1832 = vmatprep.mubr.f32.mxu0 %v14532_v0  ;;  %v11099_v38 = vld [vmem:[%s10459_s6 + $0xca] sm:$0xff] }
 0x15b   : > { %2299 = vmatprep.mubr.f32.mxu1 %v14532_v0 }
 0x15d   : > { %v983_v13 = vpop.f32.mrf.mxu0  ;;  %8628 = vmatmul.mubr.msk.f32.gmra.mxu0 %vm820_vm0, %v11088_v34 }
 0x15e   : > { %v1336_v36 = vpop.f32.mrf.mxu1  ;;  %8708 = vmatmul.mubr.msk.f32.gmra.mxu1 %vm820_vm0, %v10730_v40  ;;  %1838 = vmatprep.mubr.f32.mxu0 %v14532_v0 }
 0x15f   : > { %v11095_v14 = vadd.f32 %v1336_v36, %v983_v13  ;;  %2305 = vmatprep.mubr.f32.mxu1 %v14532_v0  ;;  %v985_v15 = vpop.f32.mrf.mxu0 }
 0x160   : > { %v1338_v17 = vpop.f32.mrf.mxu1 }
 0x161   : > { %v11102_v18 = vadd.f32 %v1338_v17, %v985_v15  ;;  %v989_v42 = vpop.f32.mrf.mxu0  ;;  %8629 = vmatmul.mubr.msk.f32.gmra.mxu0 %vm820_vm0, %v11099_v38 }
 0x162   : > { %v1342_v19 = vpop.f32.mrf.mxu1  ;;  %8709 = vmatmul.mubr.msk.f32.gmra.mxu1 %vm820_vm0, %v10739_v43  ;;  %1844 = vmatprep.mubr.f32.mxu0 %v14532_v0 }
 0x163   : > { %v11108_v40 = vadd.f32 %v1342_v19, %v989_v42  ;;  %2311 = vmatprep.mubr.f32.mxu1 %v14532_v0  ;;  %v991_v22 = vpop.f32.mrf.mxu0  ;;  %v11177_v19 = vld [vmem:[%s10459_s6 + $0x112] sm:$0xff] }
 0x164   : > { %v1344_v46 = vpop.f32.mrf.mxu1 }
 0x165   : > { %v11115_v25 = vadd.f32 %v1344_v46, %v991_v22  ;;  %v995_v26 = vpop.f32.mrf.mxu0  ;;  %8630 = vmatmul.mubr.msk.f32.gmra.mxu0 %vm820_vm0, %v11112_v21 }
 0x166   : > { %v1348_v27 = vpop.f32.mrf.mxu1  ;;  %8710 = vmatmul.mubr.msk.f32.gmra.mxu1 %vm820_vm0, %v10748_v45  ;;  %1850 = vmatprep.mubr.f32.mxu0 %v14532_v0 }
 0x167   : > { %v11121_v43 = vadd.f32 %v1348_v27, %v995_v26  ;;  %2317 = vmatprep.mubr.f32.mxu1 %v14532_v0  ;;  %v997_v31 = vpop.f32.mrf.mxu0 }
 0x168   : > { %v1350_v33 = vpop.f32.mrf.mxu1 }
 0x169   : > { %v11128_v35 = vadd.f32 %v1350_v33, %v997_v31  ;;  %v1001_v54 = vpop.f32.mrf.mxu0  ;;  %8631 = vmatmul.mubr.msk.f32.gmra.mxu0 %vm820_vm0, %v11125_v50  ;;  %v11190_v33 = vld [vmem:[%s10459_s6 + $0x122] sm:$0xff] }
 0x16a   : > { %v1354_v39 = vpop.f32.mrf.mxu1  ;;  %8711 = vmatmul.mubr.msk.f32.gmra.mxu1 %vm820_vm0, %v10757_v48  ;;  %1856 = vmatprep.mubr.f32.mxu0 %v14532_v0 }
 0x16b   : > { %v11134_v45 = vadd.f32 %v1354_v39, %v1001_v54  ;;  %2323 = vmatprep.mubr.f32.mxu1 %v14532_v0  ;;  %v1003_v44 = vpop.f32.mrf.mxu0 }
 0x16c   : > { %v1356_v62 = vpop.f32.mrf.mxu1 }
 0x16d   : > { %v11141_v49 = vadd.f32 %v1356_v62, %v1003_v44  ;;  %v1007_v52 = vpop.f32.mrf.mxu0  ;;  %8632 = vmatmul.mubr.msk.f32.gmra.mxu0 %vm820_vm0, %v11138_v41 }
 0x16e   : > { %v1360_v55 = vpop.f32.mrf.mxu1  ;;  %8712 = vmatmul.mubr.msk.f32.gmra.mxu1 %vm820_vm0, %v10766_v51  ;;  %1862 = vmatprep.mubr.f32.mxu0 %v14532_v0 }
 0x16f   : > { %v11147_v48 = vadd.f32 %v1360_v55, %v1007_v52  ;;  %2329 = vmatprep.mubr.f32.mxu1 %v14532_v0  ;;  %v1009_v59 = vpop.f32.mrf.mxu0  ;;  %v11203_v55 = vld [vmem:[%s10459_s6 + $0x12a] sm:$0xff] }
 0x170   : > { %v1362_v61 = vpop.f32.mrf.mxu1 }
 0x171   : > { %v11154_v1 = vadd.f32 %v1362_v61, %v1009_v59  ;;  %v1013_v11 = vpop.f32.mrf.mxu0  ;;  %8633 = vmatmul.mubr.msk.f32.gmra.mxu0 %vm820_vm0, %v11151_v5 }
 0x172   : > { %v1366_v6 = vpop.f32.mrf.mxu1  ;;  %8713 = vmatmul.mubr.msk.f32.gmra.mxu1 %vm820_vm0, %v10775_v53  ;;  %1868 = vmatprep.mubr.f32.mxu0 %v14532_v0 }
 0x173   : > { %v11160_v51 = vadd.f32 %v1366_v6, %v1013_v11  ;;  %2335 = vmatprep.mubr.f32.mxu1 %v14532_v0  ;;  %v1015_v13 = vpop.f32.mrf.mxu0 }
 0x174   : > { %v1368_v36 = vpop.f32.mrf.mxu1 }
 0x175   : > { %v11167_v15 = vadd.f32 %v1368_v36, %v1015_v13  ;;  %v1019_v17 = vpop.f32.mrf.mxu0  ;;  %8634 = vmatmul.mubr.msk.f32.gmra.mxu0 %vm820_vm0, %v11164_v16  ;;  %v11216_v36 = vld [vmem:[%s10459_s6 + $0x13a] sm:$0xff] }
 0x176   : > { %v1372_v42 = vpop.f32.mrf.mxu1  ;;  %8714 = vmatmul.mubr.msk.f32.gmra.mxu1 %vm820_vm0, %v10784_v56  ;;  %1874 = vmatprep.mubr.f32.mxu0 %v14532_v0 }
 0x177   : > { %v11173_v53 = vadd.f32 %v1372_v42, %v1019_v17  ;;  %2341 = vmatprep.mubr.f32.mxu1 %v14532_v0  ;;  %v1021_v22 = vpop.f32.mrf.mxu0 }
 0x178   : > { %v1374_v46 = vpop.f32.mrf.mxu1 }
 0x179   : > { %v11180_v26 = vadd.f32 %v1374_v46, %v1021_v22  ;;  %v1025_v27 = vpop.f32.mrf.mxu0  ;;  %8635 = vmatmul.mubr.msk.f32.gmra.mxu0 %vm820_vm0, %v11177_v19 }
 0x17a   : > { %v1378_v31 = vpop.f32.mrf.mxu1  ;;  %8715 = vmatmul.mubr.msk.f32.gmra.mxu1 %vm820_vm0, %v10793_v58  ;;  %1880 = vmatprep.mubr.f32.mxu0 %v14532_v0 }
 0x17b   : > { %v11186_v56 = vadd.f32 %v1378_v31, %v1025_v27  ;;  %2347 = vmatprep.mubr.f32.mxu1 %v14532_v0  ;;  %v1027_v54 = vpop.f32.mrf.mxu0  ;;  %v11229_v31 = vld [vmem:[%s10459_s6 + $0x142] sm:$0xff] }
 0x17c   : > { %v1380_v39 = vpop.f32.mrf.mxu1 }
 0x17d   : > { %v11193_v44 = vadd.f32 %v1380_v39, %v1027_v54  ;;  %v1031_v62 = vpop.f32.mrf.mxu0  ;;  %8636 = vmatmul.mubr.msk.f32.gmra.mxu0 %vm820_vm0, %v11190_v33 }
 0x17e   : > { %v1384_v52 = vpop.f32.mrf.mxu1  ;;  %8716 = vmatmul.mubr.msk.f32.gmra.mxu1 %vm820_vm0, %v10802_v60  ;;  %1886 = vmatprep.mubr.f32.mxu0 %v14532_v0 }
 0x17f   : > { %v11199_v58 = vadd.f32 %v1384_v52, %v1031_v62  ;;  %2353 = vmatprep.mubr.f32.mxu1 %v14532_v0  ;;  %v1033_v59 = vpop.f32.mrf.mxu0 }
 0x180   : > { %v1386_v61 = vpop.f32.mrf.mxu1 }
 0x181   : > { %v11206_v11 = vadd.f32 %v1386_v61, %v1033_v59  ;;  %v1037_v6 = vpop.f32.mrf.mxu0  ;;  %8637 = vmatmul.mubr.msk.f32.gmra.mxu0 %vm820_vm0, %v11203_v55  ;;  %v11242_v61 = vld [vmem:[%s10459_s6 + $0x152] sm:$0xff] }
 0x182   : > { %v1390_v13 = vpop.f32.mrf.mxu1  ;;  %8717 = vmatmul.mubr.msk.f32.gmra.mxu1 %vm820_vm0, %v10811_v63  ;;  %1892 = vmatprep.mubr.f32.mxu0 %v14532_v0 }
 0x183   : > { %v11212_v60 = vadd.f32 %v1390_v13, %v1037_v6  ;;  %2359 = vmatprep.mubr.f32.mxu1 %v14532_v0  ;;  %v1039_v17 = vpop.f32.mrf.mxu0 }
 0x184   : > { %v1392_v42 = vpop.f32.mrf.mxu1 }
 0x185   : > { %v11219_v22 = vadd.f32 %v1392_v42, %v1039_v17  ;;  %v1043_v46 = vpop.f32.mrf.mxu0  ;;  %8638 = vmatmul.mubr.msk.f32.gmra.mxu0 %vm820_vm0, %v11216_v36 }
 0x186   : > { %v1396_v27 = vpop.f32.mrf.mxu1  ;;  %8718 = vmatmul.mubr.msk.f32.gmra.mxu1 %vm820_vm0, %v10820_v2  ;;  %1898 = vmatprep.mubr.f32.mxu0 %v14532_v0 }
 0x187   : > { %v11225_v63 = vadd.f32 %v1396_v27, %v1043_v46  ;;  %2365 = vmatprep.mubr.f32.mxu1 %v14532_v0  ;;  %v1045_v54 = vpop.f32.mrf.mxu0  ;;  %v11255_v27 = vld [vmem:[%s10459_s6 + $0x15a] sm:$0xff] }
 0x188   : > { %v1398_v39 = vpop.f32.mrf.mxu1 }
 0x189   : > { %v11232_v62 = vadd.f32 %v1398_v39, %v1045_v54  ;;  %v1049_v52 = vpop.f32.mrf.mxu0  ;;  %8639 = vmatmul.mubr.msk.f32.gmra.mxu0 %vm820_vm0, %v11229_v31  ;;  %v9011_v54 = vld [vmem:[%s14647_s22 + $0x3f8] sm:$0xff] }
 0x18a   : > { %v1402_v59 = vpop.f32.mrf.mxu1  ;;  %8719 = vmatmul.mubr.msk.f32.gmra.mxu1 %vm820_vm0, %v10829_v4  ;;  %1904 = vmatprep.mubr.f32.mxu0 %v14532_v0 }
 0x18b   : > { %v11238_v2 = vadd.f32 %v1402_v59, %v1049_v52  ;;  %2371 = vmatprep.mubr.f32.mxu1 %v14532_v0  ;;  %v1051_v6 = vpop.f32.mrf.mxu0  ;;  %4020 = vmatprep.subr.mxu1 %v9011_v54 }
 0x18c   : > { %v1404_v13 = vpop.f32.mrf.mxu1 }
 0x18d   : > { %v11245_v17 = vadd.f32 %v1404_v13, %v1051_v6  ;;  %v1055_v42 = vpop.f32.mrf.mxu0  ;;  %8640 = vmatmul.mubr.msk.f32.gmra.mxu0 %vm820_vm0, %v11242_v61 }
 0x18e   : > { %v1408_v46 = vpop.f32.mrf.mxu1  ;;  %8720 = vmatmul.mubr.msk.f32.gmra.mxu1 %vm820_vm0, %v10841_v8  ;;  %1910 = vmatprep.mubr.f32.mxu0 %v14532_v0 }
 0x18f   : > { %14649 = vst [vmem:[#allocation26_spill] sm:$0xff] %v11245_v17  ;;  %v11251_v4 = vadd.f32 %v1408_v46, %v1055_v42  ;;  %2377 = vmatprep.mubr.f32.mxu1 %v14532_v0  ;;  %v1057_v39 = vpop.f32.mrf.mxu0  ;;  %v11271_v42 = vld [vmem:[%s10459_s6 + $0x16a] sm:$0xff]  ;;  %v8674_v46 = vld [vmem:[%s10459_s6 + $0x180] sm:$0xff] }
 0x190   : > { %v1410_v52 = vpop.f32.mrf.mxu1  ;;  %14653 = vst [vmem:[#allocation30_spill] sm:$0xff] %v11271_v42 }
 0x191   : > { %14650 = vst [vmem:[#allocation27_spill] sm:$0xff] %v11251_v4  ;;  %v11261_v59 = vadd.f32 %v1410_v52, %v1057_v39  ;;  %v1061_v8 = vpop.f32.mrf.mxu0  ;;  %8641 = vmatmul.mubr.msk.f32.gmra.mxu0 %vm820_vm0, %v11255_v27 }
 0x192   : > { %v1414_v6 = vpop.f32.mrf.mxu1  ;;  %8721 = vmatmul.mubr.msk.f32.gmra.mxu1 %vm820_vm0, %v10850_v10  ;;  %1916 = vmatprep.mubr.f32.mxu0 %v14532_v0 }
 0x193   : > { %14651 = vst [vmem:[#allocation28_spill] sm:$0xff] %v11261_v59  ;;  %v11267_v13 = vadd.f32 %v1414_v6, %v1061_v8  ;;  %2383 = vmatprep.mubr.f32.mxu1 %v14532_v0  ;;  %v1063_v54 = vpop.f32.mrf.mxu0  ;;  %v11284_v8 = vld [vmem:[%s10459_s6 + $0x172] sm:$0xff]  ;;  %v8675_v6 = vld [vmem:[%s10459_s6 + $0x188] sm:$0xff] }
 0x194   : > { %v1416_v39 = vpop.f32.mrf.mxu1 }
 0x195   : > { %14652 = vst [vmem:[#allocation29_spill] sm:$0xff] %v11267_v13  ;;  %v11275_v52 = vadd.f32 %v1416_v39, %v1063_v54  ;;  %v1067_v59 = vpop.f32.mrf.mxu0  ;;  %8642 = vmatmul.mubr.msk.f32.gmra.mxu0 %vm820_vm0, %v11271_v42 }
 0x196   : > { %v1420_v4 = vpop.f32.mrf.mxu1  ;;  %8722 = vmatmul.mubr.msk.f32.gmra.mxu1 %vm820_vm0, %v8674_v46  ;;  %1922 = vmatprep.mubr.f32.mxu0 %v14532_v0 }
 0x197   : > { %14654 = vst [vmem:[#allocation31_spill] sm:$0xff] %v11275_v52  ;;  %v11280_v10 = vadd.f32 %v1420_v4, %v1067_v59  ;;  %2389 = vmatprep.mubr.f32.mxu1 %v14532_v0  ;;  %v1069_v13 = vpop.f32.mrf.mxu0  ;;  %v8724_v59 = vld [vmem:[%s10459_s6 + $0x19] sm:$0xff] }
 0x198   : > { %v1422_v54 = vpop.f32.mrf.mxu1 }
 0x199   : > { %14655 = vst [vmem:[#allocation32_spill] sm:$0xff] %v11280_v10  ;;  %v11288_v39 = vadd.f32 %v1422_v54, %v1069_v13  ;;  %v1073_v52 = vpop.f32.mrf.mxu0  ;;  %8643 = vmatmul.mubr.msk.f32.gmra.mxu0 %vm820_vm0, %v11284_v8  ;;  %v8930_v13 = vld [vmem:[%s14647_s22 + $0x370] sm:$0xff]  ;;  %v9009_v54 = vld [vmem:[%s14647_s22 + $0x3e8] sm:$0xff] }
 0x19a   : > { %v1426_v17 = vpop.f32.mrf.mxu1  ;;  %8723 = vmatmul.mubr.msk.f32.gmra.mxu1 %vm820_vm0, %v8675_v6  ;;  %2669 = vmatprep.mubr.f32.mxu0 %v14532_v0  ;;  %v9010_v6 = vld [vmem:[%s14647_s22 + $0x3f0] sm:$0xff] }
 0x19b   : > { %14656 = vst [vmem:[#allocation33_spill] sm:$0xff] %v11288_v39  ;;  %v11293_v4 = vadd.f32 %v1426_v17, %v1073_v52  ;;  %3135 = vmatprep.mubr.f32.mxu1 %v14532_v0  ;;  %v1075_v46 = vpop.f32.mrf.mxu0  ;;  %v8928_v39 = vld [vmem:[%s14647_s22 + $0x360] sm:$0xff] }
 0x19c   : > { %v1428_v10 = vpop.f32.mrf.mxu1 }
 0x19d   : > { %14657 = vst [vmem:[#allocation34_spill] sm:$0xff] %v11293_v4  ;;  %v11298_v42 = vadd.f32 %v1428_v10, %v1075_v46  ;;  %v1079_v17 = vpop.f32.mrf.mxu0  ;;  %8772 = vmatmul.mubr.msk.f32.vlgmr.msra.gmra.mxu0 %vm820_vm0, %v8724_v59  ;;  %v8929_v10 = vld [vmem:[%s14647_s22 + $0x368] sm:$0xff] }
 0x19e   : > { %v1432_v52 = vpop.f32.mrf.mxu1  ;;  %8852 = vmatmul.mubr.msk.f32.vlgmr.msra.gmra.mxu1 %vm820_vm0, %v10893_v23  ;;  %2675 = vmatprep.mubr.f32.mxu0 %v14532_v0 }
 0x19f   : > { %14658 = vst [vmem:[#allocation35_spill] sm:$0xff] %v11298_v42  ;;  %v11315_v46 = vadd.f32 %v1432_v52, %v1079_v17  ;;  %v8725_v42 = vld [vmem:[%s10459_s6 + $0x21] sm:$0xff]  ;;  %3141 = vmatprep.mubr.f32.mxu1 %v14532_v0  ;;  %v1081_v4 = vpop.f32.mrf.mxu0  ;;  %3555 = vmatpush1.msra.mxu0 %v8930_v13  ;;  %v9007_v13 = vld [vmem:[%s14647_s22 + $0x3d8] sm:$0xff] }
 0x1a0   : > { %v1434_v59 = vpop.f32.mrf.mxu1  ;;  %4021 = vmatpush1.msra.mxu1 %v9010_v6  ;;  %3556 = vmatprep.subr.mxu0 %v8929_v10  ;;  %v9008_v17 = vld [vmem:[%s14647_s22 + $0x3e0] sm:$0xff]  ;;  %v11341_v10 = vld [vmem:[%s10459_s6 + $0x31] sm:$0xff] }
 0x1a1   : > { %14659 = vst [vmem:[#allocation36_spill] sm:$0xff] %v11315_v46  ;;  %v11320_v23 = vadd.f32 %v1434_v59, %v1081_v4  ;;  %4022 = vmatprep.subr.mxu1 %v9009_v54  ;;  %v1085_v52 = vpop.f32.mrf.mxu0  ;;  %8773 = vmatmul.mubr.msk.f32.gmra.mxu0 %vm820_vm0, %v8725_v42  ;;  %v8927_v4 = vld [vmem:[%s14647_s22 + $0x358] sm:$0xff]  ;;  %v8926_v59 = vld [vmem:[%s14647_s22 + $0x350] sm:$0xff] }
 0x1a2   : > { %v1438_v46 = vpop.f32.mrf.mxu1  ;;  %8853 = vmatmul.mubr.msk.f32.gmra.mxu1 %vm820_vm0, %v10914_v29  ;;  %2681 = vmatprep.mubr.f32.mxu0 %v14532_v0 }
 0x1a3   : > { %v11337_v6 = vadd.f32 %v1438_v46, %v1085_v52  ;;  %3147 = vmatprep.mubr.f32.mxu1 %v14532_v0  ;;  %v1087_v42 = vpop.f32.mrf.mxu0  ;;  %3557 = vmatpush1.msra.mxu0 %v8928_v39  ;;  %v9006_v46 = vld [vmem:[%s14647_s22 + $0x3d0] sm:$0xff]  ;;  %v8925_v39 = vld [vmem:[%s14647_s22 + $0x348] sm:$0xff] }
 0x1a4   : > { %v1440_v54 = vpop.f32.mrf.mxu1  ;;  %4023 = vmatpush1.msra.mxu1 %v9008_v17  ;;  %3558 = vmatprep.subr.mxu0 %v8927_v4  ;;  %v9005_v17 = vld [vmem:[%s14647_s22 + $0x3c8] sm:$0xff] }
 0x1a5   : > { %14660 = vst [vmem:[#allocation37_spill] sm:$0xff] %v11337_v6  ;;  %v11344_v29 = vadd.f32 %v1440_v54, %v1087_v42  ;;  %4024 = vmatprep.subr.mxu1 %v9007_v13  ;;  %v1091_v52 = vpop.f32.mrf.mxu0  ;;  %8774 = vmatmul.mubr.msk.f32.gmra.mxu0 %vm820_vm0, %v11341_v10  ;;  %v11366_v13 = vld [vmem:[%s10459_s6 + $0x39] sm:$0xff] }
 0x1a6   : > { %v1444_v6 = vpop.f32.mrf.mxu1  ;;  %8854 = vmatmul.mubr.msk.f32.gmra.mxu1 %vm820_vm0, %v10935_v37  ;;  %2687 = vmatprep.mubr.f32.mxu0 %v14532_v0 }
 0x1a7   : > { %14661 = vst [vmem:[#allocation38_spill] sm:$0xff] %v11344_v29  ;;  %v11362_v4 = vadd.f32 %v1444_v6, %v1091_v52  ;;  %3153 = vmatprep.mubr.f32.mxu1 %v14532_v0  ;;  %v1093_v42 = vpop.f32.mrf.mxu0  ;;  %3559 = vmatpush1.msra.mxu0 %v8926_v59  ;;  %v8924_v29 = vld [vmem:[%s14647_s22 + $0x340] sm:$0xff]  ;;  %v8923_v59 = vld [vmem:[%s14647_s22 + $0x338] sm:$0xff] }
 0x1a8   : > { %v1446_v54 = vpop.f32.mrf.mxu1  ;;  %4025 = vmatpush1.msra.mxu1 %v9006_v46  ;;  %3560 = vmatprep.subr.mxu0 %v8925_v39  ;;  %v9004_v6 = vld [vmem:[%s14647_s22 + $0x3c0] sm:$0xff]  ;;  %v9003_v46 = vld [vmem:[%s14647_s22 + $0x3b8] sm:$0xff] }
 0x1a9   : > { %14662 = vst [vmem:[#allocation39_spill] sm:$0xff] %v11362_v4  ;;  %v11369_v37 = vadd.f32 %v1446_v54, %v1093_v42  ;;  %4026 = vmatprep.subr.mxu1 %v9005_v17  ;;  %v1097_v52 = vpop.f32.mrf.mxu0  ;;  %8775 = vmatmul.mubr.msk.f32.gmra.mxu0 %vm820_vm0, %v11366_v13  ;;  %v11391_v17 = vld [vmem:[%s10459_s6 + $0x49] sm:$0xff] }
 0x1aa   : > { %v1450_v4 = vpop.f32.mrf.mxu1  ;;  %8855 = vmatmul.mubr.msk.f32.gmra.mxu1 %vm820_vm0, %v10956_v47  ;;  %2693 = vmatprep.mubr.f32.mxu0 %v14532_v0  ;;  %14665 = vst [vmem:[#allocation42_spill] sm:$0xff] %v11391_v17 }
 0x1ab   : > { %14663 = vst [vmem:[#allocation40_spill] sm:$0xff] %v11369_v37  ;;  %v11387_v39 = vadd.f32 %v1450_v4, %v1097_v52  ;;  %3159 = vmatprep.mubr.f32.mxu1 %v14532_v0  ;;  %v1099_v42 = vpop.f32.mrf.mxu0  ;;  %3561 = vmatpush1.msra.mxu0 %v8924_v29  ;;  %v8922_v37 = vld [vmem:[%s14647_s22 + $0x330] sm:$0xff]  ;;  %v8921_v29 = vld [vmem:[%s14647_s22 + $0x328] sm:$0xff] }
 0x1ac   : > { %v1452_v54 = vpop.f32.mrf.mxu1  ;;  %4027 = vmatpush1.msra.mxu1 %v9004_v6  ;;  %3562 = vmatprep.subr.mxu0 %v8923_v59  ;;  %v9002_v4 = vld [vmem:[%s14647_s22 + $0x3b0] sm:$0xff]  ;;  %v9001_v6 = vld [vmem:[%s14647_s22 + $0x3a8] sm:$0xff] }
 0x1ad   : > { %14664 = vst [vmem:[#allocation41_spill] sm:$0xff] %v11387_v39  ;;  %v11394_v47 = vadd.f32 %v1452_v54, %v1099_v42  ;;  %4028 = vmatprep.subr.mxu1 %v9003_v46  ;;  %v1103_v52 = vpop.f32.mrf.mxu0  ;;  %8776 = vmatmul.mubr.msk.f32.gmra.mxu0 %vm820_vm0, %v11391_v17  ;;  %v14668_v46 = vmov 0.0   ;;  %v11416_v42 = vld [vmem:[%s10459_s6 + $0x51] sm:$0xff] }
 0x1ae   : > { %v1456_v0 = vpop.f32.mrf.mxu1  ;;  %8856 = vmatmul.mubr.msk.f32.gmra.mxu1 %vm820_vm0, %v10977_v57  ;;  %2699 = vmatprep.mubr.f32.mxu0 %v14668_v46  ;;  %14669 = vst [vmem:[#allocation45_spill] sm:$0xff] %v11416_v42 }
 0x1af   : > { %14666 = vst [vmem:[#allocation43_spill] sm:$0xff] %v11394_v47  ;;  %v11412_v59 = vadd.f32 %v1456_v0, %v1103_v52  ;;  %3165 = vmatprep.mubr.f32.mxu1 %v14668_v46  ;;  %v1105_v54 = vpop.f32.mrf.mxu0  ;;  %3563 = vmatpush1.msra.mxu0 %v8922_v37  ;;  %v8920_v0 = vld [vmem:[%s14647_s22 + $0x320] sm:$0xff]  ;;  %v8919_v37 = vld [vmem:[%s14647_s22 + $0x318] sm:$0xff] }
 0x1b0   : > { %v1458_v47 = vpop.f32.mrf.mxu1  ;;  %4029 = vmatpush1.msra.mxu1 %v9002_v4  ;;  %3564 = vmatprep.subr.mxu0 %v8921_v29  ;;  %v9000_v52 = vld [vmem:[%s14647_s22 + $0x3a0] sm:$0xff] }
 0x1b1   : > { %14667 = vst [vmem:[#allocation44_spill] sm:$0xff] %v11412_v59  ;;  %v11420_v57 = vadd.f32 %v1458_v47, %v1105_v54  ;;  %4030 = vmatprep.subr.mxu1 %v9001_v6  ;;  %v1109_v59 = vpop.f32.mrf.mxu0  ;;  %8777 = vmatmul.mubr.msk.f32.gmra.mxu0 %vm820_vm0, %v11416_v42  ;;  %v8999_v47 = vld [vmem:[%s14647_s22 + $0x398] sm:$0xff]  ;;  %v11442_v29 = vld [vmem:[%s10459_s6 + $0x61] sm:$0xff] }
 0x1b2   : > { %v1462_v39 = vpop.f32.mrf.mxu1  ;;  %8857 = vmatmul.mubr.msk.f32.gmra.mxu1 %vm820_vm0, %v10998_v3  ;;  %2705 = vmatprep.mubr.f32.mxu0 %v14668_v46  ;;  %14672 = vst [vmem:[#allocation48_spill] sm:$0xff] %v11442_v29  ;;  %v8916_v42 = vld [vmem:[%s14647_s22 + $0x300] sm:$0xff] }
 0x1b3   : > { %14670 = vst [vmem:[#allocation46_spill] sm:$0xff] %v11420_v57  ;;  %v11438_v4 = vadd.f32 %v1462_v39, %v1109_v59  ;;  %3171 = vmatprep.mubr.f32.mxu1 %v14668_v46  ;;  %v1111_v3 = vpop.f32.mrf.mxu0  ;;  %3565 = vmatpush1.msra.mxu0 %v8920_v0  ;;  %v8918_v39 = vld [vmem:[%s14647_s22 + $0x310] sm:$0xff]  ;;  %v8917_v59 = vld [vmem:[%s14647_s22 + $0x308] sm:$0xff] }
 0x1b4   : > { %v1464_v6 = vpop.f32.mrf.mxu1  ;;  %4031 = vmatpush1.msra.mxu1 %v9000_v52  ;;  %3566 = vmatprep.subr.mxu0 %v8919_v37  ;;  %v8997_v52 = vld [vmem:[%s14647_s22 + $0x388] sm:$0xff]  ;;  %v11466_v37 = vld [vmem:[%s722_s19] sm:$0xff] }
 0x1b5   : > { %14671 = vst [vmem:[#allocation47_spill] sm:$0xff] %v11438_v4  ;;  %v11448_v54 = vadd.f32 %v1464_v6, %v1111_v3  ;;  %4032 = vmatprep.subr.mxu1 %v8999_v47  ;;  %v8998_v4 = vld [vmem:[%s14647_s22 + $0x390] sm:$0xff]  ;;  %v1115_v57 = vpop.f32.mrf.mxu0  ;;  %8778 = vmatmul.mubr.msk.f32.gmra.mxu0 %vm820_vm0, %v11442_v29  ;;  %14675 = vst [vmem:[#allocation50_spill] sm:$0xff] %v11466_v37  ;;  %v11468_v3 = vld [vmem:[%s722_s19 + $0x8] sm:$0xff] }
 0x1b6   : > { %v1468_v0 = vpop.f32.mrf.mxu1  ;;  %8858 = vmatmul.mubr.msk.f32.gmra.mxu1 %vm820_vm0, %v11013_v7  ;;  %14676 = vst [vmem:[#allocation51_spill] sm:$0xff] %v11468_v3  ;;  %2711 = vmatprep.mubr.f32.mxu0 %v14668_v46  ;;  %v11474_v6 = vld [vmem:[%s10459_s6 + $0x69] sm:$0xff] }
 0x1b7   : > { %14674 = vst [vmem:[#allocation49_spill] sm:$0xff] %v11448_v54  ;;  %v11470_v47 = vadd.f32 %v1468_v0, %v1115_v57  ;;  %3177 = vmatprep.mubr.f32.mxu1 %v14668_v46  ;;  %v1117_v54 = vpop.f32.mrf.mxu0  ;;  %3567 = vmatpush1.msra.mxu0 %v8918_v39  ;;  %v8996_v57 = vld [vmem:[%s14647_s22 + $0x380] sm:$0xff]  ;;  %v5023_v0 = vmax.f32 %v11466_v37, %v11468_v3 }
 0x1b8   : > { %v1470_v29 = vpop.f32.mrf.mxu1  ;;  %4033 = vmatpush1.msra.mxu1 %v8998_v4  ;;  %3568 = vmatprep.subr.mxu0 %v8917_v59 }
 0x1b9   : > { %14677 = vst [vmem:[#allocation52_spill] sm:$0xff] %v11470_v47  ;;  %v11477_v7 = vadd.f32 %v1470_v29, %v1117_v54  ;;  %4034 = vmatprep.subr.mxu1 %v8997_v52  ;;  %v1121_v47 = vpop.f32.mrf.mxu0  ;;  %8779 = vmatmul.mubr.msk.f32.gmra.mxu0 %vm820_vm0, %v11474_v6  ;;  %v11495_v29 = vld [vmem:[%s10459_s6 + $0x79] sm:$0xff] }
 0x1ba   : > { %v1474_v17 = vpop.f32.mrf.mxu1  ;;  %8859 = vmatmul.mubr.msk.f32.gmra.mxu1 %vm820_vm0, %v11022_v9  ;;  %2717 = vmatprep.mubr.f32.mxu0 %v14668_v46 }
 0x1bb   : > { %v11491_v4 = vadd.f32 %v1474_v17, %v1121_v47  ;;  %3183 = vmatprep.mubr.f32.mxu1 %v14668_v46  ;;  %v1123_v54 = vpop.f32.mrf.mxu0  ;;  %3569 = vmatpush1.msra.mxu0 %v8916_v42  ;;  %v11509_v42 = vld [vmem:[%s10459_s6 + $0x81] sm:$0xff]  ;;  %v9091_v47 = vld [vmem:[%s14647_s22 + $0x478] sm:$0xff] }
 0x1bc   : > { %v1476_v39 = vpop.f32.mrf.mxu1  ;;  %4035 = vmatpush1.msra.mxu1 %v8996_v57  ;;  %5024 = vmax.xlane.f32.xlu0 %v5023_v0 }
 0x1bd   : > { %v11498_v59 = vadd.f32 %v1476_v39, %v1123_v54  ;;  %5141 = vmatprep.subr.mxu1 %v14668_v46  ;;  %v1127_v52 = vpop.f32.mrf.mxu0  ;;  %8780 = vmatmul.mubr.msk.f32.gmra.mxu0 %vm820_vm0, %v11495_v29 }
 0x1be   : > { %v1480_v9 = vpop.f32.mrf.mxu1  ;;  %8860 = vmatmul.mubr.msk.f32.gmra.mxu1 %vm820_vm0, %v11034_v20  ;;  %2723 = vmatprep.mubr.f32.mxu0 %v14668_v46 }
 0x1bf   : > { %v11505_v17 = vadd.f32 %v1480_v9, %v1127_v52  ;;  %3189 = vmatprep.mubr.f32.mxu1 %v14668_v46  ;;  %v1129_v57 = vpop.f32.mrf.mxu0  ;;  %4486 = vmatprep.subr.mxu0 %v9091_v47  ;;  %v11525_v9 = vld [vmem:[%s10459_s6 + $0x91] sm:$0xff] }
 0x1c0   : > { %v1482_v0 = vpop.f32.mrf.mxu1 }
 0x1c1   : > { %v11515_v54 = vadd.f32 %v1482_v0, %v1129_v57  ;;  %v1133_v39 = vpop.f32.mrf.mxu0  ;;  %8781 = vmatmul.mubr.msk.f32.gmra.mxu0 %vm820_vm0, %v11509_v42 }
 0x1c2   : > { %v1486_v20 = vpop.f32.mrf.mxu1  ;;  %8861 = vmatmul.mubr.msk.f32.gmra.mxu1 %vm820_vm0, %v11043_v12  ;;  %2729 = vmatprep.mubr.f32.mxu0 %v14668_v46 }
 0x1c3   : > { %v11521_v52 = vadd.f32 %v1486_v20, %v1133_v39  ;;  %3195 = vmatprep.mubr.f32.mxu1 %v14668_v46  ;;  %v1135_v47 = vpop.f32.mrf.mxu0  ;;  %v11538_v39 = vld [vmem:[%s10459_s6 + $0x99] sm:$0xff] }
 0x1c4   : > { %v1488_v57 = vpop.f32.mrf.mxu1 }
 0x1c5   : > { %14678 = vst [vmem:[#allocation53_spill] sm:$0xff] %v11521_v52  ;;  %v11528_v0 = vadd.f32 %v1488_v57, %v1135_v47  ;;  %v1139_v3 = vpop.f32.mrf.mxu0  ;;  %8782 = vmatmul.mubr.msk.f32.gmra.mxu0 %vm820_vm0, %v11525_v9 }
 0x1c6   : > { %v1492_v37 = vpop.f32.mrf.mxu1  ;;  %8862 = vmatmul.mubr.msk.f32.gmra.mxu1 %vm820_vm0, %v11052_v24  ;;  %2735 = vmatprep.mubr.f32.mxu0 %v14668_v46 }
 0x1c7   : > { %14679 = vst [vmem:[#allocation54_spill] sm:$0xff] %v11528_v0  ;;  %v11534_v12 = vadd.f32 %v1492_v37, %v1139_v3  ;;  %3201 = vmatprep.mubr.f32.mxu1 %v14668_v46  ;;  %v1141_v20 = vpop.f32.mrf.mxu0  ;;  %v11551_v37 = vld [vmem:[%s10459_s6 + $0xa9] sm:$0xff] }
 0x1c8   : > { %v1494_v47 = vpop.f32.mrf.mxu1 }
 0x1c9   : > { %14680 = vst [vmem:[#allocation55_spill] sm:$0xff] %v11534_v12  ;;  %v11541_v57 = vadd.f32 %v1494_v47, %v1141_v20  ;;  %v1145_v0 = vpop.f32.mrf.mxu0  ;;  %8783 = vmatmul.mubr.msk.f32.gmra.mxu0 %vm820_vm0, %v11538_v39 }
 0x1ca   : > { %v1498_v52 = vpop.f32.mrf.mxu1  ;;  %8863 = vmatmul.mubr.msk.f32.gmra.mxu1 %vm820_vm0, %v11061_v28  ;;  %2741 = vmatprep.mubr.f32.mxu0 %v14668_v46 }
 0x1cb   : > { %14681 = vst [vmem:[#allocation56_spill] sm:$0xff] %v11541_v57  ;;  %v11547_v24 = vadd.f32 %v1498_v52, %v1145_v0  ;;  %3207 = vmatprep.mubr.f32.mxu1 %v14668_v46  ;;  %v1147_v3 = vpop.f32.mrf.mxu0  ;;  %v11564_v52 = vld [vmem:[%s10459_s6 + $0xb1] sm:$0xff] }
 0x1cc   : > { %v1500_v20 = vpop.f32.mrf.mxu1 }
 0x1cd   : > { %14682 = vst [vmem:[#allocation57_spill] sm:$0xff] %v11547_v24  ;;  %v11554_v47 = vadd.f32 %v1500_v20, %v1147_v3  ;;  %v1151_v57 = vpop.f32.mrf.mxu0  ;;  %8784 = vmatmul.mubr.msk.f32.gmra.mxu0 %vm820_vm0, %v11551_v37 }
 0x1ce   : > { %v1504_v12 = vpop.f32.mrf.mxu1  ;;  %8864 = vmatmul.mubr.msk.f32.gmra.mxu1 %vm820_vm0, %v11070_v30  ;;  %2747 = vmatprep.mubr.f32.mxu0 %v14668_v46 }
 0x1cf   : > { %14683 = vst [vmem:[#allocation58_spill] sm:$0xff] %v11554_v47  ;;  %v11560_v28 = vadd.f32 %v1504_v12, %v1151_v57  ;;  %3213 = vmatprep.mubr.f32.mxu1 %v14668_v46  ;;  %v1153_v0 = vpop.f32.mrf.mxu0  ;;  %v11577_v12 = vld [vmem:[%s10459_s6 + $0xc1] sm:$0xff] }
 0x1d0   : > { %v1506_v3 = vpop.f32.mrf.mxu1 }
 0x1d1   : > { %14684 = vst [vmem:[#allocation59_spill] sm:$0xff] %v11560_v28  ;;  %v11567_v20 = vadd.f32 %v1506_v3, %v1153_v0  ;;  %v1157_v47 = vpop.f32.mrf.mxu0  ;;  %8785 = vmatmul.mubr.msk.f32.gmra.mxu0 %vm820_vm0, %v11564_v52 }
 0x1d2   : > { %v1510_v24 = vpop.f32.mrf.mxu1  ;;  %8865 = vmatmul.mubr.msk.f32.gmra.mxu1 %vm820_vm0, %v11079_v32  ;;  %2753 = vmatprep.mubr.f32.mxu0 %v14668_v46 }
 0x1d3   : > { %14685 = vst [vmem:[#allocation60_spill] sm:$0xff] %v11567_v20  ;;  %v11573_v30 = vadd.f32 %v1510_v24, %v1157_v47  ;;  %3219 = vmatprep.mubr.f32.mxu1 %v14668_v46  ;;  %v1159_v57 = vpop.f32.mrf.mxu0  ;;  %v11590_v24 = vld [vmem:[%s10459_s6 + $0xc9] sm:$0xff] }
 0x1d4   : > { %v1512_v0 = vpop.f32.mrf.mxu1 }
 0x1d5   : > { %14686 = vst [vmem:[#allocation61_spill] sm:$0xff] %v11573_v30  ;;  %v11580_v3 = vadd.f32 %v1512_v0, %v1159_v57  ;;  %v1163_v20 = vpop.f32.mrf.mxu0  ;;  %8786 = vmatmul.mubr.msk.f32.gmra.mxu0 %vm820_vm0, %v11577_v12 }
 0x1d6   : > { %v1516_v28 = vpop.f32.mrf.mxu1  ;;  %8866 = vmatmul.mubr.msk.f32.gmra.mxu1 %vm820_vm0, %v11088_v34  ;;  %2759 = vmatprep.mubr.f32.mxu0 %v14668_v46 }
 0x1d7   : > { %14687 = vst [vmem:[#allocation62_spill] sm:$0xff] %v11580_v3  ;;  %v11586_v32 = vadd.f32 %v1516_v28, %v1163_v20  ;;  %3225 = vmatprep.mubr.f32.mxu1 %v14668_v46  ;;  %v1165_v47 = vpop.f32.mrf.mxu0  ;;  %v11603_v28 = vld [vmem:[%s10459_s6 + $0xd9] sm:$0xff] }
 0x1d8   : > { %v1518_v57 = vpop.f32.mrf.mxu1  ;;  %14691 = vst [vmem:[#allocation66_spill] sm:$0xff] %v11603_v28 }
 0x1d9   : > { %14688 = vst [vmem:[#allocation63_spill] sm:$0xff] %v11586_v32  ;;  %v11593_v0 = vadd.f32 %v1518_v57, %v1165_v47  ;;  %v1169_v3 = vpop.f32.mrf.mxu0  ;;  %8787 = vmatmul.mubr.msk.f32.gmra.mxu0 %vm820_vm0, %v11590_v24 }
 0x1da   : > { %v1522_v30 = vpop.f32.mrf.mxu1  ;;  %8867 = vmatmul.mubr.msk.f32.gmra.mxu1 %vm820_vm0, %v11099_v38  ;;  %2765 = vmatprep.mubr.f32.mxu0 %v14668_v46 }
 0x1db   : > { %14689 = vst [vmem:[#allocation64_spill] sm:$0xff] %v11593_v0  ;;  %v11599_v34 = vadd.f32 %v1522_v30, %v1169_v3  ;;  %3231 = vmatprep.mubr.f32.mxu1 %v14668_v46  ;;  %v1171_v20 = vpop.f32.mrf.mxu0  ;;  %v11615_v30 = vld [vmem:[%s10459_s6 + $0xe1] sm:$0xff] }
 0x1dc   : > { %v1524_v47 = vpop.f32.mrf.mxu1 }
 0x1dd   : > { %14690 = vst [vmem:[#allocation65_spill] sm:$0xff] %v11599_v34  ;;  %v11606_v57 = vadd.f32 %v1524_v47, %v1171_v20  ;;  %v1738_v0 = vpop.f32.mrf.mxu0  ;;  %8788 = vmatmul.mubr.msk.f32.gmra.mxu0 %vm820_vm0, %v11603_v28  ;;  %v11630_v28 = vld [vmem:[%s10459_s6 + $0xf1] sm:$0xff] }
 0x1de   : > { %v2205_v32 = vpop.f32.mrf.mxu1  ;;  %8868 = vmatmul.mubr.msk.f32.gmra.mxu1 %vm820_vm0, %v11112_v21  ;;  %v1929_v38 = vadd.f32 %v1738_v0, %v11095_v14  ;;  %2771 = vmatprep.mubr.f32.mxu0 %v14668_v46 }
 0x1df   : > { %14692 = vst [vmem:[#allocation67_spill] sm:$0xff] %v11606_v57  ;;  %3237 = vmatprep.mubr.f32.mxu1 %v14668_v46  ;;  %v1740_v3 = vpop.f32.mrf.mxu0 }
 0x1e0   : > { %v2207_v20 = vpop.f32.mrf.mxu1  ;;  %v1930_v47 = vadd.f32 %v1740_v3, %v11102_v18  ;;  %v11619_v57 = vadd.f32 %v2205_v32, %v1929_v38 }
 0x1e1   : > { %v1744_v34 = vpop.f32.mrf.mxu0  ;;  %8789 = vmatmul.mubr.msk.f32.gmra.mxu0 %vm820_vm0, %v11615_v30 }
 0x1e2   : > { %14693 = vst [vmem:[#allocation68_spill] sm:$0xff] %v11619_v57  ;;  %v2211_v21 = vpop.f32.mrf.mxu1  ;;  %8869 = vmatmul.mubr.msk.f32.gmra.mxu1 %vm820_vm0, %v11125_v50  ;;  %v1931_v14 = vadd.f32 %v1744_v34, %v11108_v40  ;;  %v11626_v0 = vadd.f32 %v2207_v20, %v1930_v47  ;;  %2777 = vmatprep.mubr.f32.mxu0 %v14668_v46  ;;  %v11645_v20 = vld [vmem:[%s10459_s6 + $0xf9] sm:$0xff] }
 0x1e3   : > { %3243 = vmatprep.mubr.f32.mxu1 %v14668_v46  ;;  %v1746_v18 = vpop.f32.mrf.mxu0 }
 0x1e4   : > { %v2213_v32 = vpop.f32.mrf.mxu1  ;;  %v1932_v38 = vadd.f32 %v1746_v18, %v11115_v25  ;;  %v11634_v3 = vadd.f32 %v2211_v21, %v1931_v14 }
 0x1e5   : > { %v1750_v57 = vpop.f32.mrf.mxu0  ;;  %8790 = vmatmul.mubr.msk.f32.gmra.mxu0 %vm820_vm0, %v11630_v28 }
 0x1e6   : > { %v2217_v40 = vpop.f32.mrf.mxu1  ;;  %8870 = vmatmul.mubr.msk.f32.gmra.mxu1 %vm820_vm0, %v11138_v41  ;;  %v1933_v50 = vadd.f32 %v1750_v57, %v11121_v43  ;;  %v11641_v34 = vadd.f32 %v2213_v32, %v1932_v38  ;;  %2783 = vmatprep.mubr.f32.mxu0 %v14668_v46  ;;  %v11660_v32 = vld [vmem:[%s10459_s6 + $0x109] sm:$0xff] }
 0x1e7   : > { %3249 = vmatprep.mubr.f32.mxu1 %v14668_v46  ;;  %v1752_v25 = vpop.f32.mrf.mxu0 }
 0x1e8   : > { %v2219_v47 = vpop.f32.mrf.mxu1  ;;  %v1934_v21 = vadd.f32 %v1752_v25, %v11128_v35  ;;  %v11649_v14 = vadd.f32 %v2217_v40, %v1933_v50 }
 0x1e9   : > { %v1756_v18 = vpop.f32.mrf.mxu0  ;;  %8791 = vmatmul.mubr.msk.f32.gmra.mxu0 %vm820_vm0, %v11645_v20 }
 0x1ea   : > { %v2223_v43 = vpop.f32.mrf.mxu1  ;;  %8871 = vmatmul.mubr.msk.f32.gmra.mxu1 %vm820_vm0, %v11151_v5  ;;  %v1935_v41 = vadd.f32 %v1756_v18, %v11134_v45  ;;  %v11656_v57 = vadd.f32 %v2219_v47, %v1934_v21  ;;  %2789 = vmatprep.mubr.f32.mxu0 %v14668_v46  ;;  %v11675_v21 = vld [vmem:[%s10459_s6 + $0x111] sm:$0xff] }
 0x1eb   : > { %3255 = vmatprep.mubr.f32.mxu1 %v14668_v46  ;;  %v1758_v35 = vpop.f32.mrf.mxu0 }
 0x1ec   : > { %v2225_v38 = vpop.f32.mrf.mxu1  ;;  %v1936_v40 = vadd.f32 %v1758_v35, %v11141_v49  ;;  %v11664_v50 = vadd.f32 %v2223_v43, %v1935_v41 }
 0x1ed   : > { %v1762_v25 = vpop.f32.mrf.mxu0  ;;  %8792 = vmatmul.mubr.msk.f32.gmra.mxu0 %vm820_vm0, %v11660_v32 }
 0x1ee   : > { %v2229_v45 = vpop.f32.mrf.mxu1  ;;  %8872 = vmatmul.mubr.msk.f32.gmra.mxu1 %vm820_vm0, %v11164_v16  ;;  %v1937_v5 = vadd.f32 %v1762_v25, %v11147_v48  ;;  %v11671_v47 = vadd.f32 %v2225_v38, %v1936_v40  ;;  %2795 = vmatprep.mubr.f32.mxu0 %v14668_v46  ;;  %v11690_v40 = vld [vmem:[%s10459_s6 + $0x121] sm:$0xff] }
 0x1ef   : > { %3261 = vmatprep.mubr.f32.mxu1 %v14668_v46  ;;  %v1764_v49 = vpop.f32.mrf.mxu0 }
 0x1f0   : > { %v2231_v18 = vpop.f32.mrf.mxu1  ;;  %v1938_v43 = vadd.f32 %v1764_v49, %v11154_v1  ;;  %v11679_v41 = vadd.f32 %v2229_v45, %v1937_v5 }
 0x1f1   : > { %v1768_v35 = vpop.f32.mrf.mxu0  ;;  %8793 = vmatmul.mubr.msk.f32.gmra.mxu0 %vm820_vm0, %v11675_v21 }
 0x1f2   : > { %v2235_v48 = vpop.f32.mrf.mxu1  ;;  %8873 = vmatmul.mubr.msk.f32.gmra.mxu1 %vm820_vm0, %v11177_v19  ;;  %v1939_v16 = vadd.f32 %v1768_v35, %v11160_v51  ;;  %v11686_v38 = vadd.f32 %v2231_v18, %v1938_v43  ;;  %2801 = vmatprep.mubr.f32.mxu0 %v14668_v46  ;;  %v11705_v43 = vld [vmem:[%s10459_s6 + $0x129] sm:$0xff] }
 0x1f3   : > { %3267 = vmatprep.mubr.f32.mxu1 %v14668_v46  ;;  %v1770_v1 = vpop.f32.mrf.mxu0 }
 0x1f4   : > { %v2237_v25 = vpop.f32.mrf.mxu1  ;;  %v1940_v45 = vadd.f32 %v1770_v1, %v11167_v15  ;;  %v11694_v5 = vadd.f32 %v2235_v48, %v1939_v16 }
 0x1f5   : > { %v1774_v49 = vpop.f32.mrf.mxu0  ;;  %8794 = vmatmul.mubr.msk.f32.gmra.mxu0 %vm820_vm0, %v11690_v40 }
 0x1f6   : > { %v2241_v51 = vpop.f32.mrf.mxu1  ;;  %8874 = vmatmul.mubr.msk.f32.gmra.mxu1 %vm820_vm0, %v11190_v33  ;;  %v1941_v19 = vadd.f32 %v1774_v49, %v11173_v53  ;;  %v11701_v18 = vadd.f32 %v2237_v25, %v1940_v45  ;;  %2807 = vmatprep.mubr.f32.mxu0 %v14668_v46  ;;  %v11720_v45 = vld [vmem:[%s10459_s6 + $0x139] sm:$0xff] }
 0x1f7   : > { %3273 = vmatprep.mubr.f32.mxu1 %v14668_v46  ;;  %v1776_v15 = vpop.f32.mrf.mxu0 }
 0x1f8   : > { %v2243_v35 = vpop.f32.mrf.mxu1  ;;  %v1942_v48 = vadd.f32 %v1776_v15, %v11180_v26  ;;  %v11709_v16 = vadd.f32 %v2241_v51, %v1941_v19 }
 0x1f9   : > { %v1780_v1 = vpop.f32.mrf.mxu0  ;;  %8795 = vmatmul.mubr.msk.f32.gmra.mxu0 %vm820_vm0, %v11705_v43 }
 0x1fa   : > { %v2247_v53 = vpop.f32.mrf.mxu1  ;;  %8875 = vmatmul.mubr.msk.f32.gmra.mxu1 %vm820_vm0, %v11203_v55  ;;  %v1943_v33 = vadd.f32 %v1780_v1, %v11186_v56  ;;  %v11716_v25 = vadd.f32 %v2243_v35, %v1942_v48  ;;  %2813 = vmatprep.mubr.f32.mxu0 %v14668_v46  ;;  %v11735_v48 = vld [vmem:[%s10459_s6 + $0x141] sm:$0xff] }
 0x1fb   : > { %3279 = vmatprep.mubr.f32.mxu1 %v14668_v46  ;;  %v1782_v26 = vpop.f32.mrf.mxu0 }
 0x1fc   : > { %v2249_v49 = vpop.f32.mrf.mxu1  ;;  %v1944_v51 = vadd.f32 %v1782_v26, %v11193_v44  ;;  %v11724_v19 = vadd.f32 %v2247_v53, %v1943_v33 }
 0x1fd   : > { %v1786_v15 = vpop.f32.mrf.mxu0  ;;  %8796 = vmatmul.mubr.msk.f32.gmra.mxu0 %vm820_vm0, %v11720_v45 }
 0x1fe   : > { %v2253_v56 = vpop.f32.mrf.mxu1  ;;  %8876 = vmatmul.mubr.msk.f32.gmra.mxu1 %vm820_vm0, %v11216_v36  ;;  %v1945_v55 = vadd.f32 %v1786_v15, %v11199_v58  ;;  %v11731_v35 = vadd.f32 %v2249_v49, %v1944_v51  ;;  %2819 = vmatprep.mubr.f32.mxu0 %v14668_v46  ;;  %v11750_v51 = vld [vmem:[%s10459_s6 + $0x151] sm:$0xff] }
 0x1ff   : > { %3285 = vmatprep.mubr.f32.mxu1 %v14668_v46  ;;  %v1788_v44 = vpop.f32.mrf.mxu0 }
 0x200   : > { %v2255_v1 = vpop.f32.mrf.mxu1  ;;  %v1946_v53 = vadd.f32 %v1788_v44, %v11206_v11  ;;  %v11739_v33 = vadd.f32 %v2253_v56, %v1945_v55 }
 0x201   : > { %v1792_v26 = vpop.f32.mrf.mxu0  ;;  %8797 = vmatmul.mubr.msk.f32.gmra.mxu0 %vm820_vm0, %v11735_v48 }
 0x202   : > { %v2259_v58 = vpop.f32.mrf.mxu1  ;;  %8877 = vmatmul.mubr.msk.f32.gmra.mxu1 %vm820_vm0, %v11229_v31  ;;  %v1947_v36 = vadd.f32 %v1792_v26, %v11212_v60  ;;  %v11746_v49 = vadd.f32 %v2255_v1, %v1946_v53  ;;  %2825 = vmatprep.mubr.f32.mxu0 %v14668_v46  ;;  %v11765_v53 = vld [vmem:[%s10459_s6 + $0x159] sm:$0xff] }
 0x203   : > { %3291 = vmatprep.mubr.f32.mxu1 %v14668_v46  ;;  %v1794_v11 = vpop.f32.mrf.mxu0 }
 0x204   : > { %v2261_v15 = vpop.f32.mrf.mxu1  ;;  %v1948_v56 = vadd.f32 %v1794_v11, %v11219_v22  ;;  %v11754_v55 = vadd.f32 %v2259_v58, %v1947_v36 }
 0x205   : > { %v1798_v44 = vpop.f32.mrf.mxu0  ;;  %8798 = vmatmul.mubr.msk.f32.gmra.mxu0 %vm820_vm0, %v11750_v51 }
 0x206   : > { %v2265_v60 = vpop.f32.mrf.mxu1  ;;  %8878 = vmatmul.mubr.msk.f32.gmra.mxu1 %vm820_vm0, %v11242_v61  ;;  %v1949_v31 = vadd.f32 %v1798_v44, %v11225_v63  ;;  %v11761_v1 = vadd.f32 %v2261_v15, %v1948_v56  ;;  %2831 = vmatprep.mubr.f32.mxu0 %v14668_v46  ;;  %v11780_v56 = vld [vmem:[%s10459_s6 + $0x169] sm:$0xff] }
 0x207   : > { %3297 = vmatprep.mubr.f32.mxu1 %v14668_v46  ;;  %v1800_v22 = vpop.f32.mrf.mxu0  ;;  %14696 = vst [vmem:[#allocation71_spill] sm:$0xff] %v11780_v56 }
 0x208   : > { %v2267_v26 = vpop.f32.mrf.mxu1  ;;  %v1950_v58 = vadd.f32 %v1800_v22, %v11232_v62  ;;  %v11769_v36 = vadd.f32 %v2265_v60, %v1949_v31  ;;  %v14697_v60 = vld [vmem:[#allocation26_spill] sm:$0xff] }
 0x209   : > { %v1804_v11 = vpop.f32.mrf.mxu0  ;;  %8799 = vmatmul.mubr.msk.f32.gmra.mxu0 %vm820_vm0, %v11765_v53 }
 0x20a   : > { %14694 = vst [vmem:[#allocation69_spill] sm:$0xff] %v11769_v36  ;;  %v2271_v63 = vpop.f32.mrf.mxu1  ;;  %8879 = vmatmul.mubr.msk.f32.gmra.mxu1 %vm820_vm0, %v11255_v27  ;;  %v1951_v61 = vadd.f32 %v1804_v11, %v11238_v2  ;;  %v11776_v15 = vadd.f32 %v2267_v26, %v1950_v58  ;;  %2837 = vmatprep.mubr.f32.mxu0 %v14668_v46  ;;  %v14699_v27 = vld [vmem:[#allocation30_spill] sm:$0xff]  ;;  %v14700_v26 = vld [vmem:[#allocation27_spill] sm:$0xff] }
 0x20b   : > { %3303 = vmatprep.mubr.f32.mxu1 %v14668_v46  ;;  %v1806_v62 = vpop.f32.mrf.mxu0 }
 0x20c   : > { %14695 = vst [vmem:[#allocation70_spill] sm:$0xff] %v11776_v15  ;;  %v2273_v44 = vpop.f32.mrf.mxu1  ;;  %v1952_v31 = vadd.f32 %v1806_v62, %v14697_v60  ;;  %v11784_v22 = vadd.f32 %v2271_v63, %v1951_v61  ;;  %v11795_v15 = vld [vmem:[%s10459_s6 + $0x171] sm:$0xff] }
 0x20d   : > { %v1810_v36 = vpop.f32.mrf.mxu0  ;;  %8800 = vmatmul.mubr.msk.f32.gmra.mxu0 %vm820_vm0, %v11780_v56  ;;  %14702 = vst [vmem:[#allocation27_spill] sm:$0xff] %v11795_v15  ;;  %v14703_v62 = vld [vmem:[#allocation28_spill] sm:$0xff] }
 0x20e   : > { %14698 = vst [vmem:[#allocation26_spill] sm:$0xff] %v11784_v22  ;;  %v2277_v2 = vpop.f32.mrf.mxu1  ;;  %8880 = vmatmul.mubr.msk.f32.gmra.mxu1 %vm820_vm0, %v14699_v27  ;;  %v1953_v58 = vadd.f32 %v1810_v36, %v14700_v26  ;;  %v11791_v11 = vadd.f32 %v2273_v44, %v1952_v31  ;;  %2843 = vmatprep.mubr.f32.mxu0 %v14668_v46  ;;  %v14705_v44 = vld [vmem:[#allocation29_spill] sm:$0xff]  ;;  %v11810_v26 = vld [vmem:[%s10459_s6 + $0x181] sm:$0xff] }
 0x20f   : > { %3309 = vmatprep.mubr.f32.mxu1 %v14668_v46  ;;  %v1812_v63 = vpop.f32.mrf.mxu0  ;;  %14707 = vst [vmem:[#allocation72_spill] sm:$0xff] %v11810_v26 }
 0x210   : > { %14701 = vst [vmem:[#allocation30_spill] sm:$0xff] %v11791_v11  ;;  %v2279_v61 = vpop.f32.mrf.mxu1  ;;  %v1954_v60 = vadd.f32 %v1812_v63, %v14703_v62  ;;  %v11799_v22 = vadd.f32 %v2277_v2, %v1953_v58  ;;  %v8834_v2 = vld [vmem:[%s10459_s6 + $0x182] sm:$0xff] }
 0x211   : > { %v1816_v56 = vpop.f32.mrf.mxu0  ;;  %8801 = vmatmul.mubr.msk.f32.gmra.mxu0 %vm820_vm0, %v11795_v15  ;;  %v14708_v62 = vld [vmem:[#allocation31_spill] sm:$0xff] }
 0x212   : > { %14704 = vst [vmem:[#allocation28_spill] sm:$0xff] %v11799_v22  ;;  %v2283_v36 = vpop.f32.mrf.mxu1  ;;  %8881 = vmatmul.mubr.msk.f32.gmra.mxu1 %vm820_vm0, %v11284_v8  ;;  %v1955_v31 = vadd.f32 %v1816_v56, %v14705_v44  ;;  %v11806_v27 = vadd.f32 %v2279_v61, %v1954_v60  ;;  %2849 = vmatprep.mubr.f32.mxu0 %v14668_v46  ;;  %v14710_v61 = vld [vmem:[#allocation32_spill] sm:$0xff] }
 0x213   : > { %3315 = vmatprep.mubr.f32.mxu1 %v14668_v46  ;;  %v1818_v58 = vpop.f32.mrf.mxu0 }
 0x214   : > { %14706 = vst [vmem:[#allocation29_spill] sm:$0xff] %v11806_v27  ;;  %v2285_v63 = vpop.f32.mrf.mxu1  ;;  %v1956_v22 = vadd.f32 %v1818_v58, %v14708_v62  ;;  %v11815_v11 = vadd.f32 %v2283_v36, %v1955_v31  ;;  %v11825_v27 = vld [vmem:[%s10459_s6 + $0x189] sm:$0xff]  ;;  %v14712_v62 = vld [vmem:[#allocation33_spill] sm:$0xff] }
 0x215   : > { %v1822_v8 = vpop.f32.mrf.mxu0  ;;  %8802 = vmatmul.mubr.msk.f32.gmra.mxu0 %vm820_vm0, %v11810_v26  ;;  %v8835_v36 = vld [vmem:[%s10459_s6 + $0x18a] sm:$0xff] }
 0x216   : > { %14709 = vst [vmem:[#allocation31_spill] sm:$0xff] %v11815_v11  ;;  %v2289_v56 = vpop.f32.mrf.mxu1  ;;  %8882 = vmatmul.mubr.msk.f32.gmra.mxu1 %vm820_vm0, %v8834_v2  ;;  %v1957_v60 = vadd.f32 %v1822_v8, %v14710_v61  ;;  %v11821_v44 = vadd.f32 %v2285_v63, %v1956_v22  ;;  %2855 = vmatprep.mubr.f32.mxu0 %v14668_v46  ;;  %v14714_v2 = vld [vmem:[#allocation34_spill] sm:$0xff]  ;;  %v8884_v61 = vld [vmem:[%s10459_s6 + $0x30] sm:$0xff] }
 0x217   : > { %3321 = vmatprep.mubr.f32.mxu1 %v14668_v46  ;;  %v1824_v31 = vpop.f32.mrf.mxu0 }
 0x218   : > { %14711 = vst [vmem:[#allocation32_spill] sm:$0xff] %v11821_v44  ;;  %v2291_v58 = vpop.f32.mrf.mxu1  ;;  %v1958_v11 = vadd.f32 %v1824_v31, %v14712_v62  ;;  %v11830_v26 = vadd.f32 %v2289_v56, %v1957_v60  ;;  %v14715_v60 = vld [vmem:[#allocation35_spill] sm:$0xff] }
 0x219   : > { %v1828_v15 = vpop.f32.mrf.mxu0  ;;  %8803 = vmatmul.mubr.msk.f32.gmra.mxu0 %vm820_vm0, %v11825_v27 }
 0x21a   : > { %14713 = vst [vmem:[#allocation33_spill] sm:$0xff] %v11830_v26  ;;  %v2295_v22 = vpop.f32.mrf.mxu1  ;;  %8883 = vmatmul.mubr.msk.f32.gmra.mxu1 %vm820_vm0, %v8835_v36  ;;  %v1959_v63 = vadd.f32 %v1828_v15, %v14714_v2  ;;  %v11836_v8 = vadd.f32 %v2291_v58, %v1958_v11  ;;  %3602 = vmatprep.mubr.f32.mxu0 %v14668_v46  ;;  %v9090_v36 = vld [vmem:[%s14647_s22 + $0x470] sm:$0xff]  ;;  %v9089_v11 = vld [vmem:[%s14647_s22 + $0x468] sm:$0xff] }
 0x21b   : > { %4068 = vmatprep.mubr.f32.mxu1 %v14668_v46  ;;  %v1830_v31 = vpop.f32.mrf.mxu0  ;;  %v14716_v58 = vld [vmem:[#allocation36_spill] sm:$0xff] }
 0x21c   : > { %v2297_v56 = vpop.f32.mrf.mxu1  ;;  %v1960_v62 = vadd.f32 %v1830_v31, %v14715_v60  ;;  %v11842_v26 = vadd.f32 %v2295_v22, %v1959_v63  ;;  %v8885_v22 = vld [vmem:[%s10459_s6 + $0x38] sm:$0xff] }
 0x21d   : > { %v1834_v44 = vpop.f32.mrf.mxu0  ;;  %8932 = vmatmul.mubr.msk.f32.vlgmr.msra.gmra.mxu0 %vm820_vm0, %v8884_v61 }
 0x21e   : > { %v2301_v15 = vpop.f32.mrf.mxu1  ;;  %9012 = vmatmul.mubr.msk.f32.vlgmr.msra.gmra.mxu1 %vm820_vm0, %v11341_v10  ;;  %v1961_v2 = vadd.f32 %v1834_v44, %v14716_v58  ;;  %v11854_v31 = vadd.f32 %v2297_v56, %v1960_v62  ;;  %3608 = vmatprep.mubr.f32.mxu0 %v14668_v46  ;;  %v9088_v44 = vld [vmem:[%s14647_s22 + $0x460] sm:$0xff]  ;;  %v14718_v58 = vld [vmem:[#allocation37_spill] sm:$0xff] }
 0x21f   : > { %4074 = vmatprep.mubr.f32.mxu1 %v14668_v46  ;;  %v1836_v63 = vpop.f32.mrf.mxu0  ;;  %4487 = vmatpush1.msra.mxu0 %v9090_v36  ;;  %v9087_v36 = vld [vmem:[%s14647_s22 + $0x458] sm:$0xff] }
 0x220   : > { %v2303_v61 = vpop.f32.mrf.mxu1  ;;  %v1962_v60 = vadd.f32 %v1836_v63, %v11320_v23  ;;  %v11860_v10 = vadd.f32 %v2301_v15, %v1961_v2  ;;  %4488 = vmatprep.subr.mxu0 %v9089_v11  ;;  %v8886_v11 = vld [vmem:[%s10459_s6 + $0x48] sm:$0xff]  ;;  %v14720_v63 = vld [vmem:[#allocation38_spill] sm:$0xff] }
 0x221   : > { %v1840_v56 = vpop.f32.mrf.mxu0  ;;  %8933 = vmatmul.mubr.msk.f32.gmra.mxu0 %vm820_vm0, %v8885_v22 }
 0x222   : > { %14717 = vst [vmem:[#allocation34_spill] sm:$0xff] %v11860_v10  ;;  %v2307_v62 = vpop.f32.mrf.mxu1  ;;  %9013 = vmatmul.mubr.msk.f32.gmra.mxu1 %vm820_vm0, %v11366_v13  ;;  %v1963_v23 = vadd.f32 %v1840_v56, %v14718_v58  ;;  %v11872_v15 = vadd.f32 %v2303_v61, %v1962_v60  ;;  %3614 = vmatprep.mubr.f32.mxu0 %v14668_v46  ;;  %v9086_v56 = vld [vmem:[%s14647_s22 + $0x450] sm:$0xff]  ;;  %v14722_v58 = vld [vmem:[#allocation42_spill] sm:$0xff] }
 0x223   : > { %4080 = vmatprep.mubr.f32.mxu1 %v14668_v46  ;;  %v1842_v2 = vpop.f32.mrf.mxu0  ;;  %4489 = vmatpush1.msra.mxu0 %v9088_v44  ;;  %v9085_v44 = vld [vmem:[%s14647_s22 + $0x448] sm:$0xff] }
 0x224   : > { %14719 = vst [vmem:[#allocation35_spill] sm:$0xff] %v11872_v15  ;;  %v2309_v22 = vpop.f32.mrf.mxu1  ;;  %v1964_v10 = vadd.f32 %v1842_v2, %v14720_v63  ;;  %v11878_v13 = vadd.f32 %v2307_v62, %v1963_v23  ;;  %4490 = vmatprep.subr.mxu0 %v9087_v36  ;;  %v14723_v15 = vld [vmem:[#allocation39_spill] sm:$0xff]  ;;  %v8887_v36 = vld [vmem:[%s10459_s6 + $0x50] sm:$0xff] }
 0x225   : > { %v1846_v61 = vpop.f32.mrf.mxu0  ;;  %8934 = vmatmul.mubr.msk.f32.gmra.mxu0 %vm820_vm0, %v8886_v11  ;;  %v14725_v63 = vld [vmem:[#allocation40_spill] sm:$0xff] }
 0x226   : > { %14721 = vst [vmem:[#allocation36_spill] sm:$0xff] %v11878_v13  ;;  %v2313_v60 = vpop.f32.mrf.mxu1  ;;  %9014 = vmatmul.mubr.msk.f32.gmra.mxu1 %vm820_vm0, %v14722_v58  ;;  %v1965_v2 = vadd.f32 %v1846_v61, %v14723_v15  ;;  %v11890_v62 = vadd.f32 %v2309_v22, %v1964_v10  ;;  %3620 = vmatprep.mubr.f32.mxu0 %v14668_v46  ;;  %v9084_v15 = vld [vmem:[%s14647_s22 + $0x440] sm:$0xff]  ;;  %v14727_v61 = vld [vmem:[#allocation45_spill] sm:$0xff] }
 0x227   : > { %4086 = vmatprep.mubr.f32.mxu1 %v14668_v46  ;;  %v1848_v23 = vpop.f32.mrf.mxu0  ;;  %4491 = vmatpush1.msra.mxu0 %v9086_v56  ;;  %v9083_v56 = vld [vmem:[%s14647_s22 + $0x438] sm:$0xff] }
 0x228   : > { %14724 = vst [vmem:[#allocation37_spill] sm:$0xff] %v11890_v62  ;;  %v2315_v11 = vpop.f32.mrf.mxu1  ;;  %v1966_v13 = vadd.f32 %v1848_v23, %v14725_v63  ;;  %v11896_v58 = vadd.f32 %v2313_v60, %v1965_v2  ;;  %4492 = vmatprep.subr.mxu0 %v9085_v44  ;;  %v14728_v62 = vld [vmem:[#allocation41_spill] sm:$0xff]  ;;  %v8888_v44 = vld [vmem:[%s10459_s6 + $0x60] sm:$0xff]  ;;  %v14730_v63 = vld [vmem:[#allocation43_spill] sm:$0xff] }
 0x229   : > { %v1852_v10 = vpop.f32.mrf.mxu0  ;;  %8935 = vmatmul.mubr.msk.f32.gmra.mxu0 %vm820_vm0, %v8887_v36 }
 0x22a   : > { %14726 = vst [vmem:[#allocation38_spill] sm:$0xff] %v11896_v58  ;;  %v2319_v22 = vpop.f32.mrf.mxu1  ;;  %9015 = vmatmul.mubr.msk.f32.gmra.mxu1 %vm820_vm0, %v14727_v61  ;;  %v1967_v23 = vadd.f32 %v1852_v10, %v14728_v62  ;;  %v11908_v60 = vadd.f32 %v2315_v11, %v1966_v13  ;;  %3626 = vmatprep.mubr.f32.mxu0 %v14668_v46  ;;  %v9082_v62 = vld [vmem:[%s14647_s22 + $0x430] sm:$0xff] }
 0x22b   : > { %4092 = vmatprep.mubr.f32.mxu1 %v14668_v46  ;;  %v1854_v2 = vpop.f32.mrf.mxu0  ;;  %4493 = vmatpush1.msra.mxu0 %v9084_v15  ;;  %v14732_v10 = vld [vmem:[#allocation48_spill] sm:$0xff]  ;;  %v9081_v15 = vld [vmem:[%s14647_s22 + $0x428] sm:$0xff] }
 0x22c   : > { %14729 = vst [vmem:[#allocation42_spill] sm:$0xff] %v11908_v60  ;;  %v2321_v36 = vpop.f32.mrf.mxu1  ;;  %v1968_v58 = vadd.f32 %v1854_v2, %v14730_v63  ;;  %v11914_v61 = vadd.f32 %v2319_v22, %v1967_v23  ;;  %4494 = vmatprep.subr.mxu0 %v9083_v56  ;;  %v14733_v60 = vld [vmem:[#allocation44_spill] sm:$0xff]  ;;  %v8889_v56 = vld [vmem:[%s10459_s6 + $0x68] sm:$0xff]  ;;  %v14734_v63 = vld [vmem:[#allocation46_spill] sm:$0xff] }
 0x22d   : > { %v1858_v13 = vpop.f32.mrf.mxu0  ;;  %8936 = vmatmul.mubr.msk.f32.gmra.mxu0 %vm820_vm0, %v8888_v44 }
 0x22e   : > { %14731 = vst [vmem:[#allocation39_spill] sm:$0xff] %v11914_v61  ;;  %v2325_v11 = vpop.f32.mrf.mxu1  ;;  %9016 = vmatmul.mubr.msk.f32.gmra.mxu1 %vm820_vm0, %v14732_v10  ;;  %v1969_v2 = vadd.f32 %v1858_v13, %v14733_v60  ;;  %v11926_v22 = vadd.f32 %v2321_v36, %v1968_v58  ;;  %3632 = vmatprep.mubr.f32.mxu0 %v14668_v46  ;;  %v9080_v60 = vld [vmem:[%s14647_s22 + $0x420] sm:$0xff]  ;;  %v14736_v13 = vld [vmem:[#allocation47_spill] sm:$0xff] }
 0x22f   : > { %4098 = vmatprep.mubr.f32.mxu1 %v14668_v46  ;;  %v1860_v23 = vpop.f32.mrf.mxu0  ;;  %4495 = vmatpush1.msra.mxu0 %v9082_v62  ;;  %v9079_v62 = vld [vmem:[%s14647_s22 + $0x418] sm:$0xff] }
 0x230   : > { %v2327_v44 = vpop.f32.mrf.mxu1  ;;  %v1970_v61 = vadd.f32 %v1860_v23, %v14734_v63  ;;  %v11932_v10 = vadd.f32 %v2325_v11, %v1969_v2  ;;  %4496 = vmatprep.subr.mxu0 %v9081_v15  ;;  %v8890_v15 = vld [vmem:[%s10459_s6 + $0x78] sm:$0xff] }
 0x231   : > { %v1864_v58 = vpop.f32.mrf.mxu0  ;;  %8937 = vmatmul.mubr.msk.f32.gmra.mxu0 %vm820_vm0, %v8889_v56  ;;  %v14737_v63 = vld [vmem:[#allocation49_spill] sm:$0xff] }
 0x232   : > { %14735 = vst [vmem:[#allocation40_spill] sm:$0xff] %v11932_v10  ;;  %v2331_v36 = vpop.f32.mrf.mxu1  ;;  %9017 = vmatmul.mubr.msk.f32.gmra.mxu1 %vm820_vm0, %v11474_v6  ;;  %v1971_v23 = vadd.f32 %v1864_v58, %v14736_v13  ;;  %v11944_v11 = vadd.f32 %v2327_v44, %v1970_v61  ;;  %3638 = vmatprep.mubr.f32.mxu0 %v14668_v46  ;;  %v9078_v58 = vld [vmem:[%s14647_s22 + $0x410] sm:$0xff] }
 0x233   : > { %4104 = vmatprep.mubr.f32.mxu1 %v14668_v46  ;;  %v1866_v2 = vpop.f32.mrf.mxu0  ;;  %4497 = vmatpush1.msra.mxu0 %v9080_v60  ;;  %v9077_v60 = vld [vmem:[%s14647_s22 + $0x408] sm:$0xff]  ;;  %v14738_v13 = vld [vmem:[#allocation52_spill] sm:$0xff] }
 0x234   : > { %v2333_v56 = vpop.f32.mrf.mxu1  ;;  %v1972_v10 = vadd.f32 %v1866_v2, %v14737_v63  ;;  %v11950_v6 = vadd.f32 %v2331_v36, %v1971_v23  ;;  %4498 = vmatprep.subr.mxu0 %v9079_v62  ;;  %v8891_v62 = vld [vmem:[%s10459_s6 + $0x80] sm:$0xff] }
 0x235   : > { %v1870_v61 = vpop.f32.mrf.mxu0  ;;  %8938 = vmatmul.mubr.msk.f32.gmra.mxu0 %vm820_vm0, %v8890_v15 }
 0x236   : > { %v2337_v44 = vpop.f32.mrf.mxu1  ;;  %9018 = vmatmul.mubr.msk.f32.gmra.mxu1 %vm820_vm0, %v11495_v29  ;;  %v1973_v2 = vadd.f32 %v1870_v61, %v14738_v13  ;;  %v11962_v36 = vadd.f32 %v2333_v56, %v1972_v10  ;;  %3644 = vmatprep.mubr.f32.mxu0 %v14668_v46  ;;  %v9076_v61 = vld [vmem:[%s14647_s22 + $0x400] sm:$0xff] }
 0x237   : > { %4110 = vmatprep.mubr.f32.mxu1 %v14668_v46  ;;  %v1872_v23 = vpop.f32.mrf.mxu0  ;;  %4499 = vmatpush1.msra.mxu0 %v9078_v58 }
 0x238   : > { %14739 = vst [vmem:[#allocation45_spill] sm:$0xff] %v11962_v36  ;;  %v2339_v15 = vpop.f32.mrf.mxu1  ;;  %v1974_v63 = vadd.f32 %v1872_v23, %v11477_v7  ;;  %v11968_v29 = vadd.f32 %v2337_v44, %v1973_v2  ;;  %4500 = vmatprep.subr.mxu0 %v9077_v60  ;;  %v8892_v7 = vld [vmem:[%s10459_s6 + $0x90] sm:$0xff] }
 0x239   : > { %v1876_v10 = vpop.f32.mrf.mxu0  ;;  %8939 = vmatmul.mubr.msk.f32.gmra.mxu0 %vm820_vm0, %v8891_v62 }
 0x23a   : > { %v2343_v56 = vpop.f32.mrf.mxu1  ;;  %9019 = vmatmul.mubr.msk.f32.gmra.mxu1 %vm820_vm0, %v11509_v42  ;;  %v1975_v13 = vadd.f32 %v1876_v10, %v11491_v4  ;;  %v11977_v36 = vadd.f32 %v2339_v15, %v1974_v63  ;;  %3650 = vmatprep.mubr.f32.mxu0 %v14668_v46  ;;  %v8893_v15 = vld [vmem:[%s10459_s6 + $0x98] sm:$0xff] }
 0x23b   : > { %4116 = vmatprep.mubr.f32.mxu1 %v14668_v46  ;;  %v1878_v58 = vpop.f32.mrf.mxu0  ;;  %4501 = vmatpush1.msra.mxu0 %v9076_v61 }
 0x23c   : > { %v2345_v44 = vpop.f32.mrf.mxu1  ;;  %v1976_v60 = vadd.f32 %v1878_v58, %v11498_v59  ;;  %v11983_v2 = vadd.f32 %v2343_v56, %v1975_v13  ;;  %v8894_v58 = vld [vmem:[%s10459_s6 + $0xa8] sm:$0xff] }
 0x23d   : > { %v1882_v62 = vpop.f32.mrf.mxu0  ;;  %8940 = vmatmul.mubr.msk.f32.gmra.mxu0 %vm820_vm0, %v8892_v7 }
 0x23e   : > { %v2349_v42 = vpop.f32.mrf.mxu1  ;;  %9020 = vmatmul.mubr.msk.f32.gmra.mxu1 %vm820_vm0, %v11525_v9  ;;  %v1977_v4 = vadd.f32 %v1882_v62, %v11505_v17  ;;  %v11989_v23 = vadd.f32 %v2345_v44, %v1976_v60  ;;  %3656 = vmatprep.mubr.f32.mxu0 %v14668_v46  ;;  %v14742_v17 = vld [vmem:[#allocation53_spill] sm:$0xff]  ;;  %v14744_v60 = vld [vmem:[#allocation54_spill] sm:$0xff] }
 0x23f   : > { %4122 = vmatprep.mubr.f32.mxu1 %v14668_v46  ;;  %v1884_v59 = vpop.f32.mrf.mxu0 }
 0x240   : > { %14740 = vst [vmem:[#allocation41_spill] sm:$0xff] %v11989_v23  ;;  %v2351_v63 = vpop.f32.mrf.mxu1  ;;  %v1978_v61 = vadd.f32 %v1884_v59, %v11515_v54  ;;  %v11995_v10 = vadd.f32 %v2349_v42, %v1977_v4 }
 0x241   : > { %v1888_v56 = vpop.f32.mrf.mxu0  ;;  %8941 = vmatmul.mubr.msk.f32.gmra.mxu0 %vm820_vm0, %v8893_v15  ;;  %v14746_v15 = vld [vmem:[#allocation55_spill] sm:$0xff] }
 0x242   : > { %14741 = vst [vmem:[#allocation43_spill] sm:$0xff] %v11995_v10  ;;  %v2355_v9 = vpop.f32.mrf.mxu1  ;;  %9021 = vmatmul.mubr.msk.f32.gmra.mxu1 %vm820_vm0, %v11538_v39  ;;  %v1979_v13 = vadd.f32 %v1888_v56, %v14742_v17  ;;  %v12001_v7 = vadd.f32 %v2351_v63, %v1978_v61  ;;  %3662 = vmatprep.mubr.f32.mxu0 %v14668_v46  ;;  %v8895_v61 = vld [vmem:[%s10459_s6 + $0xb0] sm:$0xff] }
 0x243   : > { %4128 = vmatprep.mubr.f32.mxu1 %v14668_v46  ;;  %v1890_v54 = vpop.f32.mrf.mxu0 }
 0x244   : > { %14743 = vst [vmem:[#allocation48_spill] sm:$0xff] %v12001_v7  ;;  %v2357_v44 = vpop.f32.mrf.mxu1  ;;  %v1980_v62 = vadd.f32 %v1890_v54, %v14744_v60  ;;  %v12007_v42 = vadd.f32 %v2355_v9, %v1979_v13  ;;  %v14748_v13 = vld [vmem:[#allocation50_spill] sm:$0xff] }
 0x245   : > { %v1894_v4 = vpop.f32.mrf.mxu0  ;;  %8942 = vmatmul.mubr.msk.f32.gmra.mxu0 %vm820_vm0, %v8894_v58  ;;  %v5025_v56 = vpop.xlane.xlu0 %5024  ;;  %v14749_v58 = vld [vmem:[#allocation51_spill] sm:$0xff] }
 0x246   : > { %14745 = vst [vmem:[#allocation44_spill] sm:$0xff] %v12007_v42  ;;  %v2361_v39 = vpop.f32.mrf.mxu1  ;;  %9022 = vmatmul.mubr.msk.f32.gmra.mxu1 %vm820_vm0, %v11551_v37  ;;  %v1981_v59 = vadd.f32 %v1894_v4, %v14746_v15  ;;  %v12013_v63 = vadd.f32 %v2357_v44, %v1980_v62  ;;  %3668 = vmatprep.mubr.f32.mxu0 %v14668_v46  ;;  %v14750_v42 = vld [vmem:[#allocation56_spill] sm:$0xff] }
 0x247   : > { %4134 = vmatprep.mubr.f32.mxu1 %v14668_v46  ;;  %v1896_v9 = vpop.f32.mrf.mxu0  ;;  %v5026_v54 = vsub.f32 %v14748_v13, %v5025_v56  ;;  %v5027_v60 = vsub.f32 %v14749_v58, %v5025_v56  ;;  %v8896_v56 = vld [vmem:[%s10459_s6 + $0xc0] sm:$0xff] }
 0x248   : > { %14747 = vst [vmem:[#allocation46_spill] sm:$0xff] %v12013_v63  ;;  %v2363_v17 = vpop.f32.mrf.mxu1  ;;  %v1982_v7 = vadd.f32 %v1896_v9, %v14750_v42  ;;  %v12021_v37 = vadd.f32 %v2361_v39, %v1981_v59  ;;  %v14751_v63 = vld [vmem:[#allocation57_spill] sm:$0xff]  ;;  %v14752_v59 = vld [vmem:[#allocation58_spill] sm:$0xff] }
 0x249   : > { %v1900_v4 = vpop.f32.mrf.mxu0  ;;  %8943 = vmatmul.mubr.msk.f32.gmra.mxu0 %vm820_vm0, %v8895_v61  ;;  %v5028_v62 = vmul.f32 1.442695, %v5026_v54  ;;  %v5030_v15 = vmul.f32 1.442695, %v5027_v60  ;;  %v8897_v54 = vld [vmem:[%s10459_s6 + $0xc8] sm:$0xff]  ;;  %v14754_v60 = vld [vmem:[#allocation60_spill] sm:$0xff] }
 0x24a   : > { %v2367_v44 = vpop.f32.mrf.mxu1  ;;  %9023 = vmatmul.mubr.msk.f32.gmra.mxu1 %vm820_vm0, %v11564_v52  ;;  %v1983_v10 = vadd.f32 %v1900_v4, %v14751_v63  ;;  %v12027_v23 = vadd.f32 %v2363_v17, %v1982_v7  ;;  %3674 = vmatprep.mubr.f32.mxu0 %v14668_v46  ;;  %v14753_v7 = vld [vmem:[#allocation59_spill] sm:$0xff] }
 0x24b   : > { %4140 = vmatprep.mubr.f32.mxu1 %v14668_v46  ;;  %v1902_v42 = vpop.f32.mrf.mxu0  ;;  %9698 = vpow2.f32 %v5028_v62 }
 0x24c   : > { %v2369_v39 = vpop.f32.mrf.mxu1  ;;  %v1984_v61 = vadd.f32 %v1902_v42, %v14752_v59  ;;  %v12033_v9 = vadd.f32 %v2367_v44, %v1983_v10  ;;  %9700 = vpow2.f32 %v5030_v15  ;;  %v14755_v15 = vld [vmem:[#allocation61_spill] sm:$0xff] }
 0x24d   : > { %v1906_v52 = vpop.f32.mrf.mxu0  ;;  %8944 = vmatmul.mubr.msk.f32.gmra.mxu0 %vm820_vm0, %v8896_v56 }
 0x24e   : > { %v2373_v63 = vpop.f32.mrf.mxu1  ;;  %9024 = vmatmul.mubr.msk.f32.gmra.mxu1 %vm820_vm0, %v11577_v12  ;;  %v1985_v17 = vadd.f32 %v1906_v52, %v14753_v7  ;;  %v12039_v13 = vadd.f32 %v2369_v39, %v1984_v61  ;;  %3680 = vmatprep.mubr.f32.mxu0 %v14668_v46  ;;  %v8898_v39 = vld [vmem:[%s10459_s6 + $0xd8] sm:$0xff]  ;;  %v14756_v52 = vld [vmem:[#allocation62_spill] sm:$0xff] }
 0x24f   : > { %4146 = vmatprep.mubr.f32.mxu1 %v14668_v46  ;;  %v1908_v10 = vpop.f32.mrf.mxu0 }
 0x250   : > { %v2375_v58 = vpop.f32.mrf.mxu1  ;;  %v1986_v4 = vadd.f32 %v1908_v10, %v14754_v60  ;;  %v12045_v44 = vadd.f32 %v2373_v63, %v1985_v17  ;;  %v14758_v10 = vld [vmem:[#allocation63_spill] sm:$0xff] }
 0x251   : > { %v1912_v62 = vpop.f32.mrf.mxu0  ;;  %8945 = vmatmul.mubr.msk.f32.gmra.mxu0 %vm820_vm0, %v8897_v54  ;;  %v14757_v54 = vld [vmem:[#allocation66_spill] sm:$0xff] }
 0x252   : > { %v2379_v12 = vpop.f32.mrf.mxu1  ;;  %9025 = vmatmul.mubr.msk.f32.gmra.mxu1 %vm820_vm0, %v11590_v24  ;;  %v1987_v56 = vadd.f32 %v1912_v62, %v14755_v15  ;;  %v12051_v42 = vadd.f32 %v2375_v58, %v1986_v4  ;;  %3686 = vmatprep.mubr.f32.mxu0 %v14668_v46  ;;  %v8899_v4 = vld [vmem:[%s10459_s6 + $0xe0] sm:$0xff] }
 0x253   : > { %4152 = vmatprep.mubr.f32.mxu1 %v14668_v46  ;;  %v1914_v59 = vpop.f32.mrf.mxu0 }
 0x254   : > { %v2381_v61 = vpop.f32.mrf.mxu1  ;;  %v1988_v63 = vadd.f32 %v1914_v59, %v14756_v52  ;;  %v12057_v7 = vadd.f32 %v2379_v12, %v1987_v56  ;;  %v14761_v56 = vld [vmem:[#allocation64_spill] sm:$0xff] }
 0x255   : > { %v1918_v17 = vpop.f32.mrf.mxu0  ;;  %8946 = vmatmul.mubr.msk.f32.gmra.mxu0 %vm820_vm0, %v8898_v39 }
 0x256   : > { %v2385_v24 = vpop.f32.mrf.mxu1  ;;  %9026 = vmatmul.mubr.msk.f32.gmra.mxu1 %vm820_vm0, %v14757_v54  ;;  %v1989_v58 = vadd.f32 %v1918_v17, %v14758_v10  ;;  %v12063_v60 = vadd.f32 %v2381_v61, %v1988_v63  ;;  %3692 = vmatprep.mubr.f32.mxu0 %v14668_v46  ;;  %v14763_v63 = vld [vmem:[#allocation65_spill] sm:$0xff] }
 0x257   : > { %4158 = vmatprep.mubr.f32.mxu1 %v14668_v46  ;;  %v1920_v62 = vpop.f32.mrf.mxu0 }
 0x258   : > { %14759 = vst [vmem:[#allocation47_spill] sm:$0xff] %v12063_v60  ;;  %v2387_v12 = vpop.f32.mrf.mxu1  ;;  %v12068_v15 = vpop.eup %9698  ;;  %v1990_v39 = vadd.f32 %v1920_v62, %v14761_v56  ;;  %v12071_v59 = vadd.f32 %v2385_v24, %v1989_v58  ;;  %v8900_v60 = vld [vmem:[%s10459_s6 + $0xf0] sm:$0xff] }
 0x259   : > { %14760 = vst [vmem:[#allocation49_spill] sm:$0xff] %v12068_v15  ;;  %v12073_v52 = vpop.eup %9700  ;;  %v1924_v54 = vpop.f32.mrf.mxu0  ;;  %8947 = vmatmul.mubr.msk.f32.gmra.mxu0 %vm820_vm0, %v8899_v4  ;;  %v14764_v4 = vld [vmem:[#allocation67_spill] sm:$0xff] }
 0x25a   : > { %14762 = vst [vmem:[#allocation52_spill] sm:$0xff] %v12071_v59  ;;  %v2391_v61 = vpop.f32.mrf.mxu1  ;;  %9027 = vmatmul.mubr.msk.f32.gmra.mxu1 %vm820_vm0, %v11615_v30  ;;  %v1991_v17 = vadd.f32 %v1924_v54, %v14763_v63  ;;  %v12079_v10 = vadd.f32 %v2387_v12, %v1990_v39  ;;  %3698 = vmatprep.mubr.f32.mxu0 %v14668_v46  ;;  %v14765_v54 = vld [vmem:[#allocation68_spill] sm:$0xff] }
 0x25b   : > { %4164 = vmatprep.mubr.f32.mxu1 %v14668_v46  ;;  %v5032_v24 = vadd.f32 %v12073_v52, %v12068_v15  ;;  %v1926_v58 = vpop.f32.mrf.mxu0  ;;  %v8901_v15 = vld [vmem:[%s10459_s6 + $0xf8] sm:$0xff] }
 0x25c   : > { %v2393_v62 = vpop.f32.mrf.mxu1  ;;  %v1992_v56 = vadd.f32 %v1926_v58, %v14764_v4  ;;  %v12087_v59 = vadd.f32 %v2391_v61, %v1991_v17 }
 0x25d   : > { %5033 = vadd.xlane.f32.xlu0 %v5032_v24  ;;  %v2671_v30 = vpop.f32.mrf.mxu0  ;;  %8948 = vmatmul.mubr.msk.f32.gmra.mxu0 %vm820_vm0, %v8900_v60 }
 0x25e   : > { %v3137_v12 = vpop.f32.mrf.mxu1  ;;  %9028 = vmatmul.mubr.msk.f32.gmra.mxu1 %vm820_vm0, %v11630_v28  ;;  %v12092_v39 = vadd.f32 %v2393_v62, %v1992_v56  ;;  %v2862_v63 = vadd.f32 %v2671_v30, %v14765_v54  ;;  %3704 = vmatprep.mubr.f32.mxu0 %v14668_v46  ;;  %v8902_v56 = vld [vmem:[%s10459_s6 + $0x108] sm:$0xff] }
 0x25f   : > { %4170 = vmatprep.mubr.f32.mxu1 %v14668_v46  ;;  %v2673_v61 = vpop.f32.mrf.mxu0 }
 0x260   : > { %v3139_v17 = vpop.f32.mrf.mxu1  ;;  %v2863_v24 = vadd.f32 %v2673_v61, %v11626_v0  ;;  %v12099_v58 = vadd.f32 %v3137_v12, %v2862_v63  ;;  %v8903_v61 = vld [vmem:[%s10459_s6 + $0x110] sm:$0xff] }
 0x261   : > { %v2677_v60 = vpop.f32.mrf.mxu0  ;;  %8949 = vmatmul.mubr.msk.f32.gmra.mxu0 %vm820_vm0, %v8901_v15 }
 0x262   : > { %v3143_v28 = vpop.f32.mrf.mxu1  ;;  %9029 = vmatmul.mubr.msk.f32.gmra.mxu1 %vm820_vm0, %v11645_v20  ;;  %v2864_v62 = vadd.f32 %v2677_v60, %v11634_v3  ;;  %v12105_v4 = vadd.f32 %v3139_v17, %v2863_v24  ;;  %3710 = vmatprep.mubr.f32.mxu0 %v14668_v46 }
 0x263   : > { %4176 = vmatprep.mubr.f32.mxu1 %v14668_v46  ;;  %v2679_v0 = vpop.f32.mrf.mxu0 }
 0x264   : > { %v3145_v30 = vpop.f32.mrf.mxu1  ;;  %v2865_v12 = vadd.f32 %v2679_v0, %v11641_v34  ;;  %v12111_v54 = vadd.f32 %v3143_v28, %v2864_v62 }
 0x265   : > { %v2683_v15 = vpop.f32.mrf.mxu0  ;;  %8950 = vmatmul.mubr.msk.f32.gmra.mxu0 %vm820_vm0, %v8902_v56  ;;  %v8904_v56 = vld [vmem:[%s10459_s6 + $0x120] sm:$0xff] }
 0x266   : > { %v3149_v20 = vpop.f32.mrf.mxu1  ;;  %9030 = vmatmul.mubr.msk.f32.gmra.mxu1 %vm820_vm0, %v11660_v32  ;;  %v2866_v3 = vadd.f32 %v2683_v15, %v11649_v14  ;;  %v12117_v63 = vadd.f32 %v3145_v30, %v2865_v12  ;;  %3716 = vmatprep.mubr.f32.mxu0 %v14668_v46 }
 0x267   : > { %4182 = vmatprep.mubr.f32.mxu1 %v14668_v46  ;;  %v2685_v34 = vpop.f32.mrf.mxu0 }
 0x268   : > { %v3151_v17 = vpop.f32.mrf.mxu1  ;;  %v2867_v24 = vadd.f32 %v2685_v34, %v11656_v57  ;;  %v12123_v60 = vadd.f32 %v3149_v20, %v2866_v3  ;;  %v8905_v3 = vld [vmem:[%s10459_s6 + $0x128] sm:$0xff] }
 0x269   : > { %v2689_v28 = vpop.f32.mrf.mxu0  ;;  %8951 = vmatmul.mubr.msk.f32.gmra.mxu0 %vm820_vm0, %v8903_v61 }
 0x26a   : > { %v3155_v32 = vpop.f32.mrf.mxu1  ;;  %9031 = vmatmul.mubr.msk.f32.gmra.mxu1 %vm820_vm0, %v11675_v21  ;;  %v2868_v14 = vadd.f32 %v2689_v28, %v11664_v50  ;;  %v12129_v62 = vadd.f32 %v3151_v17, %v2867_v24  ;;  %3722 = vmatprep.mubr.f32.mxu0 %v14668_v46 }
 0x26b   : > { %4188 = vmatprep.mubr.f32.mxu1 %v14668_v46  ;;  %v2691_v57 = vpop.f32.mrf.mxu0 }
 0x26c   : > { %v3157_v0 = vpop.f32.mrf.mxu1  ;;  %v2869_v30 = vadd.f32 %v2691_v57, %v11671_v47  ;;  %v12135_v12 = vadd.f32 %v3155_v32, %v2868_v14  ;;  %v8906_v32 = vld [vmem:[%s10459_s6 + $0x138] sm:$0xff] }
 0x26d   : > { %v2695_v15 = vpop.f32.mrf.mxu0  ;;  %8952 = vmatmul.mubr.msk.f32.gmra.mxu0 %vm820_vm0, %v8904_v56 }
 0x26e   : > { %v3161_v21 = vpop.f32.mrf.mxu1  ;;  %9032 = vmatmul.mubr.msk.f32.gmra.mxu1 %vm820_vm0, %v11690_v40  ;;  %v2870_v50 = vadd.f32 %v2695_v15, %v11679_v41  ;;  %v12141_v20 = vadd.f32 %v3157_v0, %v2869_v30  ;;  %3728 = vmatprep.mubr.f32.mxu0 %v14668_v46  ;;  %v8907_v15 = vld [vmem:[%s10459_s6 + $0x140] sm:$0xff] }
 0x26f   : > { %4194 = vmatprep.mubr.f32.mxu1 %v14668_v46  ;;  %v2697_v47 = vpop.f32.mrf.mxu0 }
 0x270   : > { %v3163_v61 = vpop.f32.mrf.mxu1  ;;  %v2871_v34 = vadd.f32 %v2697_v47, %v11686_v38  ;;  %v12147_v17 = vadd.f32 %v3161_v21, %v2870_v50 }
 0x271   : > { %v2701_v24 = vpop.f32.mrf.mxu0  ;;  %8953 = vmatmul.mubr.msk.f32.gmra.mxu0 %vm820_vm0, %v8905_v3 }
 0x272   : > { %v3167_v40 = vpop.f32.mrf.mxu1  ;;  %9033 = vmatmul.mubr.msk.f32.gmra.mxu1 %vm820_vm0, %v11705_v43  ;;  %v2872_v41 = vadd.f32 %v2701_v24, %v11694_v5  ;;  %v12153_v28 = vadd.f32 %v3163_v61, %v2871_v34  ;;  %3734 = vmatprep.mubr.f32.mxu0 %v14668_v46  ;;  %v8908_v34 = vld [vmem:[%s10459_s6 + $0x150] sm:$0xff] }
 0x273   : > { %4200 = vmatprep.mubr.f32.mxu1 %v14668_v46  ;;  %v2703_v38 = vpop.f32.mrf.mxu0 }
 0x274   : > { %v3169_v14 = vpop.f32.mrf.mxu1  ;;  %v2873_v56 = vadd.f32 %v2703_v38, %v11701_v18  ;;  %v12159_v57 = vadd.f32 %v3167_v40, %v2872_v41 }
 0x275   : > { %v2707_v0 = vpop.f32.mrf.mxu0  ;;  %8954 = vmatmul.mubr.msk.f32.gmra.mxu0 %vm820_vm0, %v8906_v32 }
 0x276   : > { %v3173_v43 = vpop.f32.mrf.mxu1  ;;  %9034 = vmatmul.mubr.msk.f32.gmra.mxu1 %vm820_vm0, %v11720_v45  ;;  %v2874_v5 = vadd.f32 %v2707_v0, %v11709_v16  ;;  %v12165_v30 = vadd.f32 %v3169_v14, %v2873_v56  ;;  %3740 = vmatprep.mubr.f32.mxu0 %v14668_v46  ;;  %v8909_v14 = vld [vmem:[%s10459_s6 + $0x158] sm:$0xff] }
 0x277   : > { %4206 = vmatprep.mubr.f32.mxu1 %v14668_v46  ;;  %v2709_v18 = vpop.f32.mrf.mxu0 }
 0x278   : > { %v3175_v21 = vpop.f32.mrf.mxu1  ;;  %v2875_v50 = vadd.f32 %v2709_v18, %v11716_v25  ;;  %v12171_v3 = vadd.f32 %v3173_v43, %v2874_v5 }
 0x279   : > { %v2713_v47 = vpop.f32.mrf.mxu0  ;;  %8955 = vmatmul.mubr.msk.f32.gmra.mxu0 %vm820_vm0, %v8907_v15  ;;  %v8910_v15 = vld [vmem:[%s10459_s6 + $0x168] sm:$0xff] }
 0x27a   : > { %v3179_v45 = vpop.f32.mrf.mxu1  ;;  %9035 = vmatmul.mubr.msk.f32.gmra.mxu1 %vm820_vm0, %v11735_v48  ;;  %v2876_v16 = vadd.f32 %v2713_v47, %v11724_v19  ;;  %v12177_v61 = vadd.f32 %v3175_v21, %v2875_v50  ;;  %3746 = vmatprep.mubr.f32.mxu0 %v14668_v46 }
 0x27b   : > { %4212 = vmatprep.mubr.f32.mxu1 %v14668_v46  ;;  %v2715_v25 = vpop.f32.mrf.mxu0 }
 0x27c   : > { %v3181_v24 = vpop.f32.mrf.mxu1  ;;  %v2877_v40 = vadd.f32 %v2715_v25, %v11731_v35  ;;  %v12183_v41 = vadd.f32 %v3179_v45, %v2876_v16 }
 0x27d   : > { %v2719_v32 = vpop.f32.mrf.mxu0  ;;  %8956 = vmatmul.mubr.msk.f32.gmra.mxu0 %vm820_vm0, %v8908_v34  ;;  %v8911_v34 = vld [vmem:[%s10459_s6 + $0x170] sm:$0xff] }
 0x27e   : > { %v3185_v48 = vpop.f32.mrf.mxu1  ;;  %9036 = vmatmul.mubr.msk.f32.gmra.mxu1 %vm820_vm0, %v11750_v51  ;;  %v2878_v19 = vadd.f32 %v2719_v32, %v11739_v33  ;;  %v12189_v38 = vadd.f32 %v3181_v24, %v2877_v40  ;;  %3752 = vmatprep.mubr.f32.mxu0 %v14668_v46  ;;  %v14771_v24 = vld [vmem:[#allocation70_spill] sm:$0xff] }
 0x27f   : > { %4218 = vmatprep.mubr.f32.mxu1 %v14668_v46  ;;  %v2721_v35 = vpop.f32.mrf.mxu0 }
 0x280   : > { %v12194_v56 = vpop.f32.mrf.mxu1  ;;  %v12197_v0 = vadd.f32 %v2721_v35, %v11746_v49  ;;  %v12199_v43 = vadd.f32 %v3185_v48, %v2878_v19  ;;  %v14774_v35 = vld [vmem:[#allocation26_spill] sm:$0xff] }
 0x281   : > { %v2725_v5 = vpop.f32.mrf.mxu0  ;;  %8957 = vmatmul.mubr.msk.f32.gmra.mxu0 %vm820_vm0, %v8909_v14  ;;  %v14773_v14 = vld [vmem:[#allocation27_spill] sm:$0xff] }
 0x282   : > { %v3191_v51 = vpop.f32.mrf.mxu1  ;;  %9037 = vmatmul.mubr.msk.f32.gmra.mxu1 %vm820_vm0, %v11765_v53  ;;  %v2880_v33 = vadd.f32 %v2725_v5, %v11754_v55  ;;  %3758 = vmatprep.mubr.f32.mxu0 %v14668_v46  ;;  %v14768_v53 = vld [vmem:[#allocation71_spill] sm:$0xff]  ;;  %v14769_v55 = vld [vmem:[#allocation69_spill] sm:$0xff] }
 0x283   : > { %4224 = vmatprep.mubr.f32.mxu1 %v14668_v46  ;;  %v2727_v18 = vpop.f32.mrf.mxu0 }
 0x284   : > { %v12208_v49 = vpop.f32.mrf.mxu1  ;;  %v12211_v21 = vadd.f32 %v2727_v18, %v11761_v1  ;;  %v12213_v50 = vadd.f32 %v3191_v51, %v2880_v33  ;;  %v8912_v51 = vld [vmem:[%s10459_s6 + $0x180] sm:$0xff] }
 0x285   : > { %14766 = vst [vmem:[#allocation53_spill] sm:$0xff] %v12208_v49  ;;  %v2731_v47 = vpop.f32.mrf.mxu0  ;;  %8958 = vmatmul.mubr.msk.f32.gmra.mxu0 %vm820_vm0, %v8910_v15  ;;  %v14776_v18 = vld [vmem:[#allocation30_spill] sm:$0xff] }
 0x286   : > { %14767 = vst [vmem:[#allocation54_spill] sm:$0xff] %v12211_v21  ;;  %v3197_v45 = vpop.f32.mrf.mxu1  ;;  %9038 = vmatmul.mubr.msk.f32.gmra.mxu1 %vm820_vm0, %v14768_v53  ;;  %v2882_v16 = vadd.f32 %v2731_v47, %v14769_v55  ;;  %3764 = vmatprep.mubr.f32.mxu0 %v14668_v46 }
 0x287   : > { %4230 = vmatprep.mubr.f32.mxu1 %v14668_v46  ;;  %v2733_v25 = vpop.f32.mrf.mxu0 }
 0x288   : > { %v12222_v1 = vpop.f32.mrf.mxu1  ;;  %v12225_v40 = vadd.f32 %v2733_v25, %v14771_v24  ;;  %v12227_v32 = vadd.f32 %v3197_v45, %v2882_v16  ;;  %v14778_v16 = vld [vmem:[#allocation72_spill] sm:$0xff]  ;;  %v8913_v24 = vld [vmem:[%s10459_s6 + $0x188] sm:$0xff] }
 0x289   : > { %14770 = vst [vmem:[#allocation55_spill] sm:$0xff] %v12222_v1  ;;  %v2737_v48 = vpop.f32.mrf.mxu0  ;;  %8959 = vmatmul.mubr.msk.f32.gmra.mxu0 %vm820_vm0, %v8911_v34  ;;  %v14779_v34 = vld [vmem:[#allocation28_spill] sm:$0xff] }
 0x28a   : > { %14772 = vst [vmem:[#allocation50_spill] sm:$0xff] %v12225_v40  ;;  %v3203_v19 = vpop.f32.mrf.mxu1  ;;  %9039 = vmatmul.mubr.msk.f32.gmra.mxu1 %vm820_vm0, %v14773_v14  ;;  %v2884_v5 = vadd.f32 %v2737_v48, %v14774_v35  ;;  %3770 = vmatprep.mubr.f32.mxu0 %v14668_v46 }
 0x28b   : > { %4236 = vmatprep.mubr.f32.mxu1 %v14668_v46  ;;  %v2739_v33 = vpop.f32.mrf.mxu0 }
 0x28c   : > { %v12236_v15 = vpop.f32.mrf.mxu1  ;;  %v12239_v47 = vadd.f32 %v2739_v33, %v14776_v18  ;;  %v12241_v45 = vadd.f32 %v3203_v19, %v2884_v5  ;;  %v14781_v19 = vld [vmem:[#allocation29_spill] sm:$0xff]  ;;  %v14783_v18 = vld [vmem:[#allocation31_spill] sm:$0xff] }
 0x28d   : > { %14775 = vst [vmem:[#allocation51_spill] sm:$0xff] %v12236_v15  ;;  %v2743_v53 = vpop.f32.mrf.mxu0  ;;  %8960 = vmatmul.mubr.msk.f32.gmra.mxu0 %vm820_vm0, %v8912_v51 }
 0x28e   : > { %14777 = vst [vmem:[#allocation56_spill] sm:$0xff] %v12239_v47  ;;  %v3209_v55 = vpop.f32.mrf.mxu1  ;;  %9040 = vmatmul.mubr.msk.f32.gmra.mxu1 %vm820_vm0, %v14778_v16  ;;  %v2886_v25 = vadd.f32 %v2743_v53, %v14779_v34  ;;  %3776 = vmatprep.mubr.f32.mxu0 %v14668_v46  ;;  %v8914_v16 = vld [vmem:[%s10459_s6 + $0x198] sm:$0xff]  ;;  %v9048_v47 = vld [vmem:[%s10459_s6 + $0x62] sm:$0xff] }
 0x28f   : > { %4242 = vmatprep.mubr.f32.mxu1 %v14668_v46  ;;  %v2745_v48 = vpop.f32.mrf.mxu0  ;;  %v8994_v34 = vld [vmem:[%s10459_s6 + $0x199] sm:$0xff] }
 0x290   : > { %v12250_v14 = vpop.f32.mrf.mxu1  ;;  %v12253_v35 = vadd.f32 %v2745_v48, %v14781_v19  ;;  %v12255_v5 = vadd.f32 %v3209_v55, %v2886_v25  ;;  %v14785_v25 = vld [vmem:[#allocation32_spill] sm:$0xff] }
 0x291   : > { %14780 = vst [vmem:[#allocation57_spill] sm:$0xff] %v12250_v14  ;;  %v2749_v51 = vpop.f32.mrf.mxu0  ;;  %8961 = vmatmul.mubr.msk.f32.gmra.mxu0 %vm820_vm0, %v8913_v24 }
 0x292   : > { %14782 = vst [vmem:[#allocation58_spill] sm:$0xff] %v12253_v35  ;;  %v3215_v33 = vpop.f32.mrf.mxu1  ;;  %9041 = vmatmul.mubr.msk.f32.gmra.mxu1 %vm820_vm0, %v11825_v27  ;;  %v2888_v53 = vadd.f32 %v2749_v51, %v14783_v18  ;;  %3782 = vmatprep.mubr.f32.mxu0 %v14668_v46  ;;  %v14787_v51 = vld [vmem:[#allocation33_spill] sm:$0xff]  ;;  %v8915_v35 = vld [vmem:[%s10459_s6 + $0x1a0] sm:$0xff] }
 0x293   : > { %4248 = vmatprep.mubr.f32.mxu1 %v14668_v46  ;;  %v2751_v48 = vpop.f32.mrf.mxu0 }
 0x294   : > { %v12265_v55 = vpop.f32.mrf.mxu1  ;;  %v12268_v19 = vadd.f32 %v2751_v48, %v14785_v25  ;;  %v12270_v24 = vadd.f32 %v3215_v33, %v2888_v53  ;;  %v9044_v25 = vld [vmem:[%s10459_s6 + $0x32] sm:$0xff] }
 0x295   : > { %14784 = vst [vmem:[#allocation59_spill] sm:$0xff] %v12265_v55  ;;  %v2755_v14 = vpop.f32.mrf.mxu0  ;;  %8962 = vmatmul.mubr.msk.f32.gmra.mxu0 %vm820_vm0, %v8914_v16  ;;  %v8995_v55 = vld [vmem:[%s10459_s6 + $0x1a1] sm:$0xff] }
 0x296   : > { %14786 = vst [vmem:[#allocation60_spill] sm:$0xff] %v12268_v19  ;;  %v3221_v27 = vpop.f32.mrf.mxu1  ;;  %9042 = vmatmul.mubr.msk.f32.gmra.mxu1 %vm820_vm0, %v8994_v34  ;;  %v2890_v18 = vadd.f32 %v2755_v14, %v14787_v51  ;;  %3788 = vmatprep.mubr.f32.mxu0 %v14668_v46 }
 0x297   : > { %4254 = vmatprep.mubr.f32.mxu1 %v14668_v46  ;;  %v2757_v15 = vpop.f32.mrf.mxu0 }
 0x298   : > { %v12279_v48 = vpop.f32.mrf.mxu1  ;;  %v12282_v33 = vadd.f32 %v2757_v15, %v11836_v8  ;;  %v12284_v53 = vadd.f32 %v3221_v27, %v2890_v18  ;;  %v14792_v18 = vld [vmem:[#allocation34_spill] sm:$0xff] }
 0x299   : > { %14788 = vst [vmem:[#allocation61_spill] sm:$0xff] %v12279_v48  ;;  %v2761_v16 = vpop.f32.mrf.mxu0  ;;  %8963 = vmatmul.mubr.msk.f32.gmra.mxu0 %vm820_vm0, %v8915_v35 }
 0x29a   : > { %14789 = vst [vmem:[#allocation62_spill] sm:$0xff] %v12282_v33  ;;  %v3227_v34 = vpop.f32.mrf.mxu1  ;;  %9043 = vmatmul.mubr.msk.f32.gmra.mxu1 %vm820_vm0, %v8995_v55  ;;  %v2892_v14 = vadd.f32 %v2761_v16, %v11842_v26  ;;  %4534 = vmatprep.mubr.f32.mxu0 %v14668_v46  ;;  %v9045_v26 = vld [vmem:[%s10459_s6 + $0x3a] sm:$0xff]  ;;  %v14794_v33 = vld [vmem:[#allocation35_spill] sm:$0xff] }
 0x29b   : > { %v2763_v51 = vpop.f32.mrf.mxu0 }
 0x29c   : > { %v12291_v19 = vpop.f32.mrf.mxu1  ;;  %v12294_v8 = vadd.f32 %v2763_v51, %v11854_v31  ;;  %v12296_v15 = vadd.f32 %v3227_v34, %v2892_v14  ;;  %v14796_v51 = vld [vmem:[#allocation36_spill] sm:$0xff] }
 0x29d   : > { %14790 = vst [vmem:[#allocation66_spill] sm:$0xff] %v12291_v19  ;;  %v2767_v27 = vpop.f32.mrf.mxu0  ;;  %9092 = vmatmul.mubr.msk.f32.vlgmr.msra.gmra.mxu0 %vm820_vm0, %v9044_v25 }
 0x29e   : > { %14791 = vst [vmem:[#allocation63_spill] sm:$0xff] %v12294_v8  ;;  %v3233_v35 = vpop.f32.mrf.mxu1  ;;  %v2894_v55 = vadd.f32 %v2767_v27, %v14792_v18  ;;  %4540 = vmatprep.mubr.f32.mxu0 %v14668_v46  ;;  %v9046_v27 = vld [vmem:[%s10459_s6 + $0x4a] sm:$0xff]  ;;  %v5124_v18 = vld [vmem:[%s14504_s4 + $0x78] sm:$0xff] }
 0x29f   : > { %v2769_v16 = vpop.f32.mrf.mxu0  ;;  %5142 = vmatpush1.msra.mxu1 %v5124_v18  ;;  %v5123_v18 = vld [vmem:[%s14504_s4 + $0x70] sm:$0xff] }
 0x2a0   : > { %v12302_v48 = vpop.f32.mrf.mxu1  ;;  %v12305_v19 = vadd.f32 %v2769_v16, %v14794_v33  ;;  %v12307_v31 = vadd.f32 %v3233_v35, %v2894_v55  ;;  %v14798_v33 = vld [vmem:[#allocation37_spill] sm:$0xff]  ;;  %5143 = vmatprep.subr.mxu1 %v14668_v46 }
 0x2a1   : > { %14793 = vst [vmem:[#allocation64_spill] sm:$0xff] %v12302_v48  ;;  %v2773_v34 = vpop.f32.mrf.mxu0  ;;  %9093 = vmatmul.mubr.msk.f32.gmra.mxu0 %vm820_vm0, %v9045_v26  ;;  %5144 = vmatpush1.msra.mxu1 %v5123_v18  ;;  %v5122_v18 = vld [vmem:[%s14504_s4 + $0x68] sm:$0xff] }
 0x2a2   : > { %14795 = vst [vmem:[#allocation65_spill] sm:$0xff] %v12305_v19  ;;  %v3239_v14 = vpop.f32.mrf.mxu1  ;;  %v2896_v25 = vadd.f32 %v2773_v34, %v14796_v51  ;;  %4546 = vmatprep.mubr.f32.mxu0 %v14668_v46  ;;  %v14800_v34 = vld [vmem:[#allocation38_spill] sm:$0xff]  ;;  %v9047_v19 = vld [vmem:[%s10459_s6 + $0x52] sm:$0xff]  ;;  %5145 = vmatprep.subr.mxu1 %v14668_v46 }
 0x2a3   : > { %v2775_v48 = vpop.f32.mrf.mxu0  ;;  %5146 = vmatpush1.msra.mxu1 %v5122_v18  ;;  %v5121_v18 = vld [vmem:[%s14504_s4 + $0x60] sm:$0xff] }
 0x2a4   : > { %v12316_v8 = vpop.f32.mrf.mxu1  ;;  %v12319_v35 = vadd.f32 %v2775_v48, %v14798_v33  ;;  %v12321_v55 = vadd.f32 %v3239_v14, %v2896_v25  ;;  %v14802_v14 = vld [vmem:[#allocation42_spill] sm:$0xff]  ;;  %5147 = vmatprep.subr.mxu1 %v14668_v46 }
 0x2a5   : > { %14797 = vst [vmem:[#allocation67_spill] sm:$0xff] %v12316_v8  ;;  %v2779_v26 = vpop.f32.mrf.mxu0  ;;  %9094 = vmatmul.mubr.msk.f32.gmra.mxu0 %vm820_vm0, %v9046_v27  ;;  %5148 = vmatpush1.msra.mxu1 %v5121_v18  ;;  %v9050_v18 = vld [vmem:[%s10459_s6 + $0x7a] sm:$0xff] }
 0x2a6   : > { %14799 = vst [vmem:[#allocation68_spill] sm:$0xff] %v12319_v35  ;;  %v3245_v16 = vpop.f32.mrf.mxu1  ;;  %v2898_v51 = vadd.f32 %v2779_v26, %v14800_v34  ;;  %4552 = vmatprep.mubr.f32.mxu0 %v14668_v46  ;;  %v14804_v34 = vld [vmem:[#allocation39_spill] sm:$0xff]  ;;  %5149 = vmatprep.subr.mxu1 %v14668_v46 }
 0x2a7   : > { %v2781_v48 = vpop.f32.mrf.mxu0 }
 0x2a8   : > { %v12331_v33 = vpop.f32.mrf.mxu1  ;;  %v12334_v25 = vadd.f32 %v2781_v48, %v14802_v14  ;;  %v12336_v8 = vadd.f32 %v3245_v16, %v2898_v51 }
 0x2a9   : > { %14801 = vst [vmem:[#allocation71_spill] sm:$0xff] %v12331_v33  ;;  %v2785_v27 = vpop.f32.mrf.mxu0  ;;  %9095 = vmatmul.mubr.msk.f32.gmra.mxu0 %vm820_vm0, %v9047_v19 }
 0x2aa   : > { %14803 = vst [vmem:[#allocation69_spill] sm:$0xff] %v12334_v25  ;;  %v3251_v26 = vpop.f32.mrf.mxu1  ;;  %v2900_v35 = vadd.f32 %v2785_v27, %v14804_v34  ;;  %4558 = vmatprep.mubr.f32.mxu0 %v14668_v46  ;;  %v14807_v34 = vld [vmem:[#allocation40_spill] sm:$0xff] }
 0x2ab   : > { %v2787_v48 = vpop.f32.mrf.mxu0  ;;  %v9049_v25 = vld [vmem:[%s10459_s6 + $0x6a] sm:$0xff] }
 0x2ac   : > { %v12346_v14 = vpop.f32.mrf.mxu1  ;;  %v12349_v16 = vadd.f32 %v2787_v48, %v11926_v22  ;;  %v12351_v51 = vadd.f32 %v3251_v26, %v2900_v35 }
 0x2ad   : > { %14805 = vst [vmem:[#allocation70_spill] sm:$0xff] %v12346_v14  ;;  %v2791_v19 = vpop.f32.mrf.mxu0  ;;  %9096 = vmatmul.mubr.msk.f32.gmra.mxu0 %vm820_vm0, %v9048_v47 }
 0x2ae   : > { %14806 = vst [vmem:[#allocation27_spill] sm:$0xff] %v12349_v16  ;;  %v3257_v27 = vpop.f32.mrf.mxu1  ;;  %v2902_v33 = vadd.f32 %v2791_v19, %v14807_v34  ;;  %4564 = vmatprep.mubr.f32.mxu0 %v14668_v46  ;;  %v5120_v34 = vld [vmem:[%s14504_s4 + $0x58] sm:$0xff]  ;;  %v9054_v16 = vld [vmem:[%s10459_s6 + $0xaa] sm:$0xff] }
 0x2af   : > { %v2793_v22 = vpop.f32.mrf.mxu0  ;;  %5150 = vmatpush1.msra.mxu1 %v5120_v34  ;;  %v5118_v34 = vld [vmem:[%s14504_s4 + $0x48] sm:$0xff] }
 0x2b0   : > { %v12361_v48 = vpop.f32.mrf.mxu1  ;;  %v12364_v35 = vadd.f32 %v2793_v22, %v11944_v11  ;;  %v12366_v26 = vadd.f32 %v3257_v27, %v2902_v33  ;;  %5151 = vmatprep.subr.mxu1 %v14668_v46  ;;  %v14811_v27 = vld [vmem:[#allocation45_spill] sm:$0xff] }
 0x2b1   : > { %14808 = vst [vmem:[#allocation26_spill] sm:$0xff] %v12361_v48  ;;  %v2797_v47 = vpop.f32.mrf.mxu0  ;;  %9097 = vmatmul.mubr.msk.f32.gmra.mxu0 %vm820_vm0, %v9049_v25  ;;  %v5119_v25 = vld [vmem:[%s14504_s4 + $0x50] sm:$0xff] }
 0x2b2   : > { %14809 = vst [vmem:[#allocation30_spill] sm:$0xff] %v12364_v35  ;;  %v3263_v19 = vpop.f32.mrf.mxu1  ;;  %v2904_v14 = vadd.f32 %v2797_v47, %v11950_v6  ;;  %4570 = vmatprep.mubr.f32.mxu0 %v14668_v46  ;;  %5152 = vmatpush1.msra.mxu1 %v5119_v25  ;;  %v9051_v35 = vld [vmem:[%s10459_s6 + $0x82] sm:$0xff] }
 0x2b3   : > { %v2799_v11 = vpop.f32.mrf.mxu0  ;;  %5153 = vmatprep.subr.mxu1 %v14668_v46 }
 0x2b4   : > { %v12376_v33 = vpop.f32.mrf.mxu1  ;;  %v12383_v22 = vadd.f32 %v2799_v11, %v14811_v27  ;;  %v12385_v48 = vadd.f32 %v3263_v19, %v2904_v14  ;;  %5154 = vmatpush1.msra.mxu1 %v5118_v34 }
 0x2b5   : > { %14810 = vst [vmem:[#allocation72_spill] sm:$0xff] %v12376_v33  ;;  %v2803_v6 = vpop.f32.mrf.mxu0  ;;  %9098 = vmatmul.mubr.msk.f32.gmra.mxu0 %vm820_vm0, %v9050_v18  ;;  %5155 = vmatprep.subr.mxu1 %v14668_v46  ;;  %v5117_v18 = vld [vmem:[%s14504_s4 + $0x40] sm:$0xff] }
 0x2b6   : > { %14812 = vst [vmem:[#allocation28_spill] sm:$0xff] %v12383_v22  ;;  %v3269_v47 = vpop.f32.mrf.mxu1  ;;  %v2906_v33 = vadd.f32 %v2803_v6, %v11968_v29  ;;  %4576 = vmatprep.mubr.f32.mxu0 %v14668_v46  ;;  %5156 = vmatpush1.msra.mxu1 %v5117_v18  ;;  %v5116_v6 = vld [vmem:[%s14504_s4 + $0x38] sm:$0xff] }
 0x2b7   : > { %v2805_v14 = vpop.f32.mrf.mxu0  ;;  %5157 = vmatprep.subr.mxu1 %v14668_v46  ;;  %v9053_v22 = vld [vmem:[%s10459_s6 + $0x9a] sm:$0xff] }
 0x2b8   : > { %v12395_v19 = vpop.f32.mrf.mxu1  ;;  %v12402_v11 = vadd.f32 %v2805_v14, %v11977_v36  ;;  %v12404_v25 = vadd.f32 %v3269_v47, %v2906_v33  ;;  %5158 = vmatpush1.msra.mxu1 %v5116_v6  ;;  %v14816_v47 = vld [vmem:[#allocation41_spill] sm:$0xff]  ;;  %v5114_v6 = vld [vmem:[%s14504_s4 + $0x28] sm:$0xff] }
 0x2b9   : > { %14813 = vst [vmem:[#allocation29_spill] sm:$0xff] %v12395_v19  ;;  %v2809_v29 = vpop.f32.mrf.mxu0  ;;  %9099 = vmatmul.mubr.msk.f32.gmra.mxu0 %vm820_vm0, %v9051_v35  ;;  %v9052_v19 = vld [vmem:[%s10459_s6 + $0x92] sm:$0xff]  ;;  %5159 = vmatprep.subr.mxu1 %v14668_v46 }
 0x2ba   : > { %14814 = vst [vmem:[#allocation31_spill] sm:$0xff] %v12402_v11  ;;  %v3275_v27 = vpop.f32.mrf.mxu1  ;;  %v2908_v34 = vadd.f32 %v2809_v29, %v11983_v2  ;;  %4582 = vmatprep.mubr.f32.mxu0 %v14668_v46  ;;  %v5115_v35 = vld [vmem:[%s14504_s4 + $0x30] sm:$0xff] }
 0x2bb   : > { %v2811_v36 = vpop.f32.mrf.mxu0  ;;  %5160 = vmatpush1.msra.mxu1 %v5115_v35 }
 0x2bc   : > { %v12414_v33 = vpop.f32.mrf.mxu1  ;;  %v12421_v14 = vadd.f32 %v2811_v36, %v14816_v47  ;;  %v12423_v18 = vadd.f32 %v3275_v27, %v2908_v34  ;;  %5161 = vmatprep.subr.mxu1 %v14668_v46  ;;  %v14820_v36 = vld [vmem:[#allocation48_spill] sm:$0xff] }
 0x2bd   : > { %14815 = vst [vmem:[#allocation32_spill] sm:$0xff] %v12414_v33  ;;  %v2815_v2 = vpop.f32.mrf.mxu0  ;;  %9100 = vmatmul.mubr.msk.f32.gmra.mxu0 %vm820_vm0, %v9052_v19  ;;  %v14818_v33 = vld [vmem:[#allocation43_spill] sm:$0xff]  ;;  %5162 = vmatpush1.msra.mxu1 %v5114_v6  ;;  %v5113_v19 = vld [vmem:[%s14504_s4 + $0x20] sm:$0xff]  ;;  %v5112_v6 = vld [vmem:[%s14504_s4 + $0x18] sm:$0xff] }
 0x2be   : > { %14817 = vst [vmem:[#allocation33_spill] sm:$0xff] %v12421_v14  ;;  %v3281_v29 = vpop.f32.mrf.mxu1  ;;  %v2910_v11 = vadd.f32 %v2815_v2, %v14818_v33  ;;  %4588 = vmatprep.mubr.f32.mxu0 %v14668_v46  ;;  %5163 = vmatprep.subr.mxu1 %v14668_v46 }
 0x2bf   : > { %v2817_v27 = vpop.f32.mrf.mxu0  ;;  %5164 = vmatpush1.msra.mxu1 %v5113_v19 }
 0x2c0   : > { %v12433_v34 = vpop.f32.mrf.mxu1  ;;  %v12440_v35 = vadd.f32 %v2817_v27, %v14820_v36  ;;  %v12442_v47 = vadd.f32 %v3281_v29, %v2910_v11  ;;  %5165 = vmatprep.subr.mxu1 %v14668_v46  ;;  %v14824_v27 = vld [vmem:[#allocation46_spill] sm:$0xff] }
 0x2c1   : > { %14819 = vst [vmem:[#allocation34_spill] sm:$0xff] %v12433_v34  ;;  %v2821_v33 = vpop.f32.mrf.mxu0  ;;  %9101 = vmatmul.mubr.msk.f32.gmra.mxu0 %vm820_vm0, %v9053_v22  ;;  %v14822_v34 = vld [vmem:[#allocation44_spill] sm:$0xff]  ;;  %5166 = vmatpush1.msra.mxu1 %v5112_v6  ;;  %v5110_v6 = vld [vmem:[%s14504_s4 + $0x8] sm:$0xff] }
 0x2c2   : > { %14821 = vst [vmem:[#allocation35_spill] sm:$0xff] %v12440_v35  ;;  %v3287_v2 = vpop.f32.mrf.mxu1  ;;  %v2912_v14 = vadd.f32 %v2821_v33, %v14822_v34  ;;  %4594 = vmatprep.mubr.f32.mxu0 %v14668_v46  ;;  %5167 = vmatprep.subr.mxu1 %v14668_v46  ;;  %v5111_v22 = vld [vmem:[%s14504_s4 + $0x10] sm:$0xff] }
 0x2c3   : > { %v2823_v11 = vpop.f32.mrf.mxu0  ;;  %5168 = vmatpush1.msra.mxu1 %v5111_v22  ;;  %v9055_v35 = vld [vmem:[%s10459_s6 + $0xb2] sm:$0xff] }
 0x2c4   : > { %v12452_v29 = vpop.f32.mrf.mxu1  ;;  %v12459_v19 = vadd.f32 %v2823_v11, %v14824_v27  ;;  %v12461_v36 = vadd.f32 %v3287_v2, %v2912_v14  ;;  %5169 = vmatprep.subr.mxu1 %v14668_v46 }
 0x2c5   : > { %14823 = vst [vmem:[#allocation36_spill] sm:$0xff] %v12452_v29  ;;  %v2827_v34 = vpop.f32.mrf.mxu0  ;;  %9102 = vmatmul.mubr.msk.f32.gmra.mxu0 %vm820_vm0, %v9054_v16  ;;  %5170 = vmatpush1.msra.mxu1 %v5110_v6  ;;  %v5109_v16 = vld [vmem:[%s14504_s4] sm:$0xff] }
 0x2c6   : > { %14825 = vst [vmem:[#allocation37_spill] sm:$0xff] %v12459_v19  ;;  %v3293_v33 = vpop.f32.mrf.mxu1  ;;  %v2914_v29 = vadd.f32 %v2827_v34, %v12021_v37  ;;  %4600 = vmatprep.mubr.f32.mxu0 %v14668_v46  ;;  %5171 = vmatprep.subr.mxu1 %v14668_v46  ;;  %v5140_v34 = vld [vmem:[%s14504_s4 + $0xf8] sm:$0xff] }
 0x2c7   : > { %v2829_v14 = vpop.f32.mrf.mxu0  ;;  %5172 = vmatpush1.msra.mxu1 %v5109_v16 }
 0x2c8   : > { %v12471_v2 = vpop.f32.mrf.mxu1  ;;  %v12478_v11 = vadd.f32 %v2829_v14, %v12027_v23  ;;  %v12480_v22 = vadd.f32 %v3293_v33, %v2914_v29  ;;  %5173 = vmatprep.subr.mxu1 %v14668_v46 }
 0x2c9   : > { %14826 = vst [vmem:[#allocation38_spill] sm:$0xff] %v12471_v2  ;;  %v2833_v37 = vpop.f32.mrf.mxu0  ;;  %9103 = vmatmul.mubr.msk.f32.gmra.mxu0 %vm820_vm0, %v9055_v35  ;;  %v9056_v2 = vld [vmem:[%s10459_s6 + $0xc2] sm:$0xff]  ;;  %5174 = vmatpush2.msra.mxu1 %v5140_v34  ;;  %v5139_v35 = vld [vmem:[%s14504_s4 + $0xf0] sm:$0xff] }
 0x2ca   : > { %14827 = vst [vmem:[#allocation42_spill] sm:$0xff] %v12478_v11  ;;  %v3299_v27 = vpop.f32.mrf.mxu1  ;;  %v2916_v6 = vadd.f32 %v2833_v37, %v12033_v9  ;;  %4606 = vmatprep.mubr.f32.mxu0 %v14668_v46  ;;  %5175 = vmatprep.subr.mxu1 %v14668_v46  ;;  %v5138_v37 = vld [vmem:[%s14504_s4 + $0xe8] sm:$0xff] }
 0x2cb   : > { %v2835_v23 = vpop.f32.mrf.mxu0  ;;  %5176 = vmatpush2.msra.mxu1 %v5139_v35 }
 0x2cc   : > { %v12490_v29 = vpop.f32.mrf.mxu1  ;;  %v12497_v33 = vadd.f32 %v2835_v23, %v12039_v13  ;;  %v12499_v14 = vadd.f32 %v3299_v27, %v2916_v6  ;;  %5177 = vmatprep.subr.mxu1 %v14668_v46 }
 0x2cd   : > { %14828 = vst [vmem:[#allocation39_spill] sm:$0xff] %v12490_v29  ;;  %v2839_v9 = vpop.f32.mrf.mxu0  ;;  %9104 = vmatmul.mubr.msk.f32.gmra.mxu0 %vm820_vm0, %v9056_v2  ;;  %v9057_v29 = vld [vmem:[%s10459_s6 + $0xca] sm:$0xff]  ;;  %5178 = vmatpush2.msra.mxu1 %v5138_v37  ;;  %v5137_v2 = vld [vmem:[%s14504_s4 + $0xe0] sm:$0xff] }
 0x2ce   : > { %14829 = vst [vmem:[#allocation40_spill] sm:$0xff] %v12497_v33  ;;  %v3305_v16 = vpop.f32.mrf.mxu1  ;;  %v2918_v34 = vadd.f32 %v2839_v9, %v12045_v44  ;;  %4612 = vmatprep.mubr.f32.mxu0 %v14668_v46  ;;  %5179 = vmatprep.subr.mxu1 %v14668_v46  ;;  %v5136_v9 = vld [vmem:[%s14504_s4 + $0xd8] sm:$0xff]  ;;  %v9059_v33 = vld [vmem:[%s10459_s6 + $0xe2] sm:$0xff] }
 0x2cf   : > { %v2841_v13 = vpop.f32.mrf.mxu0  ;;  %5180 = vmatpush2.msra.mxu1 %v5137_v2 }
 0x2d0   : > { %v12509_v27 = vpop.f32.mrf.mxu1  ;;  %v12516_v6 = vadd.f32 %v2841_v13, %v12051_v42  ;;  %v12518_v23 = vadd.f32 %v3305_v16, %v2918_v34  ;;  %5181 = vmatprep.subr.mxu1 %v14668_v46  ;;  %v14833_v34 = vld [vmem:[#allocation47_spill] sm:$0xff] }
 0x2d1   : > { %14830 = vst [vmem:[#allocation45_spill] sm:$0xff] %v12509_v27  ;;  %v2845_v44 = vpop.f32.mrf.mxu0  ;;  %9105 = vmatmul.mubr.msk.f32.gmra.mxu0 %vm820_vm0, %v9057_v29  ;;  %v9058_v27 = vld [vmem:[%s10459_s6 + $0xda] sm:$0xff]  ;;  %5182 = vmatpush2.msra.mxu1 %v5136_v9  ;;  %v5135_v29 = vld [vmem:[%s14504_s4 + $0xd0] sm:$0xff]  ;;  %v5134_v9 = vld [vmem:[%s14504_s4 + $0xc8] sm:$0xff] }
 0x2d2   : > { %14831 = vst [vmem:[#allocation41_spill] sm:$0xff] %v12516_v6  ;;  %v3311_v35 = vpop.f32.mrf.mxu1  ;;  %v2920_v37 = vadd.f32 %v2845_v44, %v12057_v7  ;;  %4618 = vmatprep.mubr.f32.mxu0 %v14668_v46  ;;  %5183 = vmatprep.subr.mxu1 %v14668_v46 }
 0x2d3   : > { %v2847_v42 = vpop.f32.mrf.mxu0  ;;  %5184 = vmatpush2.msra.mxu1 %v5135_v29 }
 0x2d4   : > { %v12528_v16 = vpop.f32.mrf.mxu1  ;;  %v12535_v13 = vadd.f32 %v2847_v42, %v14833_v34  ;;  %v12537_v2 = vadd.f32 %v3311_v35, %v2920_v37  ;;  %5185 = vmatprep.subr.mxu1 %v14668_v46 }
 0x2d5   : > { %14832 = vst [vmem:[#allocation43_spill] sm:$0xff] %v12528_v16  ;;  %v2851_v7 = vpop.f32.mrf.mxu0  ;;  %9106 = vmatmul.mubr.msk.f32.gmra.mxu0 %vm820_vm0, %v9058_v27  ;;  %v14835_v16 = vld [vmem:[#allocation52_spill] sm:$0xff]  ;;  %5186 = vmatpush2.msra.mxu1 %v5134_v9  ;;  %v5133_v27 = vld [vmem:[%s14504_s4 + $0xc0] sm:$0xff] }
 0x2d6   : > { %14834 = vst [vmem:[#allocation48_spill] sm:$0xff] %v12535_v13  ;;  %v3317_v44 = vpop.f32.mrf.mxu1  ;;  %v2922_v6 = vadd.f32 %v2851_v7, %v14835_v16  ;;  %4624 = vmatprep.mubr.f32.mxu0 %v14668_v46  ;;  %5187 = vmatprep.subr.mxu1 %v14668_v46  ;;  %v5132_v7 = vld [vmem:[%s14504_s4 + $0xb8] sm:$0xff] }
 0x2d7   : > { %v2853_v35 = vpop.f32.mrf.mxu0  ;;  %5188 = vmatpush2.msra.mxu1 %v5133_v27 }
 0x2d8   : > { %v12547_v37 = vpop.f32.mrf.mxu1  ;;  %v12554_v42 = vadd.f32 %v2853_v35, %v12079_v10  ;;  %v12556_v29 = vadd.f32 %v3317_v44, %v2922_v6  ;;  %5189 = vmatprep.subr.mxu1 %v14668_v46 }
 0x2d9   : > { %14836 = vst [vmem:[#allocation44_spill] sm:$0xff] %v12547_v37  ;;  %v2857_v16 = vpop.f32.mrf.mxu0  ;;  %9107 = vmatmul.mubr.msk.f32.gmra.mxu0 %vm820_vm0, %v9059_v33  ;;  %v9060_v37 = vld [vmem:[%s10459_s6 + $0xf2] sm:$0xff]  ;;  %5190 = vmatpush2.msra.mxu1 %v5132_v7 }
 0x2da   : > { %14837 = vst [vmem:[#allocation46_spill] sm:$0xff] %v12554_v42  ;;  %v3323_v34 = vpop.f32.mrf.mxu1  ;;  %v2924_v9 = vadd.f32 %v2857_v16, %v12087_v59  ;;  %4630 = vmatprep.mubr.f32.mxu0 %v14668_v46  ;;  %5191 = vmatprep.subr.mxu1 %v14668_v46  ;;  %v5131_v33 = vld [vmem:[%s14504_s4 + $0xb0] sm:$0xff]  ;;  %v5130_v16 = vld [vmem:[%s14504_s4 + $0xa8] sm:$0xff] }
 0x2db   : > { %v2859_v10 = vpop.f32.mrf.mxu0  ;;  %5192 = vmatpush2.msra.mxu1 %v5131_v33 }
 0x2dc   : > { %v12566_v6 = vpop.f32.mrf.mxu1  ;;  %v12573_v44 = vadd.f32 %v2859_v10, %v12092_v39  ;;  %v12575_v35 = vadd.f32 %v3323_v34, %v2924_v9  ;;  %5193 = vmatprep.subr.mxu1 %v14668_v46  ;;  %v9061_v39 = vld [vmem:[%s10459_s6 + $0xfa] sm:$0xff] }
 0x2dd   : > { %14838 = vst [vmem:[#allocation47_spill] sm:$0xff] %v12566_v6  ;;  %v3604_v59 = vpop.f32.mrf.mxu0  ;;  %9108 = vmatmul.mubr.msk.f32.gmra.mxu0 %vm820_vm0, %v9060_v37  ;;  %5194 = vmatpush2.msra.mxu1 %v5130_v16  ;;  %v5129_v37 = vld [vmem:[%s14504_s4 + $0xa0] sm:$0xff]  ;;  %v9062_v16 = vld [vmem:[%s10459_s6 + $0x10a] sm:$0xff]  ;;  %v9063_v6 = vld [vmem:[%s10459_s6 + $0x112] sm:$0xff] }
 0x2de   : > { %14839 = vst [vmem:[#allocation52_spill] sm:$0xff] %v12573_v44  ;;  %v12578_v27 = vpop.f32.mrf.mxu1  ;;  %v12585_v7 = vadd.f32 %v3604_v59, %v12099_v58  ;;  %4636 = vmatprep.mubr.f32.mxu0 %v14668_v46  ;;  %5195 = vmatprep.subr.mxu1 %v14668_v46  ;;  %v5128_v58 = vld [vmem:[%s14504_s4 + $0x98] sm:$0xff] }
 0x2df   : > { %v3606_v34 = vpop.f32.mrf.mxu0  ;;  %5196 = vmatpush2.msra.mxu1 %v5129_v37 }
 0x2e0   : > { %v12589_v9 = vpop.f32.mrf.mxu1  ;;  %v12595_v10 = vadd.f32 %v3606_v34, %v12105_v4  ;;  %5197 = vmatprep.subr.mxu1 %v14668_v46 }
 0x2e1   : > { %v3610_v33 = vpop.f32.mrf.mxu0  ;;  %9109 = vmatmul.mubr.msk.f32.gmra.mxu0 %vm820_vm0, %v9061_v39  ;;  %5198 = vmatpush2.msra.mxu1 %v5128_v58  ;;  %v5127_v39 = vld [vmem:[%s14504_s4 + $0x90] sm:$0xff] }
 0x2e2   : > { %v12603_v59 = vadd.f32 %v3610_v33, %v12111_v54  ;;  %4642 = vmatprep.mubr.f32.mxu0 %v14668_v46  ;;  %v12608_v34 = vpop.f32.mrf.mxu1  ;;  %5199 = vmatprep.subr.mxu1 %v14668_v46  ;;  %v5126_v33 = vld [vmem:[%s14504_s4 + $0x88] sm:$0xff] }
 0x2e3   : > { %v3612_v4 = vpop.f32.mrf.mxu0  ;;  %5200 = vmatpush2.msra.mxu1 %v5127_v39 }
 0x2e4   : > { %v12614_v37 = vadd.f32 %v3612_v4, %v12117_v63  ;;  %5201 = vmatprep.subr.mxu1 %v14668_v46  ;;  %v12627_v63 = vpop.f32.mrf.mxu1 }
 0x2e5   : > { %v3616_v54 = vpop.f32.mrf.mxu0  ;;  %9110 = vmatmul.mubr.msk.f32.gmra.mxu0 %vm820_vm0, %v9062_v16  ;;  %5202 = vmatpush2.msra.mxu1 %v5126_v33  ;;  %v5125_v16 = vld [vmem:[%s14504_s4 + $0x80] sm:$0xff] }
 0x2e6   : > { %v12622_v58 = vadd.f32 %v3616_v54, %v12123_v60  ;;  %4648 = vmatprep.mubr.f32.mxu0 %v14668_v46  ;;  %5203 = vmatprep.subr.mxu1 %v14668_v46  ;;  %v9064_v33 = vld [vmem:[%s10459_s6 + $0x122] sm:$0xff]  ;;  %v12643_v44 = vpop.f32.mrf.mxu1 }
 0x2e7   : > { %v3618_v4 = vpop.f32.mrf.mxu0  ;;  %5204 = vmatpush2.msra.mxu1 %v5125_v16 }
 0x2e8   : > { %v12633_v39 = vadd.f32 %v3618_v4, %v12129_v62  ;;  %9444 = vmatprep.subr.mxu1 %v14668_v46  ;;  %v12654_v16 = vpop.f32.mrf.mxu1 }
 0x2e9   : > { %v3622_v60 = vpop.f32.mrf.mxu0  ;;  %9111 = vmatmul.mubr.msk.f32.gmra.mxu0 %vm820_vm0, %v9063_v6 }
 0x2ea   : > { %v12638_v54 = vadd.f32 %v3622_v60, %v12135_v12  ;;  %4654 = vmatprep.mubr.f32.mxu0 %v14668_v46  ;;  %v9065_v12 = vld [vmem:[%s10459_s6 + $0x12a] sm:$0xff] }
 0x2eb   : > { %v3624_v62 = vpop.f32.mrf.mxu0 }
 0x2ec   : > { %v12646_v4 = vadd.f32 %v3624_v62, %v12141_v20 }
 0x2ed   : > { %v3628_v42 = vpop.f32.mrf.mxu0  ;;  %9112 = vmatmul.mubr.msk.f32.gmra.mxu0 %vm820_vm0, %v9064_v33 }
 0x2ee   : > { %v12650_v6 = vadd.f32 %v3628_v42, %v12147_v17  ;;  %4660 = vmatprep.mubr.f32.mxu0 %v14668_v46  ;;  %v9066_v17 = vld [vmem:[%s10459_s6 + $0x13a] sm:$0xff]  ;;  %v12665_v42 = vpop.f32.mrf.mxu1 }
 0x2ef   : > { %v3630_v60 = vpop.f32.mrf.mxu0 }
 0x2f0   : > { %v12657_v13 = vadd.f32 %v3630_v60, %v12153_v28 }
 0x2f1   : > { %v3634_v11 = vpop.f32.mrf.mxu0  ;;  %9113 = vmatmul.mubr.msk.f32.gmra.mxu0 %vm820_vm0, %v9065_v12 }
 0x2f2   : > { %v12661_v20 = vadd.f32 %v3634_v11, %v12159_v57  ;;  %4666 = vmatprep.mubr.f32.mxu0 %v14668_v46  ;;  %v9067_v57 = vld [vmem:[%s10459_s6 + $0x142] sm:$0xff]  ;;  %v12676_v11 = vpop.f32.mrf.mxu1 }
 0x2f3   : > { %v3636_v33 = vpop.f32.mrf.mxu0 }
 0x2f4   : > { %v12668_v62 = vadd.f32 %v3636_v33, %v12165_v30 }
 0x2f5   : > { %v3640_v19 = vpop.f32.mrf.mxu0  ;;  %9114 = vmatmul.mubr.msk.f32.gmra.mxu0 %vm820_vm0, %v9066_v17 }
 0x2f6   : > { %v12672_v28 = vadd.f32 %v3640_v19, %v12171_v3  ;;  %4672 = vmatprep.mubr.f32.mxu0 %v14668_v46  ;;  %v9068_v3 = vld [vmem:[%s10459_s6 + $0x152] sm:$0xff]  ;;  %v12687_v19 = vpop.f32.mrf.mxu1 }
 0x2f7   : > { %v3642_v12 = vpop.f32.mrf.mxu0 }
 0x2f8   : > { %v12679_v60 = vadd.f32 %v3642_v12, %v12177_v61 }
 0x2f9   : > { %v3646_v1 = vpop.f32.mrf.mxu0  ;;  %9115 = vmatmul.mubr.msk.f32.gmra.mxu0 %vm820_vm0, %v9067_v57 }
 0x2fa   : > { %v12683_v30 = vadd.f32 %v3646_v1, %v12183_v41  ;;  %4678 = vmatprep.mubr.f32.mxu0 %v14668_v46  ;;  %v9069_v41 = vld [vmem:[%s10459_s6 + $0x15a] sm:$0xff]  ;;  %v12698_v1 = vpop.f32.mrf.mxu1 }
 0x2fb   : > { %v3648_v17 = vpop.f32.mrf.mxu0 }
 0x2fc   : > { %v12690_v33 = vadd.f32 %v3648_v17, %v12189_v38 }
 0x2fd   : > { %v3652_v40 = vpop.f32.mrf.mxu0  ;;  %9116 = vmatmul.mubr.msk.f32.gmra.mxu0 %vm820_vm0, %v9068_v3  ;;  %v9070_v3 = vld [vmem:[%s10459_s6 + $0x16a] sm:$0xff] }
 0x2fe   : > { %v12694_v61 = vadd.f32 %v3652_v40, %v12199_v43  ;;  %4684 = vmatprep.mubr.f32.mxu0 %v14668_v46  ;;  %v5034_v43 = vpop.xlane.xlu0 %5033  ;;  %v12708_v40 = vpop.f32.mrf.mxu1 }
 0x2ff   : > { %v12700_v57 = vpop.f32.mrf.mxu0  ;;  %9702 = vrcp.f32 %v5034_v43 }
 0x300   : > { %14840 = vst [vmem:[#allocation73_spill] sm:$0xff] %v12694_v61 }
 0x301   : > { %v3658_v12 = vpop.f32.mrf.mxu0  ;;  %9117 = vmatmul.mubr.msk.f32.gmra.mxu0 %vm820_vm0, %v9069_v41  ;;  %v12718_v41 = vpop.f32.mrf.mxu1 }
 0x302   : > { %v12704_v38 = vadd.f32 %v3658_v12, %v12213_v50  ;;  %4690 = vmatprep.mubr.f32.mxu0 %v14668_v46  ;;  %v9071_v50 = vld [vmem:[%s10459_s6 + $0x172] sm:$0xff] }
 0x303   : > { %v12710_v17 = vpop.f32.mrf.mxu0 }
 0x304   : > { %14841 = vst [vmem:[#allocation74_spill] sm:$0xff] %v12704_v38  ;;  %14842 = vst [vmem:[#allocation75_spill] sm:$0xff] %v12710_v17 }
 0x305   : > { %v3664_v61 = vpop.f32.mrf.mxu0  ;;  %9118 = vmatmul.mubr.msk.f32.gmra.mxu0 %vm820_vm0, %v9070_v3 }
 0x306   : > { %v12714_v49 = vadd.f32 %v3664_v61, %v12227_v32  ;;  %4696 = vmatprep.mubr.f32.mxu0 %v14668_v46  ;;  %v9072_v32 = vld [vmem:[%s10459_s6 + $0x182] sm:$0xff]  ;;  %v12728_v61 = vpop.f32.mrf.mxu1 }
 0x307   : > { %v12720_v12 = vpop.f32.mrf.mxu0 }
 0x308   : > { %14843 = vst [vmem:[#allocation76_spill] sm:$0xff] %v12714_v49  ;;  %14844 = vst [vmem:[#allocation77_spill] sm:$0xff] %v12720_v12 }
 0x309   : > { %v3670_v38 = vpop.f32.mrf.mxu0  ;;  %9119 = vmatmul.mubr.msk.f32.gmra.mxu0 %vm820_vm0, %v9071_v50  ;;  %v9073_v50 = vld [vmem:[%s10459_s6 + $0x18a] sm:$0xff] }
 0x30a   : > { %v12724_v17 = vadd.f32 %v3670_v38, %v12241_v45  ;;  %4702 = vmatprep.mubr.f32.mxu0 %v14668_v46  ;;  %v12738_v45 = vpop.f32.mrf.mxu1 }
 0x30b   : > { %v12730_v3 = vpop.f32.mrf.mxu0 }
 0x30c   : > { %14845 = vst [vmem:[#allocation78_spill] sm:$0xff] %v12724_v17  ;;  %14846 = vst [vmem:[#allocation79_spill] sm:$0xff] %v12730_v3  ;;  %v12748_v3 = vpop.eup %9702 }
 0x30d   : > { %v3676_v49 = vpop.f32.mrf.mxu0  ;;  %9120 = vmatmul.mubr.msk.f32.gmra.mxu0 %vm820_vm0, %v9072_v32  ;;  %v9074_v32 = vld [vmem:[%s10459_s6 + $0x19a] sm:$0xff]  ;;  %14850 = vst [vmem:[#allocation83_spill] sm:$0xff] %v12748_v3 }
 0x30e   : > { %v12734_v43 = vadd.f32 %v3676_v49, %v12255_v5  ;;  %4708 = vmatprep.mubr.f32.mxu0 %v14668_v46  ;;  %v12750_v49 = vpop.f32.mrf.mxu1 }
 0x30f   : > { %v12740_v38 = vpop.f32.mrf.mxu0 }
 0x310   : > { %14847 = vst [vmem:[#allocation80_spill] sm:$0xff] %v12734_v43  ;;  %14848 = vst [vmem:[#allocation81_spill] sm:$0xff] %v12740_v38 }
 0x311   : > { %v3682_v17 = vpop.f32.mrf.mxu0  ;;  %9121 = vmatmul.mubr.msk.f32.gmra.mxu0 %vm820_vm0, %v9073_v50  ;;  %v9075_v50 = vld [vmem:[%s10459_s6 + $0x1a2] sm:$0xff]  ;;  %s10018_s6 = sshll.u32 %s10105_s26, 4  ;;  %s10019_s6 = int_to_ptr.vmem [resolvable:$false] %s10018_s6 }
 0x312   : > { %v12744_v12 = vadd.f32 %v3682_v17, %v12270_v24  ;;  %4714 = vmatprep.mubr.f32.mxu0 %v14668_v46  ;;  %v5037_v24 = vmul.f32 %v12748_v3, %v12073_v52  ;;  %v12762_v17 = vpop.f32.mrf.mxu1  ;;  %s10020_s8 = scalar_lea.vmem %s10019_s6, 16384  ;;  %p10021_p4 = scmp.lt.s32.totalorder %s14454_s23, %s10019_s6 }
 0x313   : > { %v12752_v5 = vpop.f32.mrf.mxu0  ;;  %p10022_p13 = scmp.lt.s32.totalorder %s10020_s8, %s10014_s0 }
 0x314   : > { %14849 = vst [vmem:[#allocation82_spill] sm:$0xff] %v12744_v12  ;;  %14851 = vst [vmem:[#allocation84_spill] sm:$0xff] %v12752_v5 }
 0x315   : > { %v3688_v43 = vpop.f32.mrf.mxu0  ;;  %9122 = vmatmul.mubr.msk.f32.gmra.mxu0 %vm820_vm0, %v9074_v32  ;;  %v12770_v32 = vpop.f32.mrf.mxu1  ;;  %p10023_p7 = por %p10022_p13, %p10021_p4 }
 0x316   : > { %v12756_v38 = vadd.f32 %v3688_v43, %v12284_v53  ;;  %4720 = vmatprep.mubr.f32.mxu0 %v14668_v46 }
 0x317   : > { %v12764_v12 = vpop.f32.mrf.mxu0  ;;  %v12777_v52 = vpop.f32.mrf.mxu1  ;;  %p10024_p11 = pnand %p10023_p7, %p10017_p2 }
 0x318   : > { %14852 = vst [vmem:[#allocation85_spill] sm:$0xff] %v12756_v38  ;;  %14853 = vst [vmem:[#allocation86_spill] sm:$0xff] %v12764_v12 }
 0x319   : > { %v3694_v21 = vpop.f32.mrf.mxu0  ;;  %9123 = vmatmul.mubr.msk.f32.gmra.mxu0 %vm820_vm0, %v9075_v50  ;;  %v12784_v50 = vpop.f32.mrf.mxu1 }
 0x31a   : > { %v12768_v5 = vadd.f32 %v3694_v21, %v12296_v15  ;;  %5102 = vmatprep.mubr.f32.mxu0 %v5037_v24 }
 0x31b   : > { %v12772_v53 = vpop.f32.mrf.mxu0 }
 0x31c   : > { %14854 = vst [vmem:[#allocation87_spill] sm:$0xff] %v12768_v5  ;;  %14855 = vst [vmem:[#allocation88_spill] sm:$0xff] %v12772_v53  ;;  %v12791_v5 = vpop.f32.mrf.mxu1 }
 0x31d   : > { %v3700_v43 = vpop.f32.mrf.mxu0 }
 0x31e   : > { %v12775_v46 = vadd.f32 %v3700_v43, %v12307_v31 }
 0x31f   : > { %v12779_v3 = vpop.f32.mrf.mxu0 }
 0x320   : > { %14856 = vst [vmem:[#allocation89_spill] sm:$0xff] %v12775_v46  ;;  %14857 = vst [vmem:[#allocation90_spill] sm:$0xff] %v12779_v3  ;;  %v12798_v3 = vpop.f32.mrf.mxu1 }
 0x321   : > { %v3706_v38 = vpop.f32.mrf.mxu0 }
 0x322   : > { %v12782_v12 = vadd.f32 %v3706_v38, %v12321_v55 }
 0x323   : > { %v12786_v21 = vpop.f32.mrf.mxu0 }
 0x324   : > { %14858 = vst [vmem:[#allocation91_spill] sm:$0xff] %v12782_v12  ;;  %14859 = vst [vmem:[#allocation92_spill] sm:$0xff] %v12786_v21  ;;  %v12805_v21 = vpop.f32.mrf.mxu1 }
 0x325   : > { %v3712_v15 = vpop.f32.mrf.mxu0 }
 0x326   : > { %v12789_v24 = vadd.f32 %v3712_v15, %v12336_v8 }
 0x327   : > { %v12793_v31 = vpop.f32.mrf.mxu0 }
 0x328   : > { %14860 = vst [vmem:[#allocation93_spill] sm:$0xff] %v12789_v24  ;;  %14861 = vst [vmem:[#allocation94_spill] sm:$0xff] %v12793_v31  ;;  %v12812_v31 = vpop.f32.mrf.mxu1 }
 0x329   : > { %v3718_v43 = vpop.f32.mrf.mxu0 }
 0x32a   : > { %v12796_v46 = vadd.f32 %v3718_v43, %v12351_v51 }
 0x32b   : > { %v12800_v55 = vpop.f32.mrf.mxu0 }
 0x32c   : > { %14862 = vst [vmem:[#allocation95_spill] sm:$0xff] %v12796_v46  ;;  %14863 = vst [vmem:[#allocation96_spill] sm:$0xff] %v12800_v55  ;;  %v12819_v55 = vpop.f32.mrf.mxu1 }
 0x32d   : > { %v3724_v38 = vpop.f32.mrf.mxu0 }
 0x32e   : > { %v12803_v12 = vadd.f32 %v3724_v38, %v12366_v26 }
 0x32f   : > { %v12807_v8 = vpop.f32.mrf.mxu0 }
 0x330   : > { %14864 = vst [vmem:[#allocation97_spill] sm:$0xff] %v12803_v12  ;;  %14865 = vst [vmem:[#allocation98_spill] sm:$0xff] %v12807_v8  ;;  %v12826_v8 = vpop.f32.mrf.mxu1 }
 0x331   : > { %v3730_v15 = vpop.f32.mrf.mxu0 }
 0x332   : > { %v12810_v24 = vadd.f32 %v3730_v15, %v12385_v48 }
 0x333   : > { %v12814_v51 = vpop.f32.mrf.mxu0 }
 0x334   : > { %14866 = vst [vmem:[#allocation99_spill] sm:$0xff] %v12810_v24  ;;  %14867 = vst [vmem:[#allocation100_spill] sm:$0xff] %v12814_v51  ;;  %v12833_v51 = vpop.f32.mrf.mxu1 }
 0x335   : > { %v3736_v43 = vpop.f32.mrf.mxu0 }
 0x336   : > { %v12817_v46 = vadd.f32 %v3736_v43, %v12404_v25 }
 0x337   : > { %v12821_v26 = vpop.f32.mrf.mxu0 }
 0x338   : > { %14868 = vst [vmem:[#allocation101_spill] sm:$0xff] %v12817_v46  ;;  %14869 = vst [vmem:[#allocation102_spill] sm:$0xff] %v12821_v26  ;;  %v12840_v26 = vpop.f32.mrf.mxu1 }
 0x339   : > { %v3742_v38 = vpop.f32.mrf.mxu0 }
 0x33a   : > { %v12824_v12 = vadd.f32 %v3742_v38, %v12423_v18 }
 0x33b   : > { %v12828_v48 = vpop.f32.mrf.mxu0 }
 0x33c   : > { %14870 = vst [vmem:[#allocation103_spill] sm:$0xff] %v12824_v12  ;;  %14871 = vst [vmem:[#allocation104_spill] sm:$0xff] %v12828_v48  ;;  %v12847_v48 = vpop.f32.mrf.mxu1 }
 0x33d   : > { %v3748_v15 = vpop.f32.mrf.mxu0 }
 0x33e   : > { %v12831_v24 = vadd.f32 %v3748_v15, %v12442_v47 }
 0x33f   : > { %v12835_v25 = vpop.f32.mrf.mxu0 }
 0x340   : > { %14872 = vst [vmem:[#allocation105_spill] sm:$0xff] %v12831_v24  ;;  %14873 = vst [vmem:[#allocation106_spill] sm:$0xff] %v12835_v25  ;;  %v12854_v25 = vpop.f32.mrf.mxu1 }
 0x341   : > { %v3754_v43 = vpop.f32.mrf.mxu0  ;;  %14879 = vst [vmem:[#allocation112_spill] sm:$0xff] %v12854_v25 }
 0x342   : > { %v12838_v46 = vadd.f32 %v3754_v43, %v12461_v36  ;;  %v4793_v43 = vlaneseq  ;;  %v12861_v53 = vpop.f32.mrf.mxu1 }
 0x343   : > { %v12842_v18 = vpop.f32.mrf.mxu0  ;;  %14882 = vst [vmem:[#allocation115_spill] sm:$0xff] %v12861_v53 }
 0x344   : > { %14874 = vst [vmem:[#allocation107_spill] sm:$0xff] %v12838_v46  ;;  %14875 = vst [vmem:[#allocation108_spill] sm:$0xff] %v12842_v18 }
 0x345   : > { %v3760_v38 = vpop.f32.mrf.mxu0 }
 0x346   : > { %v12845_v12 = vadd.f32 %v3760_v38, %v12480_v22  ;;  %v4794_v38 = vshrl.u32 %v4793_v43, 7 }
 0x347   : > { %v12849_v47 = vpop.f32.mrf.mxu0 }
 0x348   : > { %14876 = vst [vmem:[#allocation109_spill] sm:$0xff] %v12845_v12  ;;  %14877 = vst [vmem:[#allocation110_spill] sm:$0xff] %v12849_v47 }
 0x349   : > { %v3766_v15 = vpop.f32.mrf.mxu0 }
 0x34a   : > { %v12852_v24 = vadd.f32 %v3766_v15, %v12499_v14  ;;  %v12868_v14 = vpop.f32.mrf.mxu1 }
 0x34b   : > { %v12856_v36 = vpop.f32.mrf.mxu0  ;;  %14885 = vst [vmem:[#allocation118_spill] sm:$0xff] %v12868_v14 }
 0x34c   : > { %14878 = vst [vmem:[#allocation111_spill] sm:$0xff] %v12852_v24  ;;  %14880 = vst [vmem:[#allocation113_spill] sm:$0xff] %v12856_v36  ;;  %v12872_v24 = vsub.s32 0, %v4794_v38  ;;  %v12882_v43 = vpop.f32.mrf.mxu1 }
 0x34d   : > { %v3772_v46 = vpop.f32.mrf.mxu0  ;;  %14891 = vst [vmem:[#allocation123_spill] sm:$0xff] %v12882_v43 }
 0x34e   : > { %v12859_v18 = vadd.f32 %v3772_v46, %v12518_v23  ;;  %14887 = vst [vmem:[#allocation120_spill] sm:$0xff] %v12872_v24  ;;  %v4791_v46 = vld [vmem:[%s14888_s20] sm:$0xf] }
 0x34f   : > { %v12863_v22 = vpop.f32.mrf.mxu0 }
 0x350   : > { %14881 = vst [vmem:[#allocation114_spill] sm:$0xff] %v12859_v18  ;;  %14883 = vst [vmem:[#allocation116_spill] sm:$0xff] %v12863_v22  ;;  %v12880_v18 = vsub.s32 2, %v4794_v38 }
 0x351   : > { %v3778_v12 = vpop.f32.mrf.mxu0 }
 0x352   : > { %v12866_v47 = vadd.f32 %v3778_v12, %v12537_v2  ;;  %14890 = vst [vmem:[#allocation122_spill] sm:$0xff] %v12880_v18  ;;  %v12886_v12 = vsub.s32 1, %v4794_v38  ;;  %v4800_v53 = vrot.slane %v4791_v46, %v12880_v18 }
 0x353   : > { %v12870_v15 = vpop.f32.mrf.mxu0 }
 0x354   : > { %14884 = vst [vmem:[#allocation117_spill] sm:$0xff] %v12866_v47  ;;  %14886 = vst [vmem:[#allocation119_spill] sm:$0xff] %v12870_v15  ;;  %v4796_v47 = vrot.slane %v4791_v46, %v12872_v24  ;;  %v12889_v15 = vsub.s32 3, %v4794_v38  ;;  %v12909_v18 = vrot.slane %v4800_v53, %v12872_v24 }
 0x355   : > { %v3784_v36 = vpop.f32.mrf.mxu0  ;;  %14893 = vst [vmem:[#allocation125_spill] sm:$0xff] %v12886_v12 }
 0x356   : > { %v12878_v23 = vadd.f32 %v3784_v36, %v12556_v29  ;;  %14894 = vst [vmem:[#allocation126_spill] sm:$0xff] %v12889_v15  ;;  %v12895_v29 = vpop.f32.mrf.mxu1  ;;  %v12903_v43 = vrot.slane %v4796_v47, %v12872_v24  ;;  %v4882_v38 = vrot.slane %v4791_v46, %v12889_v15  ;;  %v14951_v24 = vld [vmem:[#allocation118_spill] sm:$0xff] }
 0x357   : > { %v12884_v2 = vpop.f32.mrf.mxu0  ;;  %14896 = vst [vmem:[#allocation128_spill] sm:$0xff] %v12895_v29 }
 0x358   : > { %14889 = vst [vmem:[#allocation121_spill] sm:$0xff] %v12878_v23  ;;  %14892 = vst [vmem:[#allocation124_spill] sm:$0xff] %v12884_v2  ;;  %v4878_v23 = vrot.slane %v4791_v46, %v12886_v12  ;;  %v4261_v2 = vadd.f32 %v12578_v27, %v12585_v7  ;;  %v4263_v27 = vadd.f32 %v12608_v34, %v12603_v59 }
 0x359   : > { %v3790_v22 = vpop.f32.mrf.mxu0  ;;  %v12920_v46 = vrot.slane %v4882_v38, %v12886_v12  ;;  %v4265_v59 = vadd.f32 %v12643_v44, %v12622_v58 }
 0x35a   : > { %v12892_v14 = vadd.f32 %v3790_v22, %v12575_v35  ;;  %v4262_v35 = vadd.f32 %v12589_v9, %v12595_v10  ;;  %v4264_v10 = vadd.f32 %v12627_v63, %v12614_v37  ;;  %v4266_v37 = vadd.f32 %v12654_v16, %v12633_v39 }
 0x35b   : > { %v12897_v36 = vpop.f32.mrf.mxu0 }
 0x35c   : > { %14895 = vst [vmem:[#allocation127_spill] sm:$0xff] %v12892_v14  ;;  %14897 = vst [vmem:[#allocation129_spill] sm:$0xff] %v12897_v36  ;;  %v12911_v14 = vpop.f32.mrf.mxu1  ;;  %v12914_v36 = vrot.slane %v4878_v23, %v12886_v12 }
 0x35d   : > { %v4536_v25 = vpop.f32.mrf.mxu0 }
 0x35e   : > { %v4727_v22 = vadd.f32 %v4536_v25, %v4261_v2  ;;  %v12925_v2 = vpop.f32.mrf.mxu1 }
 0x35f   : > { %v4538_v29 = vpop.f32.mrf.mxu0 }
 0x360   : > { %v4811_v7 = vmul.f32 %v12903_v43, %v4727_v22  ;;  %v4728_v47 = vadd.f32 %v4538_v29, %v4262_v35 }
 0x361   : > { %v4542_v9 = vpop.f32.mrf.mxu0 }
 0x362   : > { %v4812_v53 = vmul.f32 %v12909_v18, %v4728_v47  ;;  %v4729_v25 = vadd.f32 %v4542_v9, %v4263_v27  ;;  %v4893_v23 = vadd.f32 %v12914_v36, %v4811_v7  ;;  %v12937_v47 = vpop.f32.mrf.mxu1 }
 0x363   : > { %v4544_v15 = vpop.f32.mrf.mxu0 }
 0x364   : > { %v4813_v34 = vmul.f32 %v12903_v43, %v4729_v25  ;;  %v4730_v29 = vadd.f32 %v4544_v15, %v4264_v10  ;;  %v4894_v38 = vadd.f32 %v12920_v46, %v4812_v53  ;;  %v12939_v7 = vmax.f32 %v4893_v23, 0.0 }
 0x365   : > { %v4548_v35 = vpop.f32.mrf.mxu0  ;;  %v4267_v15 = vadd.f32 %v12665_v42, %v12638_v54  ;;  %v4268_v53 = vadd.f32 %v12676_v11, %v12646_v4 }
 0x366   : > { %v4814_v63 = vmul.f32 %v12909_v18, %v4730_v29  ;;  %v4731_v22 = vadd.f32 %v4548_v35, %v4265_v59  ;;  %v12935_v27 = vmax.f32 %v4894_v38, 0.0  ;;  %14899 = vst [vmem:[#allocation131_spill] sm:$0xff] %v12939_v7  ;;  %v4895_v44 = vadd.f32 %v12914_v36, %v4813_v34  ;;  %v12953_v34 = vpop.f32.mrf.mxu1 }
 0x367   : > { %v4550_v58 = vpop.f32.mrf.mxu0  ;;  %v4269_v38 = vadd.f32 %v12687_v19, %v12650_v6 }
 0x368   : > { %14898 = vst [vmem:[#allocation130_spill] sm:$0xff] %v12935_v27  ;;  %v4815_v9 = vmul.f32 %v12903_v43, %v4731_v22  ;;  %v4732_v10 = vadd.f32 %v4550_v58, %v4266_v37  ;;  %5205 = vmatprep.mubr.f32.mxu1 %v12935_v27  ;;  %v4896_v39 = vadd.f32 %v12920_v46, %v4814_v63  ;;  %v12955_v54 = vmax.f32 %v4895_v44, 0.0 }
 0x369   : > { %v4554_v16 = vpop.f32.mrf.mxu0  ;;  %5206 = vmatmul.mubr.f32.vlgmr.msra.gmra.mxu1 %v12939_v7  ;;  %v4270_v63 = vadd.f32 %v12698_v1, %v12657_v13 }
 0x36a   : > { %v4816_v25 = vmul.f32 %v12909_v18, %v4732_v10  ;;  %v4733_v23 = vadd.f32 %v4554_v16, %v4267_v15  ;;  %v12951_v59 = vmax.f32 %v4896_v39, 0.0  ;;  %14901 = vst [vmem:[#allocation133_spill] sm:$0xff] %v12955_v54  ;;  %v4897_v42 = vadd.f32 %v12914_v36, %v4815_v9  ;;  %v12969_v15 = vpop.f32.mrf.mxu1 }
 0x36b   : > { %v4556_v29 = vpop.f32.mrf.mxu0  ;;  %v4271_v10 = vadd.f32 %v12708_v40, %v12661_v20 }
 0x36c   : > { %14900 = vst [vmem:[#allocation132_spill] sm:$0xff] %v12951_v59  ;;  %v4817_v35 = vmul.f32 %v12903_v43, %v4733_v23  ;;  %v4734_v37 = vadd.f32 %v4556_v29, %v4268_v53  ;;  %5210 = vmatprep.mubr.f32.mxu1 %v12951_v59  ;;  %v4898_v4 = vadd.f32 %v12920_v46, %v4816_v25  ;;  %v12971_v6 = vmax.f32 %v4897_v42, 0.0  ;;  %v12985_v29 = vpop.f32.mrf.mxu1 }
 0x36d   : > { %v4560_v11 = vpop.f32.mrf.mxu0  ;;  %5211 = vmatmul.mubr.f32.gmra.mxu1 %v12955_v54  ;;  %v4272_v53 = vadd.f32 %v12718_v41, %v12668_v62  ;;  %v14959_v54 = vld [vmem:[#allocation128_spill] sm:$0xff] }
 0x36e   : > { %v4818_v22 = vmul.f32 %v12909_v18, %v4734_v37  ;;  %v4735_v44 = vadd.f32 %v4560_v11, %v4269_v38  ;;  %v12967_v58 = vmax.f32 %v4898_v4, 0.0  ;;  %14903 = vst [vmem:[#allocation135_spill] sm:$0xff] %v12971_v6  ;;  %v4899_v19 = vadd.f32 %v12914_v36, %v4817_v35 }
 0x36f   : > { %v4562_v9 = vpop.f32.mrf.mxu0  ;;  %v4273_v35 = vadd.f32 %v12728_v61, %v12672_v28  ;;  %v4274_v11 = vadd.f32 %v12738_v45, %v12679_v60  ;;  %v3345_v28 = vadd.f32 %v12194_v56, %v12197_v0  ;;  %v13003_v61 = vpop.f32.mrf.mxu1  ;;  %v4276_v0 = vadd.f32 %v12762_v17, %v12690_v33 }
 0x370   : > { %14902 = vst [vmem:[#allocation134_spill] sm:$0xff] %v12967_v58  ;;  %v4819_v39 = vmul.f32 %v12903_v43, %v4735_v44  ;;  %v4736_v16 = vadd.f32 %v4562_v9, %v4270_v63  ;;  %5215 = vmatprep.mubr.f32.mxu1 %v12967_v58  ;;  %v4900_v13 = vadd.f32 %v12920_v46, %v4818_v22  ;;  %v12987_v20 = vmax.f32 %v4899_v19, 0.0 }
 0x371   : > { %v4566_v1 = vpop.f32.mrf.mxu0  ;;  %5216 = vmatmul.mubr.f32.gmra.mxu1 %v12971_v6 }
 0x372   : > { %v4820_v25 = vmul.f32 %v12909_v18, %v4736_v16  ;;  %v4737_v23 = vadd.f32 %v4566_v1, %v4271_v10  ;;  %v12983_v42 = vmax.f32 %v4900_v13, 0.0  ;;  %v4901_v40 = vadd.f32 %v12914_v36, %v4819_v39 }
 0x373   : > { %v4568_v38 = vpop.f32.mrf.mxu0  ;;  %v4275_v39 = vadd.f32 %v12750_v49, %v12683_v30  ;;  %v3812_v13 = vadd.f32 %v12700_v57, %v3345_v28  ;;  %v14904_v30 = vld [vmem:[#allocation54_spill] sm:$0xff]  ;;  %v14905_v49 = vld [vmem:[#allocation53_spill] sm:$0xff] }
 0x374   : > { %v4821_v37 = vmul.f32 %v12903_v43, %v4737_v23  ;;  %v4738_v4 = vadd.f32 %v4568_v38, %v4272_v53  ;;  %5220 = vmatprep.mubr.f32.mxu1 %v12983_v42  ;;  %v4902_v62 = vadd.f32 %v12920_v46, %v4820_v25  ;;  %v13005_v19 = vmax.f32 %v4901_v40, 0.0  ;;  %v13022_v40 = vpop.f32.mrf.mxu1 }
 0x375   : > { %v4572_v41 = vpop.f32.mrf.mxu0  ;;  %5221 = vmatmul.mubr.f32.gmra.mxu1 %v12987_v20  ;;  %v3347_v23 = vadd.f32 %v14905_v49, %v14904_v30  ;;  %v14913_v49 = vld [vmem:[#allocation77_spill] sm:$0xff] }
 0x376   : > { %v4822_v63 = vmul.f32 %v12909_v18, %v4738_v4  ;;  %v4739_v22 = vadd.f32 %v4572_v41, %v4273_v35  ;;  %v12999_v44 = vmax.f32 %v4902_v62, 0.0  ;;  %v4903_v9 = vadd.f32 %v12914_v36, %v4821_v37  ;;  %v14906_v37 = vld [vmem:[#allocation73_spill] sm:$0xff] }
 0x377   : > { %v4574_v10 = vpop.f32.mrf.mxu0  ;;  %v4277_v4 = vadd.f32 %v12770_v32, %v14906_v37  ;;  %v4278_v41 = vadd.f32 %v12777_v52, %v3812_v13  ;;  %v14909_v32 = vld [vmem:[#allocation50_spill] sm:$0xff] }
 0x378   : > { %v4823_v60 = vmul.f32 %v12903_v43, %v4739_v22  ;;  %v4740_v45 = vadd.f32 %v4574_v10, %v4274_v11  ;;  %5225 = vmatprep.mubr.f32.mxu1 %v12999_v44  ;;  %v4904_v16 = vadd.f32 %v12920_v46, %v4822_v63  ;;  %v13024_v38 = vmax.f32 %v4903_v9, 0.0  ;;  %v14907_v63 = vld [vmem:[#allocation75_spill] sm:$0xff]  ;;  %v14912_v13 = vld [vmem:[#allocation74_spill] sm:$0xff] }
 0x379   : > { %v4578_v56 = vpop.f32.mrf.mxu0  ;;  %5226 = vmatmul.mubr.f32.gmra.mxu1 %v13005_v19  ;;  %v3814_v22 = vadd.f32 %v14907_v63, %v3347_v23 }
 0x37a   : > { %v4824_v1 = vmul.f32 %v12909_v18, %v4740_v45  ;;  %v4741_v53 = vadd.f32 %v4578_v56, %v4275_v39  ;;  %v13018_v25 = vmax.f32 %v4904_v16, 0.0  ;;  %v4905_v57 = vadd.f32 %v12914_v36, %v4823_v60  ;;  %v14910_v39 = vld [vmem:[#allocation55_spill] sm:$0xff]  ;;  %v13040_v45 = vpop.f32.mrf.mxu1 }
 0x37b   : > { %v4580_v35 = vpop.f32.mrf.mxu0  ;;  %v3349_v60 = vadd.f32 %v14910_v39, %v14909_v32 }
 0x37c   : > { %v4825_v33 = vmul.f32 %v12903_v43, %v4741_v53  ;;  %v4742_v17 = vadd.f32 %v4580_v35, %v4276_v0  ;;  %5230 = vmatprep.mubr.f32.mxu1 %v13018_v25  ;;  %v4906_v62 = vadd.f32 %v12920_v46, %v4824_v1  ;;  %v13042_v16 = vmax.f32 %v4905_v57, 0.0 }
 0x37d   : > { %v4584_v11 = vpop.f32.mrf.mxu0  ;;  %5231 = vmatmul.mubr.f32.gmra.mxu1 %v13024_v38  ;;  %v4279_v0 = vadd.f32 %v12784_v50, %v14912_v13  ;;  %v3816_v23 = vadd.f32 %v14913_v49, %v3349_v60  ;;  %v4280_v57 = vadd.f32 %v12791_v5, %v3814_v22  ;;  %v14915_v50 = vld [vmem:[#allocation56_spill] sm:$0xff] }
 0x37e   : > { %v4826_v28 = vmul.f32 %v12909_v18, %v4742_v17  ;;  %v4743_v9 = vadd.f32 %v4584_v11, %v4277_v4  ;;  %v13036_v10 = vmax.f32 %v4906_v62, 0.0  ;;  %14911 = vst [vmem:[#allocation53_spill] sm:$0xff] %v13042_v16  ;;  %v4907_v56 = vadd.f32 %v12914_v36, %v4825_v33  ;;  %v14916_v17 = vld [vmem:[#allocation51_spill] sm:$0xff] }
 0x37f   : > { %v4586_v52 = vpop.f32.mrf.mxu0  ;;  %v3351_v62 = vadd.f32 %v14916_v17, %v14915_v50  ;;  %v4282_v60 = vadd.f32 %v12805_v21, %v3816_v23  ;;  %v14924_v23 = vld [vmem:[#allocation78_spill] sm:$0xff] }
 0x380   : > { %14908 = vst [vmem:[#allocation54_spill] sm:$0xff] %v13036_v10  ;;  %v4827_v1 = vmul.f32 %v12903_v43, %v4743_v9  ;;  %v4744_v53 = vadd.f32 %v4586_v52, %v4278_v41  ;;  %5235 = vmatprep.mubr.f32.mxu1 %v13036_v10  ;;  %v4908_v30 = vadd.f32 %v12920_v46, %v4826_v28  ;;  %v13058_v41 = vpop.f32.mrf.mxu1  ;;  %v13060_v11 = vmax.f32 %v4907_v56, 0.0  ;;  %v14918_v9 = vld [vmem:[#allocation76_spill] sm:$0xff]  ;;  %v14919_v56 = vld [vmem:[#allocation79_spill] sm:$0xff] }
 0x381   : > { %v4590_v35 = vpop.f32.mrf.mxu0  ;;  %5236 = vmatmul.mubr.f32.gmra.mxu1 %v13042_v16  ;;  %v4281_v32 = vadd.f32 %v12798_v3, %v14918_v9  ;;  %v3818_v13 = vadd.f32 %v14919_v56, %v3351_v62  ;;  %v14921_v3 = vld [vmem:[#allocation58_spill] sm:$0xff] }
 0x382   : > { %v4828_v37 = vmul.f32 %v12909_v18, %v4744_v53  ;;  %v4745_v4 = vadd.f32 %v4590_v35, %v4279_v0  ;;  %v13054_v33 = vmax.f32 %v4908_v30, 0.0  ;;  %14917 = vst [vmem:[#allocation75_spill] sm:$0xff] %v13060_v11  ;;  %v4909_v63 = vadd.f32 %v12914_v36, %v4827_v1  ;;  %v14922_v30 = vld [vmem:[#allocation57_spill] sm:$0xff]  ;;  %v13076_v35 = vpop.f32.mrf.mxu1 }
 0x383   : > { %v4592_v28 = vpop.f32.mrf.mxu0  ;;  %v3353_v49 = vadd.f32 %v14922_v30, %v14921_v3  ;;  %v14930_v30 = vld [vmem:[#allocation80_spill] sm:$0xff] }
 0x384   : > { %14914 = vst [vmem:[#allocation73_spill] sm:$0xff] %v13054_v33  ;;  %v4829_v5 = vmul.f32 %v12903_v43, %v4745_v4  ;;  %v4746_v22 = vadd.f32 %v4592_v28, %v4280_v57  ;;  %5240 = vmatprep.mubr.f32.mxu1 %v13054_v33  ;;  %v4910_v39 = vadd.f32 %v12920_v46, %v4828_v37  ;;  %v13078_v57 = vmax.f32 %v4909_v63, 0.0  ;;  %v14925_v28 = vld [vmem:[#allocation81_spill] sm:$0xff] }
 0x385   : > { %v4596_v52 = vpop.f32.mrf.mxu0  ;;  %5241 = vmatmul.mubr.f32.gmra.mxu1 %v13060_v11  ;;  %v4283_v4 = vadd.f32 %v12812_v31, %v14924_v23  ;;  %v3820_v9 = vadd.f32 %v14925_v28, %v3353_v49  ;;  %v4284_v63 = vadd.f32 %v12819_v55, %v3818_v13  ;;  %v14927_v31 = vld [vmem:[#allocation60_spill] sm:$0xff]  ;;  %v4285_v49 = vadd.f32 %v12826_v8, %v14930_v30  ;;  %v14933_v8 = vld [vmem:[#allocation62_spill] sm:$0xff] }
 0x386   : > { %v4830_v0 = vmul.f32 %v12909_v18, %v4746_v22  ;;  %v4747_v1 = vadd.f32 %v4596_v52, %v4281_v32  ;;  %v13072_v53 = vmax.f32 %v4910_v39, 0.0  ;;  %14923 = vst [vmem:[#allocation55_spill] sm:$0xff] %v13078_v57  ;;  %v4911_v37 = vadd.f32 %v12914_v36, %v4829_v5  ;;  %v14928_v52 = vld [vmem:[#allocation59_spill] sm:$0xff] }
 0x387   : > { %v4598_v21 = vpop.f32.mrf.mxu0  ;;  %v3355_v56 = vadd.f32 %v14928_v52, %v14927_v31  ;;  %v4286_v23 = vadd.f32 %v12833_v51, %v3820_v9  ;;  %v14936_v9 = vld [vmem:[#allocation82_spill] sm:$0xff] }
 0x388   : > { %14920 = vst [vmem:[#allocation50_spill] sm:$0xff] %v13072_v53  ;;  %v4831_v50 = vmul.f32 %v12903_v43, %v4747_v1  ;;  %v4748_v17 = vadd.f32 %v4598_v21, %v4282_v60  ;;  %5245 = vmatprep.mubr.f32.mxu1 %v13072_v53  ;;  %v4912_v62 = vadd.f32 %v12920_v46, %v4830_v0  ;;  %v13094_v60 = vpop.f32.mrf.mxu1  ;;  %v13096_v1 = vmax.f32 %v4911_v37, 0.0  ;;  %v14931_v37 = vld [vmem:[#allocation84_spill] sm:$0xff] }
 0x389   : > { %v4602_v32 = vpop.f32.mrf.mxu0  ;;  %5246 = vmatmul.mubr.f32.gmra.mxu1 %v13078_v57  ;;  %v4287_v52 = vadd.f32 %v12840_v26, %v14936_v9  ;;  %v14939_v26 = vld [vmem:[#allocation63_spill] sm:$0xff]  ;;  %v14943_v9 = vld [vmem:[#allocation112_spill] sm:$0xff] }
 0x38a   : > { %v4832_v5 = vmul.f32 %v12909_v18, %v4748_v17  ;;  %v4749_v22 = vadd.f32 %v4602_v32, %v4283_v4  ;;  %v13090_v39 = vmax.f32 %v4912_v62, 0.0  ;;  %14929 = vst [vmem:[#allocation77_spill] sm:$0xff] %v13096_v1  ;;  %v4913_v0 = vadd.f32 %v12914_v36, %v4831_v50  ;;  %v14934_v32 = vld [vmem:[#allocation61_spill] sm:$0xff] }
 0x38b   : > { %v4604_v3 = vpop.f32.mrf.mxu0  ;;  %v3822_v17 = vadd.f32 %v14931_v37, %v3355_v56 }
 0x38c   : > { %14926 = vst [vmem:[#allocation74_spill] sm:$0xff] %v13090_v39  ;;  %v4833_v55 = vmul.f32 %v12903_v43, %v4749_v22  ;;  %v4750_v13 = vadd.f32 %v4604_v3, %v4284_v63  ;;  %5250 = vmatprep.mubr.f32.mxu1 %v13090_v39  ;;  %v4914_v21 = vadd.f32 %v12920_v46, %v4832_v5  ;;  %v13112_v63 = vpop.f32.mrf.mxu1  ;;  %v13114_v31 = vmax.f32 %v4913_v0, 0.0 }
 0x38d   : > { %v4608_v4 = vpop.f32.mrf.mxu0  ;;  %5251 = vmatmul.mubr.f32.gmra.mxu1 %v13096_v1  ;;  %v3357_v22 = vadd.f32 %v14934_v32, %v14933_v8  ;;  %v4288_v0 = vadd.f32 %v12847_v48, %v3822_v17  ;;  %v14940_v8 = vld [vmem:[#allocation66_spill] sm:$0xff] }
 0x38e   : > { %v4834_v50 = vmul.f32 %v12909_v18, %v4750_v13  ;;  %v4751_v62 = vadd.f32 %v4608_v4, %v4285_v49  ;;  %v13108_v28 = vmax.f32 %v4914_v21, 0.0  ;;  %14935 = vst [vmem:[#allocation51_spill] sm:$0xff] %v13114_v31  ;;  %v4915_v5 = vadd.f32 %v12914_v36, %v4833_v55  ;;  %v14937_v49 = vld [vmem:[#allocation86_spill] sm:$0xff] }
 0x38f   : > { %v4610_v51 = vpop.f32.mrf.mxu0  ;;  %v3824_v13 = vadd.f32 %v14937_v49, %v3357_v22 }
 0x390   : > { %14932 = vst [vmem:[#allocation56_spill] sm:$0xff] %v13108_v28  ;;  %v4835_v56 = vmul.f32 %v12903_v43, %v4751_v62  ;;  %v4752_v3 = vadd.f32 %v4610_v51, %v4286_v23  ;;  %5255 = vmatprep.mubr.f32.mxu1 %v13108_v28  ;;  %v4916_v30 = vadd.f32 %v12920_v46, %v4834_v50  ;;  %v13130_v23 = vpop.f32.mrf.mxu1  ;;  %v13132_v32 = vmax.f32 %v4915_v5, 0.0  ;;  %v14942_v51 = vld [vmem:[#allocation85_spill] sm:$0xff]  ;;  %v14945_v5 = vld [vmem:[#allocation88_spill] sm:$0xff] }
 0x391   : > { %v4614_v21 = vpop.f32.mrf.mxu0  ;;  %5256 = vmatmul.mubr.f32.gmra.mxu1 %v13114_v31  ;;  %v3359_v62 = vadd.f32 %v14940_v8, %v14939_v26  ;;  %v4289_v49 = vadd.f32 %v14943_v9, %v14942_v51  ;;  %v14947_v51 = vld [vmem:[#allocation65_spill] sm:$0xff]  ;;  %v14948_v9 = vld [vmem:[#allocation64_spill] sm:$0xff] }
 0x392   : > { %v4836_v55 = vmul.f32 %v12909_v18, %v4752_v3  ;;  %v4753_v4 = vadd.f32 %v4614_v21, %v4287_v52  ;;  %v13126_v37 = vmax.f32 %v4916_v30, 0.0  ;;  %14941 = vst [vmem:[#allocation79_spill] sm:$0xff] %v13132_v32  ;;  %v4917_v50 = vadd.f32 %v12914_v36, %v4835_v56  ;;  %v14944_v3 = vld [vmem:[#allocation115_spill] sm:$0xff] }
 0x393   : > { %v4616_v22 = vpop.f32.mrf.mxu0  ;;  %v4290_v30 = vadd.f32 %v14944_v3, %v3824_v13  ;;  %v3826_v26 = vadd.f32 %v14945_v5, %v3359_v62  ;;  %v14950_v3 = vld [vmem:[#allocation87_spill] sm:$0xff] }
 0x394   : > { %14938 = vst [vmem:[#allocation76_spill] sm:$0xff] %v13126_v37  ;;  %v4837_v48 = vmul.f32 %v12903_v43, %v4753_v4  ;;  %v4754_v17 = vadd.f32 %v4616_v22, %v4288_v0  ;;  %5260 = vmatprep.mubr.f32.mxu1 %v13126_v37  ;;  %v4918_v52 = vadd.f32 %v12920_v46, %v4836_v55  ;;  %v13148_v0 = vpop.f32.mrf.mxu1  ;;  %v13150_v22 = vmax.f32 %v4917_v50, 0.0  ;;  %v14953_v50 = vld [vmem:[#allocation123_spill] sm:$0xff] }
 0x395   : > { %v4620_v21 = vpop.f32.mrf.mxu0  ;;  %5261 = vmatmul.mubr.f32.gmra.mxu1 %v13132_v32  ;;  %v3361_v4 = vadd.f32 %v14948_v9, %v14947_v51  ;;  %v4291_v7 = vadd.f32 %v14951_v24, %v14950_v3  ;;  %v4292_v51 = vadd.f32 %v14953_v50, %v3826_v26  ;;  %v14955_v24 = vld [vmem:[#allocation68_spill] sm:$0xff]  ;;  %v14956_v3 = vld [vmem:[#allocation67_spill] sm:$0xff] }
 0x396   : > { %v4838_v56 = vmul.f32 %v12909_v18, %v4754_v17  ;;  %v4755_v8 = vadd.f32 %v4620_v21, %v4289_v49  ;;  %v13144_v12 = vmax.f32 %v4918_v52, 0.0  ;;  %14949 = vst [vmem:[#allocation57_spill] sm:$0xff] %v13150_v22  ;;  %v4919_v55 = vadd.f32 %v12914_v36, %v4837_v48  ;;  %v14952_v17 = vld [vmem:[#allocation90_spill] sm:$0xff] }
 0x397   : > { %v4622_v13 = vpop.f32.mrf.mxu0  ;;  %v3828_v52 = vadd.f32 %v14952_v17, %v3361_v4  ;;  %v14958_v17 = vld [vmem:[#allocation89_spill] sm:$0xff] }
 0x398   : > { %14946 = vst [vmem:[#allocation58_spill] sm:$0xff] %v13144_v12  ;;  %v4839_v62 = vmul.f32 %v12903_v43, %v4755_v8  ;;  %v4756_v5 = vadd.f32 %v4622_v13, %v4290_v30  ;;  %5265 = vmatprep.mubr.f32.mxu1 %v13144_v12  ;;  %v4920_v49 = vadd.f32 %v12920_v46, %v4838_v56  ;;  %v13166_v30 = vpop.f32.mrf.mxu1  ;;  %v13168_v13 = vmax.f32 %v4919_v55, 0.0  ;;  %v14960_v55 = vld [vmem:[#allocation92_spill] sm:$0xff] }
 0x399   : > { %v4626_v21 = vpop.f32.mrf.mxu0  ;;  %5266 = vmatmul.mubr.f32.gmra.mxu1 %v13150_v22  ;;  %v3363_v8 = vadd.f32 %v14956_v3, %v14955_v24  ;;  %v4293_v59 = vadd.f32 %v14959_v54, %v14958_v17  ;;  %v14962_v54 = vld [vmem:[#allocation69_spill] sm:$0xff]  ;;  %v14963_v17 = vld [vmem:[#allocation71_spill] sm:$0xff] }
 0x39a   : > { %v4840_v48 = vmul.f32 %v12909_v18, %v4756_v5  ;;  %v4757_v9 = vadd.f32 %v4626_v21, %v4291_v7  ;;  %v13162_v27 = vmax.f32 %v4920_v49, 0.0  ;;  %14957 = vst [vmem:[#allocation81_spill] sm:$0xff] %v13168_v13  ;;  %v4921_v56 = vadd.f32 %v12914_v36, %v4839_v62 }
 0x39b   : > { %v4628_v4 = vpop.f32.mrf.mxu0  ;;  %v4294_v5 = vadd.f32 %v12911_v14, %v3828_v52  ;;  %v3830_v21 = vadd.f32 %v14960_v55, %v3363_v8  ;;  %v14965_v52 = vld [vmem:[#allocation91_spill] sm:$0xff] }
 0x39c   : > { %14954 = vst [vmem:[#allocation78_spill] sm:$0xff] %v13162_v27  ;;  %v4841_v26 = vmul.f32 %v12903_v43, %v4757_v9  ;;  %v4758_v50 = vadd.f32 %v4628_v4, %v4292_v51  ;;  %5270 = vmatprep.mubr.f32.mxu1 %v13162_v27  ;;  %v4922_v7 = vadd.f32 %v12920_v46, %v4840_v48  ;;  %v13184_v51 = vpop.f32.mrf.mxu1  ;;  %v13186_v4 = vmax.f32 %v4921_v56, 0.0 }
 0x39d   : > { %v4632_v49 = vpop.f32.mrf.mxu0  ;;  %5271 = vmatmul.mubr.f32.gmra.mxu1 %v13168_v13  ;;  %v3365_v9 = vadd.f32 %v14963_v17, %v14962_v54  ;;  %v4295_v6 = vadd.f32 %v12925_v2, %v14965_v52  ;;  %v4296_v56 = vadd.f32 %v12937_v47, %v3830_v21  ;;  %v14968_v2 = vld [vmem:[#allocation27_spill] sm:$0xff]  ;;  %v14969_v52 = vld [vmem:[#allocation70_spill] sm:$0xff] }
 0x39e   : > { %v4842_v62 = vmul.f32 %v12909_v18, %v4758_v50  ;;  %v4759_v24 = vadd.f32 %v4632_v49, %v4293_v59  ;;  %v13180_v3 = vmax.f32 %v4922_v7, 0.0  ;;  %14964 = vst [vmem:[#allocation59_spill] sm:$0xff] %v13186_v4  ;;  %v4923_v48 = vadd.f32 %v12914_v36, %v4841_v26  ;;  %v14966_v50 = vld [vmem:[#allocation94_spill] sm:$0xff]  ;;  %v13204_v58 = vpop.f32.mrf.mxu1 }
 0x39f   : > { %v4634_v14 = vpop.f32.mrf.mxu0  ;;  %v3832_v7 = vadd.f32 %v14966_v50, %v3365_v9 }
 0x3a0   : > { %14961 = vst [vmem:[#allocation60_spill] sm:$0xff] %v13180_v3  ;;  %v4843_v8 = vmul.f32 %v12903_v43, %v4759_v24  ;;  %v4760_v55 = vadd.f32 %v4634_v14, %v4294_v5  ;;  %5275 = vmatprep.mubr.f32.mxu1 %v13180_v3  ;;  %v4924_v59 = vadd.f32 %v12920_v46, %v4842_v62  ;;  %v14970_v5 = vld [vmem:[#allocation93_spill] sm:$0xff]  ;;  %v13206_v62 = vmax.f32 %v4923_v48, 0.0 }
 0x3a1   : > { %v4638_v49 = vpop.f32.mrf.mxu0  ;;  %5276 = vmatmul.mubr.f32.gmra.mxu1 %v13186_v4  ;;  %v3367_v24 = vadd.f32 %v14969_v52, %v14968_v2  ;;  %v4297_v14 = vadd.f32 %v12953_v34, %v14970_v5  ;;  %v14972_v34 = vld [vmem:[#allocation96_spill] sm:$0xff]  ;;  %v14975_v2 = vld [vmem:[#allocation26_spill] sm:$0xff] }
 0x3a2   : > { %v4844_v26 = vmul.f32 %v12909_v18, %v4760_v55  ;;  %v4761_v54 = vadd.f32 %v4638_v49, %v4295_v6  ;;  %v13198_v17 = vmax.f32 %v4924_v59, 0.0  ;;  %14971 = vst [vmem:[#allocation84_spill] sm:$0xff] %v13206_v62  ;;  %v4925_v9 = vadd.f32 %v12914_v36, %v4843_v8 }
 0x3a3   : > { %v4640_v50 = vpop.f32.mrf.mxu0  ;;  %v4298_v55 = vadd.f32 %v12969_v15, %v3832_v7  ;;  %v3834_v48 = vadd.f32 %v14972_v34, %v3367_v24  ;;  %v13225_v7 = vpop.f32.mrf.mxu1 }
 0x3a4   : > { %14967 = vst [vmem:[#allocation80_spill] sm:$0xff] %v13198_v17  ;;  %v4845_v47 = vmul.f32 %v12903_v43, %v4761_v54  ;;  %v4762_v21 = vadd.f32 %v4640_v50, %v4296_v56  ;;  %5038 = vmatprep.subr.mxu0 %v13198_v17  ;;  %5280 = vmatprep.mubr.f32.mxu1 %v13198_v17  ;;  %v14974_v54 = vld [vmem:[#allocation30_spill] sm:$0xff]  ;;  %v13227_v5 = vmax.f32 %v4925_v9, 0.0 }
 0x3a5   : > { %v4926_v6 = vadd.f32 %v12920_v46, %v4844_v26  ;;  %v4644_v59 = vpop.f32.mrf.mxu0  ;;  %5039 = vmatpush1.msra.mxu0 %v13206_v62  ;;  %5281 = vmatmul.mubr.f32.gmra.mxu1 %v13206_v62  ;;  %v3369_v52 = vadd.f32 %v14975_v2, %v14974_v54  ;;  %v14976_v26 = vld [vmem:[#allocation95_spill] sm:$0xff]  ;;  %v4300_v9 = vadd.f32 %v13003_v61, %v3834_v48  ;;  %v14981_v2 = vld [vmem:[#allocation72_spill] sm:$0xff] }
 0x3a6   : > { %v4846_v8 = vmul.f32 %v12909_v18, %v4762_v21  ;;  %v4763_v49 = vadd.f32 %v4644_v59, %v4297_v14  ;;  %5040 = vmatprep.subr.mxu0 %v13180_v3  ;;  %v4299_v15 = vadd.f32 %v12985_v29, %v14976_v26  ;;  %14977 = vst [vmem:[#allocation61_spill] sm:$0xff] %v13227_v5  ;;  %v14978_v59 = vld [vmem:[#allocation98_spill] sm:$0xff] }
 0x3a7   : > { %v13219_v56 = vmax.f32 %v4926_v6, 0.0  ;;  %v4927_v50 = vadd.f32 %v12914_v36, %v4845_v47  ;;  %v4646_v24 = vpop.f32.mrf.mxu0  ;;  %5041 = vmatpush1.msra.mxu0 %v13186_v4  ;;  %v3836_v29 = vadd.f32 %v14978_v59, %v3369_v52 }
 0x3a8   : > { %v4847_v14 = vmul.f32 %v12903_v43, %v4763_v49  ;;  %v4764_v21 = vadd.f32 %v4646_v24, %v4298_v55  ;;  %5042 = vmatprep.subr.mxu0 %v13162_v27  ;;  %v4928_v6 = vadd.f32 %v12920_v46, %v4846_v8  ;;  %v14980_v49 = vld [vmem:[#allocation28_spill] sm:$0xff]  ;;  %v14982_v8 = vld [vmem:[#allocation97_spill] sm:$0xff]  ;;  %v13247_v24 = vpop.f32.mrf.mxu1 }
 0x3a9   : > { %14973 = vst [vmem:[#allocation62_spill] sm:$0xff] %v13219_v56  ;;  %5285 = vmatprep.mubr.f32.mxu1 %v13219_v56  ;;  %v4650_v34 = vpop.f32.mrf.mxu0  ;;  %5043 = vmatpush1.msra.mxu0 %v13168_v13  ;;  %v3371_v26 = vadd.f32 %v14981_v2, %v14980_v49  ;;  %v4301_v52 = vadd.f32 %v13022_v40, %v14982_v8  ;;  %v13249_v59 = vmax.f32 %v4927_v50, 0.0  ;;  %v14984_v50 = vld [vmem:[#allocation100_spill] sm:$0xff]  ;;  %v14987_v2 = vld [vmem:[#allocation29_spill] sm:$0xff] }
 0x3aa   : > { %5286 = vmatmul.mubr.f32.gmra.mxu1 %v13227_v5  ;;  %v4848_v47 = vmul.f32 %v12909_v18, %v4764_v21  ;;  %v4765_v54 = vadd.f32 %v4650_v34, %v4299_v15  ;;  %5044 = vmatprep.subr.mxu0 %v13144_v12  ;;  %v13241_v55 = vmax.f32 %v4928_v6, 0.0  ;;  %v4929_v62 = vadd.f32 %v12914_v36, %v4847_v14 }
 0x3ab   : > { %14983 = vst [vmem:[#allocation86_spill] sm:$0xff] %v13249_v59  ;;  %v4652_v61 = vpop.f32.mrf.mxu0  ;;  %5045 = vmatpush1.msra.mxu0 %v13150_v22  ;;  %v4302_v40 = vadd.f32 %v13040_v45, %v3836_v29  ;;  %v3838_v14 = vadd.f32 %v14984_v50, %v3371_v26  ;;  %v13269_v29 = vpop.f32.mrf.mxu1 }
 0x3ac   : > { %14979 = vst [vmem:[#allocation82_spill] sm:$0xff] %v13241_v55  ;;  %v4849_v48 = vmul.f32 %v12903_v43, %v4765_v54  ;;  %v4766_v15 = vadd.f32 %v4652_v61, %v4300_v9  ;;  %5046 = vmatprep.subr.mxu0 %v13126_v37  ;;  %5290 = vmatprep.mubr.f32.mxu1 %v13241_v55  ;;  %v14986_v54 = vld [vmem:[#allocation31_spill] sm:$0xff]  ;;  %v13271_v61 = vmax.f32 %v4929_v62, 0.0 }
 0x3ad   : > { %v4930_v21 = vadd.f32 %v12920_v46, %v4848_v47  ;;  %v4656_v6 = vpop.f32.mrf.mxu0  ;;  %5047 = vmatpush1.msra.mxu0 %v13132_v32  ;;  %v3373_v8 = vadd.f32 %v14987_v2, %v14986_v54  ;;  %v14988_v47 = vld [vmem:[#allocation99_spill] sm:$0xff]  ;;  %v4304_v62 = vadd.f32 %v13076_v35, %v3838_v14  ;;  %v14993_v2 = vld [vmem:[#allocation32_spill] sm:$0xff] }
 0x3ae   : > { %5291 = vmatmul.mubr.f32.gmra.mxu1 %v13249_v59  ;;  %v4850_v34 = vmul.f32 %v12909_v18, %v4766_v15  ;;  %v4767_v49 = vadd.f32 %v4656_v6, %v4301_v52  ;;  %5048 = vmatprep.subr.mxu0 %v13108_v28  ;;  %v4303_v45 = vadd.f32 %v13058_v41, %v14988_v47  ;;  %v14990_v6 = vld [vmem:[#allocation102_spill] sm:$0xff]  ;;  %v15022_v32 = vld [vmem:[#allocation39_spill] sm:$0xff] }
 0x3af   : > { %v13263_v9 = vmax.f32 %v4930_v21, 0.0  ;;  %14989 = vst [vmem:[#allocation66_spill] sm:$0xff] %v13271_v61  ;;  %v4931_v17 = vadd.f32 %v12914_v36, %v4849_v48  ;;  %v4658_v26 = vpop.f32.mrf.mxu0  ;;  %5049 = vmatpush1.msra.mxu0 %v13114_v31  ;;  %v3840_v41 = vadd.f32 %v14990_v6, %v3373_v8  ;;  %v15024_v28 = vld [vmem:[#allocation131_spill] sm:$0xff] }
 0x3b0   : > { %v4851_v52 = vmul.f32 %v12903_v43, %v4767_v49  ;;  %v4768_v15 = vadd.f32 %v4658_v26, %v4302_v40  ;;  %5050 = vmatprep.subr.mxu0 %v13090_v39  ;;  %v4932_v21 = vadd.f32 %v12920_v46, %v4850_v34  ;;  %v14992_v49 = vld [vmem:[#allocation33_spill] sm:$0xff]  ;;  %v13291_v26 = vpop.f32.mrf.mxu1 }
 0x3b1   : > { %14985 = vst [vmem:[#allocation63_spill] sm:$0xff] %v13263_v9  ;;  %5295 = vmatprep.mubr.f32.mxu1 %v13263_v9  ;;  %v4662_v50 = vpop.f32.mrf.mxu0  ;;  %5051 = vmatpush1.msra.mxu0 %v13096_v1  ;;  %v3375_v47 = vadd.f32 %v14993_v2, %v14992_v49  ;;  %v14994_v34 = vld [vmem:[#allocation101_spill] sm:$0xff]  ;;  %v13293_v6 = vmax.f32 %v4931_v17, 0.0  ;;  %v14996_v17 = vld [vmem:[#allocation104_spill] sm:$0xff]  ;;  %v14999_v2 = vld [vmem:[#allocation34_spill] sm:$0xff] }
 0x3b2   : > { %5296 = vmatmul.mubr.f32.gmra.mxu1 %v13271_v61  ;;  %v4852_v48 = vmul.f32 %v12909_v18, %v4768_v15  ;;  %v4769_v54 = vadd.f32 %v4662_v50, %v4303_v45  ;;  %5052 = vmatprep.subr.mxu0 %v13072_v53  ;;  %v13285_v40 = vmax.f32 %v4932_v21, 0.0  ;;  %v4305_v8 = vadd.f32 %v13094_v60, %v14994_v34  ;;  %v15025_v1 = vld [vmem:[#allocation109_spill] sm:$0xff] }
 0x3b3   : > { %14995 = vst [vmem:[#allocation112_spill] sm:$0xff] %v13293_v6  ;;  %v4933_v4 = vadd.f32 %v12914_v36, %v4851_v52  ;;  %v4664_v35 = vpop.f32.mrf.mxu0  ;;  %5053 = vmatpush1.msra.mxu0 %v13078_v57  ;;  %v4306_v60 = vadd.f32 %v13112_v63, %v3840_v41  ;;  %v3842_v52 = vadd.f32 %v14996_v17, %v3375_v47  ;;  %v13313_v41 = vpop.f32.mrf.mxu1 }
 0x3b4   : > { %14991 = vst [vmem:[#allocation85_spill] sm:$0xff] %v13285_v40  ;;  %v4853_v14 = vmul.f32 %v12903_v43, %v4769_v54  ;;  %v4770_v45 = vadd.f32 %v4664_v35, %v4304_v62  ;;  %5054 = vmatprep.subr.mxu0 %v13054_v33  ;;  %5300 = vmatprep.mubr.f32.mxu1 %v13285_v40  ;;  %v14998_v54 = vld [vmem:[#allocation35_spill] sm:$0xff] }
 0x3b5   : > { %v4934_v15 = vadd.f32 %v12920_v46, %v4852_v48  ;;  %v4668_v21 = vpop.f32.mrf.mxu0  ;;  %5055 = vmatpush1.msra.mxu0 %v13060_v11  ;;  %v3377_v34 = vadd.f32 %v14999_v2, %v14998_v54  ;;  %v15000_v48 = vld [vmem:[#allocation103_spill] sm:$0xff]  ;;  %v13315_v35 = vmax.f32 %v4933_v4, 0.0  ;;  %v4308_v4 = vadd.f32 %v13148_v0, %v3842_v52  ;;  %v15005_v2 = vld [vmem:[#allocation36_spill] sm:$0xff] }
 0x3b6   : > { %5301 = vmatmul.mubr.f32.gmra.mxu1 %v13293_v6  ;;  %v4854_v50 = vmul.f32 %v12909_v18, %v4770_v45  ;;  %v4771_v49 = vadd.f32 %v4668_v21, %v4305_v8  ;;  %5056 = vmatprep.subr.mxu0 %v13036_v10  ;;  %v4307_v63 = vadd.f32 %v13130_v23, %v15000_v48  ;;  %v15002_v21 = vld [vmem:[#allocation106_spill] sm:$0xff] }
 0x3b7   : > { %v13307_v62 = vmax.f32 %v4934_v15, 0.0  ;;  %15001 = vst [vmem:[#allocation88_spill] sm:$0xff] %v13315_v35  ;;  %v4935_v3 = vadd.f32 %v12914_v36, %v4853_v14  ;;  %v4670_v47 = vpop.f32.mrf.mxu0  ;;  %5057 = vmatpush1.msra.mxu0 %v13042_v16  ;;  %v3844_v23 = vadd.f32 %v15002_v21, %v3377_v34 }
 0x3b8   : > { %v4855_v8 = vmul.f32 %v12903_v43, %v4771_v49  ;;  %v4772_v45 = vadd.f32 %v4670_v47, %v4306_v60  ;;  %5058 = vmatprep.subr.mxu0 %v13018_v25  ;;  %v4936_v15 = vadd.f32 %v12920_v46, %v4854_v50  ;;  %v15004_v49 = vld [vmem:[#allocation37_spill] sm:$0xff]  ;;  %v13335_v47 = vpop.f32.mrf.mxu1 }
 0x3b9   : > { %14997 = vst [vmem:[#allocation115_spill] sm:$0xff] %v13307_v62  ;;  %5305 = vmatprep.mubr.f32.mxu1 %v13307_v62  ;;  %v4674_v17 = vpop.f32.mrf.mxu0  ;;  %5059 = vmatpush1.msra.mxu0 %v13024_v38  ;;  %v3379_v48 = vadd.f32 %v15005_v2, %v15004_v49  ;;  %v15006_v50 = vld [vmem:[#allocation105_spill] sm:$0xff]  ;;  %v13337_v21 = vmax.f32 %v4935_v3, 0.0  ;;  %v15008_v3 = vld [vmem:[#allocation108_spill] sm:$0xff]  ;;  %v15011_v2 = vld [vmem:[#allocation42_spill] sm:$0xff] }
 0x3ba   : > { %5306 = vmatmul.mubr.f32.gmra.mxu1 %v13315_v35  ;;  %v4856_v14 = vmul.f32 %v12909_v18, %v4772_v45  ;;  %v4773_v54 = vadd.f32 %v4674_v17, %v4307_v63  ;;  %5060 = vmatprep.subr.mxu0 %v12999_v44  ;;  %v13329_v60 = vmax.f32 %v4936_v15, 0.0  ;;  %v4309_v34 = vadd.f32 %v13166_v30, %v15006_v50  ;;  %v15012_v50 = vld [vmem:[#allocation38_spill] sm:$0xff] }
 0x3bb   : > { %15007 = vst [vmem:[#allocation64_spill] sm:$0xff] %v13337_v21  ;;  %v4937_v13 = vadd.f32 %v12914_v36, %v4855_v8  ;;  %v4676_v0 = vpop.f32.mrf.mxu0  ;;  %5061 = vmatpush1.msra.mxu0 %v13005_v19  ;;  %v4310_v30 = vadd.f32 %v13184_v51, %v3844_v23  ;;  %v3846_v8 = vadd.f32 %v15008_v3, %v3379_v48  ;;  %v13357_v23 = vpop.f32.mrf.mxu1  ;;  %v15015_v3 = vld [vmem:[#allocation135_spill] sm:$0xff] }
 0x3bc   : > { %15003 = vst [vmem:[#allocation65_spill] sm:$0xff] %v13329_v60  ;;  %v4857_v52 = vmul.f32 %v12903_v43, %v4773_v54  ;;  %v4774_v63 = vadd.f32 %v4676_v0, %v4308_v4  ;;  %5062 = vmatprep.subr.mxu0 %v12983_v42  ;;  %5310 = vmatprep.mubr.f32.mxu1 %v13329_v60  ;;  %v15009_v54 = vld [vmem:[#allocation134_spill] sm:$0xff] }
 0x3bd   : > { %v4938_v45 = vadd.f32 %v12920_v46, %v4856_v14  ;;  %v4680_v15 = vpop.f32.mrf.mxu0  ;;  %5063 = vmatpush1.msra.mxu0 %v12987_v20  ;;  %v3381_v0 = vadd.f32 %v15012_v50, %v15011_v2  ;;  %v15013_v14 = vld [vmem:[#allocation107_spill] sm:$0xff]  ;;  %v13359_v27 = vmax.f32 %v4937_v13, 0.0  ;;  %v15017_v2 = vld [vmem:[#allocation110_spill] sm:$0xff]  ;;  %v4312_v13 = vadd.f32 %v13225_v7, %v3846_v8 }
 0x3be   : > { %5311 = vmatmul.mubr.f32.gmra.mxu1 %v13337_v21  ;;  %v4858_v17 = vmul.f32 %v12909_v18, %v4774_v63  ;;  %v4775_v49 = vadd.f32 %v4680_v15, %v4309_v34  ;;  %5064 = vmatprep.subr.mxu0 %v15009_v54  ;;  %v4311_v51 = vadd.f32 %v13204_v58, %v15013_v14  ;;  %v15018_v14 = vld [vmem:[#allocation133_spill] sm:$0xff] }
 0x3bf   : > { %v13351_v4 = vmax.f32 %v4938_v45, 0.0  ;;  %15014 = vst [vmem:[#allocation118_spill] sm:$0xff] %v13359_v27  ;;  %v4939_v22 = vadd.f32 %v12914_v36, %v4857_v52  ;;  %v4682_v48 = vpop.f32.mrf.mxu0  ;;  %5065 = vmatpush1.msra.mxu0 %v15015_v3  ;;  %v15016_v45 = vld [vmem:[#allocation132_spill] sm:$0xff]  ;;  %v3848_v58 = vadd.f32 %v15017_v2, %v3381_v0  ;;  %v4313_v7 = vadd.f32 %v13247_v24, %v15025_v1  ;;  %v15028_v1 = vld [vmem:[#allocation41_spill] sm:$0xff] }
 0x3c0   : > { %v4859_v34 = vmul.f32 %v12903_v43, %v4775_v49  ;;  %v4776_v63 = vadd.f32 %v4682_v48, %v4310_v30  ;;  %5066 = vmatprep.subr.mxu0 %v15016_v45  ;;  %v4940_v15 = vadd.f32 %v12920_v46, %v4858_v17  ;;  %v15019_v49 = vld [vmem:[#allocation130_spill] sm:$0xff]  ;;  %v15021_v48 = vld [vmem:[#allocation40_spill] sm:$0xff]  ;;  %v4244_v17 = vpop.f32.mrf.mxu1  ;;  %v15029_v24 = vld [vmem:[#allocation45_spill] sm:$0xff] }
 0x3c1   : > { %15010 = vst [vmem:[#allocation87_spill] sm:$0xff] %v13351_v4  ;;  %5315 = vmatprep.mubr.f32.mxu1 %v13351_v4  ;;  %v4686_v50 = vpop.f32.mrf.mxu0  ;;  %5067 = vmatpush1.msra.mxu0 %v15018_v14  ;;  %v3383_v37 = vadd.f32 %v15022_v32, %v15021_v48  ;;  %v13377_v31 = vmax.f32 %v4939_v22, 0.0  ;;  %v4314_v32 = vadd.f32 %v13269_v29, %v3848_v58  ;;  %v15026_v22 = vld [vmem:[#allocation113_spill] sm:$0xff]  ;;  %v15031_v29 = vld [vmem:[#allocation111_spill] sm:$0xff] }
 0x3c2   : > { %5316 = vmatmul.mubr.f32.gmra.mxu1 %v13359_v27  ;;  %v4860_v52 = vmul.f32 %v12909_v18, %v4776_v63  ;;  %v4777_v12 = vadd.f32 %v4686_v50, %v4311_v51  ;;  %5068 = vmatprep.subr.mxu0 %v15019_v49  ;;  %v13373_v30 = vmax.f32 %v4940_v15, 0.0  ;;  %v4941_v0 = vadd.f32 %v12914_v36, %v4859_v34 }
 0x3c3   : > { %15023 = vst [vmem:[#allocation123_spill] sm:$0xff] %v13377_v31  ;;  %v4688_v2 = vpop.f32.mrf.mxu0  ;;  %5069 = vmatpush1.msra.mxu0 %v15024_v28  ;;  %v3850_v34 = vadd.f32 %v15026_v22, %v3383_v37  ;;  %v4315_v58 = vadd.f32 %v13291_v26, %v15031_v29  ;;  %v15034_v26 = vld [vmem:[#allocation48_spill] sm:$0xff] }
 0x3c4   : > { %15020 = vst [vmem:[#allocation90_spill] sm:$0xff] %v13373_v30  ;;  %v4861_v8 = vmul.f32 %v12903_v43, %v4777_v12  ;;  %v4778_v51 = vadd.f32 %v4688_v2, %v4312_v13  ;;  %5320 = vmatprep.mubr.f32.mxu1 %v13373_v30  ;;  %v4942_v63 = vadd.f32 %v12920_v46, %v4860_v52  ;;  %v4246_v13 = vpop.f32.mrf.mxu1  ;;  %v13394_v2 = vmax.f32 %v4941_v0, 0.0 }
 0x3c5   : > { %v4692_v15 = vpop.f32.mrf.mxu0  ;;  %v3385_v12 = vadd.f32 %v15029_v24, %v15028_v1  ;;  %v4316_v0 = vadd.f32 %v13313_v41, %v3850_v34  ;;  %v15035_v24 = vld [vmem:[#allocation43_spill] sm:$0xff] }
 0x3c6   : > { %5321 = vmatmul.mubr.f32.gmra.mxu1 %v13377_v31  ;;  %v4862_v50 = vmul.f32 %v12909_v18, %v4778_v51  ;;  %v4779_v48 = vadd.f32 %v4692_v15, %v4313_v7  ;;  %v13390_v39 = vmax.f32 %v4942_v63, 0.0  ;;  %15030 = vst [vmem:[#allocation67_spill] sm:$0xff] %v13394_v2  ;;  %v4943_v52 = vadd.f32 %v12914_v36, %v4861_v8  ;;  %v15032_v51 = vld [vmem:[#allocation116_spill] sm:$0xff] }
 0x3c7   : > { %v4694_v57 = vpop.f32.mrf.mxu0  ;;  %v3852_v63 = vadd.f32 %v15032_v51, %v3385_v12  ;;  %v15037_v12 = vld [vmem:[#allocation114_spill] sm:$0xff] }
 0x3c8   : > { %15027 = vst [vmem:[#allocation68_spill] sm:$0xff] %v13390_v39  ;;  %v4863_v53 = vmul.f32 %v12903_v43, %v4779_v48  ;;  %v4780_v37 = vadd.f32 %v4694_v57, %v4314_v32  ;;  %5325 = vmatprep.mubr.f32.mxu1 %v13390_v39  ;;  %v4944_v7 = vadd.f32 %v12920_v46, %v4862_v50  ;;  %v4250_v57 = vpop.f32.mrf.mxu1  ;;  %v13410_v32 = vmax.f32 %v4943_v52, 0.0  ;;  %v15038_v52 = vld [vmem:[#allocation119_spill] sm:$0xff] }
 0x3c9   : > { %v4698_v15 = vpop.f32.mrf.mxu0  ;;  %v3387_v48 = vadd.f32 %v15035_v24, %v15034_v26  ;;  %v4317_v51 = vadd.f32 %v13335_v47, %v15037_v12  ;;  %v15040_v47 = vld [vmem:[#allocation46_spill] sm:$0xff]  ;;  %v15041_v24 = vld [vmem:[#allocation44_spill] sm:$0xff] }
 0x3ca   : > { %5326 = vmatmul.mubr.f32.gmra.mxu1 %v13394_v2  ;;  %v4864_v8 = vmul.f32 %v12909_v18, %v4780_v37  ;;  %v4781_v22 = vadd.f32 %v4698_v15, %v4315_v58  ;;  %v13406_v1 = vmax.f32 %v4944_v7, 0.0  ;;  %15036 = vst [vmem:[#allocation128_spill] sm:$0xff] %v13410_v32  ;;  %v4945_v50 = vadd.f32 %v12914_v36, %v4863_v53 }
 0x3cb   : > { %v4700_v29 = vpop.f32.mrf.mxu0  ;;  %v4318_v58 = vadd.f32 %v13357_v23, %v3852_v63  ;;  %v3854_v7 = vadd.f32 %v15038_v52, %v3387_v48  ;;  %v15043_v23 = vld [vmem:[#allocation117_spill] sm:$0xff] }
 0x3cc   : > { %15033 = vst [vmem:[#allocation89_spill] sm:$0xff] %v13406_v1  ;;  %v4865_v11 = vmul.f32 %v12903_v43, %v4781_v22  ;;  %v4782_v41 = vadd.f32 %v4700_v29, %v4316_v0  ;;  %5330 = vmatprep.mubr.f32.mxu1 %v13406_v1  ;;  %v4946_v34 = vadd.f32 %v12920_v46, %v4864_v8  ;;  %v4252_v0 = vpop.f32.mrf.mxu1  ;;  %v13426_v29 = vmax.f32 %v4945_v50, 0.0 }
 0x3cd   : > { %v4704_v37 = vpop.f32.mrf.mxu0  ;;  %v3389_v22 = vadd.f32 %v15041_v24, %v15040_v47  ;;  %v4319_v63 = vadd.f32 %v4244_v17, %v15043_v23  ;;  %v15046_v47 = vld [vmem:[#allocation52_spill] sm:$0xff]  ;;  %v15047_v17 = vld [vmem:[#allocation47_spill] sm:$0xff]  ;;  %v15049_v23 = vld [vmem:[#allocation121_spill] sm:$0xff] }
 0x3ce   : > { %5331 = vmatmul.mubr.f32.gmra.mxu1 %v13410_v32  ;;  %v4866_v53 = vmul.f32 %v12909_v18, %v4782_v41  ;;  %v4783_v15 = vadd.f32 %v4704_v37, %v4317_v51  ;;  %v13422_v26 = vmax.f32 %v4946_v34, 0.0  ;;  %15042 = vst [vmem:[#allocation69_spill] sm:$0xff] %v13426_v29  ;;  %v4947_v8 = vadd.f32 %v12914_v36, %v4865_v11  ;;  %v15044_v51 = vld [vmem:[#allocation124_spill] sm:$0xff] }
 0x3cf   : > { %v4706_v12 = vpop.f32.mrf.mxu0  ;;  %v3856_v41 = vadd.f32 %v15044_v51, %v3389_v22  ;;  %v4320_v37 = vadd.f32 %v4246_v13, %v3854_v7  ;;  %v3391_v24 = vadd.f32 %v15047_v17, %v15046_v47  ;;  %v4321_v22 = vadd.f32 %v4250_v57, %v15049_v23  ;;  %v15053_v17 = vld [vmem:[#allocation127_spill] sm:$0xff] }
 0x3d0   : > { %15039 = vst [vmem:[#allocation92_spill] sm:$0xff] %v13422_v26  ;;  %v4867_v33 = vmul.f32 %v12903_v43, %v4783_v15  ;;  %v4784_v16 = vadd.f32 %v4706_v12, %v4318_v58  ;;  %5335 = vmatprep.mubr.f32.mxu1 %v13422_v26  ;;  %v4948_v48 = vadd.f32 %v12920_v46, %v4866_v53  ;;  %v4256_v15 = vpop.f32.mrf.mxu1  ;;  %v13440_v58 = vmax.f32 %v4947_v8, 0.0 }
 0x3d1   : > { %v4710_v34 = vpop.f32.mrf.mxu0  ;;  %v4322_v13 = vadd.f32 %v4252_v0, %v3856_v41 }
 0x3d2   : > { %5336 = vmatmul.mubr.f32.gmra.mxu1 %v13426_v29  ;;  %v4868_v50 = vmul.f32 %v12909_v18, %v4784_v16  ;;  %v4785_v52 = vadd.f32 %v4710_v34, %v4319_v63  ;;  %v13436_v11 = vmax.f32 %v4948_v48, 0.0  ;;  %15048 = vst [vmem:[#allocation91_spill] sm:$0xff] %v13440_v58  ;;  %v4949_v12 = vadd.f32 %v12914_v36, %v4867_v33  ;;  %v15050_v63 = vld [vmem:[#allocation129_spill] sm:$0xff]  ;;  %v4258_v47 = vpop.f32.mrf.mxu1 }
 0x3d3   : > { %v4712_v53 = vpop.f32.mrf.mxu0  ;;  %v3858_v48 = vadd.f32 %v15050_v63, %v3391_v24 }
 0x3d4   : > { %15045 = vst [vmem:[#allocation71_spill] sm:$0xff] %v13436_v11  ;;  %v4869_v51 = vmul.f32 %v12903_v43, %v4785_v52  ;;  %v4786_v10 = vadd.f32 %v4712_v53, %v4320_v37  ;;  %5340 = vmatprep.mubr.f32.mxu1 %v13436_v11  ;;  %v4950_v16 = vadd.f32 %v12920_v46, %v4868_v50  ;;  %v13452_v57 = vmax.f32 %v4949_v12, 0.0 }
 0x3d5   : > { %v4716_v7 = vpop.f32.mrf.mxu0  ;;  %v4323_v53 = vadd.f32 %v4256_v15, %v15053_v17 }
 0x3d6   : > { %5341 = vmatmul.mubr.f32.gmra.mxu1 %v13440_v58  ;;  %v4870_v8 = vmul.f32 %v12909_v18, %v4786_v10  ;;  %v4787_v34 = vadd.f32 %v4716_v7, %v4321_v22  ;;  %v13450_v33 = vmax.f32 %v4950_v16, 0.0  ;;  %15052 = vst [vmem:[#allocation27_spill] sm:$0xff] %v13452_v57  ;;  %v4951_v37 = vadd.f32 %v12914_v36, %v4869_v51 }
 0x3d7   : > { %v4718_v52 = vpop.f32.mrf.mxu0  ;;  %v4324_v10 = vadd.f32 %v4258_v47, %v3858_v48 }
 0x3d8   : > { %15051 = vst [vmem:[#allocation94_spill] sm:$0xff] %v13450_v33  ;;  %v4871_v0 = vmul.f32 %v12903_v43, %v4787_v34  ;;  %v4788_v41 = vadd.f32 %v4718_v52, %v4322_v13  ;;  %5345 = vmatprep.mubr.f32.mxu1 %v13450_v33  ;;  %v4952_v50 = vadd.f32 %v12920_v46, %v4870_v8  ;;  %v13463_v51 = vmax.f32 %v4951_v37, 0.0 }
 0x3d9   : > { %v4722_v24 = vpop.f32.mrf.mxu0 }
 0x3da   : > { %5346 = vmatmul.mubr.f32.gmra.mxu1 %v13452_v57  ;;  %v4872_v23 = vmul.f32 %v12909_v18, %v4788_v41  ;;  %v4789_v12 = vadd.f32 %v4722_v24, %v4323_v53  ;;  %v13461_v22 = vmax.f32 %v4952_v50, 0.0  ;;  %15055 = vst [vmem:[#allocation93_spill] sm:$0xff] %v13463_v51  ;;  %v4953_v15 = vadd.f32 %v12914_v36, %v4871_v0  ;;  %v5485_v53 = vld [vmem:[#allocation2 + $0x70] sm:$0xff]  ;;  %v5484_v0 = vld [vmem:[#allocation2 + $0x68] sm:$0xff]  ;;  %v5483_v41 = vld [vmem:[#allocation2 + $0x60] sm:$0xff] }
 0x3db   : > { %v4724_v16 = vpop.f32.mrf.mxu0  ;;  %v5482_v50 = vld [vmem:[#allocation2 + $0x58] sm:$0xff]  ;;  %v5481_v24 = vld [vmem:[#allocation2 + $0x50] sm:$0xff] }
 0x3dc   : > { %15054 = vst [vmem:[#allocation70_spill] sm:$0xff] %v13461_v22  ;;  %v4873_v13 = vmul.f32 %v12903_v43, %v4789_v12  ;;  %v4790_v7 = vadd.f32 %v4724_v16, %v4324_v10  ;;  %5350 = vmatprep.mubr.f32.mxu1 %v13461_v22  ;;  %v4954_v63 = vadd.f32 %v12920_v46, %v4872_v23  ;;  %v13473_v34 = vmax.f32 %v4953_v15, 0.0  ;;  %v5480_v10 = vld [vmem:[#allocation2 + $0x48] sm:$0xff]  ;;  %v5479_v23 = vld [vmem:[#allocation2 + $0x40] sm:$0xff]  ;;  %v5478_v12 = vld [vmem:[#allocation2 + $0x38] sm:$0xff] }
 0x3dd   : > { %v5477_v15 = vld [vmem:[#allocation2 + $0x30] sm:$0xff]  ;;  %v5476_v16 = vld [vmem:[#allocation2 + $0x28] sm:$0xff] }
 0x3de   : > { %5351 = vmatmul.mubr.f32.gmra.mxu1 %v13463_v51  ;;  %v4874_v48 = vmul.f32 %v12909_v18, %v4790_v7  ;;  %v13471_v8 = vmax.f32 %v4954_v63, 0.0  ;;  %15057 = vst [vmem:[#allocation30_spill] sm:$0xff] %v13473_v34  ;;  %v4955_v47 = vadd.f32 %v12914_v36, %v4873_v13  ;;  %v5486_v18 = vld [vmem:[#allocation2 + $0x78] sm:$0xff]  ;;  %v5475_v13 = vld [vmem:[#allocation2 + $0x20] sm:$0xff]  ;;  %v5473_v63 = vld [vmem:[#allocation2 + $0x10] sm:$0xff] }
 0x3df   : > { %v15060_v36 = vld [vmem:[#allocation49_spill] sm:$0xff] }
 0x3e0   : > { %15056 = vst [vmem:[#allocation96_spill] sm:$0xff] %v13471_v8  ;;  %5355 = vmatprep.mubr.f32.mxu1 %v13471_v8  ;;  %v4956_v37 = vadd.f32 %v12920_v46, %v4874_v48  ;;  %v13481_v52 = vmax.f32 %v4955_v47, 0.0  ;;  %v15061_v46 = vld [vmem:[#allocation83_spill] sm:$0xff]  ;;  %v5474_v7 = vld [vmem:[#allocation2 + $0x18] sm:$0xff]  ;;  %v5471_v47 = vld [vmem:[#allocation2] sm:$0xff] }
 0x3e1   : > { %v5036_v17 = vmul.f32 %v15061_v46, %v15060_v36  ;;  %v5472_v48 = vld [vmem:[#allocation2 + $0x8] sm:$0xff]  ;;  %v5848_v46 = vld [vmem:[#allocation5 + $0xf8] sm:$0xff] }
 0x3e2   : > { %5356 = vmatmul.mubr.f32.gmra.mxu1 %v13473_v34  ;;  %v13479_v43 = vmax.f32 %v4956_v37, 0.0  ;;  %15059 = vst [vmem:[#allocation95_spill] sm:$0xff] %v13481_v52  ;;  %v5366_v37 = vld [vmem:[%s14505_s5] sm:$0x3] }
 0x3e4   : > { %15058 = vst [vmem:[#allocation26_spill] sm:$0xff] %v13479_v43  ;;  %5070 = vmatprep.subr.mxu0 %v13479_v43  ;;  %5360 = vmatprep.mubr.f32.mxu1 %v13479_v43 }
 0x3e5   : > { %5071 = vmatpush2.msra.mxu0 %v13481_v52 }
 0x3e6   : > { %5361 = vmatmul.mubr.f32.gmra.mxu1 %v13481_v52  ;;  %5072 = vmatprep.subr.mxu0 %v13471_v8 }
 0x3e7   : > { %5073 = vmatpush2.msra.mxu0 %v13473_v34 }
 0x3e8   : > { %5074 = vmatprep.subr.mxu0 %v13461_v22 }
 0x3e9   : > { %5075 = vmatpush2.msra.mxu0 %v13463_v51 }
 0x3ea   : > { %5076 = vmatprep.subr.mxu0 %v13450_v33 }
 0x3eb   : > { %5077 = vmatpush2.msra.mxu0 %v13452_v57 }
 0x3ec   : > { %5078 = vmatprep.subr.mxu0 %v13436_v11 }
 0x3ed   : > { %5079 = vmatpush2.msra.mxu0 %v13440_v58 }
 0x3ee   : > { %5080 = vmatprep.subr.mxu0 %v13422_v26 }
 0x3ef   : > { %5081 = vmatpush2.msra.mxu0 %v13426_v29 }
 0x3f0   : > { %5082 = vmatprep.subr.mxu0 %v13406_v1 }
 0x3f1   : > { %5083 = vmatpush2.msra.mxu0 %v13410_v32 }
 0x3f2   : > { %5084 = vmatprep.subr.mxu0 %v13390_v39 }
 0x3f3   : > { %5085 = vmatpush2.msra.mxu0 %v13394_v2  ;;  %v5712_v2 = vld [vmem:[%s14507_s7] sm:$0x3] }
 0x3f4   : > { %5086 = vmatprep.subr.mxu0 %v13373_v30 }
 0x3f5   : > { %5087 = vmatpush2.msra.mxu0 %v13377_v31  ;;  %v5919_v31 = vld [vmem:[%s14509_s9] sm:$0x3] }
 0x3f6   : > { %5088 = vmatprep.subr.mxu0 %v13351_v4 }
 0x3f7   : > { %5089 = vmatpush2.msra.mxu0 %v13359_v27 }
 0x3f8   : > { %5090 = vmatprep.subr.mxu0 %v13329_v60 }
 0x3f9   : > { %5091 = vmatpush2.msra.mxu0 %v13337_v21 }
 0x3fa   : > { %5092 = vmatprep.subr.mxu0 %v13307_v62 }
 0x3fb   : > { %5093 = vmatpush2.msra.mxu0 %v13315_v35 }
 0x3fc   : > { %5094 = vmatprep.subr.mxu0 %v13285_v40 }
 0x3fd   : > { %5095 = vmatpush2.msra.mxu0 %v13293_v6 }
 0x3fe   : > { %5096 = vmatprep.subr.mxu0 %v13263_v9 }
 0x3ff   : > { %5097 = vmatpush2.msra.mxu0 %v13271_v61 }
 0x400   : > { %5098 = vmatprep.subr.mxu0 %v13241_v55 }
 0x401   : > { %5099 = vmatpush2.msra.mxu0 %v13249_v59 }
 0x402   : > { %5100 = vmatprep.subr.mxu0 %v13219_v56 }
 0x403   : > { %5101 = vmatpush2.msra.mxu0 %v13227_v5  ;;  %v6131_v5 = vld [vmem:[%s14513_s13] sm:$0x3] }
 0x404   : > { %5103 = vmatmul.mubr.f32.vlgmr.msra.gmra.mxu0 %v5036_v17  ;;  %9364 = vmatprep.subr.mxu0 %v5486_v18  ;;  %v15063_v17 = vld [vmem:[#allocation125_spill] sm:$0xff] }
 0x405   : > { %9365 = vmatpush3.msra.mxu0 %v5486_v18  ;;  %v15062_v18 = vld [vmem:[#allocation120_spill] sm:$0xff]  ;;  %v5928_v62 = vrot.slane %v5919_v31, %v15063_v17  ;;  %v13687_v6 = vrot.slane %v5712_v2, %v15063_v17 }
 0x406   : > { %9366 = vmatprep.subr.mxu0 %v5485_v53  ;;  %v13523_v36 = vrot.slane %v5366_v37, %v15062_v18  ;;  %v13681_v30 = vrot.slane %v5712_v2, %v15062_v18  ;;  %v5923_v4 = vrot.slane %v5919_v31, %v15062_v18  ;;  %v6140_v2 = vrot.slane %v6131_v5, %v15063_v17 }
 0x407   : > { %9367 = vmatpush3.msra.mxu0 %v5485_v53  ;;  %v13526_v53 = vrot.slane %v5366_v37, %v15063_v17  ;;  %v5847_v37 = vld [vmem:[#allocation5 + $0xf0] sm:$0xff] }
 0x408   : > { %9368 = vmatprep.subr.mxu0 %v5484_v0 }
 0x409   : > { %9369 = vmatpush3.msra.mxu0 %v5484_v0 }
 0x40a   : > { %9370 = vmatprep.subr.mxu0 %v5483_v41 }
 0x40b   : > { %9371 = vmatpush3.msra.mxu0 %v5483_v41 }
 0x40c   : > { %9372 = vmatprep.subr.mxu0 %v5482_v50 }
 0x40d   : > { %9373 = vmatpush3.msra.mxu0 %v5482_v50 }
 0x40e   : > { %9374 = vmatprep.subr.mxu0 %v5481_v24 }
 0x40f   : > { %9375 = vmatpush3.msra.mxu0 %v5481_v24 }
 0x410   : > { %9376 = vmatprep.subr.mxu0 %v5480_v10 }
 0x411   : > { %9377 = vmatpush3.msra.mxu0 %v5480_v10 }
 0x412   : > { %9378 = vmatprep.subr.mxu0 %v5479_v23 }
 0x413   : > { %9379 = vmatpush3.msra.mxu0 %v5479_v23 }
 0x414   : > { %9380 = vmatprep.subr.mxu0 %v5478_v12 }
 0x415   : > { %9381 = vmatpush3.msra.mxu0 %v5478_v12 }
 0x416   : > { %9382 = vmatprep.subr.mxu0 %v5477_v15 }
 0x417   : > { %9383 = vmatpush3.msra.mxu0 %v5477_v15 }
 0x418   : > { %9384 = vmatprep.subr.mxu0 %v5476_v16 }
 0x419   : > { %9385 = vmatpush3.msra.mxu0 %v5476_v16 }
 0x41a   : > { %9386 = vmatprep.subr.mxu0 %v5475_v13 }
 0x41b   : > { %9387 = vmatpush3.msra.mxu0 %v5475_v13 }
 0x41c   : > { %9388 = vmatprep.subr.mxu0 %v5474_v7 }
 0x41d   : > { %9389 = vmatpush3.msra.mxu0 %v5474_v7 }
 0x41e   : > { %9390 = vmatprep.subr.mxu0 %v5473_v63 }
 0x41f   : > { %9391 = vmatpush3.msra.mxu0 %v5473_v63 }
 0x420   : > { %9392 = vmatprep.subr.mxu0 %v5472_v48 }
 0x421   : > { %9393 = vmatpush3.msra.mxu0 %v5472_v48  ;;  %v5832_v48 = vld [vmem:[#allocation5 + $0x78] sm:$0xff] }
 0x422   : > { %9394 = vmatprep.subr.mxu0 %v5471_v47 }
 0x423   : > { %9395 = vmatpush3.msra.mxu0 %v5471_v47 }
 0x424   : > { %9211 = vmatprep.subr.mxu0 %v5848_v46 }
 0x429   : > { %v5207_v0 = vpop.f32.mrf.mxu1 }
 0x42a   : > { %v5371_v41 = vmul.f32 %v13523_v36, %v5207_v0  ;;  %v5831_v0 = vld [vmem:[#allocation5 + $0x70] sm:$0xff] }
 0x42b   : > { %v5209_v50 = vpop.f32.mrf.mxu1 }
 0x42c   : > { %v5407_v24 = vadd.f32 %v13526_v53, %v5371_v41  ;;  %v5846_v50 = vld [vmem:[#allocation5 + $0xe8] sm:$0xff] }
 0x42d   : > { %v5212_v10 = vpop.f32.mrf.mxu1 }
 0x42e   : > { %v5439_v23 = vmax.f32 %v5407_v24, 0.0  ;;  %v5372_v12 = vmul.f32 %v13523_v36, %v5212_v10 }
 0x42f   : > { %v5214_v15 = vpop.f32.mrf.mxu1 }
 0x430   : > { %v5408_v16 = vadd.f32 %v13526_v53, %v5372_v12  ;;  %9396 = vmatprep.mubr.f32.mxu0 %v5439_v23  ;;  %v5830_v12 = vld [vmem:[#allocation5 + $0x68] sm:$0xff]  ;;  %v5845_v15 = vld [vmem:[#allocation5 + $0xe0] sm:$0xff] }
 0x431   : > { %v5217_v13 = vpop.f32.mrf.mxu1 }
 0x432   : > { %v5440_v7 = vmax.f32 %v5408_v16, 0.0  ;;  %v5373_v63 = vmul.f32 %v13523_v36, %v5217_v13  ;;  %v5829_v13 = vld [vmem:[#allocation5 + $0x60] sm:$0xff] }
 0x433   : > { %v5219_v47 = vpop.f32.mrf.mxu1 }
 0x434   : > { %v5409_v46 = vadd.f32 %v13526_v53, %v5373_v63  ;;  %9397 = vmatmul.mubr.f32.vlgmr.msra.gmra.mxu0 %v5440_v7  ;;  %v5844_v7 = vld [vmem:[#allocation5 + $0xd8] sm:$0xff] }
 0x435   : > { %v5222_v41 = vpop.f32.mrf.mxu1  ;;  %9212 = vmatpush3.msra.mxu0 %v5832_v48 }
 0x436   : > { %v5441_v24 = vmax.f32 %v5409_v46, 0.0  ;;  %v5374_v10 = vmul.f32 %v13523_v36, %v5222_v41  ;;  %9213 = vmatprep.subr.mxu0 %v5847_v37  ;;  %v5828_v46 = vld [vmem:[#allocation5 + $0x58] sm:$0xff]  ;;  %v5843_v37 = vld [vmem:[#allocation5 + $0xd0] sm:$0xff] }
 0x437   : > { %v5224_v23 = vpop.f32.mrf.mxu1  ;;  %9214 = vmatpush3.msra.mxu0 %v5831_v0  ;;  %v5827_v0 = vld [vmem:[#allocation5 + $0x50] sm:$0xff] }
 0x438   : > { %v5410_v16 = vadd.f32 %v13526_v53, %v5374_v10  ;;  %9399 = vmatprep.mubr.f32.mxu0 %v5441_v24  ;;  %9215 = vmatprep.subr.mxu0 %v5846_v50  ;;  %v5842_v50 = vld [vmem:[#allocation5 + $0xc8] sm:$0xff] }
 0x439   : > { %v5227_v47 = vpop.f32.mrf.mxu1  ;;  %9216 = vmatpush3.msra.mxu0 %v5830_v12  ;;  %v5826_v23 = vld [vmem:[#allocation5 + $0x48] sm:$0xff] }
 0x43a   : > { %v5442_v63 = vmax.f32 %v5410_v16, 0.0  ;;  %v5375_v48 = vmul.f32 %v13523_v36, %v5227_v47  ;;  %9217 = vmatprep.subr.mxu0 %v5845_v15  ;;  %v5841_v15 = vld [vmem:[#allocation5 + $0xc0] sm:$0xff] }
 0x43b   : > { %v5229_v52 = vpop.f32.mrf.mxu1  ;;  %9218 = vmatpush3.msra.mxu0 %v5829_v13  ;;  %v5825_v13 = vld [vmem:[#allocation5 + $0x40] sm:$0xff] }
 0x43c   : > { %v5411_v41 = vadd.f32 %v13526_v53, %v5375_v48  ;;  %9400 = vmatmul.mubr.f32.gmra.mxu0 %v5442_v63  ;;  %9219 = vmatprep.subr.mxu0 %v5844_v7  ;;  %v5840_v7 = vld [vmem:[#allocation5 + $0xb8] sm:$0xff] }
 0x43d   : > { %v5232_v10 = vpop.f32.mrf.mxu1  ;;  %9220 = vmatpush3.msra.mxu0 %v5828_v46  ;;  %v5824_v46 = vld [vmem:[#allocation5 + $0x38] sm:$0xff] }
 0x43e   : > { %v5443_v24 = vmax.f32 %v5411_v41, 0.0  ;;  %v5376_v12 = vmul.f32 %v13523_v36, %v5232_v10  ;;  %9221 = vmatprep.subr.mxu0 %v5843_v37  ;;  %v5839_v37 = vld [vmem:[#allocation5 + $0xb0] sm:$0xff] }
 0x43f   : > { %v5234_v16 = vpop.f32.mrf.mxu1  ;;  %9222 = vmatpush3.msra.mxu0 %v5827_v0  ;;  %v5823_v0 = vld [vmem:[#allocation5 + $0x30] sm:$0xff] }
 0x440   : > { %v5412_v52 = vadd.f32 %v13526_v53, %v5376_v12  ;;  %9402 = vmatprep.mubr.f32.mxu0 %v5443_v24  ;;  %9223 = vmatprep.subr.mxu0 %v5842_v50  ;;  %v5838_v50 = vld [vmem:[#allocation5 + $0xa8] sm:$0xff] }
 0x441   : > { %v5237_v47 = vpop.f32.mrf.mxu1  ;;  %9224 = vmatpush3.msra.mxu0 %v5826_v23  ;;  %v5822_v16 = vld [vmem:[#allocation5 + $0x28] sm:$0xff] }
 0x442   : > { %v5444_v63 = vmax.f32 %v5412_v52, 0.0  ;;  %v5377_v48 = vmul.f32 %v13523_v36, %v5237_v47  ;;  %9225 = vmatprep.subr.mxu0 %v5841_v15  ;;  %v5837_v15 = vld [vmem:[#allocation5 + $0xa0] sm:$0xff] }
 0x443   : > { %v5239_v41 = vpop.f32.mrf.mxu1  ;;  %9226 = vmatpush3.msra.mxu0 %v5825_v13  ;;  %v5821_v13 = vld [vmem:[#allocation5 + $0x20] sm:$0xff] }
 0x444   : > { %v5413_v10 = vadd.f32 %v13526_v53, %v5377_v48  ;;  %9403 = vmatmul.mubr.f32.gmra.mxu0 %v5444_v63  ;;  %9227 = vmatprep.subr.mxu0 %v5840_v7  ;;  %v5836_v7 = vld [vmem:[#allocation5 + $0x98] sm:$0xff] }
 0x445   : > { %v5242_v12 = vpop.f32.mrf.mxu1  ;;  %9228 = vmatpush3.msra.mxu0 %v5824_v46  ;;  %v5820_v41 = vld [vmem:[#allocation5 + $0x18] sm:$0xff] }
 0x446   : > { %v5445_v24 = vmax.f32 %v5413_v10, 0.0  ;;  %v5378_v23 = vmul.f32 %v13523_v36, %v5242_v12  ;;  %9229 = vmatprep.subr.mxu0 %v5839_v37  ;;  %v5835_v37 = vld [vmem:[#allocation5 + $0x90] sm:$0xff] }
 0x447   : > { %v5244_v52 = vpop.f32.mrf.mxu1  ;;  %9230 = vmatpush3.msra.mxu0 %v5823_v0  ;;  %v5819_v0 = vld [vmem:[#allocation5 + $0x10] sm:$0xff] }
 0x448   : > { %v5414_v47 = vadd.f32 %v13526_v53, %v5378_v23  ;;  %9405 = vmatprep.mubr.f32.mxu0 %v5445_v24  ;;  %9231 = vmatprep.subr.mxu0 %v5838_v50  ;;  %v5834_v50 = vld [vmem:[#allocation5 + $0x88] sm:$0xff] }
 0x449   : > { %v5247_v48 = vpop.f32.mrf.mxu1  ;;  %9232 = vmatpush3.msra.mxu0 %v5822_v16  ;;  %v5818_v52 = vld [vmem:[#allocation5 + $0x8] sm:$0xff] }
 0x44a   : > { %v5446_v63 = vmax.f32 %v5414_v47, 0.0  ;;  %v5379_v46 = vmul.f32 %v13523_v36, %v5247_v48  ;;  %9233 = vmatprep.subr.mxu0 %v5837_v15  ;;  %v5833_v15 = vld [vmem:[#allocation5 + $0x80] sm:$0xff] }
 0x44b   : > { %v5249_v10 = vpop.f32.mrf.mxu1  ;;  %9234 = vmatpush3.msra.mxu0 %v5821_v13  ;;  %v5817_v13 = vld [vmem:[#allocation5] sm:$0xff] }
 0x44c   : > { %v5415_v12 = vadd.f32 %v13526_v53, %v5379_v46  ;;  %9406 = vmatmul.mubr.f32.gmra.mxu0 %v5446_v63  ;;  %9235 = vmatprep.subr.mxu0 %v5836_v7  ;;  %v6060_v7 = vld [vmem:[#allocation8 + $0xf8] sm:$0xff] }
 0x44d   : > { %v5252_v23 = vpop.f32.mrf.mxu1  ;;  %9236 = vmatpush3.msra.mxu0 %v5820_v41 }
 0x44e   : > { %v5447_v24 = vmax.f32 %v5415_v12, 0.0  ;;  %v5380_v16 = vmul.f32 %v13523_v36, %v5252_v23  ;;  %9237 = vmatprep.subr.mxu0 %v5835_v37 }
 0x44f   : > { %v5254_v47 = vpop.f32.mrf.mxu1  ;;  %9238 = vmatpush3.msra.mxu0 %v5819_v0 }
 0x450   : > { %v5416_v48 = vadd.f32 %v13526_v53, %v5380_v16  ;;  %9408 = vmatprep.mubr.f32.mxu0 %v5447_v24  ;;  %9239 = vmatprep.subr.mxu0 %v5834_v50 }
 0x451   : > { %v5257_v46 = vpop.f32.mrf.mxu1  ;;  %9240 = vmatpush3.msra.mxu0 %v5818_v52 }
 0x452   : > { %v5448_v63 = vmax.f32 %v5416_v48, 0.0  ;;  %v5381_v41 = vmul.f32 %v13523_v36, %v5257_v46  ;;  %9241 = vmatprep.subr.mxu0 %v5833_v15 }
 0x453   : > { %v5259_v10 = vpop.f32.mrf.mxu1  ;;  %9242 = vmatpush3.msra.mxu0 %v5817_v13 }
 0x454   : > { %v5417_v37 = vadd.f32 %v13526_v53, %v5381_v41  ;;  %9409 = vmatmul.mubr.f32.gmra.mxu0 %v5448_v63  ;;  %9263 = vmatprep.subr.mxu0 %v6060_v7 }
 0x455   : > { %v5262_v12 = vpop.f32.mrf.mxu1 }
 0x456   : > { %v5449_v0 = vmax.f32 %v5417_v37, 0.0  ;;  %v5382_v23 = vmul.f32 %v13523_v36, %v5262_v12 }
 0x457   : > { %v5264_v24 = vpop.f32.mrf.mxu1 }
 0x458   : > { %v5418_v50 = vadd.f32 %v13526_v53, %v5382_v23  ;;  %9411 = vmatprep.mubr.f32.mxu0 %v5449_v0 }
 0x459   : > { %v5267_v16 = vpop.f32.mrf.mxu1 }
 0x45a   : > { %v5450_v52 = vmax.f32 %v5418_v50, 0.0  ;;  %v5383_v47 = vmul.f32 %v13523_v36, %v5267_v16 }
 0x45b   : > { %v5269_v48 = vpop.f32.mrf.mxu1 }
 0x45c   : > { %v5419_v15 = vadd.f32 %v13526_v53, %v5383_v47  ;;  %9412 = vmatmul.mubr.f32.gmra.mxu0 %v5450_v52 }
 0x45d   : > { %v5272_v13 = vpop.f32.mrf.mxu1 }
 0x45e   : > { %v5451_v46 = vmax.f32 %v5419_v15, 0.0  ;;  %v5384_v7 = vmul.f32 %v13523_v36, %v5272_v13 }
 0x45f   : > { %v5274_v63 = vpop.f32.mrf.mxu1 }
 0x460   : > { %v5420_v41 = vadd.f32 %v13526_v53, %v5384_v7  ;;  %9414 = vmatprep.mubr.f32.mxu0 %v5451_v46 }
 0x461   : > { %v5277_v10 = vpop.f32.mrf.mxu1 }
 0x462   : > { %v5452_v37 = vmax.f32 %v5420_v41, 0.0  ;;  %v5385_v12 = vmul.f32 %v13523_v36, %v5277_v10 }
 0x463   : > { %v5279_v0 = vpop.f32.mrf.mxu1 }
 0x464   : > { %v5421_v23 = vadd.f32 %v13526_v53, %v5385_v12  ;;  %9415 = vmatmul.mubr.f32.gmra.mxu0 %v5452_v37 }
 0x465   : > { %v5282_v24 = vpop.f32.mrf.mxu1 }
 0x466   : > { %v5453_v50 = vmax.f32 %v5421_v23, 0.0  ;;  %v5386_v16 = vmul.f32 %v13523_v36, %v5282_v24 }
 0x467   : > { %v5284_v52 = vpop.f32.mrf.mxu1 }
 0x468   : > { %v5422_v47 = vadd.f32 %v13526_v53, %v5386_v16  ;;  %9417 = vmatprep.mubr.f32.mxu0 %v5453_v50 }
 0x46a   : > { %v5287_v48 = vpop.f32.mrf.mxu1  ;;  %v5454_v15 = vmax.f32 %v5422_v47, 0.0 }
 0x46b   : > { %v5387_v13 = vmul.f32 %v13523_v36, %v5287_v48 }
 0x46c   : > { %v5289_v46 = vpop.f32.mrf.mxu1  ;;  %9418 = vmatmul.mubr.f32.gmra.mxu0 %v5454_v15 }
 0x46d   : > { %v5423_v7 = vadd.f32 %v13526_v53, %v5387_v13 }
 0x46e   : > { %v5292_v63 = vpop.f32.mrf.mxu1 }
 0x46f   : > { %v5455_v41 = vmax.f32 %v5423_v7, 0.0  ;;  %v5388_v10 = vmul.f32 %v13523_v36, %v5292_v63 }
 0x470   : > { %v5294_v37 = vpop.f32.mrf.mxu1 }
 0x471   : > { %v5424_v12 = vadd.f32 %v13526_v53, %v5388_v10  ;;  %9420 = vmatprep.mubr.f32.mxu0 %v5455_v41 }
 0x472   : > { %v5297_v0 = vpop.f32.mrf.mxu1 }
 0x473   : > { %v5456_v23 = vmax.f32 %v5424_v12, 0.0  ;;  %v5389_v24 = vmul.f32 %v13523_v36, %v5297_v0 }
 0x474   : > { %v5299_v50 = vpop.f32.mrf.mxu1 }
 0x475   : > { %v5425_v16 = vadd.f32 %v13526_v53, %v5389_v24  ;;  %9421 = vmatmul.mubr.f32.gmra.mxu0 %v5456_v23 }
 0x476   : > { %v5302_v52 = vpop.f32.mrf.mxu1 }
 0x477   : > { %v5457_v47 = vmax.f32 %v5425_v16, 0.0  ;;  %v5390_v48 = vmul.f32 %v13523_v36, %v5302_v52 }
 0x478   : > { %v5304_v15 = vpop.f32.mrf.mxu1 }
 0x479   : > { %v5426_v13 = vadd.f32 %v13526_v53, %v5390_v48  ;;  %9423 = vmatprep.mubr.f32.mxu0 %v5457_v47 }
 0x47a   : > { %v5307_v46 = vpop.f32.mrf.mxu1 }
 0x47b   : > { %v5458_v7 = vmax.f32 %v5426_v13, 0.0  ;;  %v5391_v63 = vmul.f32 %v13523_v36, %v5307_v46 }
 0x47c   : > { %v5309_v41 = vpop.f32.mrf.mxu1 }
 0x47d   : > { %v5427_v10 = vadd.f32 %v13526_v53, %v5391_v63  ;;  %9424 = vmatmul.mubr.f32.gmra.mxu0 %v5458_v7 }
 0x47e   : > { %v5312_v37 = vpop.f32.mrf.mxu1 }
 0x47f   : > { %v5459_v12 = vmax.f32 %v5427_v10, 0.0  ;;  %v5392_v0 = vmul.f32 %v13523_v36, %v5312_v37 }
 0x480   : > { %v5314_v23 = vpop.f32.mrf.mxu1 }
 0x481   : > { %v5428_v24 = vadd.f32 %v13526_v53, %v5392_v0  ;;  %9426 = vmatprep.mubr.f32.mxu0 %v5459_v12 }
 0x482   : > { %v5317_v50 = vpop.f32.mrf.mxu1 }
 0x483   : > { %v5460_v16 = vmax.f32 %v5428_v24, 0.0  ;;  %v5393_v52 = vmul.f32 %v13523_v36, %v5317_v50 }
 0x484   : > { %v5319_v47 = vpop.f32.mrf.mxu1 }
 0x485   : > { %v5429_v48 = vadd.f32 %v13526_v53, %v5393_v52  ;;  %9427 = vmatmul.mubr.f32.gmra.mxu0 %v5460_v16 }
 0x486   : > { %v5322_v15 = vpop.f32.mrf.mxu1 }
 0x487   : > { %v5461_v13 = vmax.f32 %v5429_v48, 0.0  ;;  %v5394_v46 = vmul.f32 %v13523_v36, %v5322_v15 }
 0x488   : > { %v5324_v7 = vpop.f32.mrf.mxu1 }
 0x489   : > { %v5430_v63 = vadd.f32 %v13526_v53, %v5394_v46  ;;  %9429 = vmatprep.mubr.f32.mxu0 %v5461_v13 }
 0x48a   : > { %v5327_v41 = vpop.f32.mrf.mxu1 }
 0x48b   : > { %v5462_v10 = vmax.f32 %v5430_v63, 0.0  ;;  %v5395_v37 = vmul.f32 %v13523_v36, %v5327_v41 }
 0x48c   : > { %v5329_v12 = vpop.f32.mrf.mxu1 }
 0x48d   : > { %v5431_v0 = vadd.f32 %v13526_v53, %v5395_v37  ;;  %9430 = vmatmul.mubr.f32.gmra.mxu0 %v5462_v10 }
 0x48e   : > { %v5332_v23 = vpop.f32.mrf.mxu1 }
 0x48f   : > { %v5463_v24 = vmax.f32 %v5431_v0, 0.0  ;;  %v5396_v50 = vmul.f32 %v13523_v36, %v5332_v23 }
 0x490   : > { %v5334_v16 = vpop.f32.mrf.mxu1 }
 0x491   : > { %v5432_v52 = vadd.f32 %v13526_v53, %v5396_v50  ;;  %9432 = vmatprep.mubr.f32.mxu0 %v5463_v24 }
 0x492   : > { %v5337_v47 = vpop.f32.mrf.mxu1 }
 0x493   : > { %v5464_v48 = vmax.f32 %v5432_v52, 0.0  ;;  %v5397_v15 = vmul.f32 %v13523_v36, %v5337_v47 }
 0x494   : > { %v5339_v13 = vpop.f32.mrf.mxu1 }
 0x495   : > { %v5433_v46 = vadd.f32 %v13526_v53, %v5397_v15  ;;  %9433 = vmatmul.mubr.f32.gmra.mxu0 %v5464_v48 }
 0x496   : > { %v5342_v7 = vpop.f32.mrf.mxu1 }
 0x497   : > { %v5465_v63 = vmax.f32 %v5433_v46, 0.0  ;;  %v5398_v41 = vmul.f32 %v13523_v36, %v5342_v7 }
 0x498   : > { %v5344_v10 = vpop.f32.mrf.mxu1 }
 0x499   : > { %v5434_v37 = vadd.f32 %v13526_v53, %v5398_v41  ;;  %9435 = vmatprep.mubr.f32.mxu0 %v5465_v63 }
 0x49a   : > { %v5347_v12 = vpop.f32.mrf.mxu1 }
 0x49b   : > { %v5466_v0 = vmax.f32 %v5434_v37, 0.0  ;;  %v5399_v23 = vmul.f32 %v13523_v36, %v5347_v12 }
 0x49c   : > { %v5349_v24 = vpop.f32.mrf.mxu1 }
 0x49d   : > { %v5435_v50 = vadd.f32 %v13526_v53, %v5399_v23  ;;  %9436 = vmatmul.mubr.f32.gmra.mxu0 %v5466_v0 }
 0x49e   : > { %v5352_v16 = vpop.f32.mrf.mxu1 }
 0x49f   : > { %v5467_v52 = vmax.f32 %v5435_v50, 0.0  ;;  %v5400_v47 = vmul.f32 %v13523_v36, %v5352_v16  ;;  %v5946_v50 = vld [vmem:[#allocation7 + $0x78] sm:$0xff]  ;;  %v15064_v16 = vmov 0.0  }
 0x4a0   : > { %v5354_v48 = vpop.f32.mrf.mxu1  ;;  %9445 = vmatpush3.msra.mxu1 %v5946_v50  ;;  %v6038_v50 = vld [vmem:[#allocation8 + $0x48] sm:$0xff]  ;;  %9476 = vmatprep.mubr.msk.f32.mxu1 %vm10104_vm1, %v15064_v16 }
 0x4a1   : > { %v5436_v15 = vadd.f32 %v13526_v53, %v5400_v47  ;;  %9438 = vmatprep.mubr.f32.mxu0 %v5467_v52  ;;  %9446 = vmatprep.subr.mxu1 %v15064_v16  ;;  %v5945_v52 = vld [vmem:[#allocation7 + $0x70] sm:$0xff] }
 0x4a2   : > { %v5357_v13 = vpop.f32.mrf.mxu1  ;;  %9447 = vmatpush3.msra.mxu1 %v5945_v52  ;;  %v6053_v52 = vld [vmem:[#allocation8 + $0xc0] sm:$0xff] }
 0x4a3   : > { %v5468_v46 = vmax.f32 %v5436_v15, 0.0  ;;  %v5401_v7 = vmul.f32 %v13523_v36, %v5357_v13  ;;  %9448 = vmatprep.subr.mxu1 %v15064_v16  ;;  %v6044_v15 = vld [vmem:[#allocation8 + $0x78] sm:$0xff]  ;;  %v6058_v13 = vld [vmem:[#allocation8 + $0xe8] sm:$0xff] }
 0x4a4   : > { %v5359_v63 = vpop.f32.mrf.mxu1 }
 0x4a5   : > { %v5437_v41 = vadd.f32 %v13526_v53, %v5401_v7  ;;  %9439 = vmatmul.mubr.f32.gmra.mxu0 %v5468_v46  ;;  %v5944_v46 = vld [vmem:[#allocation7 + $0x68] sm:$0xff]  ;;  %v6057_v63 = vld [vmem:[#allocation8 + $0xe0] sm:$0xff] }
 0x4a6   : > { %v5362_v10 = vpop.f32.mrf.mxu1  ;;  %v6042_v7 = vld [vmem:[#allocation8 + $0x68] sm:$0xff]  ;;  %9449 = vmatpush3.msra.mxu1 %v5944_v46 }
 0x4a7   : > { %v5469_v37 = vmax.f32 %v5437_v41, 0.0  ;;  %v5402_v12 = vmul.f32 %v13523_v36, %v5362_v10  ;;  %v6059_v36 = vld [vmem:[#allocation8 + $0xf0] sm:$0xff]  ;;  %9450 = vmatprep.subr.mxu1 %v15064_v16  ;;  %v6041_v41 = vld [vmem:[#allocation8 + $0x60] sm:$0xff]  ;;  %v6056_v10 = vld [vmem:[#allocation8 + $0xd8] sm:$0xff] }
 0x4a8   : > { %v5364_v0 = vpop.f32.mrf.mxu1  ;;  %v6050_v46 = vld [vmem:[#allocation8 + $0xa8] sm:$0xff] }
 0x4a9   : > { %v5438_v23 = vadd.f32 %v13526_v53, %v5402_v12  ;;  %9441 = vmatprep.mubr.f32.mxu0 %v5469_v37  ;;  %v6043_v53 = vld [vmem:[#allocation8 + $0x70] sm:$0xff]  ;;  %v6040_v37 = vld [vmem:[#allocation8 + $0x58] sm:$0xff] }
 0x4aa   : > { %v6055_v12 = vld [vmem:[#allocation8 + $0xd0] sm:$0xff] }
 0x4ab   : > { %v5470_v24 = vmax.f32 %v5438_v23, 0.0  ;;  %v6039_v0 = vld [vmem:[#allocation8 + $0x50] sm:$0xff]  ;;  %v6054_v23 = vld [vmem:[#allocation8 + $0xc8] sm:$0xff] }
 0x4ad   : > { %9442 = vmatmul.mubr.f32.gmra.mxu0 %v5470_v24  ;;  %v5943_v24 = vld [vmem:[#allocation7 + $0x60] sm:$0xff] }
 0x4ae   : > { %9451 = vmatpush3.msra.mxu1 %v5943_v24  ;;  %v6046_v24 = vld [vmem:[#allocation8 + $0x88] sm:$0xff] }
 0x4af   : > { %9452 = vmatprep.subr.mxu1 %v15064_v16 }
 0x4c4   : > { %v13594_v47 = vpop.f32.mrf.mxu0 }
 0x4c6   : > { %v5106_v48 = vpop.f32.mrf.mxu0 }
 0x4c7   : > { %5913 = vmatprep.mubr.f32.mxu0 %v5106_v48 }
 0x4c8   : > { %5914 = vmatmul.mubr.f32.vlgmr.msra.gmra.mxu0 %v13594_v47 }
 0x4c9   : > { %9264 = vmatpush3.msra.mxu0 %v6044_v15  ;;  %6125 = vmatprep.mubr.f32.mxu0 %v5106_v48  ;;  %v6037_v48 = vld [vmem:[#allocation8 + $0x40] sm:$0xff]  ;;  %v6052_v15 = vld [vmem:[#allocation8 + $0xb8] sm:$0xff] }
 0x4ca   : > { %9265 = vmatprep.subr.mxu0 %v6059_v36  ;;  %v6036_v36 = vld [vmem:[#allocation8 + $0x38] sm:$0xff] }
 0x4cb   : > { %9266 = vmatpush3.msra.mxu0 %v6043_v53  ;;  %v6051_v53 = vld [vmem:[#allocation8 + $0xb0] sm:$0xff] }
 0x4cc   : > { %9267 = vmatprep.subr.mxu0 %v6058_v13  ;;  %v6035_v13 = vld [vmem:[#allocation8 + $0x30] sm:$0xff] }
 0x4cd   : > { %9268 = vmatpush3.msra.mxu0 %v6042_v7  ;;  %v5942_v7 = vld [vmem:[#allocation7 + $0x58] sm:$0xff] }
 0x4ce   : > { %9269 = vmatprep.subr.mxu0 %v6057_v63  ;;  %v6034_v63 = vld [vmem:[#allocation8 + $0x28] sm:$0xff]  ;;  %9453 = vmatpush3.msra.mxu1 %v5942_v7 }
 0x4cf   : > { %9270 = vmatpush3.msra.mxu0 %v6041_v41  ;;  %v6049_v41 = vld [vmem:[#allocation8 + $0xa0] sm:$0xff]  ;;  %9454 = vmatprep.subr.mxu1 %v15064_v16  ;;  %v5936_v7 = vld [vmem:[#allocation7 + $0x28] sm:$0xff] }
 0x4d0   : > { %9271 = vmatprep.subr.mxu0 %v6056_v10  ;;  %v6033_v10 = vld [vmem:[#allocation8 + $0x20] sm:$0xff] }
 0x4d1   : > { %9272 = vmatpush3.msra.mxu0 %v6040_v37  ;;  %v6048_v37 = vld [vmem:[#allocation8 + $0x98] sm:$0xff] }
 0x4d2   : > { %9273 = vmatprep.subr.mxu0 %v6055_v12  ;;  %v6032_v12 = vld [vmem:[#allocation8 + $0x18] sm:$0xff] }
 0x4d3   : > { %9274 = vmatpush3.msra.mxu0 %v6039_v0  ;;  %v6047_v0 = vld [vmem:[#allocation8 + $0x90] sm:$0xff] }
 0x4d4   : > { %9275 = vmatprep.subr.mxu0 %v6054_v23  ;;  %v6031_v23 = vld [vmem:[#allocation8 + $0x10] sm:$0xff] }
 0x4d5   : > { %9276 = vmatpush3.msra.mxu0 %v6038_v50  ;;  %v5941_v50 = vld [vmem:[#allocation7 + $0x50] sm:$0xff] }
 0x4d6   : > { %9277 = vmatprep.subr.mxu0 %v6053_v52  ;;  %v6030_v52 = vld [vmem:[#allocation8 + $0x8] sm:$0xff]  ;;  %9455 = vmatpush3.msra.mxu1 %v5941_v50 }
 0x4d7   : > { %9278 = vmatpush3.msra.mxu0 %v6037_v48  ;;  %v6045_v48 = vld [vmem:[#allocation8 + $0x80] sm:$0xff]  ;;  %9456 = vmatprep.subr.mxu1 %v15064_v16 }
 0x4d8   : > { %9279 = vmatprep.subr.mxu0 %v6052_v15  ;;  %v6029_v15 = vld [vmem:[#allocation8] sm:$0xff] }
 0x4d9   : > { %9280 = vmatpush3.msra.mxu0 %v6036_v36  ;;  %v5940_v36 = vld [vmem:[#allocation7 + $0x48] sm:$0xff] }
 0x4da   : > { %9281 = vmatprep.subr.mxu0 %v6051_v53  ;;  %9457 = vmatpush3.msra.mxu1 %v5940_v36  ;;  %v5939_v53 = vld [vmem:[#allocation7 + $0x40] sm:$0xff] }
 0x4db   : > { %9282 = vmatpush3.msra.mxu0 %v6035_v13  ;;  %9458 = vmatprep.subr.mxu1 %v15064_v16  ;;  %v5938_v13 = vld [vmem:[#allocation7 + $0x38] sm:$0xff] }
 0x4dc   : > { %9283 = vmatprep.subr.mxu0 %v6050_v46  ;;  %9459 = vmatpush3.msra.mxu1 %v5939_v53  ;;  %v5937_v46 = vld [vmem:[#allocation7 + $0x30] sm:$0xff] }
 0x4dd   : > { %9284 = vmatpush3.msra.mxu0 %v6034_v63  ;;  %9460 = vmatprep.subr.mxu1 %v15064_v16  ;;  %v5934_v63 = vld [vmem:[#allocation7 + $0x18] sm:$0xff] }
 0x4de   : > { %9285 = vmatprep.subr.mxu0 %v6049_v41  ;;  %9461 = vmatpush3.msra.mxu1 %v5938_v13  ;;  %v5933_v41 = vld [vmem:[#allocation7 + $0x10] sm:$0xff] }
 0x4df   : > { %9286 = vmatpush3.msra.mxu0 %v6033_v10  ;;  %9462 = vmatprep.subr.mxu1 %v15064_v16  ;;  %v5932_v10 = vld [vmem:[#allocation7 + $0x8] sm:$0xff] }
 0x4e0   : > { %9287 = vmatprep.subr.mxu0 %v6048_v37  ;;  %9463 = vmatpush3.msra.mxu1 %v5937_v46  ;;  %v5931_v37 = vld [vmem:[#allocation7] sm:$0xff] }
 0x4e1   : > { %9288 = vmatpush3.msra.mxu0 %v6032_v12  ;;  %9464 = vmatprep.subr.mxu1 %v15064_v16 }
 0x4e2   : > { %9289 = vmatprep.subr.mxu0 %v6047_v0  ;;  %9465 = vmatpush3.msra.mxu1 %v5936_v7 }
 0x4e3   : > { %9290 = vmatpush3.msra.mxu0 %v6031_v23  ;;  %9466 = vmatprep.subr.mxu1 %v15064_v16 }
 0x4e4   : > { %9291 = vmatprep.subr.mxu0 %v6046_v24 }
 0x4e5   : > { %9292 = vmatpush3.msra.mxu0 %v6030_v52 }
 0x4e6   : > { %9293 = vmatprep.subr.mxu0 %v6045_v48 }
 0x4e7   : > { %9294 = vmatpush3.msra.mxu0 %v6029_v15 }
 0x4e8   : > { %6126 = vmatmul.mubr.f32.vlgmr.msra.gmra.mxu0 %v13594_v47  ;;  %v5935_v47 = vld [vmem:[#allocation7 + $0x20] sm:$0xff] }
 0x4e9   : > { %9467 = vmatpush3.msra.mxu1 %v5935_v47 }
 0x4ea   : > { %9468 = vmatprep.subr.mxu1 %v15064_v16 }
 0x4eb   : > { %9469 = vmatpush3.msra.mxu1 %v5934_v63 }
 0x4ec   : > { %9470 = vmatprep.subr.mxu1 %v15064_v16 }
 0x4ed   : > { %9471 = vmatpush3.msra.mxu1 %v5933_v41 }
 0x4ee   : > { %9472 = vmatprep.subr.mxu1 %v15064_v16 }
 0x4ef   : > { %9473 = vmatpush3.msra.mxu1 %v5932_v10 }
 0x4f0   : > { %9474 = vmatprep.subr.mxu1 %v15064_v16 }
 0x4f1   : > { %9475 = vmatpush3.msra.mxu1 %v5931_v37 }
 0x4f4   : > { %v13612_v12 = vpop.f32.mrf.mxu0 }
 0x4f6   : > { %v5553_v0 = vpop.f32.mrf.mxu0 }
 0x4f7   : > { %v5717_v21 = vmul.f32 %v13681_v30, %v5553_v0 }
 0x4f9   : > { %v5753_v61 = vadd.f32 %v13687_v6, %v5717_v21 }
 0x4fb   : > { %v5785_v55 = vmax.f32 %v5753_v61, 0.0 }
 0x4fc   : > { %v13614_v23 = vpop.f32.mrf.mxu0 }
 0x4fe   : > { %v13616_v24 = vpop.f32.mrf.mxu0 }
 0x504   : > { %v13618_v50 = vpop.f32.mrf.mxu0 }
 0x506   : > { %v13620_v52 = vpop.f32.mrf.mxu0 }
 0x50c   : > { %v13622_v48 = vpop.f32.mrf.mxu0 }
 0x50e   : > { %v13624_v15 = vpop.f32.mrf.mxu0 }
 0x514   : > { %v13626_v36 = vpop.f32.mrf.mxu0 }
 0x516   : > { %v13628_v53 = vpop.f32.mrf.mxu0 }
 0x51c   : > { %v13630_v13 = vpop.f32.mrf.mxu0 }
 0x51e   : > { %v13632_v46 = vpop.f32.mrf.mxu0 }
 0x524   : > { %v13634_v7 = vpop.f32.mrf.mxu0 }
 0x526   : > { %v13636_v47 = vpop.f32.mrf.mxu0 }
 0x52c   : > { %v13638_v63 = vpop.f32.mrf.mxu0 }
 0x52e   : > { %v13640_v41 = vpop.f32.mrf.mxu0 }
 0x535   : > { %v13642_v10 = vpop.f32.mrf.mxu0 }
 0x537   : > { %v13644_v37 = vpop.f32.mrf.mxu0 }
 0x53d   : > { %v13646_v43 = vpop.f32.mrf.mxu0 }
 0x53f   : > { %v13648_v34 = vpop.f32.mrf.mxu0 }
 0x545   : > { %v13650_v8 = vpop.f32.mrf.mxu0 }
 0x547   : > { %v13652_v51 = vpop.f32.mrf.mxu0 }
 0x54d   : > { %v13654_v22 = vpop.f32.mrf.mxu0 }
 0x54f   : > { %v13656_v57 = vpop.f32.mrf.mxu0 }
 0x555   : > { %v13658_v33 = vpop.f32.mrf.mxu0 }
 0x557   : > { %v13660_v58 = vpop.f32.mrf.mxu0 }
 0x55d   : > { %v13662_v11 = vpop.f32.mrf.mxu0 }
 0x55f   : > { %v13664_v29 = vpop.f32.mrf.mxu0 }
 0x565   : > { %v13666_v26 = vpop.f32.mrf.mxu0 }
 0x567   : > { %v13668_v32 = vpop.f32.mrf.mxu0 }
 0x56d   : > { %v13670_v1 = vpop.f32.mrf.mxu0 }
 0x56f   : > { %v13675_v39 = vpop.f32.mrf.mxu0 }
 0x588   : > { %v9243_v27 = vpop.f32.mrf.mxu0 }
 0x58a   : > { %v9244_v60 = vpop.f32.mrf.mxu0 }
 0x58b   : > { %v9245_v35 = vadd.f32 %v9244_v60, %v9243_v27  ;;  %v6135_v27 = vrot.slane %v6131_v5, %v15062_v18  ;;  %v5719_v5 = vmul.f32 %v13681_v30, %v13616_v24  ;;  %v5722_v24 = vmul.f32 %v13618_v50, %v13681_v30 }
 0x58d   : > { %v5924_v40 = vmul.f32 %v9245_v35, %v5923_v4 }
 0x58f   : > { %v5929_v9 = vadd.f32 %v5928_v62, %v5924_v40  ;;  %v5718_v40 = vmul.f32 %v13612_v12, %v13681_v30 }
 0x591   : > { %v5930_v59 = vmax.f32 %v5929_v9, 0.0 }
 0x593   : > { %9477 = vmatmul.mubr.f32.vlgmr.msra.gmra.mxu1 %v5930_v59 }
 0x594   : > { %9481 = vmatprep.mubr.f32.mxu1 %v5785_v55  ;;  %v6017_v55 = vld [vmem:[%s14511_s11] sm:$0x3] }
 0x595   : > { %v6021_v59 = vrot.slane %v6017_v55, %v15062_v18  ;;  %v6026_v9 = vrot.slane %v6017_v55, %v15063_v17  ;;  %v5723_v55 = vmul.f32 %v13681_v30, %v13624_v15 }
 0x5a8   : > { %v9295_v0 = vpop.f32.mrf.mxu0 }
 0x5aa   : > { %v9296_v60 = vpop.f32.mrf.mxu0 }
 0x5ab   : > { %v9297_v31 = vadd.f32 %v9296_v60, %v9295_v0  ;;  %v5754_v0 = vadd.f32 %v13687_v6, %v5718_v40  ;;  %v5725_v40 = vmul.f32 %v13681_v30, %v13628_v53 }
 0x5ad   : > { %v6136_v56 = vmul.f32 %v9297_v31, %v6135_v27  ;;  %v5720_v27 = vmul.f32 %v13614_v23, %v13681_v30  ;;  %v5755_v31 = vadd.f32 %v13687_v6, %v5719_v5  ;;  %v5786_v12 = vmax.f32 %v5754_v0, 0.0 }
 0x5ae   : > { %v5726_v5 = vmul.f32 %v13626_v36, %v13681_v30 }
 0x5af   : > { %v6141_v35 = vadd.f32 %v6140_v2, %v6136_v56  ;;  %v5721_v2 = vmul.f32 %v13681_v30, %v13620_v52  ;;  %v5787_v23 = vmax.f32 %v5755_v31, 0.0  ;;  %v5724_v52 = vmul.f32 %v13622_v48, %v13681_v30 }
 0x5b0   : > { %v5762_v53 = vadd.f32 %v13687_v6, %v5726_v5  ;;  %v5729_v31 = vmul.f32 %v13681_v30, %v13636_v47  ;;  %v5737_v5 = vmul.f32 %v13681_v30, %v13652_v51 }
 0x5b1   : > { %v6142_v4 = vmax.f32 %v6141_v35, 0.0  ;;  %v5756_v35 = vadd.f32 %v13687_v6, %v5720_v27  ;;  %v5760_v15 = vadd.f32 %v13687_v6, %v5724_v52  ;;  %v5728_v27 = vmul.f32 %v13630_v13, %v13681_v30 }
 0x5b2   : > { %v5734_v52 = vmul.f32 %v13642_v10, %v13681_v30 }
 0x5b3   : > { %9529 = vmatprep.subr.mxu0 %v6142_v4  ;;  %v5792_v0 = vmax.f32 %v5760_v15, 0.0 }
 0x5b4   : > { %9530 = vmatpush3.msra.mxu0 %v6142_v4  ;;  %v5757_v4 = vadd.f32 %v13687_v6, %v5721_v2  ;;  %v5794_v2 = vmax.f32 %v5762_v53, 0.0 }
 0x5b6   : > { %v5789_v50 = vmax.f32 %v5757_v4, 0.0 }
 0x653   : > { %v6013_v61 = vpop.f32.mrf.mxu1 }
 0x654   : > { %v6022_v62 = vmul.f32 %v6021_v59, %v6013_v61  ;;  %v5788_v59 = vmax.f32 %v5756_v35, 0.0  ;;  %v5759_v61 = vadd.f32 %v13687_v6, %v5723_v55  ;;  %v5765_v35 = vadd.f32 %v13687_v6, %v5729_v31 }
 0x655   : > { %v9478_v56 = vpop.f32.mrf.mxu1  ;;  %v5732_v55 = vmul.f32 %v13638_v63, %v13681_v30 }
 0x656   : > { %v6027_v21 = vadd.f32 %v6026_v9, %v6022_v62  ;;  %v5758_v9 = vadd.f32 %v13687_v6, %v5722_v24  ;;  %v5761_v56 = vadd.f32 %v13687_v6, %v5725_v40  ;;  %v5791_v48 = vmax.f32 %v5759_v61, 0.0 }
 0x657   : > { %v5731_v24 = vmul.f32 %v13681_v30, %v13640_v41  ;;  %v5768_v41 = vadd.f32 %v13687_v6, %v5732_v55  ;;  %v5735_v40 = vmul.f32 %v13681_v30, %v13648_v34 }
 0x658   : > { %v6028_v60 = vmax.f32 %v6027_v21, 0.0  ;;  %v5790_v62 = vmax.f32 %v5758_v9, 0.0  ;;  %v5727_v21 = vmul.f32 %v13681_v30, %v13632_v46  ;;  %v5793_v36 = vmax.f32 %v5761_v56, 0.0 }
 0x659   : > { %v5764_v46 = vadd.f32 %v13687_v6, %v5728_v27  ;;  %v5771_v15 = vadd.f32 %v13687_v6, %v5735_v40  ;;  %v5740_v27 = vmul.f32 %v13654_v22, %v13681_v30  ;;  %v5743_v22 = vmul.f32 %v13681_v30, %v13664_v29 }
 0x65a   : > { %9479 = vmatprep.subr.mxu1 %v6028_v60  ;;  %v5746_v29 = vmul.f32 %v13666_v26, %v13681_v30 }
 0x65b   : > { %9480 = vmatpush3.xpose.msra.mxu1 %v6028_v60  ;;  %v5763_v60 = vadd.f32 %v13687_v6, %v5727_v21  ;;  %v5796_v4 = vmax.f32 %v5764_v46, 0.0  ;;  %v5738_v21 = vmul.f32 %v13650_v8, %v13681_v30  ;;  %v5741_v8 = vmul.f32 %v13681_v30, %v13660_v58 }
 0x65c   : > { %v5744_v58 = vmul.f32 %v13662_v11, %v13681_v30  ;;  %v5747_v11 = vmul.f32 %v13681_v30, %v13675_v39 }
 0x65d   : > { %v5795_v13 = vmax.f32 %v5763_v60, 0.0  ;;  %v5774_v51 = vadd.f32 %v13687_v6, %v5738_v21 }
 0x65e   : > { %9482 = vmatmul.mubr.f32.vlgmr.msra.gmra.mxu1 %v5786_v12  ;;  %v5730_v12 = vmul.f32 %v13634_v7, %v13681_v30  ;;  %v5797_v7 = vmax.f32 %v5765_v35, 0.0  ;;  %v5780_v55 = vadd.f32 %v13687_v6, %v5744_v58 }
 0x65f   : > { %9484 = vmatprep.mubr.f32.mxu1 %v5787_v23  ;;  %v5767_v23 = vadd.f32 %v13687_v6, %v5731_v24 }
 0x660   : > { %v5766_v47 = vadd.f32 %v13687_v6, %v5730_v12  ;;  %v5777_v12 = vadd.f32 %v13687_v6, %v5741_v8 }
 0x661   : > { %v5799_v63 = vmax.f32 %v5767_v23, 0.0 }
 0x662   : > { %9485 = vmatmul.mubr.f32.gmra.mxu1 %v5788_v59  ;;  %v5733_v59 = vmul.f32 %v13681_v30, %v13644_v37  ;;  %v5798_v9 = vmax.f32 %v5766_v47, 0.0  ;;  %v5770_v37 = vadd.f32 %v13687_v6, %v5734_v52  ;;  %v5783_v52 = vadd.f32 %v13687_v6, %v5747_v11 }
 0x663   : > { %9487 = vmatprep.mubr.f32.mxu1 %v5789_v50  ;;  %v5800_v50 = vmax.f32 %v5768_v41, 0.0 }
 0x664   : > { %v5769_v61 = vadd.f32 %v13687_v6, %v5733_v59  ;;  %v5802_v56 = vmax.f32 %v5770_v37, 0.0  ;;  %v5815_v40 = vmax.f32 %v5783_v52, 0.0 }
 0x666   : > { %9488 = vmatmul.mubr.f32.gmra.mxu1 %v5790_v62  ;;  %v5736_v62 = vmul.f32 %v13646_v43, %v13681_v30  ;;  %v5801_v10 = vmax.f32 %v5769_v61, 0.0  ;;  %v5803_v43 = vmax.f32 %v5771_v15, 0.0 }
 0x667   : > { %9490 = vmatprep.mubr.f32.mxu1 %v5791_v48  ;;  %v5773_v48 = vadd.f32 %v13687_v6, %v5737_v5 }
 0x668   : > { %v5772_v34 = vadd.f32 %v13687_v6, %v5736_v62 }
 0x669   : > { %v5805_v60 = vmax.f32 %v5773_v48, 0.0 }
 0x66a   : > { %9491 = vmatmul.mubr.f32.gmra.mxu1 %v5792_v0  ;;  %v5739_v0 = vmul.f32 %v13681_v30, %v13656_v57  ;;  %v5804_v53 = vmax.f32 %v5772_v34, 0.0  ;;  %v5776_v57 = vadd.f32 %v13687_v6, %v5740_v27 }
 0x66b   : > { %9493 = vmatprep.mubr.f32.mxu1 %v5793_v36  ;;  %v5806_v36 = vmax.f32 %v5774_v51, 0.0 }
 0x66c   : > { %v5775_v31 = vadd.f32 %v13687_v6, %v5739_v0  ;;  %v5808_v35 = vmax.f32 %v5776_v57, 0.0 }
 0x66e   : > { %9494 = vmatmul.mubr.f32.gmra.mxu1 %v5794_v2  ;;  %v5742_v2 = vmul.f32 %v13658_v33, %v13681_v30  ;;  %v5807_v46 = vmax.f32 %v5775_v31, 0.0  ;;  %v5745_v33 = vmul.f32 %v13681_v30, %v13668_v32  ;;  %v5748_v32 = vmul.f32 %v13670_v1, %v13681_v30 }
 0x66f   : > { %9496 = vmatprep.mubr.f32.mxu1 %v5795_v13  ;;  %v5809_v13 = vmax.f32 %v5777_v12, 0.0 }
 0x670   : > { %v5778_v24 = vadd.f32 %v13687_v6, %v5742_v2  ;;  %v5781_v59 = vadd.f32 %v13687_v6, %v5745_v33  ;;  %v5784_v61 = vadd.f32 %v13687_v6, %v5748_v32 }
 0x672   : > { %9497 = vmatmul.mubr.f32.gmra.mxu1 %v5796_v4  ;;  %v5779_v4 = vadd.f32 %v13687_v6, %v5743_v22  ;;  %v5810_v47 = vmax.f32 %v5778_v24, 0.0  ;;  %v5813_v41 = vmax.f32 %v5781_v59, 0.0  ;;  %v5816_v39 = vmax.f32 %v5784_v61, 0.0 }
 0x673   : > { %9499 = vmatprep.mubr.f32.mxu1 %v5797_v7  ;;  %v5812_v7 = vmax.f32 %v5780_v55, 0.0 }
 0x674   : > { %v5811_v23 = vmax.f32 %v5779_v4, 0.0 }
 0x676   : > { %9500 = vmatmul.mubr.f32.gmra.mxu1 %v5798_v9  ;;  %v5782_v9 = vadd.f32 %v13687_v6, %v5746_v29 }
 0x677   : > { %9502 = vmatprep.mubr.f32.mxu1 %v5799_v63  ;;  %v7496_v63 = vld [vmem:[#allocation13 + $0xf8] sm:$0xff] }
 0x678   : > { %v5814_v26 = vmax.f32 %v5782_v9, 0.0  ;;  %7529 = vmatprep.subr.mxu0 %v7496_v63 }
 0x67a   : > { %9503 = vmatmul.mubr.f32.gmra.mxu1 %v5800_v50 }
 0x67b   : > { %9505 = vmatprep.mubr.f32.mxu1 %v5801_v10 }
 0x67e   : > { %9506 = vmatmul.mubr.f32.gmra.mxu1 %v5802_v56 }
 0x67f   : > { %9508 = vmatprep.mubr.f32.mxu1 %v5803_v43 }
 0x682   : > { %9509 = vmatmul.mubr.f32.gmra.mxu1 %v5804_v53 }
 0x683   : > { %9511 = vmatprep.mubr.f32.mxu1 %v5805_v60 }
 0x686   : > { %9512 = vmatmul.mubr.f32.gmra.mxu1 %v5806_v36 }
 0x687   : > { %9514 = vmatprep.mubr.f32.mxu1 %v5807_v46 }
 0x68a   : > { %9515 = vmatmul.mubr.f32.gmra.mxu1 %v5808_v35 }
 0x68b   : > { %9517 = vmatprep.mubr.f32.mxu1 %v5809_v13 }
 0x68e   : > { %9518 = vmatmul.mubr.f32.gmra.mxu1 %v5810_v47 }
 0x68f   : > { %9520 = vmatprep.mubr.f32.mxu1 %v5811_v23 }
 0x692   : > { %9521 = vmatmul.mubr.f32.gmra.mxu1 %v5812_v7 }
 0x693   : > { %9523 = vmatprep.mubr.f32.mxu1 %v5813_v41 }
 0x696   : > { %9524 = vmatmul.mubr.f32.gmra.mxu1 %v5814_v26 }
 0x697   : > { %9526 = vmatprep.mubr.f32.mxu1 %v5815_v40 }
 0x69a   : > { %9527 = vmatmul.mubr.f32.gmra.mxu1 %v5816_v39 }
 0x69b   : > { %6978 = vmatprep.mubr.f32.mxu1 %v15064_v16 }
 0x71e   : > { %v9483_v50 = vpop.f32.mrf.mxu1 }
 0x71f   : > { %v6369_v37 = vmul.f32 0.088388346, %v9483_v50 }
 0x720   : > { %v6209_v30 = vpop.f32.mrf.mxu1 }
 0x721   : > { %v6401_v1 = vsub.f32 0.0, %v6369_v37  ;;  %v6368_v62 = vmul.f32 0.088388346, %v6209_v30 }
 0x722   : > { %v9486_v15 = vpop.f32.mrf.mxu1 }
 0x723   : > { %v6434_v5 = vmul.f32 1.442695, %v6401_v1  ;;  %v6400_v10 = vsub.f32 0.0, %v6368_v62  ;;  %v6371_v56 = vmul.f32 0.088388346, %v9486_v15 }
 0x724   : > { %v6219_v34 = vpop.f32.mrf.mxu1 }
 0x725   : > { %9704 = vpow2.f32 %v6434_v5  ;;  %v6432_v6 = vmul.f32 1.442695, %v6400_v10  ;;  %v6403_v21 = vsub.f32 0.0, %v6371_v56  ;;  %v6370_v48 = vmul.f32 0.088388346, %v6219_v34 }
 0x726   : > { %v9489_v0 = vpop.f32.mrf.mxu1 }
 0x727   : > { %9706 = vpow2.f32 %v6432_v6  ;;  %v6438_v43 = vmul.f32 1.442695, %v6403_v21  ;;  %v6402_v53 = vsub.f32 0.0, %v6370_v48  ;;  %v6373_v51 = vmul.f32 0.088388346, %v9489_v0 }
 0x728   : > { %v6229_v27 = vpop.f32.mrf.mxu1 }
 0x729   : > { %9708 = vpow2.f32 %v6438_v43  ;;  %v6436_v60 = vmul.f32 1.442695, %v6402_v53  ;;  %v6405_v31 = vsub.f32 0.0, %v6373_v51  ;;  %v6372_v8 = vmul.f32 0.088388346, %v6229_v27 }
 0x72a   : > { %v9492_v36 = vpop.f32.mrf.mxu1 }
 0x72b   : > { %9710 = vpow2.f32 %v6436_v60  ;;  %v6442_v57 = vmul.f32 1.442695, %v6405_v31  ;;  %v6404_v2 = vsub.f32 0.0, %v6372_v8  ;;  %v6375_v46 = vmul.f32 0.088388346, %v9492_v36 }
 0x72c   : > { %v6239_v12 = vpop.f32.mrf.mxu1 }
 0x72d   : > { %9712 = vpow2.f32 %v6442_v57  ;;  %v6440_v22 = vmul.f32 1.442695, %v6404_v2  ;;  %v6407_v35 = vsub.f32 0.0, %v6375_v46  ;;  %v6374_v24 = vmul.f32 0.088388346, %v6239_v12 }
 0x72e   : > { %v9495_v58 = vpop.f32.mrf.mxu1 }
 0x72f   : > { %9714 = vpow2.f32 %v6440_v22  ;;  %v6446_v13 = vmul.f32 1.442695, %v6407_v35  ;;  %v6406_v4 = vsub.f32 0.0, %v6374_v24  ;;  %v6377_v33 = vmul.f32 0.088388346, %v9495_v58 }
 0x730   : > { %v6249_v47 = vpop.f32.mrf.mxu1 }
 0x731   : > { %9716 = vpow2.f32 %v6446_v13  ;;  %v6444_v55 = vmul.f32 1.442695, %v6406_v4  ;;  %v6409_v29 = vsub.f32 0.0, %v6377_v33  ;;  %v6376_v23 = vmul.f32 0.088388346, %v6249_v47 }
 0x732   : > { %v9705_v59 = vpop.eup %9704  ;;  %v9498_v11 = vpop.f32.mrf.mxu1 }
 0x733   : > { %v6497_v7 = vadd.f32 1.0, %v9705_v59  ;;  %9718 = vpow2.f32 %v6444_v55  ;;  %v6450_v9 = vmul.f32 1.442695, %v6409_v29  ;;  %v6408_v32 = vsub.f32 0.0, %v6376_v23 }
 0x734   : > { %v9707_v41 = vpop.eup %9706  ;;  %v6379_v52 = vmul.f32 0.088388346, %v9498_v11  ;;  %v6259_v26 = vpop.f32.mrf.mxu1 }
 0x735   : > { %9720 = vrcp.f32 %v6497_v7  ;;  %v6496_v61 = vadd.f32 1.0, %v9707_v41  ;;  %v6448_v40 = vmul.f32 1.442695, %v6408_v32  ;;  %v6378_v39 = vmul.f32 0.088388346, %v6259_v26 }
 0x736   : > { %v9709_v63 = vpop.eup %9708  ;;  %9722 = vpow2.f32 %v6450_v9  ;;  %v6411_v50 = vsub.f32 0.0, %v6379_v52  ;;  %v9501_v37 = vpop.f32.mrf.mxu1 }
 0x737   : > { %9724 = vrcp.f32 %v6496_v61  ;;  %v6499_v30 = vadd.f32 1.0, %v9709_v63  ;;  %v6410_v1 = vsub.f32 0.0, %v6378_v39  ;;  %v6381_v62 = vmul.f32 0.088388346, %v9501_v37  ;;  %v7495_v61 = vld [vmem:[#allocation13 + $0xf0] sm:$0xff]  ;;  %v7494_v37 = vld [vmem:[#allocation13 + $0xe8] sm:$0xff] }
 0x738   : > { %v9711_v15 = vpop.eup %9710  ;;  %9726 = vpow2.f32 %v6448_v40  ;;  %v6454_v5 = vmul.f32 1.442695, %v6411_v50  ;;  %v6269_v10 = vpop.f32.mrf.mxu1 }
 0x739   : > { %9728 = vrcp.f32 %v6499_v30  ;;  %v6498_v56 = vadd.f32 1.0, %v9711_v15  ;;  %v6452_v34 = vmul.f32 1.442695, %v6410_v1  ;;  %v6413_v6 = vsub.f32 0.0, %v6381_v62  ;;  %v7493_v15 = vld [vmem:[#allocation13 + $0xe0] sm:$0xff] }
 0x73a   : > { %v9713_v21 = vpop.eup %9712  ;;  %9730 = vpow2.f32 %v6454_v5  ;;  %v6380_v48 = vmul.f32 0.088388346, %v6269_v10  ;;  %v9504_v0 = vpop.f32.mrf.mxu1 }
 0x73b   : > { %9732 = vrcp.f32 %v6498_v56  ;;  %v6501_v43 = vadd.f32 1.0, %v9713_v21  ;;  %v6458_v53 = vmul.f32 1.442695, %v6413_v6  ;;  %v6383_v51 = vmul.f32 0.088388346, %v9504_v0  ;;  %v7492_v6 = vld [vmem:[#allocation13 + $0xd8] sm:$0xff] }
 0x73c   : > { %v9715_v27 = vpop.eup %9714  ;;  %9734 = vpow2.f32 %v6452_v34  ;;  %v6412_v60 = vsub.f32 0.0, %v6380_v48  ;;  %v6279_v31 = vpop.f32.mrf.mxu1 }
 0x73d   : > { %9736 = vrcp.f32 %v6501_v43  ;;  %v6500_v8 = vadd.f32 1.0, %v9715_v27  ;;  %v6415_v36 = vsub.f32 0.0, %v6383_v51  ;;  %v6382_v57 = vmul.f32 0.088388346, %v6279_v31  ;;  %v7491_v43 = vld [vmem:[#allocation13 + $0xd0] sm:$0xff]  ;;  %v7490_v31 = vld [vmem:[#allocation13 + $0xc8] sm:$0xff] }
 0x73e   : > { %v9717_v2 = vpop.eup %9716  ;;  %9738 = vpow2.f32 %v6458_v53  ;;  %v6456_v46 = vmul.f32 1.442695, %v6412_v60  ;;  %v9507_v12 = vpop.f32.mrf.mxu1 }
 0x73f   : > { %9740 = vrcp.f32 %v6500_v8  ;;  %v6503_v22 = vadd.f32 1.0, %v9717_v2  ;;  %v6462_v35 = vmul.f32 1.442695, %v6415_v36  ;;  %v6414_v24 = vsub.f32 0.0, %v6382_v57  ;;  %v7489_v2 = vld [vmem:[#allocation13 + $0xc0] sm:$0xff] }
 0x740   : > { %v9719_v58 = vpop.eup %9718  ;;  %9742 = vpow2.f32 %v6456_v46  ;;  %v6385_v13 = vmul.f32 0.088388346, %v9507_v12  ;;  %v6289_v4 = vpop.f32.mrf.mxu1 }
 0x741   : > { %9744 = vrcp.f32 %v6503_v22  ;;  %v6502_v33 = vadd.f32 1.0, %v9719_v58  ;;  %v6460_v47 = vmul.f32 1.442695, %v6414_v24  ;;  %v6384_v55 = vmul.f32 0.088388346, %v6289_v4  ;;  %v7488_v24 = vld [vmem:[#allocation13 + $0xb8] sm:$0xff] }
 0x742   : > { %v9721_v29 = vpop.eup %9720  ;;  %9746 = vpow2.f32 %v6462_v35  ;;  %v6417_v23 = vsub.f32 0.0, %v6385_v13  ;;  %v9510_v59 = vpop.f32.mrf.mxu1 }
 0x743   : > { %v9723_v11 = vpop.eup %9722  ;;  %9748 = vrcp.f32 %v6502_v33  ;;  %v6416_v7 = vsub.f32 0.0, %v6384_v55  ;;  %v6387_v9 = vmul.f32 0.088388346, %v9510_v59  ;;  %v7487_v33 = vld [vmem:[#allocation13 + $0xb0] sm:$0xff]  ;;  %v7486_v59 = vld [vmem:[#allocation13 + $0xa8] sm:$0xff] }
 0x744   : > { %v9725_v32 = vpop.eup %9724  ;;  %v6505_v41 = vadd.f32 1.0, %v9723_v11  ;;  %9750 = vpow2.f32 %v6460_v47  ;;  %v6466_v52 = vmul.f32 1.442695, %v6417_v23  ;;  %v6299_v26 = vpop.f32.mrf.mxu1 }
 0x745   : > { %v9727_v40 = vpop.eup %9726  ;;  %v6464_v39 = vmul.f32 1.442695, %v6416_v7  ;;  %v6419_v63 = vsub.f32 0.0, %v6387_v9  ;;  %v6386_v50 = vmul.f32 0.088388346, %v6299_v26  ;;  %9531 = vmatprep.mubr.msk.f32.mxu0 %vm6560_vm2, %v9725_v32  ;;  %v7485_v32 = vld [vmem:[#allocation13 + $0xa0] sm:$0xff] }
 0x746   : > { %v9729_v30 = vpop.eup %9728  ;;  %9752 = vrcp.f32 %v6505_v41  ;;  %v6504_v1 = vadd.f32 1.0, %v9727_v40  ;;  %v9513_v62 = vpop.f32.mrf.mxu1  ;;  %9532 = vmatmul.mubr.msk.f32.vlgmr.msra.gmra.mxu0 %vm6560_vm2, %v9721_v29  ;;  %v7484_v40 = vld [vmem:[#allocation13 + $0x98] sm:$0xff] }
 0x747   : > { %v9731_v5 = vpop.eup %9730  ;;  %9754 = vpow2.f32 %v6466_v52  ;;  %v6470_v10 = vmul.f32 1.442695, %v6419_v63  ;;  %v6418_v56 = vsub.f32 0.0, %v6386_v50  ;;  %v6389_v34 = vmul.f32 0.088388346, %v9513_v62  ;;  %7530 = vmatpush1.msra.mxu0 %v7495_v61 }
 0x748   : > { %v9733_v21 = vpop.eup %9732  ;;  %9756 = vrcp.f32 %v6504_v1  ;;  %v6507_v48 = vadd.f32 1.0, %v9731_v5  ;;  %v6309_v0 = vpop.f32.mrf.mxu1  ;;  %7531 = vmatprep.subr.mxu0 %v7494_v37  ;;  %v7483_v37 = vld [vmem:[#allocation13 + $0x90] sm:$0xff]  ;;  %v7482_v5 = vld [vmem:[#allocation13 + $0x88] sm:$0xff] }
 0x749   : > { %v9735_v53 = vpop.eup %9734  ;;  %9758 = vpow2.f32 %v6464_v39  ;;  %v6468_v51 = vmul.f32 1.442695, %v6418_v56  ;;  %v6421_v27 = vsub.f32 0.0, %v6389_v34  ;;  %v6388_v60 = vmul.f32 0.088388346, %v6309_v0  ;;  %9534 = vmatprep.mubr.msk.f32.mxu0 %vm6560_vm2, %v9733_v21  ;;  %7532 = vmatpush1.msra.mxu0 %v7493_v15  ;;  %v7481_v34 = vld [vmem:[#allocation13 + $0x80] sm:$0xff] }
 0x74a   : > { %v9737_v8 = vpop.eup %9736  ;;  %9760 = vrcp.f32 %v6507_v48  ;;  %v6506_v36 = vadd.f32 1.0, %v9735_v53  ;;  %v9516_v57 = vpop.f32.mrf.mxu1  ;;  %9535 = vmatmul.mubr.msk.f32.gmra.mxu0 %vm6560_vm2, %v9729_v30  ;;  %7533 = vmatprep.subr.mxu0 %v7492_v6 }
 0x74b   : > { %v9739_v46 = vpop.eup %9738  ;;  %9762 = vpow2.f32 %v6470_v10  ;;  %v6474_v12 = vmul.f32 1.442695, %v6421_v27  ;;  %v6420_v22 = vsub.f32 0.0, %v6388_v60  ;;  %v6391_v35 = vmul.f32 0.088388346, %v9516_v57  ;;  %7534 = vmatpush1.msra.mxu0 %v7491_v43  ;;  %v7480_v43 = vld [vmem:[#allocation13 + $0x78] sm:$0xff] }
 0x74c   : > { %v9741_v58 = vpop.eup %9740  ;;  %9764 = vrcp.f32 %v6506_v36  ;;  %v6509_v13 = vadd.f32 1.0, %v9739_v46  ;;  %v6319_v4 = vpop.f32.mrf.mxu1  ;;  %7535 = vmatprep.subr.mxu0 %v7490_v31  ;;  %v7479_v36 = vld [vmem:[#allocation13 + $0x70] sm:$0xff] }
 0x74d   : > { %v9743_v47 = vpop.eup %9742  ;;  %9766 = vpow2.f32 %v6468_v51  ;;  %v6472_v55 = vmul.f32 1.442695, %v6420_v22  ;;  %v6423_v29 = vsub.f32 0.0, %v6391_v35  ;;  %v6390_v23 = vmul.f32 0.088388346, %v6319_v4  ;;  %9537 = vmatprep.mubr.msk.f32.mxu0 %vm6560_vm2, %v9741_v58  ;;  %7536 = vmatpush1.msra.mxu0 %v7489_v2 }
 0x74e   : > { %v9745_v11 = vpop.eup %9744  ;;  %9768 = vrcp.f32 %v6509_v13  ;;  %v6508_v7 = vadd.f32 1.0, %v9743_v47  ;;  %v9519_v9 = vpop.f32.mrf.mxu1  ;;  %9538 = vmatmul.mubr.msk.f32.gmra.mxu0 %vm6560_vm2, %v9737_v8  ;;  %7537 = vmatprep.subr.mxu0 %v7488_v24  ;;  %v7477_v13 = vld [vmem:[#allocation13 + $0x60] sm:$0xff] }
 0x74f   : > { %v9747_v41 = vpop.eup %9746  ;;  %9770 = vpow2.f32 %v6474_v12  ;;  %v6478_v52 = vmul.f32 1.442695, %v6423_v29  ;;  %v6422_v26 = vsub.f32 0.0, %v6390_v23  ;;  %v6393_v61 = vmul.f32 0.088388346, %v9519_v9  ;;  %7538 = vmatpush1.msra.mxu0 %v7487_v33  ;;  %v7478_v12 = vld [vmem:[#allocation13 + $0x68] sm:$0xff] }
 0x750   : > { %v9749_v39 = vpop.eup %9748  ;;  %9772 = vrcp.f32 %v6508_v7  ;;  %v6511_v63 = vadd.f32 1.0, %v9747_v41  ;;  %v6329_v50 = vpop.f32.mrf.mxu1  ;;  %7539 = vmatprep.subr.mxu0 %v7486_v59  ;;  %v7475_v7 = vld [vmem:[#allocation13 + $0x50] sm:$0xff] }
 0x751   : > { %v9751_v30 = vpop.eup %9750  ;;  %9774 = vpow2.f32 %v6472_v55  ;;  %v6476_v1 = vmul.f32 1.442695, %v6422_v26  ;;  %v6425_v62 = vsub.f32 0.0, %v6393_v61  ;;  %v6392_v15 = vmul.f32 0.088388346, %v6329_v50  ;;  %9540 = vmatprep.mubr.msk.f32.mxu0 %vm6560_vm2, %v9749_v39  ;;  %7540 = vmatpush1.msra.mxu0 %v7485_v32  ;;  %v7476_v55 = vld [vmem:[#allocation13 + $0x58] sm:$0xff] }
 0x752   : > { %9776 = vrcp.f32 %v6511_v63  ;;  %v6510_v10 = vadd.f32 1.0, %v9751_v30  ;;  %v9522_v56 = vpop.f32.mrf.mxu1  ;;  %9541 = vmatmul.mubr.msk.f32.gmra.mxu0 %vm6560_vm2, %v9745_v11  ;;  %7541 = vmatprep.subr.mxu0 %v7484_v40  ;;  %v7473_v63 = vld [vmem:[#allocation13 + $0x40] sm:$0xff] }
 0x753   : > { %v9753_v6 = vpop.eup %9752  ;;  %9778 = vpow2.f32 %v6478_v52  ;;  %v6482_v21 = vmul.f32 1.442695, %v6425_v62  ;;  %v6424_v48 = vsub.f32 0.0, %v6392_v15  ;;  %v6395_v0 = vmul.f32 0.088388346, %v9522_v56  ;;  %7542 = vmatpush1.msra.mxu0 %v7483_v37  ;;  %v7474_v52 = vld [vmem:[#allocation13 + $0x48] sm:$0xff] }
 0x754   : > { %v9755_v53 = vpop.eup %9754  ;;  %9780 = vrcp.f32 %v6510_v10  ;;  %v6339_v51 = vpop.f32.mrf.mxu1  ;;  %7543 = vmatprep.subr.mxu0 %v7482_v5  ;;  %v7471_v56 = vld [vmem:[#allocation13 + $0x30] sm:$0xff] }
 0x755   : > { %v9757_v27 = vpop.eup %9756  ;;  %v6513_v60 = vadd.f32 1.0, %v9755_v53  ;;  %9782 = vpow2.f32 %v6476_v1  ;;  %v6480_v31 = vmul.f32 1.442695, %v6424_v48  ;;  %v6427_v8 = vsub.f32 0.0, %v6395_v0  ;;  %7544 = vmatpush1.msra.mxu0 %v7481_v34  ;;  %v7472_v1 = vld [vmem:[#allocation13 + $0x38] sm:$0xff]  ;;  %v7469_v53 = vld [vmem:[#allocation13 + $0x20] sm:$0xff] }
 0x756   : > { %v9759_v57 = vpop.eup %9758  ;;  %9784 = vpow2.f32 %v6482_v21  ;;  %v6394_v2 = vmul.f32 0.088388346, %v6339_v51  ;;  %9543 = vmatprep.mubr.msk.f32.mxu0 %vm6560_vm2, %v9757_v27  ;;  %v9525_v46 = vpop.f32.mrf.mxu1  ;;  %7545 = vmatprep.subr.mxu0 %v7480_v43  ;;  %v7470_v21 = vld [vmem:[#allocation13 + $0x28] sm:$0xff] }
 0x757   : > { %v9761_v22 = vpop.eup %9760  ;;  %9786 = vrcp.f32 %v6513_v60  ;;  %v6512_v35 = vadd.f32 1.0, %v9759_v57  ;;  %v6486_v24 = vmul.f32 1.442695, %v6427_v8  ;;  %v6397_v58 = vmul.f32 0.088388346, %v9525_v46  ;;  %9544 = vmatmul.mubr.msk.f32.gmra.mxu0 %vm6560_vm2, %v9753_v6  ;;  %v7468_v60 = vld [vmem:[#allocation13 + $0x18] sm:$0xff] }
 0x758   : > { %v9763_v4 = vpop.eup %9762  ;;  %9788 = vpow2.f32 %v6480_v31  ;;  %v6426_v33 = vsub.f32 0.0, %v6394_v2  ;;  %7546 = vmatpush1.msra.mxu0 %v7479_v36  ;;  %v6349_v47 = vpop.f32.mrf.mxu1  ;;  %v7467_v36 = vld [vmem:[#allocation13 + $0x10] sm:$0xff]  ;;  %v7466_v46 = vld [vmem:[#allocation13 + $0x8] sm:$0xff] }
 0x759   : > { %v9765_v29 = vpop.eup %9764  ;;  %9790 = vrcp.f32 %v6512_v35  ;;  %v6515_v23 = vadd.f32 1.0, %v9763_v4  ;;  %v6429_v59 = vsub.f32 0.0, %v6397_v58  ;;  %v6396_v11 = vmul.f32 0.088388346, %v6349_v47  ;;  %7547 = vmatprep.subr.mxu0 %v7478_v12  ;;  %v7465_v35 = vld [vmem:[#allocation13] sm:$0xff]  ;;  %v7528_v58 = vld [vmem:[#allocation13 + $0x1f8] sm:$0xff] }
 0x75a   : > { %v9767_v9 = vpop.eup %9766  ;;  %9792 = vpow2.f32 %v6486_v24  ;;  %v6484_v32 = vmul.f32 1.442695, %v6426_v33  ;;  %9546 = vmatprep.mubr.msk.f32.mxu0 %vm6560_vm2, %v9765_v29  ;;  %7548 = vmatpush1.msra.mxu0 %v7477_v13  ;;  %v9528_v41 = vpop.f32.mrf.mxu1 }
 0x75b   : > { %v9769_v26 = vpop.eup %9768  ;;  %9794 = vrcp.f32 %v6515_v23  ;;  %v6514_v61 = vadd.f32 1.0, %v9767_v9  ;;  %v6490_v40 = vmul.f32 1.442695, %v6429_v59  ;;  %v6428_v39 = vsub.f32 0.0, %v6396_v11  ;;  %9547 = vmatmul.mubr.msk.f32.gmra.mxu0 %vm6560_vm2, %v9761_v22  ;;  %7549 = vmatprep.subr.mxu0 %v7476_v55  ;;  %v7527_v55 = vld [vmem:[#allocation13 + $0x1f0] sm:$0xff]  ;;  %v7526_v23 = vld [vmem:[#allocation13 + $0x1e8] sm:$0xff] }
 0x75c   : > { %v9771_v50 = vpop.eup %9770  ;;  %9796 = vpow2.f32 %v6484_v32  ;;  %v6399_v37 = vmul.f32 0.088388346, %v9528_v41  ;;  %7550 = vmatpush1.msra.mxu0 %v7475_v7  ;;  %v6359_v30 = vpop.f32.mrf.mxu1  ;;  %v7525_v11 = vld [vmem:[#allocation13 + $0x1e0] sm:$0xff]  ;;  %v7524_v9 = vld [vmem:[#allocation13 + $0x1d8] sm:$0xff] }
 0x75d   : > { %v9773_v62 = vpop.eup %9772  ;;  %9798 = vrcp.f32 %v6514_v61  ;;  %v6517_v15 = vadd.f32 1.0, %v9771_v50  ;;  %v6488_v5 = vmul.f32 1.442695, %v6428_v39  ;;  %v6398_v10 = vmul.f32 0.088388346, %v6359_v30  ;;  %7551 = vmatprep.subr.mxu0 %v7474_v52  ;;  %v6913_v32 = vld [vmem:[#allocation10 + $0xf8] sm:$0xff] }
 0x75e   : > { %v9775_v34 = vpop.eup %9774  ;;  %9800 = vpow2.f32 %v6490_v40  ;;  %v6431_v6 = vsub.f32 0.0, %v6399_v37  ;;  %9549 = vmatprep.mubr.msk.f32.mxu0 %vm6560_vm2, %v9773_v62  ;;  %7552 = vmatpush1.msra.mxu0 %v7473_v63  ;;  %v7523_v61 = vld [vmem:[#allocation13 + $0x1d0] sm:$0xff]  ;;  %v7522_v63 = vld [vmem:[#allocation13 + $0x1c8] sm:$0xff]  ;;  %v7521_v37 = vld [vmem:[#allocation13 + $0x1c0] sm:$0xff] }
 0x75f   : > { %v9777_v48 = vpop.eup %9776  ;;  %9802 = vrcp.f32 %v6517_v15  ;;  %v6516_v0 = vadd.f32 1.0, %v9775_v34  ;;  %v6430_v43 = vsub.f32 0.0, %v6398_v10  ;;  %9550 = vmatmul.mubr.msk.f32.gmra.mxu0 %vm6560_vm2, %v9769_v26  ;;  %7553 = vmatprep.subr.mxu0 %v7472_v1  ;;  %v6912_v40 = vld [vmem:[#allocation10 + $0xf0] sm:$0xff]  ;;  %v6911_v30 = vld [vmem:[#allocation10 + $0xe8] sm:$0xff]  ;;  %v7520_v62 = vld [vmem:[#allocation13 + $0x1b8] sm:$0xff] }
 0x760   : > { %v9779_v51 = vpop.eup %9778  ;;  %9804 = vpow2.f32 %v6488_v5  ;;  %v6494_v27 = vmul.f32 1.442695, %v6431_v6  ;;  %7554 = vmatpush1.msra.mxu0 %v7471_v56  ;;  %6914 = vmatprep.subr.mxu1 %v6913_v32  ;;  %v7519_v56 = vld [vmem:[#allocation13 + $0x1b0] sm:$0xff]  ;;  %v6910_v34 = vld [vmem:[#allocation10 + $0xe0] sm:$0xff] }
 0x761   : > { %v9781_v31 = vpop.eup %9780  ;;  %9806 = vrcp.f32 %v6516_v0  ;;  %v6492_v8 = vmul.f32 1.442695, %v6430_v43  ;;  %7555 = vmatprep.subr.mxu0 %v7470_v21  ;;  %v6519_v2 = vadd.f32 1.0, %v9779_v51  ;;  %6915 = vmatpush1.msra.mxu1 %v6912_v40  ;;  %v7518_v21 = vld [vmem:[#allocation13 + $0x1a8] sm:$0xff]  ;;  %v7517_v0 = vld [vmem:[#allocation13 + $0x1a0] sm:$0xff] }
 0x762   : > { %v9783_v57 = vpop.eup %9782  ;;  %9808 = vpow2.f32 %v6494_v27  ;;  %9552 = vmatprep.mubr.msk.f32.mxu0 %vm6560_vm2, %v9781_v31  ;;  %7556 = vmatpush1.msra.mxu0 %v7469_v53  ;;  %v7516_v53 = vld [vmem:[#allocation13 + $0x198] sm:$0xff]  ;;  %v7515_v31 = vld [vmem:[#allocation13 + $0x190] sm:$0xff]  ;;  %v7502_v40 = vld [vmem:[#allocation13 + $0x128] sm:$0xff] }
 0x763   : > { %v9785_v12 = vpop.eup %9784  ;;  %v6518_v22 = vadd.f32 1.0, %v9783_v57  ;;  %9553 = vmatmul.mubr.msk.f32.gmra.mxu0 %vm6560_vm2, %v9777_v48  ;;  %7557 = vmatprep.subr.mxu0 %v7468_v60  ;;  %9810 = vpow2.f32 %v6492_v8  ;;  %v6909_v48 = vld [vmem:[#allocation10 + $0xd8] sm:$0xff]  ;;  %v6908_v8 = vld [vmem:[#allocation10 + $0xd0] sm:$0xff]  ;;  %v7514_v57 = vld [vmem:[#allocation13 + $0x188] sm:$0xff] }
 0x764   : > { %v9787_v24 = vpop.eup %9786  ;;  %7558 = vmatpush1.msra.mxu0 %v7467_v36  ;;  %v6521_v33 = vadd.f32 1.0, %v9785_v12  ;;  %6916 = vmatprep.subr.mxu1 %v6911_v30  ;;  %v7499_v30 = vld [vmem:[#allocation13 + $0x110] sm:$0xff] }
 0x765   : > { %v9789_v13 = vpop.eup %9788  ;;  %9812 = vrcp.f32 %v6518_v22  ;;  %7559 = vmatprep.subr.mxu0 %v7466_v46  ;;  %6917 = vmatpush1.msra.mxu1 %v6910_v34  ;;  %v6907_v46 = vld [vmem:[#allocation10 + $0xc8] sm:$0xff]  ;;  %v7512_v22 = vld [vmem:[#allocation13 + $0x178] sm:$0xff] }
 0x766   : > { %v9791_v4 = vpop.eup %9790  ;;  %9814 = vrcp.f32 %v6519_v2  ;;  %v6520_v47 = vadd.f32 1.0, %v9789_v13  ;;  %7560 = vmatpush1.msra.mxu0 %v7465_v35  ;;  %6918 = vmatprep.subr.mxu1 %v6909_v48  ;;  %v7513_v2 = vld [vmem:[#allocation13 + $0x180] sm:$0xff]  ;;  %v7511_v35 = vld [vmem:[#allocation13 + $0x170] sm:$0xff]  ;;  %v7510_v13 = vld [vmem:[#allocation13 + $0x168] sm:$0xff] }
 0x767   : > { %v9793_v29 = vpop.eup %9792  ;;  %9555 = vmatprep.mubr.msk.f32.mxu0 %vm6560_vm2, %v9791_v4  ;;  %7561 = vmatprep.subr.mxu0 %v7528_v58  ;;  %v7509_v4 = vld [vmem:[#allocation13 + $0x160] sm:$0xff]  ;;  %v6897_v34 = vld [vmem:[#allocation10 + $0x78] sm:$0xff] }
 0x768   : > { %v9795_v59 = vpop.eup %9794  ;;  %9816 = vrcp.f32 %v6520_v47  ;;  %9556 = vmatmul.mubr.msk.f32.gmra.mxu0 %vm6560_vm2, %v9787_v24  ;;  %v6523_v52 = vadd.f32 1.0, %v9793_v29  ;;  %6919 = vmatpush1.msra.mxu1 %v6908_v8  ;;  %v6906_v24 = vld [vmem:[#allocation10 + $0xc0] sm:$0xff]  ;;  %v7507_v29 = vld [vmem:[#allocation13 + $0x150] sm:$0xff]  ;;  %v15068_v8 = vld [vmem:[#allocation75_spill] sm:$0xff] }
 0x769   : > { %v9797_v7 = vpop.eup %9796  ;;  %7562 = vmatpush2.msra.mxu0 %v7527_v55  ;;  %9818 = vrcp.f32 %v6521_v33  ;;  %6920 = vmatprep.subr.mxu1 %v6907_v46  ;;  %v6905_v33 = vld [vmem:[#allocation10 + $0xb8] sm:$0xff]  ;;  %v6894_v48 = vld [vmem:[#allocation10 + $0x60] sm:$0xff]  ;;  %v15076_v46 = vld [vmem:[#allocation79_spill] sm:$0xff] }
 0x76a   : > { %v9799_v41 = vpop.eup %9798  ;;  %v6522_v26 = vadd.f32 1.0, %v9797_v7  ;;  %7563 = vmatprep.subr.mxu0 %v7526_v23  ;;  %v7508_v55 = vld [vmem:[#allocation13 + $0x158] sm:$0xff]  ;;  %6921 = vmatpush1.msra.mxu1 %v6906_v24  ;;  %v6904_v23 = vld [vmem:[#allocation10 + $0xb0] sm:$0xff]  ;;  %v7505_v7 = vld [vmem:[#allocation13 + $0x140] sm:$0xff] }
 0x76b   : > { %v9801_v39 = vpop.eup %9800  ;;  %9558 = vmatprep.mubr.msk.f32.mxu0 %vm6560_vm2, %v9799_v41  ;;  %7564 = vmatpush2.msra.mxu0 %v7525_v11  ;;  %v7506_v11 = vld [vmem:[#allocation13 + $0x148] sm:$0xff]  ;;  %v7504_v41 = vld [vmem:[#allocation13 + $0x138] sm:$0xff] }
 0x76c   : > { %v9803_v50 = vpop.eup %9802  ;;  %9820 = vrcp.f32 %v6522_v26  ;;  %9559 = vmatmul.mubr.msk.f32.gmra.mxu0 %vm6560_vm2, %v9795_v59  ;;  %7565 = vmatprep.subr.mxu0 %v7524_v9  ;;  %v6525_v5 = vadd.f32 1.0, %v9801_v39  ;;  %v6903_v9 = vld [vmem:[#allocation10 + $0xa8] sm:$0xff]  ;;  %v6902_v26 = vld [vmem:[#allocation10 + $0xa0] sm:$0xff]  ;;  %v15080_v24 = vld [vmem:[#allocation81_spill] sm:$0xff] }
 0x76d   : > { %v9805_v1 = vpop.eup %9804  ;;  %7566 = vmatpush2.msra.mxu0 %v7523_v61  ;;  %9822 = vrcp.f32 %v6523_v52  ;;  %6922 = vmatprep.subr.mxu1 %v6905_v33  ;;  %v7503_v52 = vld [vmem:[#allocation13 + $0x130] sm:$0xff]  ;;  %v7501_v39 = vld [vmem:[#allocation13 + $0x120] sm:$0xff] }
 0x76e   : > { %v9807_v15 = vpop.eup %9806  ;;  %v6524_v10 = vadd.f32 1.0, %v9805_v1  ;;  %7567 = vmatprep.subr.mxu0 %v7522_v63  ;;  %6923 = vmatpush1.msra.mxu1 %v6904_v23  ;;  %v6901_v63 = vld [vmem:[#allocation10 + $0x98] sm:$0xff]  ;;  %v15084_v33 = vld [vmem:[#allocation84_spill] sm:$0xff]  ;;  %v15088_v23 = vld [vmem:[#allocation86_spill] sm:$0xff] }
 0x76f   : > { %v9809_v6 = vpop.eup %9808  ;;  %9561 = vmatprep.mubr.msk.f32.mxu0 %vm6560_vm2, %v9807_v15  ;;  %7568 = vmatpush2.msra.mxu0 %v7521_v37  ;;  %v7500_v37 = vld [vmem:[#allocation13 + $0x118] sm:$0xff]  ;;  %v6900_v15 = vld [vmem:[#allocation10 + $0x90] sm:$0xff] }
 0x770   : > { %9824 = vrcp.f32 %v6524_v10  ;;  %9562 = vmatmul.mubr.msk.f32.gmra.mxu0 %vm6560_vm2, %v9803_v50  ;;  %7569 = vmatprep.subr.mxu0 %v7520_v62  ;;  %v9811_v43 = vpop.eup %9810  ;;  %v6527_v27 = vadd.f32 1.0, %v9809_v6  ;;  %v7498_v62 = vld [vmem:[#allocation13 + $0x108] sm:$0xff]  ;;  %v6896_v6 = vld [vmem:[#allocation10 + $0x70] sm:$0xff] }
 0x771   : > { %7570 = vmatpush2.msra.mxu0 %v7519_v56  ;;  %9826 = vrcp.f32 %v6525_v5  ;;  %v6526_v60 = vadd.f32 1.0, %v9811_v43  ;;  %6924 = vmatprep.subr.mxu1 %v6903_v9  ;;  %v7497_v5 = vld [vmem:[#allocation13 + $0x100] sm:$0xff]  ;;  %v6899_v10 = vld [vmem:[#allocation10 + $0x88] sm:$0xff]  ;;  %v6892_v43 = vld [vmem:[#allocation10 + $0x50] sm:$0xff] }
 0x772   : > { %v9813_v51 = vpop.eup %9812  ;;  %7571 = vmatprep.subr.mxu0 %v7518_v21  ;;  %6925 = vmatpush1.msra.mxu1 %v6902_v26  ;;  %v6898_v56 = vld [vmem:[#allocation10 + $0x80] sm:$0xff]  ;;  %v6895_v21 = vld [vmem:[#allocation10 + $0x68] sm:$0xff]  ;;  %v15092_v9 = vld [vmem:[#allocation112_spill] sm:$0xff] }
 0x773   : > { %v9815_v36 = vpop.eup %9814  ;;  %9564 = vmatprep.mubr.msk.f32.mxu0 %vm6560_vm2, %v9813_v51  ;;  %7572 = vmatpush2.msra.mxu0 %v7517_v0  ;;  %9828 = vrcp.f32 %v6526_v60  ;;  %v6893_v0 = vld [vmem:[#allocation10 + $0x58] sm:$0xff]  ;;  %v6888_v51 = vld [vmem:[#allocation10 + $0x30] sm:$0xff] }
 0x774   : > { %9565 = vmatmul.mubr.msk.f32.gmra.mxu0 %vm6560_vm2, %v9815_v36  ;;  %7573 = vmatprep.subr.mxu0 %v7516_v53  ;;  %9830 = vrcp.f32 %v6527_v27  ;;  %v6890_v53 = vld [vmem:[#allocation10 + $0x40] sm:$0xff]  ;;  %v6884_v60 = vld [vmem:[#allocation10 + $0x10] sm:$0xff]  ;;  %v15070_v36 = vld [vmem:[#allocation55_spill] sm:$0xff] }
 0x775   : > { %v9817_v12 = vpop.eup %9816  ;;  %7574 = vmatpush2.msra.mxu0 %v7515_v31  ;;  %6926 = vmatprep.subr.mxu1 %v6901_v63  ;;  %v6886_v27 = vld [vmem:[#allocation10 + $0x20] sm:$0xff]  ;;  %v15096_v26 = vld [vmem:[#allocation64_spill] sm:$0xff]  ;;  %v15100_v63 = vld [vmem:[#allocation123_spill] sm:$0xff] }
 0x776   : > { %7575 = vmatprep.subr.mxu0 %v7514_v57  ;;  %9567 = vmatprep.mubr.msk.f32.mxu0 %vm6560_vm2, %v9817_v12  ;;  %v9819_v58 = vpop.eup %9818  ;;  %v6882_v31 = vld [vmem:[#allocation10] sm:$0xff] }
 0x777   : > { %7576 = vmatpush2.msra.mxu0 %v7513_v2  ;;  %6927 = vmatpush1.msra.mxu1 %v6900_v15  ;;  %v15071_v57 = vld [vmem:[#allocation74_spill] sm:$0xff]  ;;  %v15073_v2 = vld [vmem:[#allocation56_spill] sm:$0xff]  ;;  %v15106_v15 = vld [vmem:[#allocation69_spill] sm:$0xff] }
 0x778   : > { %9568 = vmatmul.mubr.msk.f32.gmra.mxu0 %vm6560_vm2, %v9819_v58  ;;  %7577 = vmatprep.subr.mxu0 %v7512_v22  ;;  %v15077_v12 = vld [vmem:[#allocation58_spill] sm:$0xff]  ;;  %v15078_v22 = vld [vmem:[#allocation57_spill] sm:$0xff]  ;;  %v15081_v58 = vld [vmem:[#allocation60_spill] sm:$0xff] }
 0x779   : > { %v9821_v47 = vpop.eup %9820  ;;  %7578 = vmatpush2.msra.mxu0 %v7511_v35  ;;  %6928 = vmatprep.subr.mxu1 %v6899_v10  ;;  %v15079_v35 = vld [vmem:[#allocation78_spill] sm:$0xff]  ;;  %v15108_v10 = vld [vmem:[#allocation91_spill] sm:$0xff] }
 0x77a   : > { %7579 = vmatprep.subr.mxu0 %v7510_v13  ;;  %9570 = vmatprep.mubr.msk.f32.mxu0 %vm6560_vm2, %v9821_v47  ;;  %v9823_v59 = vpop.eup %9822  ;;  %v15082_v13 = vld [vmem:[#allocation59_spill] sm:$0xff]  ;;  %v15085_v47 = vld [vmem:[#allocation62_spill] sm:$0xff] }
 0x77b   : > { %7580 = vmatpush2.msra.mxu0 %v7509_v4  ;;  %6929 = vmatpush1.msra.mxu1 %v6898_v56  ;;  %v15083_v4 = vld [vmem:[#allocation80_spill] sm:$0xff]  ;;  %v7432_v56 = vld [vmem:[#allocation11 + $0xf8] sm:$0xff] }
 0x77c   : > { %9571 = vmatmul.mubr.msk.f32.gmra.mxu0 %vm6560_vm2, %v9823_v59  ;;  %7581 = vmatprep.subr.mxu0 %v7508_v55  ;;  %v15086_v55 = vld [vmem:[#allocation61_spill] sm:$0xff]  ;;  %v15089_v59 = vld [vmem:[#allocation63_spill] sm:$0xff] }
 0x77d   : > { %v9825_v32 = vpop.eup %9824  ;;  %7582 = vmatpush2.msra.mxu0 %v7507_v29  ;;  %6930 = vmatprep.subr.mxu1 %v6897_v34  ;;  %v15087_v29 = vld [vmem:[#allocation82_spill] sm:$0xff] }
 0x77e   : > { %7583 = vmatprep.subr.mxu0 %v7506_v11  ;;  %9573 = vmatprep.mubr.msk.f32.mxu0 %vm6560_vm2, %v9825_v32  ;;  %v9827_v61 = vpop.eup %9826  ;;  %v15090_v11 = vld [vmem:[#allocation66_spill] sm:$0xff]  ;;  %v15093_v32 = vld [vmem:[#allocation115_spill] sm:$0xff] }
 0x77f   : > { %7584 = vmatpush2.msra.mxu0 %v7505_v7  ;;  %6931 = vmatpush1.msra.mxu1 %v6896_v6  ;;  %v15091_v7 = vld [vmem:[#allocation85_spill] sm:$0xff]  ;;  %v15109_v34 = vld [vmem:[#allocation94_spill] sm:$0xff]  ;;  %v15110_v6 = vld [vmem:[#allocation27_spill] sm:$0xff] }
 0x780   : > { %9574 = vmatmul.mubr.msk.f32.gmra.mxu0 %vm6560_vm2, %v9827_v61  ;;  %7585 = vmatprep.subr.mxu0 %v7504_v41  ;;  %v9829_v50 = vpop.eup %9828  ;;  %v15094_v41 = vld [vmem:[#allocation88_spill] sm:$0xff]  ;;  %v15097_v61 = vld [vmem:[#allocation87_spill] sm:$0xff] }
 0x781   : > { %7586 = vmatpush2.msra.mxu0 %v7503_v52  ;;  %9576 = vmatprep.mubr.msk.f32.mxu0 %vm6560_vm2, %v9829_v50  ;;  %v9831_v1 = vpop.eup %9830  ;;  %v15095_v52 = vld [vmem:[#allocation65_spill] sm:$0xff]  ;;  %v15101_v50 = vld [vmem:[#allocation68_spill] sm:$0xff] }
 0x782   : > { %7587 = vmatprep.subr.mxu0 %v7502_v40  ;;  %6932 = vmatprep.subr.mxu1 %v6895_v21  ;;  %v15098_v40 = vld [vmem:[#allocation118_spill] sm:$0xff] }
 0x783   : > { %7588 = vmatpush2.msra.mxu0 %v7501_v39  ;;  %6933 = vmatpush1.msra.mxu1 %v6894_v48  ;;  %v15099_v39 = vld [vmem:[#allocation90_spill] sm:$0xff]  ;;  %v15112_v48 = vld [vmem:[#allocation93_spill] sm:$0xff] }
 0x784   : > { %9577 = vmatmul.mubr.msk.f32.gmra.mxu0 %vm6560_vm2, %v9831_v1  ;;  %7589 = vmatprep.subr.mxu0 %v7500_v37  ;;  %v15102_v37 = vld [vmem:[#allocation67_spill] sm:$0xff]  ;;  %v15104_v1 = vld [vmem:[#allocation128_spill] sm:$0xff]  ;;  %v15111_v21 = vld [vmem:[#allocation70_spill] sm:$0xff] }
 0x785   : > { %7590 = vmatpush2.msra.mxu0 %v7499_v30  ;;  %7593 = vmatprep.mubr.f32.mxu0 %v15019_v49  ;;  %v6891_v49 = vld [vmem:[#allocation10 + $0x48] sm:$0xff]  ;;  %v15103_v30 = vld [vmem:[#allocation89_spill] sm:$0xff] }
 0x786   : > { %7591 = vmatprep.subr.mxu0 %v7498_v62  ;;  %6934 = vmatprep.subr.mxu1 %v6893_v0  ;;  %v15105_v62 = vld [vmem:[#allocation92_spill] sm:$0xff] }
 0x787   : > { %7592 = vmatpush2.msra.mxu0 %v7497_v5  ;;  %6935 = vmatpush1.msra.mxu1 %v6892_v43  ;;  %v15107_v5 = vld [vmem:[#allocation71_spill] sm:$0xff]  ;;  %v15113_v0 = vld [vmem:[#allocation96_spill] sm:$0xff]  ;;  %v15114_v43 = vld [vmem:[#allocation30_spill] sm:$0xff] }
 0x788   : > { %7594 = vmatmul.mubr.f32.vlgmr.msra.gmra.mxu0 %v15024_v28  ;;  %v6889_v28 = vld [vmem:[#allocation10 + $0x38] sm:$0xff]  ;;  %6936 = vmatprep.subr.mxu1 %v6891_v49  ;;  %v15115_v49 = vld [vmem:[#allocation26_spill] sm:$0xff] }
 0x789   : > { %7599 = vmatprep.mubr.f32.mxu0 %v15016_v45  ;;  %6937 = vmatpush1.msra.mxu1 %v6890_v53  ;;  %v6887_v45 = vld [vmem:[#allocation10 + $0x28] sm:$0xff] }
 0x78a   : > { %6938 = vmatprep.subr.mxu1 %v6889_v28  ;;  %v15116_v53 = vld [vmem:[#allocation95_spill] sm:$0xff] }
 0x78b   : > { %6939 = vmatpush1.msra.mxu1 %v6888_v51  ;;  %v7431_v51 = vld [vmem:[#allocation11 + $0xf0] sm:$0xff] }
 0x78c   : > { %7600 = vmatmul.mubr.f32.gmra.mxu0 %v15018_v14  ;;  %v6885_v14 = vld [vmem:[#allocation10 + $0x18] sm:$0xff]  ;;  %6940 = vmatprep.subr.mxu1 %v6887_v45 }
 0x78d   : > { %7605 = vmatprep.mubr.f32.mxu0 %v15009_v54  ;;  %6941 = vmatpush1.msra.mxu1 %v6886_v27  ;;  %v6883_v54 = vld [vmem:[#allocation10 + $0x8] sm:$0xff] }
 0x78e   : > { %6942 = vmatprep.subr.mxu1 %v6885_v14  ;;  %v7430_v27 = vld [vmem:[#allocation11 + $0xe8] sm:$0xff]  ;;  %v7429_v14 = vld [vmem:[#allocation11 + $0xe0] sm:$0xff] }
 0x78f   : > { %6943 = vmatpush1.msra.mxu1 %v6884_v60  ;;  %v7428_v60 = vld [vmem:[#allocation11 + $0xd8] sm:$0xff] }
 0x790   : > { %7606 = vmatmul.mubr.f32.gmra.mxu0 %v15015_v3  ;;  %6944 = vmatprep.subr.mxu1 %v6883_v54  ;;  %v15066_v3 = vld [vmem:[#allocation53_spill] sm:$0xff]  ;;  %v7427_v54 = vld [vmem:[#allocation11 + $0xd0] sm:$0xff] }
 0x791   : > { %7611 = vmatprep.mubr.f32.mxu0 %v12983_v42  ;;  %6945 = vmatpush1.msra.mxu1 %v6882_v31  ;;  %v15065_v42 = vld [vmem:[#allocation54_spill] sm:$0xff] }
 0x792   : > { %7786 = vmatprep.subr.mxu1 %v7432_v56  ;;  %v7457_v56 = vld [vmem:[#allocation11 + $0x1c0] sm:$0xff] }
 0x794   : > { %7612 = vmatmul.mubr.f32.gmra.mxu0 %v12987_v20  ;;  %v15067_v20 = vld [vmem:[#allocation73_spill] sm:$0xff] }
 0x795   : > { %7617 = vmatprep.mubr.f32.mxu0 %v12999_v44  ;;  %v15069_v44 = vld [vmem:[#allocation50_spill] sm:$0xff] }
 0x798   : > { %7618 = vmatmul.mubr.f32.gmra.mxu0 %v13005_v19  ;;  %v15072_v19 = vld [vmem:[#allocation77_spill] sm:$0xff] }
 0x799   : > { %7623 = vmatprep.mubr.f32.mxu0 %v13018_v25  ;;  %v15074_v25 = vld [vmem:[#allocation51_spill] sm:$0xff] }
 0x79c   : > { %7624 = vmatmul.mubr.f32.gmra.mxu0 %v13024_v38  ;;  %v15075_v38 = vld [vmem:[#allocation76_spill] sm:$0xff] }
 0x79d   : > { %7629 = vmatprep.mubr.f32.mxu0 %v15065_v42  ;;  %v7426_v42 = vld [vmem:[#allocation11 + $0xc8] sm:$0xff] }
 0x7a0   : > { %7630 = vmatmul.mubr.f32.gmra.mxu0 %v15066_v3  ;;  %v7425_v3 = vld [vmem:[#allocation11 + $0xc0] sm:$0xff] }
 0x7a1   : > { %7635 = vmatprep.mubr.f32.mxu0 %v15067_v20  ;;  %v7424_v20 = vld [vmem:[#allocation11 + $0xb8] sm:$0xff] }
 0x7a4   : > { %7636 = vmatmul.mubr.f32.gmra.mxu0 %v15068_v8  ;;  %v7423_v8 = vld [vmem:[#allocation11 + $0xb0] sm:$0xff] }
 0x7a5   : > { %7641 = vmatprep.mubr.f32.mxu0 %v15069_v44 }
 0x7a8   : > { %7642 = vmatmul.mubr.f32.gmra.mxu0 %v15070_v36  ;;  %v7422_v36 = vld [vmem:[#allocation11 + $0xa8] sm:$0xff] }
 0x7a9   : > { %7647 = vmatprep.mubr.f32.mxu0 %v15071_v57  ;;  %v7421_v57 = vld [vmem:[#allocation11 + $0xa0] sm:$0xff] }
 0x7ac   : > { %7648 = vmatmul.mubr.f32.gmra.mxu0 %v15072_v19  ;;  %v7420_v19 = vld [vmem:[#allocation11 + $0x98] sm:$0xff] }
 0x7ad   : > { %7653 = vmatprep.mubr.f32.mxu0 %v15073_v2  ;;  %v7419_v2 = vld [vmem:[#allocation11 + $0x90] sm:$0xff] }
 0x7b0   : > { %7654 = vmatmul.mubr.f32.gmra.mxu0 %v15074_v25 }
 0x7b1   : > { %7659 = vmatprep.mubr.f32.mxu0 %v15075_v38  ;;  %v7418_v38 = vld [vmem:[#allocation11 + $0x88] sm:$0xff] }
 0x7b4   : > { %7660 = vmatmul.mubr.f32.gmra.mxu0 %v15076_v46  ;;  %v7417_v46 = vld [vmem:[#allocation11 + $0x80] sm:$0xff] }
 0x7b5   : > { %7665 = vmatprep.mubr.f32.mxu0 %v15077_v12  ;;  %v7416_v12 = vld [vmem:[#allocation11 + $0x78] sm:$0xff] }
 0x7b8   : > { %7666 = vmatmul.mubr.f32.gmra.mxu0 %v15078_v22  ;;  %v7415_v22 = vld [vmem:[#allocation11 + $0x70] sm:$0xff] }
 0x7b9   : > { %7671 = vmatprep.mubr.f32.mxu0 %v15079_v35 }
 0x7bc   : > { %7672 = vmatmul.mubr.f32.gmra.mxu0 %v15080_v24  ;;  %v7414_v24 = vld [vmem:[#allocation11 + $0x68] sm:$0xff] }
 0x7bd   : > { %7677 = vmatprep.mubr.f32.mxu0 %v15081_v58  ;;  %v7413_v58 = vld [vmem:[#allocation11 + $0x60] sm:$0xff] }
 0x7c0   : > { %7678 = vmatmul.mubr.f32.gmra.mxu0 %v15082_v13 }
 0x7c1   : > { %7683 = vmatprep.mubr.f32.mxu0 %v15083_v4  ;;  %v7412_v4 = vld [vmem:[#allocation11 + $0x58] sm:$0xff] }
 0x7c4   : > { %7684 = vmatmul.mubr.f32.gmra.mxu0 %v15084_v33  ;;  %v7411_v33 = vld [vmem:[#allocation11 + $0x50] sm:$0xff] }
 0x7c5   : > { %7689 = vmatprep.mubr.f32.mxu0 %v15085_v47 }
 0x7c8   : > { %7690 = vmatmul.mubr.f32.gmra.mxu0 %v15086_v55  ;;  %v7410_v55 = vld [vmem:[#allocation11 + $0x48] sm:$0xff] }
 0x7c9   : > { %7695 = vmatprep.mubr.f32.mxu0 %v15087_v29  ;;  %v7409_v29 = vld [vmem:[#allocation11 + $0x40] sm:$0xff] }
 0x7cc   : > { %7696 = vmatmul.mubr.f32.gmra.mxu0 %v15088_v23 }
 0x7cd   : > { %7701 = vmatprep.mubr.f32.mxu0 %v15089_v59  ;;  %v7408_v59 = vld [vmem:[#allocation11 + $0x38] sm:$0xff] }
 0x7d0   : > { %7702 = vmatmul.mubr.f32.gmra.mxu0 %v15090_v11  ;;  %v7407_v11 = vld [vmem:[#allocation11 + $0x30] sm:$0xff] }
 0x7d1   : > { %7707 = vmatprep.mubr.f32.mxu0 %v15091_v7 }
 0x7d4   : > { %7708 = vmatmul.mubr.f32.gmra.mxu0 %v15092_v9  ;;  %v7406_v9 = vld [vmem:[#allocation11 + $0x28] sm:$0xff] }
 0x7d5   : > { %7713 = vmatprep.mubr.f32.mxu0 %v15093_v32  ;;  %v7405_v32 = vld [vmem:[#allocation11 + $0x20] sm:$0xff] }
 0x7d8   : > { %7714 = vmatmul.mubr.f32.gmra.mxu0 %v15094_v41 }
 0x7d9   : > { %7719 = vmatprep.mubr.f32.mxu0 %v15095_v52  ;;  %v7404_v52 = vld [vmem:[#allocation11 + $0x18] sm:$0xff] }
 0x7dc   : > { %7720 = vmatmul.mubr.f32.gmra.mxu0 %v15096_v26  ;;  %v7403_v26 = vld [vmem:[#allocation11 + $0x10] sm:$0xff] }
 0x7dd   : > { %7725 = vmatprep.mubr.f32.mxu0 %v15097_v61 }
 0x7e0   : > { %7726 = vmatmul.mubr.f32.gmra.mxu0 %v15098_v40  ;;  %v7402_v40 = vld [vmem:[#allocation11 + $0x8] sm:$0xff] }
 0x7e1   : > { %7731 = vmatprep.mubr.f32.mxu0 %v15099_v39  ;;  %v7401_v39 = vld [vmem:[#allocation11] sm:$0xff] }
 0x7e4   : > { %7732 = vmatmul.mubr.f32.gmra.mxu0 %v15100_v63 }
 0x7e5   : > { %7737 = vmatprep.mubr.f32.mxu0 %v15101_v50  ;;  %v7464_v50 = vld [vmem:[#allocation11 + $0x1f8] sm:$0xff] }
 0x7e8   : > { %7738 = vmatmul.mubr.f32.gmra.mxu0 %v15102_v37  ;;  %v7463_v37 = vld [vmem:[#allocation11 + $0x1f0] sm:$0xff] }
 0x7e9   : > { %7743 = vmatprep.mubr.f32.mxu0 %v15103_v30  ;;  %v7462_v30 = vld [vmem:[#allocation11 + $0x1e8] sm:$0xff] }
 0x7ec   : > { %7744 = vmatmul.mubr.f32.gmra.mxu0 %v15104_v1  ;;  %v7461_v1 = vld [vmem:[#allocation11 + $0x1e0] sm:$0xff] }
 0x7ed   : > { %7749 = vmatprep.mubr.f32.mxu0 %v15105_v62 }
 0x7f0   : > { %7750 = vmatmul.mubr.f32.gmra.mxu0 %v15106_v15  ;;  %v7460_v15 = vld [vmem:[#allocation11 + $0x1d8] sm:$0xff] }
 0x7f1   : > { %7755 = vmatprep.mubr.f32.mxu0 %v15107_v5  ;;  %v7459_v5 = vld [vmem:[#allocation11 + $0x1d0] sm:$0xff] }
 0x7f4   : > { %7756 = vmatmul.mubr.f32.gmra.mxu0 %v15108_v10  ;;  %v7458_v10 = vld [vmem:[#allocation11 + $0x1c8] sm:$0xff] }
 0x7f5   : > { %7761 = vmatprep.mubr.f32.mxu0 %v15109_v34 }
 0x7f8   : > { %7762 = vmatmul.mubr.f32.gmra.mxu0 %v15110_v6  ;;  %v7456_v6 = vld [vmem:[#allocation11 + $0x1b8] sm:$0xff] }
 0x7f9   : > { %7767 = vmatprep.mubr.f32.mxu0 %v15111_v21  ;;  %v7455_v21 = vld [vmem:[#allocation11 + $0x1b0] sm:$0xff] }
 0x7fc   : > { %7768 = vmatmul.mubr.f32.gmra.mxu0 %v15112_v48  ;;  %v7454_v48 = vld [vmem:[#allocation11 + $0x1a8] sm:$0xff] }
 0x7fd   : > { %7773 = vmatprep.mubr.f32.mxu0 %v15113_v0  ;;  %v7453_v0 = vld [vmem:[#allocation11 + $0x1a0] sm:$0xff] }
 0x800   : > { %7774 = vmatmul.mubr.f32.gmra.mxu0 %v15114_v43 }
 0x801   : > { %7779 = vmatprep.mubr.f32.mxu0 %v15115_v49  ;;  %v7452_v49 = vld [vmem:[#allocation11 + $0x198] sm:$0xff] }
 0x804   : > { %7780 = vmatmul.mubr.f32.gmra.mxu0 %v15116_v53  ;;  %v7451_v53 = vld [vmem:[#allocation11 + $0x190] sm:$0xff] }
 0x806   : > { %v9533_v28 = vpop.f32.mrf.mxu0 }
 0x808   : > { %v6723_v45 = vpop.f32.mrf.mxu0 }
 0x809   : > { %6979 = vmatmul.mubr.f32.vlgmr.msra.gmra.mxu1 %v6723_v45 }
 0x80a   : > { %6984 = vmatprep.mubr.f32.mxu1 %v15064_v16  ;;  %7787 = vmatpush1.msra.mxu1 %v7431_v51  ;;  %v9536_v31 = vpop.f32.mrf.mxu0  ;;  %v7449_v51 = vld [vmem:[#allocation11 + $0x180] sm:$0xff] }
 0x80b   : > { %7788 = vmatprep.subr.mxu1 %v7430_v27  ;;  %v7448_v27 = vld [vmem:[#allocation11 + $0x178] sm:$0xff] }
 0x80c   : > { %7789 = vmatpush1.msra.mxu1 %v7429_v14  ;;  %v6733_v44 = vpop.f32.mrf.mxu0  ;;  %v7447_v14 = vld [vmem:[#allocation11 + $0x170] sm:$0xff] }
 0x80d   : > { %6985 = vmatmul.mubr.f32.gmra.mxu1 %v9533_v28  ;;  %7790 = vmatprep.subr.mxu1 %v7428_v60  ;;  %v7450_v28 = vld [vmem:[#allocation11 + $0x188] sm:$0xff] }
 0x80e   : > { %6990 = vmatprep.mubr.f32.mxu1 %v15064_v16  ;;  %7791 = vmatpush1.msra.mxu1 %v7427_v54  ;;  %v9539_v25 = vpop.f32.mrf.mxu0  ;;  %v7446_v60 = vld [vmem:[#allocation11 + $0x168] sm:$0xff]  ;;  %v7445_v54 = vld [vmem:[#allocation11 + $0x160] sm:$0xff] }
 0x80f   : > { %7792 = vmatprep.subr.mxu1 %v7426_v42  ;;  %v7443_v42 = vld [vmem:[#allocation11 + $0x150] sm:$0xff] }
 0x810   : > { %7793 = vmatpush1.msra.mxu1 %v7425_v3  ;;  %v6743_v35 = vpop.f32.mrf.mxu0 }
 0x811   : > { %6991 = vmatmul.mubr.f32.gmra.mxu1 %v6733_v44  ;;  %7794 = vmatprep.subr.mxu1 %v7424_v20  ;;  %v7442_v20 = vld [vmem:[#allocation11 + $0x148] sm:$0xff] }
 0x812   : > { %6996 = vmatprep.mubr.f32.mxu1 %v15064_v16  ;;  %7795 = vmatpush1.msra.mxu1 %v7423_v8  ;;  %v9542_v13 = vpop.f32.mrf.mxu0  ;;  %v7441_v8 = vld [vmem:[#allocation11 + $0x140] sm:$0xff] }
 0x813   : > { %7796 = vmatprep.subr.mxu1 %v7422_v36  ;;  %v7440_v36 = vld [vmem:[#allocation11 + $0x138] sm:$0xff] }
 0x814   : > { %7797 = vmatpush1.msra.mxu1 %v7421_v57  ;;  %v6753_v47 = vpop.f32.mrf.mxu0  ;;  %v7439_v57 = vld [vmem:[#allocation11 + $0x130] sm:$0xff] }
 0x815   : > { %6997 = vmatmul.mubr.f32.gmra.mxu1 %v9536_v31  ;;  %7798 = vmatprep.subr.mxu1 %v7420_v19  ;;  %v7444_v31 = vld [vmem:[#allocation11 + $0x158] sm:$0xff]  ;;  %v7438_v19 = vld [vmem:[#allocation11 + $0x128] sm:$0xff] }
 0x816   : > { %7002 = vmatprep.mubr.f32.mxu1 %v15064_v16  ;;  %7799 = vmatpush1.msra.mxu1 %v7419_v2  ;;  %v7437_v2 = vld [vmem:[#allocation11 + $0x120] sm:$0xff] }
 0x817   : > { %7800 = vmatprep.subr.mxu1 %v7418_v38  ;;  %v9545_v23 = vpop.f32.mrf.mxu0  ;;  %v7436_v38 = vld [vmem:[#allocation11 + $0x118] sm:$0xff] }
 0x818   : > { %7801 = vmatpush1.msra.mxu1 %v7417_v46  ;;  %v7435_v46 = vld [vmem:[#allocation11 + $0x110] sm:$0xff] }
 0x819   : > { %7003 = vmatmul.mubr.f32.gmra.mxu1 %v6743_v35  ;;  %7802 = vmatprep.subr.mxu1 %v7416_v12  ;;  %v6763_v7 = vpop.f32.mrf.mxu0  ;;  %v7434_v12 = vld [vmem:[#allocation11 + $0x108] sm:$0xff] }
 0x81a   : > { %7008 = vmatprep.mubr.f32.mxu1 %v15064_v16  ;;  %7803 = vmatpush1.msra.mxu1 %v7415_v22  ;;  %v7433_v22 = vld [vmem:[#allocation11 + $0x100] sm:$0xff] }
 0x81b   : > { %7804 = vmatprep.subr.mxu1 %v7414_v24  ;;  %v9548_v41 = vpop.f32.mrf.mxu0 }
 0x81c   : > { %7805 = vmatpush1.msra.mxu1 %v7413_v58 }
 0x81d   : > { %7009 = vmatmul.mubr.f32.gmra.mxu1 %v9539_v25  ;;  %7806 = vmatprep.subr.mxu1 %v7412_v4  ;;  %v6773_v61 = vpop.f32.mrf.mxu0 }
 0x81e   : > { %7014 = vmatprep.mubr.f32.mxu1 %v15064_v16  ;;  %7807 = vmatpush1.msra.mxu1 %v7411_v33 }
 0x81f   : > { %7808 = vmatprep.subr.mxu1 %v7410_v55  ;;  %v9551_v63 = vpop.f32.mrf.mxu0 }
 0x820   : > { %7809 = vmatpush1.msra.mxu1 %v7409_v29 }
 0x821   : > { %7015 = vmatmul.mubr.f32.gmra.mxu1 %v6753_v47  ;;  %7810 = vmatprep.subr.mxu1 %v7408_v59  ;;  %v6783_v62 = vpop.f32.mrf.mxu0 }
 0x822   : > { %7020 = vmatprep.mubr.f32.mxu1 %v15064_v16  ;;  %7811 = vmatpush1.msra.mxu1 %v7407_v11 }
 0x823   : > { %7812 = vmatprep.subr.mxu1 %v7406_v9  ;;  %v9554_v34 = vpop.f32.mrf.mxu0 }
 0x824   : > { %7813 = vmatpush1.msra.mxu1 %v7405_v32  ;;  %v15117_v32 = vld [vmem:[#allocation122_spill] sm:$0xff] }
 0x825   : > { %7021 = vmatmul.mubr.f32.gmra.mxu1 %v9542_v13  ;;  %7814 = vmatprep.subr.mxu1 %v7404_v52  ;;  %v6793_v43 = vpop.f32.mrf.mxu0 }
 0x826   : > { %7026 = vmatprep.mubr.f32.mxu1 %v15064_v16  ;;  %7815 = vmatpush1.msra.mxu1 %v7403_v26 }
 0x827   : > { %7816 = vmatprep.subr.mxu1 %v7402_v40 }
 0x828   : > { %7817 = vmatpush1.msra.mxu1 %v7401_v39  ;;  %v9557_v45 = vpop.f32.mrf.mxu0 }
 0x829   : > { %7027 = vmatmul.mubr.f32.gmra.mxu1 %v6763_v7  ;;  %7818 = vmatprep.subr.mxu1 %v7464_v50  ;;  %v7171_v7 = vld [vmem:[%s14515_s15] sm:$0xf] }
 0x82a   : > { %7032 = vmatprep.mubr.f32.mxu1 %v15064_v16  ;;  %7819 = vmatpush2.msra.mxu1 %v7463_v37  ;;  %v6803_v3 = vpop.f32.mrf.mxu0  ;;  %v7176_v9 = vrot.slane %v7171_v7, %v15062_v18  ;;  %v7258_v52 = vrot.slane %v7171_v7, %v15063_v17 }
 0x82b   : > { %7820 = vmatprep.subr.mxu1 %v7462_v30 }
 0x82c   : > { %7821 = vmatpush2.msra.mxu1 %v7461_v1  ;;  %v9560_v44 = vpop.f32.mrf.mxu0  ;;  %v13928_v26 = vrot.slane %v7176_v9, %v15062_v18 }
 0x82d   : > { %7033 = vmatmul.mubr.f32.gmra.mxu1 %v9545_v23  ;;  %7822 = vmatprep.subr.mxu1 %v7460_v15 }
 0x82e   : > { %7038 = vmatprep.mubr.f32.mxu1 %v15064_v16  ;;  %7823 = vmatpush2.msra.mxu1 %v7459_v5  ;;  %v6813_v25 = vpop.f32.mrf.mxu0 }
 0x82f   : > { %7824 = vmatprep.subr.mxu1 %v7458_v10 }
 0x830   : > { %7825 = vmatpush2.msra.mxu1 %v7457_v56  ;;  %v9563_v35 = vpop.f32.mrf.mxu0 }
 0x831   : > { %7039 = vmatmul.mubr.f32.gmra.mxu1 %v6773_v61  ;;  %7826 = vmatprep.subr.mxu1 %v7456_v6  ;;  %v15118_v61 = vld [vmem:[#allocation126_spill] sm:$0xff] }
 0x832   : > { %7044 = vmatprep.mubr.f32.mxu1 %v15064_v16  ;;  %7827 = vmatpush2.msra.mxu1 %v7455_v21  ;;  %v6823_v24 = vpop.f32.mrf.mxu0  ;;  %v7262_v40 = vrot.slane %v7171_v7, %v15118_v61 }
 0x833   : > { %7828 = vmatprep.subr.mxu1 %v7454_v48 }
 0x834   : > { %7829 = vmatpush2.msra.mxu1 %v7453_v0  ;;  %v9566_v58 = vpop.f32.mrf.mxu0  ;;  %v13939_v37 = vrot.slane %v7262_v40, %v15063_v17 }
 0x835   : > { %7045 = vmatmul.mubr.f32.gmra.mxu1 %v9548_v41  ;;  %7830 = vmatprep.subr.mxu1 %v7452_v49  ;;  %v7180_v41 = vrot.slane %v7171_v7, %v15117_v32 }
 0x836   : > { %7050 = vmatprep.mubr.f32.mxu1 %v15064_v16  ;;  %7831 = vmatpush2.msra.mxu1 %v7451_v53  ;;  %v6833_v13 = vpop.f32.mrf.mxu0 }
 0x837   : > { %7832 = vmatprep.subr.mxu1 %v7450_v28  ;;  %v13932_v39 = vrot.slane %v7180_v41, %v15062_v18 }
 0x838   : > { %7833 = vmatpush2.msra.mxu1 %v7449_v51  ;;  %v9569_v4 = vpop.f32.mrf.mxu0 }
 0x839   : > { %7051 = vmatmul.mubr.f32.gmra.mxu1 %v6783_v62  ;;  %7834 = vmatprep.subr.mxu1 %v7448_v27 }
 0x83a   : > { %7056 = vmatprep.mubr.f32.mxu1 %v15064_v16  ;;  %7835 = vmatpush2.msra.mxu1 %v7447_v14  ;;  %v6843_v33 = vpop.f32.mrf.mxu0 }
 0x83b   : > { %7836 = vmatprep.subr.mxu1 %v7446_v60 }
 0x83c   : > { %7837 = vmatpush2.msra.mxu1 %v7445_v54  ;;  %v9572_v47 = vpop.f32.mrf.mxu0 }
 0x83d   : > { %7057 = vmatmul.mubr.f32.gmra.mxu1 %v9551_v63  ;;  %7838 = vmatprep.subr.mxu1 %v7444_v31  ;;  %v13935_v63 = vrot.slane %v7258_v52, %v15063_v17 }
 0x83e   : > { %7062 = vmatprep.mubr.f32.mxu1 %v15064_v16  ;;  %7839 = vmatpush2.msra.mxu1 %v7443_v42  ;;  %v6853_v55 = vpop.f32.mrf.mxu0 }
 0x83f   : > { %7840 = vmatprep.subr.mxu1 %v7442_v20 }
 0x840   : > { %7841 = vmatpush2.msra.mxu1 %v7441_v8  ;;  %v9575_v29 = vpop.f32.mrf.mxu0 }
 0x841   : > { %7063 = vmatmul.mubr.f32.gmra.mxu1 %v6793_v43  ;;  %7842 = vmatprep.subr.mxu1 %v7440_v36 }
 0x842   : > { %7068 = vmatprep.mubr.f32.mxu1 %v15064_v16  ;;  %7843 = vmatpush2.msra.mxu1 %v7439_v57  ;;  %v6863_v23 = vpop.f32.mrf.mxu0 }
 0x843   : > { %7844 = vmatprep.subr.mxu1 %v7438_v19 }
 0x844   : > { %7845 = vmatpush2.msra.mxu1 %v7437_v2  ;;  %v9578_v59 = vpop.f32.mrf.mxu0 }
 0x845   : > { %7069 = vmatmul.mubr.f32.gmra.mxu1 %v9554_v34  ;;  %7846 = vmatprep.subr.mxu1 %v7436_v38 }
 0x846   : > { %7074 = vmatprep.mubr.f32.mxu1 %v15064_v16  ;;  %7847 = vmatpush2.msra.mxu1 %v7435_v46  ;;  %v6873_v11 = vpop.f32.mrf.mxu0 }
 0x847   : > { %7848 = vmatprep.subr.mxu1 %v7434_v12 }
 0x848   : > { %7849 = vmatpush2.msra.mxu1 %v7433_v22 }
 0x849   : > { %7075 = vmatmul.mubr.f32.gmra.mxu1 %v6803_v3 }
 0x84a   : > { %7080 = vmatprep.mubr.f32.mxu1 %v15064_v16 }
 0x84d   : > { %7081 = vmatmul.mubr.f32.gmra.mxu1 %v9557_v45 }
 0x84e   : > { %7086 = vmatprep.mubr.f32.mxu1 %v15064_v16 }
 0x851   : > { %7087 = vmatmul.mubr.f32.gmra.mxu1 %v6813_v25 }
 0x852   : > { %7092 = vmatprep.mubr.f32.mxu1 %v15064_v16 }
 0x855   : > { %7093 = vmatmul.mubr.f32.gmra.mxu1 %v9560_v44 }
 0x856   : > { %7098 = vmatprep.mubr.f32.mxu1 %v15064_v16 }
 0x859   : > { %7099 = vmatmul.mubr.f32.gmra.mxu1 %v6823_v24 }
 0x85a   : > { %7104 = vmatprep.mubr.f32.mxu1 %v15064_v16 }
 0x85d   : > { %7105 = vmatmul.mubr.f32.gmra.mxu1 %v9563_v35 }
 0x85e   : > { %7110 = vmatprep.mubr.f32.mxu1 %v15064_v16 }
 0x861   : > { %7111 = vmatmul.mubr.f32.gmra.mxu1 %v6833_v13 }
 0x862   : > { %7116 = vmatprep.mubr.f32.mxu1 %v15064_v16 }
 0x865   : > { %7117 = vmatmul.mubr.f32.gmra.mxu1 %v9566_v58 }
 0x866   : > { %7122 = vmatprep.mubr.f32.mxu1 %v15064_v16 }
 0x869   : > { %7123 = vmatmul.mubr.f32.gmra.mxu1 %v6843_v33 }
 0x86a   : > { %7128 = vmatprep.mubr.f32.mxu1 %v15064_v16 }
 0x86d   : > { %7129 = vmatmul.mubr.f32.gmra.mxu1 %v9569_v4 }
 0x86e   : > { %7134 = vmatprep.mubr.f32.mxu1 %v15064_v16 }
 0x871   : > { %7135 = vmatmul.mubr.f32.gmra.mxu1 %v6853_v55 }
 0x872   : > { %7140 = vmatprep.mubr.f32.mxu1 %v15064_v16 }
 0x875   : > { %7141 = vmatmul.mubr.f32.gmra.mxu1 %v9572_v47 }
 0x876   : > { %7146 = vmatprep.mubr.f32.mxu1 %v15064_v16 }
 0x879   : > { %7147 = vmatmul.mubr.f32.gmra.mxu1 %v6863_v23 }
 0x87a   : > { %7152 = vmatprep.mubr.f32.mxu1 %v15064_v16 }
 0x87d   : > { %7153 = vmatmul.mubr.f32.gmra.mxu1 %v9575_v29 }
 0x87e   : > { %7158 = vmatprep.mubr.f32.mxu1 %v15064_v16 }
 0x881   : > { %7159 = vmatmul.mubr.f32.gmra.mxu1 %v6873_v11 }
 0x882   : > { %7164 = vmatprep.mubr.f32.mxu1 %v15064_v16 }
 0x885   : > { %7165 = vmatmul.mubr.f32.gmra.mxu1 %v9578_v59 }
 0x8c9   : > { %v6980_v16 = vpop.f32.mrf.mxu1 }
 0x8ca   : > { %v7191_v50 = vmul.f32 %v13928_v26, %v6980_v16 }
 0x8cb   : > { %v6982_v30 = vpop.f32.mrf.mxu1 }
 0x8cc   : > { %v7192_v1 = vmul.f32 %v13932_v39, %v6982_v30  ;;  %v7273_v62 = vadd.f32 %v13935_v63, %v7191_v50 }
 0x8cd   : > { %v6986_v15 = vpop.f32.mrf.mxu1 }
 0x8ce   : > { %v7274_v5 = vadd.f32 %v13939_v37, %v7192_v1  ;;  %v7193_v10 = vmul.f32 %v13928_v26, %v6986_v15  ;;  %v7337_v21 = vmax.f32 %v7273_v62, 0.0 }
 0x8cf   : > { %v6988_v56 = vpop.f32.mrf.mxu1 }
 0x8d0   : > { %v7194_v34 = vmul.f32 %v13932_v39, %v6988_v56  ;;  %v7338_v6 = vmax.f32 %v7274_v5, 0.0  ;;  %v7275_v48 = vadd.f32 %v13935_v63, %v7193_v10 }
 0x8d1   : > { %v6992_v0 = vpop.f32.mrf.mxu1 }
 0x8d2   : > { %v7276_v43 = vadd.f32 %v13939_v37, %v7194_v34  ;;  %v7195_v49 = vmul.f32 %v13928_v26, %v6992_v0  ;;  %7850 = vmatprep.mubr.f32.mxu1 %v7338_v6  ;;  %v7339_v45 = vmax.f32 %v7275_v48, 0.0 }
 0x8d3   : > { %v6994_v53 = vpop.f32.mrf.mxu1  ;;  %7851 = vmatmul.mubr.f32.vlgmr.msra.gmra.mxu1 %v7337_v21 }
 0x8d4   : > { %v7196_v28 = vmul.f32 %v13932_v39, %v6994_v53  ;;  %v7340_v51 = vmax.f32 %v7276_v43, 0.0  ;;  %v7277_v27 = vadd.f32 %v13935_v63, %v7195_v49 }
 0x8d5   : > { %v6998_v14 = vpop.f32.mrf.mxu1 }
 0x8d6   : > { %v7278_v60 = vadd.f32 %v13939_v37, %v7196_v28  ;;  %v7197_v54 = vmul.f32 %v13928_v26, %v6998_v14  ;;  %7856 = vmatprep.mubr.f32.mxu1 %v7340_v51  ;;  %v7341_v20 = vmax.f32 %v7277_v27, 0.0 }
 0x8d7   : > { %v7000_v31 = vpop.f32.mrf.mxu1  ;;  %7857 = vmatmul.mubr.f32.gmra.mxu1 %v7339_v45 }
 0x8d8   : > { %v7198_v42 = vmul.f32 %v13932_v39, %v7000_v31  ;;  %v7342_v3 = vmax.f32 %v7278_v60, 0.0  ;;  %v7279_v8 = vadd.f32 %v13935_v63, %v7197_v54 }
 0x8d9   : > { %v7004_v44 = vpop.f32.mrf.mxu1 }
 0x8da   : > { %v7280_v36 = vadd.f32 %v13939_v37, %v7198_v42  ;;  %v7199_v57 = vmul.f32 %v13928_v26, %v7004_v44  ;;  %7862 = vmatprep.mubr.f32.mxu1 %v7342_v3  ;;  %v7343_v38 = vmax.f32 %v7279_v8, 0.0 }
 0x8db   : > { %v7006_v19 = vpop.f32.mrf.mxu1  ;;  %7863 = vmatmul.mubr.f32.gmra.mxu1 %v7341_v20 }
 0x8dc   : > { %v7200_v2 = vmul.f32 %v13932_v39, %v7006_v19  ;;  %v7344_v25 = vmax.f32 %v7280_v36, 0.0  ;;  %v7281_v46 = vadd.f32 %v13935_v63, %v7199_v57 }
 0x8dd   : > { %v7010_v12 = vpop.f32.mrf.mxu1 }
 0x8de   : > { %v7282_v22 = vadd.f32 %v13939_v37, %v7200_v2  ;;  %v7201_v35 = vmul.f32 %v13928_v26, %v7010_v12  ;;  %7868 = vmatprep.mubr.f32.mxu1 %v7344_v25  ;;  %v7345_v4 = vmax.f32 %v7281_v46, 0.0 }
 0x8df   : > { %v7012_v24 = vpop.f32.mrf.mxu1  ;;  %7869 = vmatmul.mubr.f32.gmra.mxu1 %v7343_v38 }
 0x8e0   : > { %v7202_v58 = vmul.f32 %v13932_v39, %v7012_v24  ;;  %v7346_v13 = vmax.f32 %v7282_v22, 0.0  ;;  %v7283_v33 = vadd.f32 %v13935_v63, %v7201_v35 }
 0x8e1   : > { %v7016_v47 = vpop.f32.mrf.mxu1 }
 0x8e2   : > { %v7284_v55 = vadd.f32 %v13939_v37, %v7202_v58  ;;  %v7203_v29 = vmul.f32 %v13928_v26, %v7016_v47  ;;  %7874 = vmatprep.mubr.f32.mxu1 %v7346_v13  ;;  %v7347_v7 = vmax.f32 %v7283_v33, 0.0 }
 0x8e3   : > { %v7018_v23 = vpop.f32.mrf.mxu1  ;;  %7875 = vmatmul.mubr.f32.gmra.mxu1 %v7345_v4 }
 0x8e4   : > { %v7204_v59 = vmul.f32 %v13932_v39, %v7018_v23  ;;  %v7348_v11 = vmax.f32 %v7284_v55, 0.0  ;;  %v7285_v9 = vadd.f32 %v13935_v63, %v7203_v29 }
 0x8e5   : > { %v7022_v41 = vpop.f32.mrf.mxu1 }
 0x8e6   : > { %v7286_v52 = vadd.f32 %v13939_v37, %v7204_v59  ;;  %v7205_v40 = vmul.f32 %v13928_v26, %v7022_v41  ;;  %7880 = vmatprep.mubr.f32.mxu1 %v7348_v11  ;;  %v7349_v1 = vmax.f32 %v7285_v9, 0.0 }
 0x8e7   : > { %v7024_v16 = vpop.f32.mrf.mxu1  ;;  %7881 = vmatmul.mubr.f32.gmra.mxu1 %v7347_v7 }
 0x8e8   : > { %v7206_v50 = vmul.f32 %v13932_v39, %v7024_v16  ;;  %v7350_v30 = vmax.f32 %v7286_v52, 0.0  ;;  %v7287_v62 = vadd.f32 %v13935_v63, %v7205_v40 }
 0x8e9   : > { %v7028_v15 = vpop.f32.mrf.mxu1 }
 0x8ea   : > { %v7288_v5 = vadd.f32 %v13939_v37, %v7206_v50  ;;  %v7207_v10 = vmul.f32 %v13928_v26, %v7028_v15  ;;  %7886 = vmatprep.mubr.f32.mxu1 %v7350_v30  ;;  %v7351_v21 = vmax.f32 %v7287_v62, 0.0 }
 0x8eb   : > { %v7030_v56 = vpop.f32.mrf.mxu1  ;;  %7887 = vmatmul.mubr.f32.gmra.mxu1 %v7349_v1 }
 0x8ec   : > { %v7208_v34 = vmul.f32 %v13932_v39, %v7030_v56  ;;  %v7352_v6 = vmax.f32 %v7288_v5, 0.0  ;;  %v7289_v48 = vadd.f32 %v13935_v63, %v7207_v10 }
 0x8ed   : > { %v7034_v0 = vpop.f32.mrf.mxu1 }
 0x8ee   : > { %v7290_v43 = vadd.f32 %v13939_v37, %v7208_v34  ;;  %v7209_v49 = vmul.f32 %v13928_v26, %v7034_v0  ;;  %7892 = vmatprep.mubr.f32.mxu1 %v7352_v6  ;;  %v7353_v45 = vmax.f32 %v7289_v48, 0.0 }
 0x8ef   : > { %v7036_v53 = vpop.f32.mrf.mxu1  ;;  %7893 = vmatmul.mubr.f32.gmra.mxu1 %v7351_v21 }
 0x8f0   : > { %v7354_v28 = vmax.f32 %v7290_v43, 0.0  ;;  %v7210_v51 = vmul.f32 %v13932_v39, %v7036_v53  ;;  %v7291_v27 = vadd.f32 %v13935_v63, %v7209_v49 }
 0x8f1   : > { %v7040_v14 = vpop.f32.mrf.mxu1 }
 0x8f2   : > { %v7292_v60 = vadd.f32 %v13939_v37, %v7210_v51  ;;  %v7211_v54 = vmul.f32 %v13928_v26, %v7040_v14  ;;  %7898 = vmatprep.mubr.f32.mxu1 %v7354_v28  ;;  %v7355_v20 = vmax.f32 %v7291_v27, 0.0 }
 0x8f3   : > { %v7042_v31 = vpop.f32.mrf.mxu1  ;;  %7899 = vmatmul.mubr.f32.gmra.mxu1 %v7353_v45 }
 0x8f4   : > { %v7356_v42 = vmax.f32 %v7292_v60, 0.0  ;;  %v7212_v3 = vmul.f32 %v13932_v39, %v7042_v31  ;;  %v7293_v8 = vadd.f32 %v13935_v63, %v7211_v54 }
 0x8f5   : > { %v7046_v44 = vpop.f32.mrf.mxu1 }
 0x8f6   : > { %v7294_v36 = vadd.f32 %v13939_v37, %v7212_v3  ;;  %v7213_v57 = vmul.f32 %v13928_v26, %v7046_v44  ;;  %7904 = vmatprep.mubr.f32.mxu1 %v7356_v42  ;;  %v7357_v38 = vmax.f32 %v7293_v8, 0.0 }
 0x8f7   : > { %v7048_v19 = vpop.f32.mrf.mxu1  ;;  %7905 = vmatmul.mubr.f32.gmra.mxu1 %v7355_v20 }
 0x8f8   : > { %v7358_v2 = vmax.f32 %v7294_v36, 0.0  ;;  %v7214_v25 = vmul.f32 %v13932_v39, %v7048_v19  ;;  %v7295_v46 = vadd.f32 %v13935_v63, %v7213_v57 }
 0x8f9   : > { %v7052_v12 = vpop.f32.mrf.mxu1 }
 0x8fa   : > { %v7296_v22 = vadd.f32 %v13939_v37, %v7214_v25  ;;  %v7215_v35 = vmul.f32 %v13928_v26, %v7052_v12  ;;  %7910 = vmatprep.mubr.f32.mxu1 %v7358_v2  ;;  %v7359_v4 = vmax.f32 %v7295_v46, 0.0 }
 0x8fb   : > { %v7054_v24 = vpop.f32.mrf.mxu1  ;;  %7911 = vmatmul.mubr.f32.gmra.mxu1 %v7357_v38  ;;  %v14014_v38 = vpop.f32.mrf.mxu0 }
 0x8fc   : > { %v7360_v58 = vmax.f32 %v7296_v22, 0.0  ;;  %v7216_v13 = vmul.f32 %v13932_v39, %v7054_v24  ;;  %v7297_v33 = vadd.f32 %v13935_v63, %v7215_v35 }
 0x8fd   : > { %v7058_v47 = vpop.f32.mrf.mxu1 }
 0x8fe   : > { %v7298_v55 = vadd.f32 %v13939_v37, %v7216_v13  ;;  %v7217_v29 = vmul.f32 %v13928_v26, %v7058_v47  ;;  %7916 = vmatprep.mubr.f32.mxu1 %v7360_v58  ;;  %v7361_v7 = vmax.f32 %v7297_v33, 0.0  ;;  %v14020_v33 = vpop.f32.mrf.mxu0 }
 0x8ff   : > { %v7060_v23 = vpop.f32.mrf.mxu1  ;;  %7917 = vmatmul.mubr.f32.gmra.mxu1 %v7359_v4 }
 0x900   : > { %v7362_v59 = vmax.f32 %v7298_v55, 0.0  ;;  %v7218_v11 = vmul.f32 %v13932_v39, %v7060_v23  ;;  %v7299_v9 = vadd.f32 %v13935_v63, %v7217_v29 }
 0x901   : > { %v7064_v41 = vpop.f32.mrf.mxu1 }
 0x902   : > { %v7300_v52 = vadd.f32 %v13939_v37, %v7218_v11  ;;  %v7219_v40 = vmul.f32 %v13928_v26, %v7064_v41  ;;  %7922 = vmatprep.mubr.f32.mxu1 %v7362_v59  ;;  %v7363_v1 = vmax.f32 %v7299_v9, 0.0  ;;  %v14026_v41 = vpop.f32.mrf.mxu0 }
 0x903   : > { %v7066_v16 = vpop.f32.mrf.mxu1  ;;  %7923 = vmatmul.mubr.f32.gmra.mxu1 %v7361_v7 }
 0x904   : > { %v7364_v50 = vmax.f32 %v7300_v52, 0.0  ;;  %v7220_v30 = vmul.f32 %v13932_v39, %v7066_v16  ;;  %v7301_v62 = vadd.f32 %v13935_v63, %v7219_v40 }
 0x905   : > { %v7070_v15 = vpop.f32.mrf.mxu1 }
 0x906   : > { %v7302_v5 = vadd.f32 %v13939_v37, %v7220_v30  ;;  %v7221_v10 = vmul.f32 %v13928_v26, %v7070_v15  ;;  %7928 = vmatprep.mubr.f32.mxu1 %v7364_v50  ;;  %v7365_v21 = vmax.f32 %v7301_v62, 0.0 }
 0x907   : > { %v7072_v56 = vpop.f32.mrf.mxu1  ;;  %7929 = vmatmul.mubr.f32.gmra.mxu1 %v7363_v1 }
 0x908   : > { %v7366_v34 = vmax.f32 %v7302_v5, 0.0  ;;  %v7222_v6 = vmul.f32 %v13932_v39, %v7072_v56  ;;  %v7303_v48 = vadd.f32 %v13935_v63, %v7221_v10  ;;  %v14032_v5 = vpop.f32.mrf.mxu0 }
 0x909   : > { %v7076_v0 = vpop.f32.mrf.mxu1 }
 0x90a   : > { %v7304_v43 = vadd.f32 %v13939_v37, %v7222_v6  ;;  %v7223_v49 = vmul.f32 %v13928_v26, %v7076_v0  ;;  %7934 = vmatprep.mubr.f32.mxu1 %v7366_v34  ;;  %v7367_v45 = vmax.f32 %v7303_v48, 0.0 }
 0x90b   : > { %v7078_v53 = vpop.f32.mrf.mxu1  ;;  %7935 = vmatmul.mubr.f32.gmra.mxu1 %v7365_v21 }
 0x90c   : > { %v7368_v28 = vmax.f32 %v7304_v43, 0.0  ;;  %v7224_v51 = vmul.f32 %v13932_v39, %v7078_v53  ;;  %v7305_v27 = vadd.f32 %v13935_v63, %v7223_v49  ;;  %v14038_v49 = vpop.f32.mrf.mxu0 }
 0x90d   : > { %v7082_v14 = vpop.f32.mrf.mxu1 }
 0x90e   : > { %v7306_v60 = vadd.f32 %v13939_v37, %v7224_v51  ;;  %v7225_v54 = vmul.f32 %v13928_v26, %v7082_v14  ;;  %7940 = vmatprep.mubr.f32.mxu1 %v7368_v28  ;;  %v7369_v20 = vmax.f32 %v7305_v27, 0.0 }
 0x90f   : > { %v7084_v31 = vpop.f32.mrf.mxu1  ;;  %7941 = vmatmul.mubr.f32.gmra.mxu1 %v7367_v45 }
 0x910   : > { %v7370_v42 = vmax.f32 %v7306_v60, 0.0  ;;  %v7226_v3 = vmul.f32 %v13932_v39, %v7084_v31  ;;  %v7307_v8 = vadd.f32 %v13935_v63, %v7225_v54  ;;  %v14044_v31 = vpop.f32.mrf.mxu0 }
 0x911   : > { %v7088_v44 = vpop.f32.mrf.mxu1 }
 0x912   : > { %v7308_v36 = vadd.f32 %v13939_v37, %v7226_v3  ;;  %v7227_v57 = vmul.f32 %v13928_v26, %v7088_v44  ;;  %7946 = vmatprep.mubr.f32.mxu1 %v7370_v42  ;;  %v7371_v46 = vmax.f32 %v7307_v8, 0.0 }
 0x913   : > { %v7090_v19 = vpop.f32.mrf.mxu1  ;;  %7947 = vmatmul.mubr.f32.gmra.mxu1 %v7369_v20 }
 0x914   : > { %v7372_v2 = vmax.f32 %v7308_v36, 0.0  ;;  %v7228_v25 = vmul.f32 %v13932_v39, %v7090_v19  ;;  %v7309_v12 = vadd.f32 %v13935_v63, %v7227_v57 }
 0x915   : > { %v7094_v22 = vpop.f32.mrf.mxu1 }
 0x916   : > { %v7310_v35 = vadd.f32 %v13939_v37, %v7228_v25  ;;  %v7229_v24 = vmul.f32 %v13928_v26, %v7094_v22  ;;  %7952 = vmatprep.mubr.f32.mxu1 %v7372_v2  ;;  %v7373_v47 = vmax.f32 %v7309_v12, 0.0  ;;  %v14050_v2 = vpop.f32.mrf.mxu0 }
 0x917   : > { %v7096_v58 = vpop.f32.mrf.mxu1  ;;  %7953 = vmatmul.mubr.f32.gmra.mxu1 %v7371_v46 }
 0x918   : > { %v7374_v13 = vmax.f32 %v7310_v35, 0.0  ;;  %v7230_v4 = vmul.f32 %v13932_v39, %v7096_v58  ;;  %v7311_v55 = vadd.f32 %v13935_v63, %v7229_v24 }
 0x919   : > { %v7100_v29 = vpop.f32.mrf.mxu1 }
 0x91a   : > { %v7312_v23 = vadd.f32 %v13939_v37, %v7230_v4  ;;  %v7231_v59 = vmul.f32 %v13928_v26, %v7100_v29  ;;  %7958 = vmatprep.mubr.f32.mxu1 %v7374_v13  ;;  %v7375_v52 = vmax.f32 %v7311_v55, 0.0  ;;  %v14056_v4 = vpop.f32.mrf.mxu0 }
 0x91b   : > { %v7102_v11 = vpop.f32.mrf.mxu1  ;;  %7959 = vmatmul.mubr.f32.gmra.mxu1 %v7373_v47 }
 0x91c   : > { %v7376_v7 = vmax.f32 %v7312_v23, 0.0  ;;  %v7232_v9 = vmul.f32 %v13932_v39, %v7102_v11  ;;  %v7313_v40 = vadd.f32 %v13935_v63, %v7231_v59 }
 0x91d   : > { %v7106_v16 = vpop.f32.mrf.mxu1 }
 0x91e   : > { %v7314_v50 = vadd.f32 %v13939_v37, %v7232_v9  ;;  %v7233_v30 = vmul.f32 %v13928_v26, %v7106_v16  ;;  %7964 = vmatprep.mubr.f32.mxu1 %v7376_v7  ;;  %v7377_v10 = vmax.f32 %v7313_v40, 0.0 }
 0x91f   : > { %v7108_v1 = vpop.f32.mrf.mxu1  ;;  %7965 = vmatmul.mubr.f32.gmra.mxu1 %v7375_v52  ;;  %v14062_v52 = vpop.f32.mrf.mxu0 }
 0x920   : > { %v7378_v62 = vmax.f32 %v7314_v50, 0.0  ;;  %v7234_v15 = vmul.f32 %v13932_v39, %v7108_v1  ;;  %v7315_v56 = vadd.f32 %v13935_v63, %v7233_v30 }
 0x921   : > { %v7112_v34 = vpop.f32.mrf.mxu1 }
 0x922   : > { %v7316_v6 = vadd.f32 %v13939_v37, %v7234_v15  ;;  %v7235_v21 = vmul.f32 %v13928_v26, %v7112_v34  ;;  %7970 = vmatprep.mubr.f32.mxu1 %v7378_v62  ;;  %v7379_v53 = vmax.f32 %v7315_v56, 0.0  ;;  %v14068_v56 = vpop.f32.mrf.mxu0 }
 0x923   : > { %v7114_v48 = vpop.f32.mrf.mxu1  ;;  %7971 = vmatmul.mubr.f32.gmra.mxu1 %v7377_v10 }
 0x924   : > { %v7380_v0 = vmax.f32 %v7316_v6, 0.0  ;;  %v7236_v43 = vmul.f32 %v13932_v39, %v7114_v48  ;;  %v7317_v28 = vadd.f32 %v13935_v63, %v7235_v21 }
 0x925   : > { %v7118_v51 = vpop.f32.mrf.mxu1 }
 0x926   : > { %v7318_v45 = vadd.f32 %v13939_v37, %v7236_v43  ;;  %v7237_v27 = vmul.f32 %v13928_v26, %v7118_v51  ;;  %7976 = vmatprep.mubr.f32.mxu1 %v7380_v0  ;;  %v7381_v42 = vmax.f32 %v7317_v28, 0.0  ;;  %v14074_v51 = vpop.f32.mrf.mxu0 }
 0x927   : > { %v7120_v14 = vpop.f32.mrf.mxu1  ;;  %7977 = vmatmul.mubr.f32.gmra.mxu1 %v7379_v53 }
 0x928   : > { %v7382_v60 = vmax.f32 %v7318_v45, 0.0  ;;  %v7238_v54 = vmul.f32 %v13932_v39, %v7120_v14  ;;  %v7319_v3 = vadd.f32 %v13935_v63, %v7237_v27 }
 0x929   : > { %v7124_v20 = vpop.f32.mrf.mxu1 }
 0x92a   : > { %v7320_v8 = vadd.f32 %v13939_v37, %v7238_v54  ;;  %v7239_v44 = vmul.f32 %v13928_v26, %v7124_v20  ;;  %7982 = vmatprep.mubr.f32.mxu1 %v7382_v60  ;;  %v7383_v25 = vmax.f32 %v7319_v3, 0.0 }
 0x92b   : > { %v7126_v36 = vpop.f32.mrf.mxu1  ;;  %7983 = vmatmul.mubr.f32.gmra.mxu1 %v7381_v42 }
 0x92c   : > { %v7384_v57 = vmax.f32 %v7320_v8, 0.0  ;;  %v7240_v19 = vmul.f32 %v13932_v39, %v7126_v36  ;;  %v7321_v46 = vadd.f32 %v13935_v63, %v7239_v44  ;;  %v14080_v8 = vpop.f32.mrf.mxu0 }
 0x92d   : > { %v7130_v12 = vpop.f32.mrf.mxu1 }
 0x92e   : > { %v7322_v22 = vadd.f32 %v13939_v37, %v7240_v19  ;;  %v7241_v35 = vmul.f32 %v13928_v26, %v7130_v12  ;;  %7988 = vmatprep.mubr.f32.mxu1 %v7384_v57  ;;  %v7385_v47 = vmax.f32 %v7321_v46, 0.0 }
 0x92f   : > { %v7132_v24 = vpop.f32.mrf.mxu1  ;;  %7989 = vmatmul.mubr.f32.gmra.mxu1 %v7383_v25 }
 0x930   : > { %v7386_v58 = vmax.f32 %v7322_v22, 0.0  ;;  %v7242_v13 = vmul.f32 %v13932_v39, %v7132_v24  ;;  %v7323_v55 = vadd.f32 %v13935_v63, %v7241_v35  ;;  %v14086_v35 = vpop.f32.mrf.mxu0 }
 0x931   : > { %v7136_v29 = vpop.f32.mrf.mxu1 }
 0x932   : > { %v7324_v23 = vadd.f32 %v13939_v37, %v7242_v13  ;;  %v7243_v59 = vmul.f32 %v13928_v26, %v7136_v29  ;;  %7994 = vmatprep.mubr.f32.mxu1 %v7386_v58  ;;  %v7387_v40 = vmax.f32 %v7323_v55, 0.0 }
 0x933   : > { %v7138_v11 = vpop.f32.mrf.mxu1  ;;  %7995 = vmatmul.mubr.f32.gmra.mxu1 %v7385_v47 }
 0x934   : > { %v7388_v7 = vmax.f32 %v7324_v23, 0.0  ;;  %v7244_v9 = vmul.f32 %v13932_v39, %v7138_v11  ;;  %v7325_v16 = vadd.f32 %v13935_v63, %v7243_v59  ;;  %v14092_v11 = vpop.f32.mrf.mxu0 }
 0x935   : > { %v7142_v50 = vpop.f32.mrf.mxu1 }
 0x936   : > { %v7326_v30 = vadd.f32 %v13939_v37, %v7244_v9  ;;  %v7245_v1 = vmul.f32 %v13928_v26, %v7142_v50  ;;  %8000 = vmatprep.mubr.f32.mxu1 %v7388_v7  ;;  %v7389_v34 = vmax.f32 %v7325_v16, 0.0  ;;  %v14096_v50 = vpop.f32.mrf.mxu0 }
 0x937   : > { %v7144_v62 = vpop.f32.mrf.mxu1  ;;  %8001 = vmatmul.mubr.f32.gmra.mxu1 %v7387_v40 }
 0x938   : > { %v7390_v15 = vmax.f32 %v7326_v30, 0.0  ;;  %v7246_v10 = vmul.f32 %v13932_v39, %v7144_v62  ;;  %v7327_v6 = vadd.f32 %v13935_v63, %v7245_v1 }
 0x939   : > { %v7148_v21 = vpop.f32.mrf.mxu1 }
 0x93a   : > { %v7328_v48 = vadd.f32 %v13939_v37, %v7246_v10  ;;  %v7247_v0 = vmul.f32 %v13928_v26, %v7148_v21  ;;  %8006 = vmatprep.mubr.f32.mxu1 %v7390_v15  ;;  %v7391_v45 = vmax.f32 %v7327_v6, 0.0 }
 0x93b   : > { %v7150_v43 = vpop.f32.mrf.mxu1  ;;  %8007 = vmatmul.mubr.f32.gmra.mxu1 %v7389_v34 }
 0x93c   : > { %v7392_v53 = vmax.f32 %v7328_v48, 0.0  ;;  %v7248_v28 = vmul.f32 %v13932_v39, %v7150_v43  ;;  %v7329_v27 = vadd.f32 %v13935_v63, %v7247_v0 }
 0x93d   : > { %v7154_v14 = vpop.f32.mrf.mxu1 }
 0x93e   : > { %v7330_v60 = vadd.f32 %v13939_v37, %v7248_v28  ;;  %v7249_v54 = vmul.f32 %v13928_v26, %v7154_v14  ;;  %8012 = vmatprep.mubr.f32.mxu1 %v7392_v53  ;;  %v7393_v44 = vmax.f32 %v7329_v27, 0.0  ;;  %v8043_v28 = vld [vmem:[%s14518_s18] sm:$0xf] }
 0x93f   : > { %v7156_v42 = vpop.f32.mrf.mxu1  ;;  %8013 = vmatmul.mubr.f32.gmra.mxu1 %v7391_v45  ;;  %v8048_v27 = vrot.slane %v8043_v28, %v15062_v18  ;;  %v8052_v14 = vrot.slane %v8043_v28, %v15117_v32 }
 0x940   : > { %v7394_v3 = vmax.f32 %v7330_v60, 0.0  ;;  %v7250_v20 = vmul.f32 %v13932_v39, %v7156_v42  ;;  %v7331_v36 = vadd.f32 %v13935_v63, %v7249_v54  ;;  %v8130_v60 = vrot.slane %v8043_v28, %v15063_v17 }
 0x941   : > { %v7160_v57 = vpop.f32.mrf.mxu1  ;;  %v8134_v42 = vrot.slane %v8043_v28, %v15118_v61 }
 0x942   : > { %v7332_v19 = vadd.f32 %v13939_v37, %v7250_v20  ;;  %v7251_v25 = vmul.f32 %v13928_v26, %v7160_v57  ;;  %8018 = vmatprep.mubr.f32.mxu1 %v7394_v3  ;;  %v7395_v24 = vmax.f32 %v7331_v36, 0.0  ;;  %v14140_v3 = vrot.slane %v8048_v27, %v15062_v18 }
 0x943   : > { %v7162_v46 = vpop.f32.mrf.mxu1  ;;  %8019 = vmatmul.mubr.f32.gmra.mxu1 %v7393_v44  ;;  %v14145_v36 = vrot.slane %v8130_v60, %v15063_v17  ;;  %v14148_v57 = vrot.slane %v8052_v14, %v15062_v18 }
 0x944   : > { %v7396_v12 = vmax.f32 %v7332_v19, 0.0  ;;  %v7252_v22 = vmul.f32 %v13932_v39, %v7162_v46  ;;  %v7333_v58 = vadd.f32 %v13935_v63, %v7251_v25  ;;  %v14157_v46 = vrot.slane %v8134_v42, %v15063_v17 }
 0x945   : > { %v7166_v13 = vpop.f32.mrf.mxu1 }
 0x946   : > { %v7334_v47 = vadd.f32 %v13939_v37, %v7252_v22  ;;  %v7253_v55 = vmul.f32 %v13928_v26, %v7166_v13  ;;  %8024 = vmatprep.mubr.f32.mxu1 %v7396_v12  ;;  %v7397_v7 = vmax.f32 %v7333_v58, 0.0  ;;  %v14098_v26 = vpop.f32.mrf.mxu0 }
 0x947   : > { %v7168_v29 = vpop.f32.mrf.mxu1  ;;  %8025 = vmatmul.mubr.f32.gmra.mxu1 %v7395_v24 }
 0x948   : > { %v7398_v23 = vmax.f32 %v7334_v47, 0.0  ;;  %v7254_v59 = vmul.f32 %v13932_v39, %v7168_v29  ;;  %v7335_v9 = vadd.f32 %v13935_v63, %v7253_v55  ;;  %v14100_v1 = vpop.f32.mrf.mxu0 }
 0x94a   : > { %v7336_v40 = vadd.f32 %v13939_v37, %v7254_v59  ;;  %8030 = vmatprep.mubr.f32.mxu1 %v7398_v23  ;;  %v7399_v30 = vmax.f32 %v7335_v9, 0.0  ;;  %v14102_v39 = vpop.f32.mrf.mxu0 }
 0x94b   : > { %8031 = vmatmul.mubr.f32.gmra.mxu1 %v7397_v7 }
 0x94c   : > { %v7400_v16 = vmax.f32 %v7336_v40, 0.0  ;;  %v14104_v62 = vpop.f32.mrf.mxu0 }
 0x94e   : > { %8036 = vmatprep.mubr.f32.mxu1 %v7400_v16  ;;  %v14106_v15 = vpop.f32.mrf.mxu0 }
 0x94f   : > { %8037 = vmatmul.mubr.f32.gmra.mxu1 %v7399_v30 }
 0x950   : > { %v14108_v63 = vpop.f32.mrf.mxu0 }
 0x952   : > { %v14110_v37 = vpop.f32.mrf.mxu0 }
 0x954   : > { %v14112_v10 = vpop.f32.mrf.mxu0 }
 0x956   : > { %v14114_v34 = vpop.f32.mrf.mxu0 }
 0x958   : > { %v14116_v6 = vpop.f32.mrf.mxu0 }
 0x95a   : > { %v14118_v21 = vpop.f32.mrf.mxu0 }
 0x95c   : > { %v14120_v48 = vpop.f32.mrf.mxu0 }
 0x95e   : > { %v14122_v0 = vpop.f32.mrf.mxu0 }
 0x960   : > { %v14124_v43 = vpop.f32.mrf.mxu0 }
 0x962   : > { %v14126_v53 = vpop.f32.mrf.mxu0 }
 0x964   : > { %v14131_v45 = vpop.f32.mrf.mxu0 }
 0x966   : > { %v14136_v54 = vpop.f32.mrf.mxu0 }
 0x968   : > { %v14150_v32 = vpop.f32.mrf.mxu0 }
 0x96a   : > { %v14162_v24 = vpop.f32.mrf.mxu0 }
 0x96c   : > { %v14173_v7 = vpop.f32.mrf.mxu0 }
 0x96e   : > { %v14183_v42 = vpop.f32.mrf.mxu0 }
 0x993   : > { %v7852_v20 = vpop.f32.mrf.mxu1 }
 0x994   : > { %v7853_v44 = vadd.f32 %v7852_v20, %v14014_v38 }
 0x995   : > { %v7854_v19 = vpop.f32.mrf.mxu1 }
 0x996   : > { %v8063_v61 = vmul.f32 %v14140_v3, %v7853_v44  ;;  %v7855_v25 = vadd.f32 %v7854_v19, %v14020_v33 }
 0x997   : > { %v7858_v12 = vpop.f32.mrf.mxu1 }
 0x998   : > { %v8145_v38 = vadd.f32 %v14145_v36, %v8063_v61  ;;  %v8064_v22 = vmul.f32 %v14148_v57, %v7855_v25  ;;  %v7859_v18 = vadd.f32 %v7858_v12, %v14026_v41 }
 0x999   : > { %v7860_v58 = vpop.f32.mrf.mxu1 }
 0x99a   : > { %v8209_v13 = vmax.f32 %v8145_v38, 0.0  ;;  %v8146_v47 = vadd.f32 %v14157_v46, %v8064_v22  ;;  %v8065_v55 = vmul.f32 %v14140_v3, %v7859_v18  ;;  %v7861_v33 = vadd.f32 %v7860_v58, %v14032_v5  ;;  %v14193_v18 = vpop.f32.mrf.mxu0 }
 0x99b   : > { %v7864_v29 = vpop.f32.mrf.mxu1 }
 0x99c   : > { %8273 = vst [vmem:[%s14167_s2] sm:$0xff] %v8209_v13  ;;  %v8210_v17 = vmax.f32 %v8146_v47, 0.0  ;;  %v8147_v41 = vadd.f32 %v14145_v36, %v8065_v55  ;;  %v8066_v23 = vmul.f32 %v14148_v57, %v7861_v33  ;;  %v7865_v59 = vadd.f32 %v7864_v29, %v14038_v49 }
 0x99d   : > { %v7866_v9 = vpop.f32.mrf.mxu1 }
 0x99e   : > { %8274 = vst [vmem:[%s14167_s2 + $0x8] sm:$0xff] %v8210_v17  ;;  %v8211_v5 = vmax.f32 %v8147_v41, 0.0  ;;  %v8148_v40 = vadd.f32 %v14157_v46, %v8066_v23  ;;  %v8067_v16 = vmul.f32 %v14140_v3, %v7865_v59  ;;  %v7867_v30 = vadd.f32 %v7866_v9, %v14044_v31  ;;  %v14203_v23 = vpop.f32.mrf.mxu0 }
 0x99f   : > { %v7870_v28 = vpop.f32.mrf.mxu1 }
 0x9a0   : > { %8275 = vst [vmem:[%s14167_s2 + $0x10] sm:$0xff] %v8211_v5  ;;  %v8212_v27 = vmax.f32 %v8148_v40, 0.0  ;;  %v8149_v14 = vadd.f32 %v14145_v36, %v8067_v16  ;;  %v8068_v49 = vmul.f32 %v14148_v57, %v7867_v30  ;;  %v7871_v60 = vadd.f32 %v7870_v28, %v14050_v2 }
 0x9a1   : > { %v7872_v20 = vpop.f32.mrf.mxu1 }
 0x9a2   : > { %8276 = vst [vmem:[%s14167_s2 + $0x18] sm:$0xff] %v8212_v27  ;;  %v8213_v44 = vmax.f32 %v8149_v14, 0.0  ;;  %v8150_v19 = vadd.f32 %v14157_v46, %v8068_v49  ;;  %v8069_v61 = vmul.f32 %v14140_v3, %v7871_v60  ;;  %v7873_v31 = vadd.f32 %v7872_v20, %v14056_v4  ;;  %v14213_v14 = vpop.f32.mrf.mxu0 }
 0x9a3   : > { %v7876_v25 = vpop.f32.mrf.mxu1 }
 0x9a4   : > { %8277 = vst [vmem:[%s14167_s2 + $0x20] sm:$0xff] %v8213_v44  ;;  %v8214_v12 = vmax.f32 %v8150_v19, 0.0  ;;  %v8151_v38 = vadd.f32 %v14145_v36, %v8069_v61  ;;  %v8070_v2 = vmul.f32 %v14148_v57, %v7873_v31  ;;  %v7877_v22 = vadd.f32 %v7876_v25, %v14062_v52 }
 0x9a5   : > { %v7878_v58 = vpop.f32.mrf.mxu1 }
 0x9a6   : > { %8278 = vst [vmem:[%s14167_s2 + $0x28] sm:$0xff] %v8214_v12  ;;  %v8215_v13 = vmax.f32 %v8151_v38, 0.0  ;;  %v8152_v47 = vadd.f32 %v14157_v46, %v8070_v2  ;;  %v8071_v55 = vmul.f32 %v14140_v3, %v7877_v22  ;;  %v7879_v4 = vadd.f32 %v7878_v58, %v14068_v56  ;;  %v14223_v12 = vpop.f32.mrf.mxu0 }
 0x9a7   : > { %v7882_v33 = vpop.f32.mrf.mxu1 }
 0x9a8   : > { %8279 = vst [vmem:[%s14167_s2 + $0x30] sm:$0xff] %v8215_v13  ;;  %v8216_v29 = vmax.f32 %v8152_v47, 0.0  ;;  %v8153_v17 = vadd.f32 %v14145_v36, %v8071_v55  ;;  %v8072_v52 = vmul.f32 %v14148_v57, %v7879_v4  ;;  %v7883_v41 = vadd.f32 %v7882_v33, %v14074_v51  ;;  %v14233_v33 = vpop.f32.mrf.mxu0 }
 0x9a9   : > { %v7884_v59 = vpop.f32.mrf.mxu1 }
 0x9aa   : > { %8280 = vst [vmem:[%s14167_s2 + $0x38] sm:$0xff] %v8216_v29  ;;  %v8217_v9 = vmax.f32 %v8153_v17, 0.0  ;;  %v8154_v5 = vadd.f32 %v14157_v46, %v8072_v52  ;;  %v8073_v40 = vmul.f32 %v14140_v3, %v7883_v41  ;;  %v7885_v56 = vadd.f32 %v7884_v59, %v14080_v8 }
 0x9ab   : > { %v7888_v16 = vpop.f32.mrf.mxu1 }
 0x9ac   : > { %8281 = vst [vmem:[%s14167_s2 + $0x40] sm:$0xff] %v8217_v9  ;;  %v8218_v30 = vmax.f32 %v8154_v5, 0.0  ;;  %v8155_v28 = vadd.f32 %v14145_v36, %v8073_v40  ;;  %v8074_v51 = vmul.f32 %v14148_v57, %v7885_v56  ;;  %v7889_v27 = vadd.f32 %v7888_v16, %v14086_v35  ;;  %v14243_v56 = vpop.f32.mrf.mxu0 }
 0x9ad   : > { %v7890_v49 = vpop.f32.mrf.mxu1 }
 0x9ae   : > { %8282 = vst [vmem:[%s14167_s2 + $0x48] sm:$0xff] %v8218_v30  ;;  %v8219_v60 = vmax.f32 %v8155_v28, 0.0  ;;  %v8156_v20 = vadd.f32 %v14157_v46, %v8074_v51  ;;  %v8075_v44 = vmul.f32 %v14140_v3, %v7889_v27  ;;  %v7891_v8 = vadd.f32 %v7890_v49, %v14092_v11 }
 0x9af   : > { %v7894_v19 = vpop.f32.mrf.mxu1 }
 0x9b0   : > { %8283 = vst [vmem:[%s14167_s2 + $0x50] sm:$0xff] %v8219_v60  ;;  %v8220_v61 = vmax.f32 %v8156_v20, 0.0  ;;  %v8157_v31 = vadd.f32 %v14145_v36, %v8075_v44  ;;  %v8076_v35 = vmul.f32 %v14148_v57, %v7891_v8  ;;  %v7895_v25 = vadd.f32 %v7894_v19, %v14096_v50  ;;  %v14253_v44 = vpop.f32.mrf.mxu0 }
 0x9b1   : > { %v7896_v38 = vpop.f32.mrf.mxu1 }
 0x9b2   : > { %8284 = vst [vmem:[%s14167_s2 + $0x58] sm:$0xff] %v8220_v61  ;;  %v8221_v2 = vmax.f32 %v8157_v31, 0.0  ;;  %v8158_v22 = vadd.f32 %v14157_v46, %v8076_v35  ;;  %v8077_v58 = vmul.f32 %v14140_v3, %v7895_v25  ;;  %v7897_v11 = vadd.f32 %v7896_v38, %v14098_v26 }
 0x9b3   : > { %v7900_v13 = vpop.f32.mrf.mxu1 }
 0x9b4   : > { %8285 = vst [vmem:[%s14167_s2 + $0x60] sm:$0xff] %v8221_v2  ;;  %v8222_v47 = vmax.f32 %v8158_v22, 0.0  ;;  %v8159_v55 = vadd.f32 %v14145_v36, %v8077_v58  ;;  %v8078_v50 = vmul.f32 %v14148_v57, %v7897_v11  ;;  %v7901_v4 = vadd.f32 %v7900_v13, %v14100_v1  ;;  %v14263_v22 = vpop.f32.mrf.mxu0 }
 0x9b5   : > { %v7902_v29 = vpop.f32.mrf.mxu1 }
 0x9b6   : > { %8286 = vst [vmem:[%s14167_s2 + $0x68] sm:$0xff] %v8222_v47  ;;  %v8223_v17 = vmax.f32 %v8159_v55, 0.0  ;;  %v8160_v52 = vadd.f32 %v14157_v46, %v8078_v50  ;;  %v8079_v41 = vmul.f32 %v14140_v3, %v7901_v4  ;;  %v7903_v26 = vadd.f32 %v7902_v29, %v14102_v39 }
 0x9b7   : > { %v7906_v59 = vpop.f32.mrf.mxu1 }
 0x9b8   : > { %8287 = vst [vmem:[%s14167_s2 + $0x70] sm:$0xff] %v8223_v17  ;;  %v8224_v9 = vmax.f32 %v8160_v52, 0.0  ;;  %v8161_v5 = vadd.f32 %v14145_v36, %v8079_v41  ;;  %v8080_v1 = vmul.f32 %v14148_v57, %v7903_v26  ;;  %v7907_v40 = vadd.f32 %v7906_v59, %v14104_v62  ;;  %v14273_v17 = vpop.f32.mrf.mxu0 }
 0x9b9   : > { %v7908_v16 = vpop.f32.mrf.mxu1 }
 0x9ba   : > { %8288 = vst [vmem:[%s14167_s2 + $0x78] sm:$0xff] %v8224_v9  ;;  %v8225_v30 = vmax.f32 %v8161_v5, 0.0  ;;  %v8162_v28 = vadd.f32 %v14157_v46, %v8080_v1  ;;  %v8081_v51 = vmul.f32 %v14140_v3, %v7907_v40  ;;  %v7909_v39 = vadd.f32 %v7908_v16, %v14106_v15  ;;  %v14283_v16 = vpop.f32.mrf.mxu0 }
 0x9bb   : > { %v7912_v27 = vpop.f32.mrf.mxu1 }
 0x9bc   : > { %8289 = vst [vmem:[%s14167_s2 + $0x80] sm:$0xff] %v8225_v30  ;;  %v8226_v49 = vmax.f32 %v8162_v28, 0.0  ;;  %v8163_v60 = vadd.f32 %v14145_v36, %v8081_v51  ;;  %v8082_v62 = vmul.f32 %v14148_v57, %v7909_v39  ;;  %v7913_v20 = vadd.f32 %v7912_v27, %v14108_v63 }
 0x9bd   : > { %v7914_v8 = vpop.f32.mrf.mxu1 }
 0x9be   : > { %8290 = vst [vmem:[%s14167_s2 + $0x88] sm:$0xff] %v8226_v49  ;;  %v8227_v19 = vmax.f32 %v8163_v60, 0.0  ;;  %v8164_v61 = vadd.f32 %v14157_v46, %v8082_v62  ;;  %v8083_v31 = vmul.f32 %v14140_v3, %v7913_v20  ;;  %v7915_v15 = vadd.f32 %v7914_v8, %v14110_v37  ;;  %v14293_v20 = vpop.f32.mrf.mxu0 }
 0x9bf   : > { %v7918_v35 = vpop.f32.mrf.mxu1 }
 0x9c0   : > { %8291 = vst [vmem:[%s14167_s2 + $0x90] sm:$0xff] %v8227_v19  ;;  %v8228_v25 = vmax.f32 %v8164_v61, 0.0  ;;  %v8165_v38 = vadd.f32 %v14145_v36, %v8083_v31  ;;  %v8084_v63 = vmul.f32 %v14148_v57, %v7915_v15  ;;  %v7919_v2 = vadd.f32 %v7918_v35, %v14112_v10 }
 0x9c1   : > { %v7920_v58 = vpop.f32.mrf.mxu1 }
 0x9c2   : > { %8292 = vst [vmem:[%s14167_s2 + $0x98] sm:$0xff] %v8228_v25  ;;  %v8229_v11 = vmax.f32 %v8165_v38, 0.0  ;;  %v8166_v13 = vadd.f32 %v14157_v46, %v8084_v63  ;;  %v8085_v47 = vmul.f32 %v14140_v3, %v7919_v2  ;;  %v7921_v37 = vadd.f32 %v7920_v58, %v14114_v34  ;;  %v14303_v63 = vpop.f32.mrf.mxu0 }
 0x9c3   : > { %v7924_v55 = vpop.f32.mrf.mxu1 }
 0x9c4   : > { %8293 = vst [vmem:[%s14167_s2 + $0xa0] sm:$0xff] %v8229_v11  ;;  %v8230_v50 = vmax.f32 %v8166_v13, 0.0  ;;  %v8167_v4 = vadd.f32 %v14145_v36, %v8085_v47  ;;  %v8086_v10 = vmul.f32 %v14148_v57, %v7921_v37  ;;  %v7925_v29 = vadd.f32 %v7924_v55, %v14116_v6 }
 0x9c5   : > { %v7926_v52 = vpop.f32.mrf.mxu1 }
 0x9c6   : > { %8294 = vst [vmem:[%s14167_s2 + $0xa8] sm:$0xff] %v8230_v50  ;;  %v8231_v41 = vmax.f32 %v8167_v4, 0.0  ;;  %v8168_v26 = vadd.f32 %v14157_v46, %v8086_v10  ;;  %v8087_v59 = vmul.f32 %v14140_v3, %v7925_v29  ;;  %v7927_v34 = vadd.f32 %v7926_v52, %v14118_v21  ;;  %v14313_v4 = vpop.f32.mrf.mxu0 }
 0x9c7   : > { %v7930_v9 = vpop.f32.mrf.mxu1 }
 0x9c8   : > { %8295 = vst [vmem:[%s14167_s2 + $0xb0] sm:$0xff] %v8231_v41  ;;  %v8232_v5 = vmax.f32 %v8168_v26, 0.0  ;;  %v8169_v1 = vadd.f32 %v14145_v36, %v8087_v59  ;;  %v8088_v6 = vmul.f32 %v14148_v57, %v7927_v34  ;;  %v7931_v40 = vadd.f32 %v7930_v9, %v14120_v48 }
 0x9c9   : > { %v7932_v30 = vpop.f32.mrf.mxu1 }
 0x9ca   : > { %8296 = vst [vmem:[%s14167_s2 + $0xb8] sm:$0xff] %v8232_v5  ;;  %v8233_v28 = vmax.f32 %v8169_v1, 0.0  ;;  %v8170_v51 = vadd.f32 %v14157_v46, %v8088_v6  ;;  %v8089_v39 = vmul.f32 %v14140_v3, %v7931_v40  ;;  %v7933_v21 = vadd.f32 %v7932_v30, %v14122_v0  ;;  %v14323_v5 = vpop.f32.mrf.mxu0 }
 0x9cb   : > { %v7936_v27 = vpop.f32.mrf.mxu1 }
 0x9cc   : > { %8297 = vst [vmem:[%s14167_s2 + $0xc0] sm:$0xff] %v8233_v28  ;;  %v8234_v49 = vmax.f32 %v8170_v51, 0.0  ;;  %v8171_v60 = vadd.f32 %v14145_v36, %v8089_v39  ;;  %v8090_v48 = vmul.f32 %v14148_v57, %v7933_v21  ;;  %v7937_v62 = vadd.f32 %v7936_v27, %v14124_v43  ;;  %v14333_v27 = vpop.f32.mrf.mxu0 }
 0x9cd   : > { %v7938_v8 = vpop.f32.mrf.mxu1 }
 0x9ce   : > { %8298 = vst [vmem:[%s14167_s2 + $0xc8] sm:$0xff] %v8234_v49  ;;  %v8235_v19 = vmax.f32 %v8171_v60, 0.0  ;;  %v8172_v61 = vadd.f32 %v14157_v46, %v8090_v48  ;;  %v8091_v31 = vmul.f32 %v14140_v3, %v7937_v62  ;;  %v7939_v0 = vadd.f32 %v7938_v8, %v14126_v53 }
 0x9cf   : > { %v7942_v15 = vpop.f32.mrf.mxu1 }
 0x9d0   : > { %8299 = vst [vmem:[%s14167_s2 + $0xd0] sm:$0xff] %v8235_v19  ;;  %v8236_v35 = vmax.f32 %v8172_v61, 0.0  ;;  %v8173_v25 = vadd.f32 %v14145_v36, %v8091_v31  ;;  %v8092_v43 = vmul.f32 %v14148_v57, %v7939_v0  ;;  %v7943_v38 = vadd.f32 %v7942_v15, %v14131_v45  ;;  %v14343_v0 = vpop.f32.mrf.mxu0 }
 0x9d1   : > { %v7944_v2 = vpop.f32.mrf.mxu1 }
 0x9d2   : > { %8300 = vst [vmem:[%s14167_s2 + $0xd8] sm:$0xff] %v8236_v35  ;;  %v8237_v58 = vmax.f32 %v8173_v25, 0.0  ;;  %v8174_v11 = vadd.f32 %v14157_v46, %v8092_v43  ;;  %v8093_v13 = vmul.f32 %v14140_v3, %v7943_v38  ;;  %v7945_v53 = vadd.f32 %v7944_v2, %v14136_v54 }
 0x9d3   : > { %v7948_v47 = vpop.f32.mrf.mxu1 }
 0x9d4   : > { %8301 = vst [vmem:[%s14167_s2 + $0xe0] sm:$0xff] %v8237_v58  ;;  %v8238_v37 = vmax.f32 %v8174_v11, 0.0  ;;  %v8175_v55 = vadd.f32 %v14145_v36, %v8093_v13  ;;  %v8094_v45 = vmul.f32 %v14148_v57, %v7945_v53  ;;  %v7949_v50 = vadd.f32 %v7948_v47, %v14150_v32  ;;  %v14353_v13 = vpop.f32.mrf.mxu0 }
 0x9d5   : > { %v7950_v10 = vpop.f32.mrf.mxu1 }
 0x9d6   : > { %8302 = vst [vmem:[%s14167_s2 + $0xe8] sm:$0xff] %v8238_v37  ;;  %v8239_v29 = vmax.f32 %v8175_v55, 0.0  ;;  %v8176_v52 = vadd.f32 %v14157_v46, %v8094_v45  ;;  %v8095_v41 = vmul.f32 %v14140_v3, %v7949_v50  ;;  %v7951_v54 = vadd.f32 %v7950_v10, %v14162_v24 }
 0x9d7   : > { %v7954_v26 = vpop.f32.mrf.mxu1 }
 0x9d8   : > { %8303 = vst [vmem:[%s14167_s2 + $0xf0] sm:$0xff] %v8239_v29  ;;  %v8240_v59 = vmax.f32 %v8176_v52, 0.0  ;;  %v8177_v34 = vadd.f32 %v14145_v36, %v8095_v41  ;;  %v8096_v32 = vmul.f32 %v14148_v57, %v7951_v54  ;;  %v7955_v9 = vadd.f32 %v7954_v26, %v14173_v7  ;;  %v14363_v52 = vpop.f32.mrf.mxu0 }
 0x9d9   : > { %v7956_v1 = vpop.f32.mrf.mxu1 }
 0x9da   : > { %8304 = vst [vmem:[%s14167_s2 + $0xf8] sm:$0xff] %v8240_v59  ;;  %v8241_v6 = vmax.f32 %v8177_v34, 0.0  ;;  %v8178_v40 = vadd.f32 %v14157_v46, %v8096_v32  ;;  %v8097_v30 = vmul.f32 %v14140_v3, %v7955_v9  ;;  %v7957_v24 = vadd.f32 %v7956_v1, %v14183_v42 }
 0x9db   : > { %v7960_v28 = vpop.f32.mrf.mxu1 }
 0x9dc   : > { %8305 = vst [vmem:[%s14167_s2 + $0x100] sm:$0xff] %v8241_v6  ;;  %v8242_v51 = vmax.f32 %v8178_v40, 0.0  ;;  %v8179_v39 = vadd.f32 %v14145_v36, %v8097_v30  ;;  %v8098_v7 = vmul.f32 %v14148_v57, %v7957_v24  ;;  %v7961_v21 = vadd.f32 %v7960_v28, %v14193_v18  ;;  %v14373_v6 = vpop.f32.mrf.mxu0 }
 0x9dd   : > { %v7962_v49 = vpop.f32.mrf.mxu1 }
 0x9de   : > { %8306 = vst [vmem:[%s14167_s2 + $0x108] sm:$0xff] %v8242_v51  ;;  %v8243_v60 = vmax.f32 %v8179_v39, 0.0  ;;  %v8180_v48 = vadd.f32 %v14157_v46, %v8098_v7  ;;  %v8099_v62 = vmul.f32 %v14140_v3, %v7961_v21  ;;  %v7963_v42 = vadd.f32 %v7962_v49, %v14203_v23  ;;  %v7759_v49 = vpop.f32.mrf.mxu0 }
 0x9df   : > { %v7966_v8 = vpop.f32.mrf.mxu1 }
 0x9e0   : > { %8307 = vst [vmem:[%s14167_s2 + $0x110] sm:$0xff] %v8243_v60  ;;  %v8244_v19 = vmax.f32 %v8180_v48, 0.0  ;;  %v8181_v61 = vadd.f32 %v14145_v36, %v8099_v62  ;;  %v8100_v18 = vmul.f32 %v14148_v57, %v7963_v42  ;;  %v7967_v31 = vadd.f32 %v7966_v8, %v14213_v14 }
 0x9e1   : > { %v7968_v15 = vpop.f32.mrf.mxu1 }
 0x9e2   : > { %8308 = vst [vmem:[%s14167_s2 + $0x118] sm:$0xff] %v8244_v19  ;;  %v8245_v35 = vmax.f32 %v8181_v61, 0.0  ;;  %v8182_v25 = vadd.f32 %v14157_v46, %v8100_v18  ;;  %v8101_v43 = vmul.f32 %v14140_v3, %v7967_v31  ;;  %v7969_v23 = vadd.f32 %v7968_v15, %v14223_v12  ;;  %v7763_v31 = vpop.f32.mrf.mxu0 }
 0x9e3   : > { %v7972_v38 = vpop.f32.mrf.mxu1 }
 0x9e4   : > { %8309 = vst [vmem:[%s14167_s2 + $0x120] sm:$0xff] %v8245_v35  ;;  %v8246_v2 = vmax.f32 %v8182_v25, 0.0  ;;  %v8183_v58 = vadd.f32 %v14145_v36, %v8101_v43  ;;  %v8102_v14 = vmul.f32 %v14148_v57, %v7969_v23  ;;  %v7973_v11 = vadd.f32 %v7972_v38, %v14233_v33 }
 0x9e5   : > { %v7974_v53 = vpop.f32.mrf.mxu1 }
 0x9e6   : > { %8310 = vst [vmem:[%s14167_s2 + $0x128] sm:$0xff] %v8246_v2  ;;  %v8247_v47 = vmax.f32 %v8183_v58, 0.0  ;;  %v8184_v37 = vadd.f32 %v14157_v46, %v8102_v14  ;;  %v8103_v55 = vmul.f32 %v14140_v3, %v7973_v11  ;;  %v7975_v12 = vadd.f32 %v7974_v53, %v14243_v56  ;;  %v7765_v14 = vpop.f32.mrf.mxu0 }
 0x9e7   : > { %v7978_v45 = vpop.f32.mrf.mxu1 }
 0x9e8   : > { %8311 = vst [vmem:[%s14167_s2 + $0x130] sm:$0xff] %v8247_v47  ;;  %v8248_v50 = vmax.f32 %v8184_v37, 0.0  ;;  %v8185_v10 = vadd.f32 %v14145_v36, %v8103_v55  ;;  %v8104_v33 = vmul.f32 %v14148_v57, %v7975_v12  ;;  %v7979_v29 = vadd.f32 %v7978_v45, %v14253_v44 }
 0x9e9   : > { %v7980_v41 = vpop.f32.mrf.mxu1 }
 0x9ea   : > { %8312 = vst [vmem:[%s14167_s2 + $0x138] sm:$0xff] %v8248_v50  ;;  %v8249_v54 = vmax.f32 %v8185_v10, 0.0  ;;  %v8186_v26 = vadd.f32 %v14157_v46, %v8104_v33  ;;  %v8105_v59 = vmul.f32 %v14140_v3, %v7979_v29  ;;  %v7981_v56 = vadd.f32 %v7980_v41, %v14263_v22  ;;  %v7769_v10 = vpop.f32.mrf.mxu0 }
 0x9eb   : > { %v7984_v34 = vpop.f32.mrf.mxu1 }
 0x9ec   : > { %8313 = vst [vmem:[%s14167_s2 + $0x140] sm:$0xff] %v8249_v54  ;;  %v8250_v32 = vmax.f32 %v8186_v26, 0.0  ;;  %v8187_v9 = vadd.f32 %v14145_v36, %v8105_v59  ;;  %v8106_v44 = vmul.f32 %v14148_v57, %v7981_v56  ;;  %v7985_v1 = vadd.f32 %v7984_v34, %v14273_v17 }
 0x9ed   : > { %v7986_v40 = vpop.f32.mrf.mxu1 }
 0x9ee   : > { %8314 = vst [vmem:[%s14167_s2 + $0x148] sm:$0xff] %v8250_v32  ;;  %v8251_v30 = vmax.f32 %v8187_v9, 0.0  ;;  %v8188_v24 = vadd.f32 %v14157_v46, %v8106_v44  ;;  %v8107_v28 = vmul.f32 %v14140_v3, %v7985_v1  ;;  %v7987_v22 = vadd.f32 %v7986_v40, %v14283_v16  ;;  %v7771_v32 = vpop.f32.mrf.mxu0 }
 0x9ef   : > { %v7990_v51 = vpop.f32.mrf.mxu1 }
 0x9f0   : > { %8315 = vst [vmem:[%s14167_s2 + $0x150] sm:$0xff] %v8251_v30  ;;  %v8252_v39 = vmax.f32 %v8188_v24, 0.0  ;;  %v8189_v7 = vadd.f32 %v14145_v36, %v8107_v28  ;;  %v8108_v17 = vmul.f32 %v14148_v57, %v7987_v22  ;;  %v7991_v21 = vadd.f32 %v7990_v51, %v14293_v20 }
 0x9f1   : > { %v7992_v60 = vpop.f32.mrf.mxu1 }
 0x9f2   : > { %8316 = vst [vmem:[%s14167_s2 + $0x158] sm:$0xff] %v8252_v39  ;;  %v8253_v48 = vmax.f32 %v8189_v7, 0.0  ;;  %v8190_v62 = vadd.f32 %v14157_v46, %v8108_v17  ;;  %v8109_v42 = vmul.f32 %v14140_v3, %v7991_v21  ;;  %v7993_v16 = vadd.f32 %v7992_v60, %v14303_v63 }
 0x9f3   : > { %v7996_v8 = vpop.f32.mrf.mxu1 }
 0x9f4   : > { %8317 = vst [vmem:[%s14167_s2 + $0x160] sm:$0xff] %v8253_v48  ;;  %v8254_v19 = vmax.f32 %v8190_v62, 0.0  ;;  %v8191_v61 = vadd.f32 %v14145_v36, %v8109_v42  ;;  %v8110_v18 = vmul.f32 %v14148_v57, %v7993_v16  ;;  %v7997_v20 = vadd.f32 %v7996_v8, %v14313_v4 }
 0x9f5   : > { %v7998_v15 = vpop.f32.mrf.mxu1 }
 0x9f6   : > { %8318 = vst [vmem:[%s14167_s2 + $0x168] sm:$0xff] %v8254_v19  ;;  %v8255_v35 = vmax.f32 %v8191_v61, 0.0  ;;  %v8192_v25 = vadd.f32 %v14157_v46, %v8110_v18  ;;  %v8111_v43 = vmul.f32 %v14140_v3, %v7997_v20  ;;  %v7999_v63 = vadd.f32 %v7998_v15, %v14323_v5 }
 0x9f7   : > { %v8002_v23 = vpop.f32.mrf.mxu1 }
 0x9f8   : > { %8319 = vst [vmem:[%s14167_s2 + $0x170] sm:$0xff] %v8255_v35  ;;  %v8256_v38 = vmax.f32 %v8192_v25, 0.0  ;;  %v8193_v2 = vadd.f32 %v14145_v36, %v8111_v43  ;;  %v8112_v58 = vmul.f32 %v14148_v57, %v7999_v63  ;;  %v8003_v4 = vadd.f32 %v8002_v23, %v14333_v27 }
 0x9f9   : > { %v8004_v11 = vpop.f32.mrf.mxu1 }
 0x9fa   : > { %8320 = vst [vmem:[%s14167_s2 + $0x178] sm:$0xff] %v8256_v38  ;;  %v8257_v53 = vmax.f32 %v8193_v2, 0.0  ;;  %v8194_v47 = vadd.f32 %v14157_v46, %v8112_v58  ;;  %v8113_v37 = vmul.f32 %v14140_v3, %v8003_v4  ;;  %v8005_v5 = vadd.f32 %v8004_v11, %v14343_v0 }
 0x9fb   : > { %v8008_v55 = vpop.f32.mrf.mxu1 }
 0x9fc   : > { %8321 = vst [vmem:[%s14167_s2 + $0x180] sm:$0xff] %v8257_v53  ;;  %v8258_v12 = vmax.f32 %v8194_v47, 0.0  ;;  %v8195_v45 = vadd.f32 %v14145_v36, %v8113_v37  ;;  %v8114_v50 = vmul.f32 %v14148_v57, %v8005_v5  ;;  %v8009_v27 = vadd.f32 %v8008_v55, %v14353_v13 }
 0x9fd   : > { %v8010_v33 = vpop.f32.mrf.mxu1 }
 0x9fe   : > { %8322 = vst [vmem:[%s14167_s2 + $0x188] sm:$0xff] %v8258_v12  ;;  %v8259_v29 = vmax.f32 %v8195_v45, 0.0  ;;  %v8196_v41 = vadd.f32 %v14157_v46, %v8114_v50  ;;  %v8115_v54 = vmul.f32 %v14140_v3, %v8009_v27  ;;  %v8011_v0 = vadd.f32 %v8010_v33, %v14363_v52 }
 0x9ff   : > { %v8014_v26 = vpop.f32.mrf.mxu1 }
 0xa00   : > { %8323 = vst [vmem:[%s14167_s2 + $0x190] sm:$0xff] %v8259_v29  ;;  %v8260_v59 = vmax.f32 %v8196_v41, 0.0  ;;  %v8197_v56 = vadd.f32 %v14145_v36, %v8115_v54  ;;  %v8116_v34 = vmul.f32 %v14148_v57, %v8011_v0  ;;  %v8015_v13 = vadd.f32 %v8014_v26, %v14373_v6  ;;  %v7775_v6 = vpop.f32.mrf.mxu0 }
 0xa01   : > { %v8016_v9 = vpop.f32.mrf.mxu1 }
 0xa02   : > { %8324 = vst [vmem:[%s14167_s2 + $0x198] sm:$0xff] %v8260_v59  ;;  %v8261_v44 = vmax.f32 %v8197_v56, 0.0  ;;  %v8198_v1 = vadd.f32 %v14157_v46, %v8116_v34  ;;  %v8117_v40 = vmul.f32 %v14140_v3, %v8015_v13  ;;  %v8017_v52 = vadd.f32 %v8016_v9, %v7759_v49  ;;  %v7777_v8 = vpop.f32.mrf.mxu0 }
 0xa03   : > { %v8020_v30 = vpop.f32.mrf.mxu1 }
 0xa04   : > { %8325 = vst [vmem:[%s14167_s2 + $0x1a0] sm:$0xff] %v8261_v44  ;;  %v8262_v24 = vmax.f32 %v8198_v1, 0.0  ;;  %v8199_v28 = vadd.f32 %v14145_v36, %v8117_v40  ;;  %v8118_v22 = vmul.f32 %v14148_v57, %v8017_v52  ;;  %v8021_v51 = vadd.f32 %v8020_v30, %v7763_v31  ;;  %v7781_v23 = vpop.f32.mrf.mxu0 }
 0xa05   : > { %v8022_v39 = vpop.f32.mrf.mxu1 }
 0xa06   : > { %8326 = vst [vmem:[%s14167_s2 + $0x1a8] sm:$0xff] %v8262_v24  ;;  %v8263_v7 = vmax.f32 %v8199_v28, 0.0  ;;  %v8200_v17 = vadd.f32 %v14157_v46, %v8118_v22  ;;  %v8119_v21 = vmul.f32 %v14140_v3, %v8021_v51  ;;  %v8023_v60 = vadd.f32 %v8022_v39, %v7765_v14  ;;  %v7783_v55 = vpop.f32.mrf.mxu0 }
 0xa07   : > { %v8026_v49 = vpop.f32.mrf.mxu1 }
 0xa08   : > { %8327 = vst [vmem:[%s14167_s2 + $0x1b0] sm:$0xff] %v8263_v7  ;;  %v8264_v48 = vmax.f32 %v8200_v17, 0.0  ;;  %v8201_v62 = vadd.f32 %v14145_v36, %v8119_v21  ;;  %v8120_v42 = vmul.f32 %v14148_v57, %v8023_v60  ;;  %v8027_v16 = vadd.f32 %v8026_v49, %v7769_v10 }
 0xa09   : > { %v8028_v19 = vpop.f32.mrf.mxu1 }
 0xa0a   : > { %8328 = vst [vmem:[%s14167_s2 + $0x1b8] sm:$0xff] %v8264_v48  ;;  %v8265_v61 = vmax.f32 %v8201_v62, 0.0  ;;  %v8202_v18 = vadd.f32 %v14157_v46, %v8120_v42  ;;  %v8121_v20 = vmul.f32 %v14140_v3, %v8027_v16  ;;  %v8029_v31 = vadd.f32 %v8028_v19, %v7771_v32 }
 0xa0b   : > { %v8032_v15 = vpop.f32.mrf.mxu1 }
 0xa0c   : > { %8329 = vst [vmem:[%s14167_s2 + $0x1c0] sm:$0xff] %v8265_v61  ;;  %v8266_v35 = vmax.f32 %v8202_v18, 0.0  ;;  %v8203_v25 = vadd.f32 %v14145_v36, %v8121_v20  ;;  %v8122_v43 = vmul.f32 %v14148_v57, %v8029_v31  ;;  %v8033_v63 = vadd.f32 %v8032_v15, %v7775_v6 }
 0xa0d   : > { %v8034_v38 = vpop.f32.mrf.mxu1 }
 0xa0e   : > { %8330 = vst [vmem:[%s14167_s2 + $0x1c8] sm:$0xff] %v8266_v35  ;;  %v8267_v2 = vmax.f32 %v8203_v25, 0.0  ;;  %v8204_v58 = vadd.f32 %v14157_v46, %v8122_v43  ;;  %v8123_v4 = vmul.f32 %v14140_v3, %v8033_v63  ;;  %v8035_v14 = vadd.f32 %v8034_v38, %v7777_v8 }
 0xa0f   : > { %v8038_v11 = vpop.f32.mrf.mxu1 }
 0xa10   : > { %8331 = vst [vmem:[%s14167_s2 + $0x1d0] sm:$0xff] %v8267_v2  ;;  %v8268_v53 = vmax.f32 %v8204_v58, 0.0  ;;  %v8205_v47 = vadd.f32 %v14145_v36, %v8123_v4  ;;  %v8124_v37 = vmul.f32 %v14148_v57, %v8035_v14  ;;  %v8039_v5 = vadd.f32 %v8038_v11, %v7781_v23 }
 0xa11   : > { %v8040_v12 = vpop.f32.mrf.mxu1 }
 0xa12   : > { %8332 = vst [vmem:[%s14167_s2 + $0x1d8] sm:$0xff] %v8268_v53  ;;  %v8269_v45 = vmax.f32 %v8205_v47, 0.0  ;;  %v8206_v50 = vadd.f32 %v14157_v46, %v8124_v37  ;;  %v8125_v27 = vmul.f32 %v14140_v3, %v8039_v5  ;;  %v8041_v10 = vadd.f32 %v8040_v12, %v7783_v55 }
 0xa14   : > { %8333 = vst [vmem:[%s14167_s2 + $0x1e0] sm:$0xff] %v8269_v45  ;;  %v8270_v33 = vmax.f32 %v8206_v50, 0.0  ;;  %v8207_v29 = vadd.f32 %v14145_v36, %v8125_v27  ;;  %v8126_v41 = vmul.f32 %v14148_v57, %v8041_v10 }
 0xa16   : > { %8334 = vst [vmem:[%s14167_s2 + $0x1e8] sm:$0xff] %v8270_v33  ;;  %v8271_v54 = vmax.f32 %v8207_v29, 0.0  ;;  %v8208_v0 = vadd.f32 %v14157_v46, %v8126_v41 }
 0xa18   : > { %8335 = vst [vmem:[%s14167_s2 + $0x1f0] sm:$0xff] %v8271_v54  ;;  %v8272_v3 = vmax.f32 %v8208_v0, 0.0 }
 0xa1a   : > { %8336 = vst [vmem:[%s14167_s2 + $0x1f8] sm:$0xff] %v8272_v3 }
 0xa1b   : > { %10027 = shalt.err (!%p10024_p11)
}
 0xa1c   : > { %s10028_s20 = scalar_lea.hbm %s14452_s21, 8192  ;;  %s10032_s2 = scalar_lea.hbm %s15119_s27, 16384 }
 0xa1d   : > { %p10029_p8 = scmp.ne.s32.totalorder %s14452_s21, %s10028_s20  ;;  %p10033_p10 = scmp.lt.s32.totalorder %s14452_s21, %s15119_s27 }
 0xa1e   : > { %p10034_p0 = scmp.lt.s32.totalorder %s10032_s2, %s10028_s20 }
 0xa1f   : > { %p10030_p1 = pnand %p10029_p8, %p10246_p5 }
 0xa20   : > { %p10035_p6 = por %p10034_p0, %p10033_p10 }
 0xa21   : > { %p10031_p12 = pneg %p10030_p1 }
 0xa23   : > { %p10036_p9 = pnand %p10035_p6, %p10031_p12 }
 0xa25   : > { %10039 = shalt.err (!%p10036_p9)
}
 0xa26   : > { %s10106_s19 = smov 256   ;;  %s10107_s0 = smov 16  }
 0xa27   : > { %9608 = dma.vmem_to_hbm [thread:$0]  (%p10246_p5), %s14454_s23, 8192, %s14452_s21, %s14460_s1, %s10106_s19, %s10106_s19, %s10107_s0  }
 0xa28 PF: > { %s15120_s26 = sld [smem:[#allocation22_spill]] }
 0xa29   : > { %s15121_s6 = sld [smem:[#allocation20_spill]] }
 0xa2a   : > { %s15122_s8 = sld [smem:[#allocation25_spill]] }
 0xa2e   : > { %p9650_p3 = scmp.ge.s32.totalorder %s15120_s26, 2 }
 0xa2f   : > { %s8366_s25 = sand.u32 1, %s15121_s6  }
 0xa30   : > { %p15123_p2 = scmp.ne.s32.totalorder %s15122_s8, 0  ;;  %s8367_s20 = scalar_lea.sflag [#allocation4], %s8366_s25 }
 0xa32   : > { %p9633_p4 = pnand %p9650_p3, %p15123_p2 }
 0xa34   : > { %p9634_p13 = pneg %p9633_p4 }
 0xa36   : > { %10073 = dma.done.wait (%p9634_p13), %s8367_s20, 8192  }
 0xa37   : > { %10075 = vsyncadd (%p9634_p13), %s8367_s20, 4294959104  ;;  %s15124_s21 = sld [smem:[#allocation23_spill]]  ;;  %s15127_s0 = smov %s10082_s30 }
 0xa38   : > { %s15125_s29 = sld [smem:[#allocation21_spill]] }
 0xa39   : > { %s15126_s20 = sld [smem:[#allocation24_spill]] }
 0xa3d   : > { %p33_p7 = scmp.ge.s32.totalorder %s15124_s21, 4  }
 0xa3e   : > { %s15128_s30 = smov %s15125_s29 }
 0xa3f   :  { %35 = sbr.rel (!%p33_p7) target bundleno = 15 (0xf), region = 173 }
 0xa44   :  { %8372 = vsyncpa [#allocation3], 1 }
 0xa45   :  { %8374 = vsyncpa [#allocation3 + $0x1], 1 }
 0xa46   :  { %8375 = vsyncpa [#allocation6], 1 }
 0xa47   :  { %8376 = vsyncpa [#allocation9], 1 }
 0xa48   :  { %8377 = vsyncpa [#allocation12], 1 }
 0xa49   :  { %8378 = vsyncpa [#allocation4], 1 }
 0xa4a   :  { %8380 = vsyncpa [#allocation4 + $0x1], 1 }

</bundles_post_ra>
